<compile_context>
chip_gen: v5e
topology: v5e:2x2
jax: 0.10.0
libtpu: 0.0.40
codegen_flags: <defaults>
</compile_context>

<pallas_src>
import functools

import jax
import jax.numpy as jnp
import numpy as np
from jax import lax
from jax.experimental import pallas as pl
from jax.experimental.pallas import tpu as pltpu


def net_kernel(xcol_ref, convw_ref, convb_ref,
               w0_ref, b0_ref, whh0_ref,
               w1_ref, b1_ref, whh1_ref,
               scores_ref, fc1w_ref, fc1b_ref, fc2w_ref, fc2b_ref,
               out_ref,
               gx_scr, l1_scr,
               *, B_pad, H, T_seq):
    H3 = 3 * H
    H4 = 4 * H
    H8 = 8 * H

    # ---------------- Conv1d (im2col, single matmul) + hoisted layer-0 input projections ----------
    conv_out = (jnp.dot(xcol_ref[...], convw_ref[...],
                        preferred_element_type=jnp.float32) + convb_ref[...])
    gx_scr[...] = (jnp.dot(conv_out, w0_ref[...],
                           preferred_element_type=jnp.float32) + b0_ref[...])

    # ---------------- LSTM cell, one direction; gate column order is [i, f, o, g] -----------------
    def cell_dir(gates, c):
        s = jax.nn.sigmoid(gates[:, 0:H3])            # i | f | o  (contiguous, no redundant tanh)
        g = jnp.tanh(gates[:, H3:H4])                 # g only
        c_new = s[:, H:2 * H] * c + s[:, 0:H] * g
        h_new = s[:, 2 * H:H3] * jnp.tanh(c_new)
        return h_new, c_new

    zeros = jnp.zeros((B_pad, H), jnp.float32)
    unroll = True if T_seq <= 32 else 8               # full unroll only for short sequences

    # ---------------- Layer 0: fwd + bwd fused via block-diagonal W_hh (one matmul / step) --------
    whh0 = whh0_ref[...]                              # (2H, 8H) block diagonal

    def body0(step, carry):
        hf, hb, cf, cb = carry
        tb = T_seq - 1 - step
        rf = pl.multiple_of(step * B_pad, 8)
        rb = pl.multiple_of(tb * B_pad, 8)
        hcat = jnp.concatenate([hf, hb], axis=1)                          # (B_pad, 2H)
        g8 = jnp.dot(hcat, whh0, preferred_element_type=jnp.float32)      # (B_pad, 8H)
        gf = g8[:, 0:H4] + gx_scr[pl.ds(rf, B_pad), 0:H4]
        gb = g8[:, H4:H8] + gx_scr[pl.ds(rb, B_pad), H4:H8]
        hf, cf = cell_dir(gf, cf)
        hb, cb = cell_dir(gb, cb)
        l1_scr[pl.ds(rf, B_pad), 0:H] = hf
        l1_scr[pl.ds(rb, B_pad), H:2 * H] = hb
        return hf, hb, cf, cb

    lax.fori_loop(0, T_seq, body0, (zeros, zeros, zeros, zeros), unroll=unroll)

    # ---------------- Hoisted layer-1 input projections (both directions, one matmul) -------------
    gx_scr[...] = (jnp.dot(l1_scr[...], w1_ref[...],
                           preferred_element_type=jnp.float32) + b1_ref[...])

    # ---------------- Layer 1: fused recurrence with attention pooling accumulated ----------------
    whh1 = whh1_ref[...]                              # (2H, 8H) block diagonal

    def body1(step, carry):
        hf, hb, cf, cb, pf, pb = carry
        tb = T_seq - 1 - step
        rf = pl.multiple_of(step * B_pad, 8)
        rb = pl.multiple_of(tb * B_pad, 8)
        hcat = jnp.concatenate([hf, hb], axis=1)
        g8 = jnp.dot(hcat, whh1, preferred_element_type=jnp.float32)
        gf = g8[:, 0:H4] + gx_scr[pl.ds(rf, B_pad), 0:H4]
        gb = g8[:, H4:H8] + gx_scr[pl.ds(rb, B_pad), H4:H8]
        hf, cf = cell_dir(gf, cf)
        hb, cb = cell_dir(gb, cb)
        pf = pf + scores_ref[step] * hf               # SMEM scalar * vreg broadcast
        pb = pb + scores_ref[tb] * hb
        return hf, hb, cf, cb, pf, pb

    _, _, _, _, pooled_f, pooled_b = lax.fori_loop(
        0, T_seq, body1, (zeros, zeros, zeros, zeros, zeros, zeros), unroll=unroll)

    # ---------------- FC head: Linear -> (Dropout: identity in eval) -> ReLU -> Linear ------------
    pooled = jnp.concatenate([pooled_f, pooled_b], axis=1)                # (B_pad, 2H)
    h1 = (jnp.dot(pooled, fc1w_ref[...], preferred_element_type=jnp.float32)
          + fc1b_ref[...])
    h1 = jnp.maximum(h1, 0.0)
    out_ref[...] = (jnp.dot(h1, fc2w_ref[...], preferred_element_type=jnp.float32)
                    + fc2b_ref[...])


def net_forward(x, params, *, kernel_size, stride, lstm_hidden_dim):
    """x: (B, T_in, C) float32 padded batch (all sequences full length)."""
    B, T_in, C = x.shape
    H = lstm_hidden_dim
    K = kernel_size
    T_seq = (T_in - K) // stride                       # == params.max_seq_len
    Hout = params['fc1_w'].shape[0]
    V = params['fc2_w'].shape[0]
    B_pad = max(8, ((B + 7) // 8) * 8)                 # full-sublane rows in every per-step access

    x = x.astype(jnp.float32)
    x_pad = jnp.zeros((B_pad, T_in, C), jnp.float32).at[:B].set(x)

    # im2col (layout plumbing only): row (t*B_pad + b) is the flattened (K, C) window of frame t.
    cols = jnp.stack([x_pad[:, t * stride:t * stride + K, :].reshape(B_pad, K * C)
                      for t in range(T_seq)], axis=0)               # (T_seq, B_pad, K*C)
    x_col = cols.reshape(T_seq * B_pad, K * C)

    conv_w_col = jnp.transpose(params['conv_w'], (2, 1, 0)).reshape(K * C, C)
    conv_b = params['conv_b'].reshape(1, C)

    def reorder_gates(w):
        # last-dim gate blocks [i, f, g, o] (PyTorch) -> [i, f, o, g]
        return jnp.concatenate([w[..., 0:2 * H], w[..., 3 * H:4 * H], w[..., 2 * H:3 * H]],
                               axis=-1)

    def wih(name):
        return reorder_gates(params[f'w_ih_{name}'].T)               # (in_dim, 4H)

    def whh(name):
        return reorder_gates(params[f'w_hh_{name}'].T)               # (H, 4H)

    def bias(name):
        return reorder_gates((params[f'b_ih_{name}'] + params[f'b_hh_{name}']).reshape(1, 4 * H))

    def blkdiag(wf, wb):
        z = jnp.zeros((H, 4 * H), jnp.float32)
        return jnp.concatenate([jnp.concatenate([wf, z], axis=1),
                                jnp.concatenate([z, wb], axis=1)], axis=0)   # (2H, 8H)

    w0cat = jnp.concatenate([wih('l0f'), wih('l0b')], axis=1)        # (C, 8H)
    b0cat = jnp.concatenate([bias('l0f'), bias('l0b')], axis=1)      # (1, 8H)
    w1cat = jnp.concatenate([wih('l1f'), wih('l1b')], axis=1)        # (2H, 8H)
    b1cat = jnp.concatenate([bias('l1f'), bias('l1b')], axis=1)      # (1, 8H)
    whh0_blk = blkdiag(whh('l0f'), whh('l0b'))                       # (2H, 8H)
    whh1_blk = blkdiag(whh('l1f'), whh('l1b'))                       # (2H, 8H)

    # Attention softmax depends only on parameters -> precompute, pass via SMEM.
    scores = jax.nn.softmax(params['attn_w'].astype(jnp.float32))    # (T_seq,)

    VMEM = pl.BlockSpec(memory_space=pltpu.MemorySpace.VMEM)
    SMEM = pl.BlockSpec(memory_space=pltpu.MemorySpace.SMEM)
    args_and_specs = [
        (x_col, VMEM), (conv_w_col, VMEM), (conv_b, VMEM),
        (w0cat, VMEM), (b0cat, VMEM), (whh0_blk, VMEM),
        (w1cat, VMEM), (b1cat, VMEM), (whh1_blk, VMEM),
        (scores, SMEM),
        (params['fc1_w'].T, VMEM), (params['fc1_b'].reshape(1, Hout), VMEM),
        (params['fc2_w'].T, VMEM), (params['fc2_b'].reshape(1, V), VMEM),
    ]
    inputs = [a for a, _ in args_and_specs]
    in_specs = [s for _, s in args_and_specs]

    kernel = functools.partial(net_kernel, B_pad=B_pad, H=H, T_seq=T_seq)
    out = pl.pallas_call(
        kernel,
        out_shape=jax.ShapeDtypeStruct((B_pad, V), jnp.float32),
        in_specs=in_specs,
        out_specs=pl.BlockSpec(memory_space=pltpu.MemorySpace.VMEM),
        scratch_shapes=[
            pltpu.VMEM((T_seq * B_pad, 8 * H), jnp.float32),   # hoisted gate projections (layer 0, then 1)
            pltpu.VMEM((T_seq * B_pad, 2 * H), jnp.float32),   # layer-0 outputs [fwd | bwd]
        ],
        # Explicit VMEM budget: trivially small at these shapes; safely below v7x's 64 MiB physical.
        compiler_params=pltpu.CompilerParams(vmem_limit_bytes=48 * 1024 * 1024),
    )(*inputs)
    return out[:B]


# ---------------------------------------------------------------------------
# Deterministic parameter init (PyTorch-convention shapes) and a pure-JAX reference.
# ---------------------------------------------------------------------------
def init_params(key, *, C, K, H, T_seq, Hout, V):
    keys = iter(jax.random.split(key, 32))

    def nrm(shape, scale=0.1):
        return (scale * jax.random.normal(next(keys), shape)).astype(jnp.float32)

    p = {
        'conv_w': nrm((C, C, K)),          # (C_out, C_in, K)
        'conv_b': nrm((C,)),
        'attn_w': nrm((T_seq,), scale=1.0),
        'fc1_w': nrm((Hout, 2 * H)),
        'fc1_b': nrm((Hout,)),
        'fc2_w': nrm((V, Hout)),
        'fc2_b': nrm((V,)),
    }
    in_dims = {'l0f': C, 'l0b': C, 'l1f': 2 * H, 'l1b': 2 * H}
    for name, d in in_dims.items():
        p[f'w_ih_{name}'] = nrm((4 * H, d))
        p[f'w_hh_{name}'] = nrm((4 * H, H))
        p[f'b_ih_{name}'] = nrm((4 * H,))
        p[f'b_hh_{name}'] = nrm((4 * H,))
    return p


def ref_forward(x, p, *, kernel_size, stride, H):
    B, T_in, C = x.shape
    T_seq = (T_in - kernel_size) // stride
    windows = jnp.stack([x[:, t * stride:t * stride + kernel_size, :]
                         for t in range(T_seq)], axis=1)            # (B, T_seq, K, C)
    conv = jnp.einsum('btkc,ock->bto', windows, p['conv_w']) + p['conv_b']

    def lstm_dir(inp, name, reverse):
        w_ih, w_hh = p[f'w_ih_{name}'], p[f'w_hh_{name}']
        b = p[f'b_ih_{name}'] + p[f'b_hh_{name}']
        T = inp.shape[1]
        h = jnp.zeros((B, H), jnp.float32)
        c = jnp.zeros((B, H), jnp.float32)
        outs = [None] * T
        order = range(T - 1, -1, -1) if reverse else range(T)
        for t in order:
            g = inp[:, t, :] @ w_ih.T + h @ w_hh.T + b
            i = jax.nn.sigmoid(g[:, :H]); f = jax.nn.sigmoid(g[:, H:2 * H])
            gg = jnp.tanh(g[:, 2 * H:3 * H]); o = jax.nn.sigmoid(g[:, 3 * H:])
            c = f * c + i * gg
            h = o * jnp.tanh(c)
            outs[t] = h
        return jnp.stack(outs, axis=1)

    l1 = jnp.concatenate([lstm_dir(conv, 'l0f', False),
                          lstm_dir(conv, 'l0b', True)], axis=-1)
    l2 = jnp.concatenate([lstm_dir(l1, 'l1f', False),
                          lstm_dir(l1, 'l1b', True)], axis=-1)
    scores = jax.nn.softmax(p['attn_w'])
    pooled = jnp.einsum('btd,t->bd', l2, scores)
    h1 = jnp.maximum(pooled @ p['fc1_w'].T + p['fc1_b'], 0.0)
    return h1 @ p['fc2_w'].T + p['fc2_b']


if __name__ == "__main__":
    # Small shapes consistent with the module's params
    B, C, T_IN, K, STRIDE = 2, 16, 32, 4, 2      # speech_dim=16, max_mfcc_seq_length=32
    H, HOUT, V = 32, 32, 8                       # lstm_hidden_dim, outputHiddenDim, vocab_size
    T_SEQ = (T_IN - K) // STRIDE                 # params.max_seq_len = 14

    key = jax.random.PRNGKey(0)
    pkey, xkey = jax.random.split(key)
    params = init_params(pkey, C=C, K=K, H=H, T_seq=T_SEQ, Hout=HOUT, V=V)
    x = jax.random.normal(xkey, (B, T_IN, C), dtype=jnp.float32)

    out = net_forward(x, params, kernel_size=K, stride=STRIDE, lstm_hidden_dim=H)
    out = jax.block_until_ready(out)
    assert out.shape == (B, V)

    ref = jax.block_until_ready(
        ref_forward(x, params, kernel_size=K, stride=STRIDE, H=H))
    np.testing.assert_allclose(np.asarray(out), np.asarray(ref), rtol=2e-3, atol=2e-3)

    print("KERNEL_OK")
</pallas_src>

<mosaic_0001>
module attributes {stable_mosaic.version = 11 : i64} {
  func.func @net_kernel(%arg0: memref<112x64xf32, #tpu.memory_space<vmem>>, %arg1: memref<64x16xf32, #tpu.memory_space<vmem>>, %arg2: memref<1x16xf32, #tpu.memory_space<vmem>>, %arg3: memref<16x256xf32, #tpu.memory_space<vmem>>, %arg4: memref<1x256xf32, #tpu.memory_space<vmem>>, %arg5: memref<64x256xf32, #tpu.memory_space<vmem>>, %arg6: memref<64x256xf32, #tpu.memory_space<vmem>>, %arg7: memref<1x256xf32, #tpu.memory_space<vmem>>, %arg8: memref<64x256xf32, #tpu.memory_space<vmem>>, %arg9: memref<14xf32, #tpu.memory_space<smem>>, %arg10: memref<64x32xf32, #tpu.memory_space<vmem>>, %arg11: memref<1x32xf32, #tpu.memory_space<vmem>>, %arg12: memref<32x8xf32, #tpu.memory_space<vmem>>, %arg13: memref<1x8xf32, #tpu.memory_space<vmem>>, %arg14: memref<8x8xf32, #tpu.memory_space<vmem>>, %arg15: memref<112x256xf32, #tpu.memory_space<vmem>>, %arg16: memref<112x64xf32, #tpu.memory_space<vmem>>) attributes {dimension_semantics = [], scalar_prefetch = 0 : i64, scratch_operands = 2 : i64, tpu.core_type = #tpu.core_type<tc>} {
    %c0 = arith.constant 0 : index
    %c0_0 = arith.constant 0 : index
    %0 = vector.load %arg0[%c0, %c0_0] : memref<112x64xf32, #tpu.memory_space<vmem>>, vector<112x64xf32>
    %c0_1 = arith.constant 0 : index
    %c0_2 = arith.constant 0 : index
    %1 = vector.load %arg1[%c0_1, %c0_2] : memref<64x16xf32, #tpu.memory_space<vmem>>, vector<64x16xf32>
    %cst = arith.constant dense<0.000000e+00> : vector<112x16xf32>
    %2 = tpu.matmul %0, %1, %cst {dimension_numbers = #tpu.dot_dimension_numbers<[1], [0], [0], [1], [0, 0, 1, 1], [], []>} : vector<112x64xf32>, vector<64x16xf32>, vector<112x16xf32> -> vector<112x16xf32>
    %c0_3 = arith.constant 0 : index
    %c0_4 = arith.constant 0 : index
    %3 = vector.load %arg2[%c0_3, %c0_4] : memref<1x16xf32, #tpu.memory_space<vmem>>, vector<1x16xf32>
    %4 = vector.broadcast %3 : vector<1x16xf32> to vector<112x16xf32>
    %5 = arith.addf %2, %4 : vector<112x16xf32>
    %c0_5 = arith.constant 0 : index
    %c0_6 = arith.constant 0 : index
    %6 = vector.load %arg3[%c0_5, %c0_6] : memref<16x256xf32, #tpu.memory_space<vmem>>, vector<16x256xf32>
    %cst_7 = arith.constant dense<0.000000e+00> : vector<112x256xf32>
    %7 = tpu.matmul %5, %6, %cst_7 {dimension_numbers = #tpu.dot_dimension_numbers<[1], [0], [0], [1], [0, 0, 1, 1], [], []>} : vector<112x16xf32>, vector<16x256xf32>, vector<112x256xf32> -> vector<112x256xf32>
    %c0_8 = arith.constant 0 : index
    %c0_9 = arith.constant 0 : index
    %8 = vector.load %arg4[%c0_8, %c0_9] : memref<1x256xf32, #tpu.memory_space<vmem>>, vector<1x256xf32>
    %9 = vector.broadcast %8 : vector<1x256xf32> to vector<112x256xf32>
    %10 = arith.addf %7, %9 : vector<112x256xf32>
    %c0_10 = arith.constant 0 : index
    %c0_11 = arith.constant 0 : index
    %11 = vector.load %arg15[%c0_10, %c0_11] : memref<112x256xf32, #tpu.memory_space<vmem>>, vector<112x256xf32>
    tpu.vector_store %arg15[%c0_10, %c0_11], %10 {strides = array<i32>} : memref<112x256xf32, #tpu.memory_space<vmem>>, vector<112x256xf32>,
    %cst_12 = arith.constant 0.000000e+00 : f32
    %12 = vector.broadcast %cst_12 : f32 to vector<8x32xf32>
    %c0_13 = arith.constant 0 : index
    %c0_14 = arith.constant 0 : index
    %13 = vector.load %arg5[%c0_13, %c0_14] : memref<64x256xf32, #tpu.memory_space<vmem>>, vector<64x256xf32>
    %c0_i32 = arith.constant 0 : i32
    %c13_i32 = arith.constant 13 : i32
    %14 = arith.subi %c13_i32, %c0_i32 : i32
    %c8_i32 = arith.constant 8 : i32
    %15 = arith.muli %c0_i32, %c8_i32 : i32
    %16 = tpu.assume_multiple %15, 8 : i32
    %c8_i32_15 = arith.constant 8 : i32
    %17 = arith.muli %14, %c8_i32_15 : i32
    %18 = tpu.assume_multiple %17, 8 : i32
    %19 = tpu.concatenate %12, %12 in 1 : vector<8x32xf32>, vector<8x32xf32> -> vector<8x64xf32>
    %cst_16 = arith.constant dense<0.000000e+00> : vector<8x256xf32>
    %20 = tpu.matmul %19, %13, %cst_16 {dimension_numbers = #tpu.dot_dimension_numbers<[1], [0], [0], [1], [0, 0, 1, 1], [], []>} : vector<8x64xf32>, vector<64x256xf32>, vector<8x256xf32> -> vector<8x256xf32>
    %21 = vector.extract_strided_slice %20 {offsets = [0, 0], sizes = [8, 128], strides = [1, 1]} : vector<8x256xf32> to vector<8x128xf32>
    %22 = arith.index_cast %16 : i32 to index
    %c0_17 = arith.constant 0 : index
    %23 = vector.load %arg15[%22, %c0_17] : memref<112x256xf32, #tpu.memory_space<vmem>>, vector<8x128xf32>
    %24 = arith.addf %21, %23 : vector<8x128xf32>
    %25 = vector.extract_strided_slice %20 {offsets = [0, 128], sizes = [8, 128], strides = [1, 1]} : vector<8x256xf32> to vector<8x128xf32>
    %26 = arith.index_cast %18 : i32 to index
    %c128 = arith.constant 128 : index
    %27 = vector.load %arg15[%26, %c128] : memref<112x256xf32, #tpu.memory_space<vmem>>, vector<8x128xf32>
    %28 = arith.addf %25, %27 : vector<8x128xf32>
    %29 = vector.extract_strided_slice %24 {offsets = [0, 0], sizes = [8, 96], strides = [1, 1]} : vector<8x128xf32> to vector<8x96xf32>
    %30 = arith.negf %29 : vector<8x96xf32>
    %31 = math.exp %30 : vector<8x96xf32>
    %cst_18 = arith.constant 1.000000e+00 : f32
    %32 = vector.broadcast %cst_18 : f32 to vector<8x96xf32>
    %33 = arith.addf %32, %31 : vector<8x96xf32>
    %34 = arith.divf %32, %33 : vector<8x96xf32>
    %35 = vector.extract_strided_slice %24 {offsets = [0, 96], sizes = [8, 32], strides = [1, 1]} : vector<8x128xf32> to vector<8x32xf32>
    %36 = math.tanh %35 : vector<8x32xf32>
    %37 = vector.extract_strided_slice %34 {offsets = [0, 32], sizes = [8, 32], strides = [1, 1]} : vector<8x96xf32> to vector<8x32xf32>
    %38 = arith.mulf %37, %12 : vector<8x32xf32>
    %39 = vector.extract_strided_slice %34 {offsets = [0, 0], sizes = [8, 32], strides = [1, 1]} : vector<8x96xf32> to vector<8x32xf32>
    %40 = arith.mulf %39, %36 : vector<8x32xf32>
    %41 = arith.addf %38, %40 : vector<8x32xf32>
    %42 = vector.extract_strided_slice %34 {offsets = [0, 64], sizes = [8, 32], strides = [1, 1]} : vector<8x96xf32> to vector<8x32xf32>
    %43 = math.tanh %41 : vector<8x32xf32>
    %44 = arith.mulf %42, %43 : vector<8x32xf32>
    %45 = vector.extract_strided_slice %28 {offsets = [0, 0], sizes = [8, 96], strides = [1, 1]} : vector<8x128xf32> to vector<8x96xf32>
    %46 = arith.negf %45 : vector<8x96xf32>
    %47 = math.exp %46 : vector<8x96xf32>
    %cst_19 = arith.constant 1.000000e+00 : f32
    %48 = vector.broadcast %cst_19 : f32 to vector<8x96xf32>
    %49 = arith.addf %48, %47 : vector<8x96xf32>
    %50 = arith.divf %48, %49 : vector<8x96xf32>
    %51 = vector.extract_strided_slice %28 {offsets = [0, 96], sizes = [8, 32], strides = [1, 1]} : vector<8x128xf32> to vector<8x32xf32>
    %52 = math.tanh %51 : vector<8x32xf32>
    %53 = vector.extract_strided_slice %50 {offsets = [0, 32], sizes = [8, 32], strides = [1, 1]} : vector<8x96xf32> to vector<8x32xf32>
    %54 = arith.mulf %53, %12 : vector<8x32xf32>
    %55 = vector.extract_strided_slice %50 {offsets = [0, 0], sizes = [8, 32], strides = [1, 1]} : vector<8x96xf32> to vector<8x32xf32>
    %56 = arith.mulf %55, %52 : vector<8x32xf32>
    %57 = arith.addf %54, %56 : vector<8x32xf32>
    %58 = vector.extract_strided_slice %50 {offsets = [0, 64], sizes = [8, 32], strides = [1, 1]} : vector<8x96xf32> to vector<8x32xf32>
    %59 = math.tanh %57 : vector<8x32xf32>
    %60 = arith.mulf %58, %59 : vector<8x32xf32>
    %61 = arith.index_cast %16 : i32 to index
    %c0_20 = arith.constant 0 : index
    %62 = vector.load %arg16[%61, %c0_20] : memref<112x64xf32, #tpu.memory_space<vmem>>, vector<8x32xf32>
    tpu.vector_store %arg16[%61, %c0_20], %44 {strides = array<i32>} : memref<112x64xf32, #tpu.memory_space<vmem>>, vector<8x32xf32>,
    %63 = arith.index_cast %18 : i32 to index
    %c32 = arith.constant 32 : index
    %64 = vector.load %arg16[%63, %c32] : memref<112x64xf32, #tpu.memory_space<vmem>>, vector<8x32xf32>
    tpu.vector_store %arg16[%63, %c32], %60 {strides = array<i32>} : memref<112x64xf32, #tpu.memory_space<vmem>>, vector<8x32xf32>,
    %c1_i32 = arith.constant 1 : i32
    %c13_i32_21 = arith.constant 13 : i32
    %65 = arith.subi %c13_i32_21, %c1_i32 : i32
    %c8_i32_22 = arith.constant 8 : i32
    %66 = arith.muli %c1_i32, %c8_i32_22 : i32
    %67 = tpu.assume_multiple %66, 8 : i32
    %c8_i32_23 = arith.constant 8 : i32
    %68 = arith.muli %65, %c8_i32_23 : i32
    %69 = tpu.assume_multiple %68, 8 : i32
    %70 = tpu.concatenate %44, %60 in 1 : vector<8x32xf32>, vector<8x32xf32> -> vector<8x64xf32>
    %cst_24 = arith.constant dense<0.000000e+00> : vector<8x256xf32>
    %71 = tpu.matmul %70, %13, %cst_24 {dimension_numbers = #tpu.dot_dimension_numbers<[1], [0], [0], [1], [0, 0, 1, 1], [], []>} : vector<8x64xf32>, vector<64x256xf32>, vector<8x256xf32> -> vector<8x256xf32>
    %72 = vector.extract_strided_slice %71 {offsets = [0, 0], sizes = [8, 128], strides = [1, 1]} : vector<8x256xf32> to vector<8x128xf32>
    %73 = arith.index_cast %67 : i32 to index
    %c0_25 = arith.constant 0 : index
    %74 = vector.load %arg15[%73, %c0_25] : memref<112x256xf32, #tpu.memory_space<vmem>>, vector<8x128xf32>
    %75 = arith.addf %72, %74 : vector<8x128xf32>
    %76 = vector.extract_strided_slice %71 {offsets = [0, 128], sizes = [8, 128], strides = [1, 1]} : vector<8x256xf32> to vector<8x128xf32>
    %77 = arith.index_cast %69 : i32 to index
    %c128_26 = arith.constant 128 : index
    %78 = vector.load %arg15[%77, %c128_26] : memref<112x256xf32, #tpu.memory_space<vmem>>, vector<8x128xf32>
    %79 = arith.addf %76, %78 : vector<8x128xf32>
    %80 = vector.extract_strided_slice %75 {offsets = [0, 0], sizes = [8, 96], strides = [1, 1]} : vector<8x128xf32> to vector<8x96xf32>
    %81 = arith.negf %80 : vector<8x96xf32>
    %82 = math.exp %81 : vector<8x96xf32>
    %cst_27 = arith.constant 1.000000e+00 : f32
    %83 = vector.broadcast %cst_27 : f32 to vector<8x96xf32>
    %84 = arith.addf %83, %82 : vector<8x96xf32>
    %85 = arith.divf %83, %84 : vector<8x96xf32>
    %86 = vector.extract_strided_slice %75 {offsets = [0, 96], sizes = [8, 32], strides = [1, 1]} : vector<8x128xf32> to vector<8x32xf32>
    %87 = math.tanh %86 : vector<8x32xf32>
    %88 = vector.extract_strided_slice %85 {offsets = [0, 32], sizes = [8, 32], strides = [1, 1]} : vector<8x96xf32> to vector<8x32xf32>
    %89 = arith.mulf %88, %41 : vector<8x32xf32>
    %90 = vector.extract_strided_slice %85 {offsets = [0, 0], sizes = [8, 32], strides = [1, 1]} : vector<8x96xf32> to vector<8x32xf32>
    %91 = arith.mulf %90, %87 : vector<8x32xf32>
    %92 = arith.addf %89, %91 : vector<8x32xf32>
    %93 = vector.extract_strided_slice %85 {offsets = [0, 64], sizes = [8, 32], strides = [1, 1]} : vector<8x96xf32> to vector<8x32xf32>
    %94 = math.tanh %92 : vector<8x32xf32>
    %95 = arith.mulf %93, %94 : vector<8x32xf32>
    %96 = vector.extract_strided_slice %79 {offsets = [0, 0], sizes = [8, 96], strides = [1, 1]} : vector<8x128xf32> to vector<8x96xf32>
    %97 = arith.negf %96 : vector<8x96xf32>
    %98 = math.exp %97 : vector<8x96xf32>
    %cst_28 = arith.constant 1.000000e+00 : f32
    %99 = vector.broadcast %cst_28 : f32 to vector<8x96xf32>
    %100 = arith.addf %99, %98 : vector<8x96xf32>
    %101 = arith.divf %99, %100 : vector<8x96xf32>
    %102 = vector.extract_strided_slice %79 {offsets = [0, 96], sizes = [8, 32], strides = [1, 1]} : vector<8x128xf32> to vector<8x32xf32>
    %103 = math.tanh %102 : vector<8x32xf32>
    %104 = vector.extract_strided_slice %101 {offsets = [0, 32], sizes = [8, 32], strides = [1, 1]} : vector<8x96xf32> to vector<8x32xf32>
    %105 = arith.mulf %104, %57 : vector<8x32xf32>
    %106 = vector.extract_strided_slice %101 {offsets = [0, 0], sizes = [8, 32], strides = [1, 1]} : vector<8x96xf32> to vector<8x32xf32>
    %107 = arith.mulf %106, %103 : vector<8x32xf32>
    %108 = arith.addf %105, %107 : vector<8x32xf32>
    %109 = vector.extract_strided_slice %101 {offsets = [0, 64], sizes = [8, 32], strides = [1, 1]} : vector<8x96xf32> to vector<8x32xf32>
    %110 = math.tanh %108 : vector<8x32xf32>
    %111 = arith.mulf %109, %110 : vector<8x32xf32>
    %112 = arith.index_cast %67 : i32 to index
    %c0_29 = arith.constant 0 : index
    %113 = vector.load %arg16[%112, %c0_29] : memref<112x64xf32, #tpu.memory_space<vmem>>, vector<8x32xf32>
    tpu.vector_store %arg16[%112, %c0_29], %95 {strides = array<i32>} : memref<112x64xf32, #tpu.memory_space<vmem>>, vector<8x32xf32>,
    %114 = arith.index_cast %69 : i32 to index
    %c32_30 = arith.constant 32 : index
    %115 = vector.load %arg16[%114, %c32_30] : memref<112x64xf32, #tpu.memory_space<vmem>>, vector<8x32xf32>
    tpu.vector_store %arg16[%114, %c32_30], %111 {strides = array<i32>} : memref<112x64xf32, #tpu.memory_space<vmem>>, vector<8x32xf32>,
    %c2_i32 = arith.constant 2 : i32
    %c13_i32_31 = arith.constant 13 : i32
    %116 = arith.subi %c13_i32_31, %c2_i32 : i32
    %c8_i32_32 = arith.constant 8 : i32
    %117 = arith.muli %c2_i32, %c8_i32_32 : i32
    %118 = tpu.assume_multiple %117, 8 : i32
    %c8_i32_33 = arith.constant 8 : i32
    %119 = arith.muli %116, %c8_i32_33 : i32
    %120 = tpu.assume_multiple %119, 8 : i32
    %121 = tpu.concatenate %95, %111 in 1 : vector<8x32xf32>, vector<8x32xf32> -> vector<8x64xf32>
    %cst_34 = arith.constant dense<0.000000e+00> : vector<8x256xf32>
    %122 = tpu.matmul %121, %13, %cst_34 {dimension_numbers = #tpu.dot_dimension_numbers<[1], [0], [0], [1], [0, 0, 1, 1], [], []>} : vector<8x64xf32>, vector<64x256xf32>, vector<8x256xf32> -> vector<8x256xf32>
    %123 = vector.extract_strided_slice %122 {offsets = [0, 0], sizes = [8, 128], strides = [1, 1]} : vector<8x256xf32> to vector<8x128xf32>
    %124 = arith.index_cast %118 : i32 to index
    %c0_35 = arith.constant 0 : index
    %125 = vector.load %arg15[%124, %c0_35] : memref<112x256xf32, #tpu.memory_space<vmem>>, vector<8x128xf32>
    %126 = arith.addf %123, %125 : vector<8x128xf32>
    %127 = vector.extract_strided_slice %122 {offsets = [0, 128], sizes = [8, 128], strides = [1, 1]} : vector<8x256xf32> to vector<8x128xf32>
    %128 = arith.index_cast %120 : i32 to index
    %c128_36 = arith.constant 128 : index
    %129 = vector.load %arg15[%128, %c128_36] : memref<112x256xf32, #tpu.memory_space<vmem>>, vector<8x128xf32>
    %130 = arith.addf %127, %129 : vector<8x128xf32>
    %131 = vector.extract_strided_slice %126 {offsets = [0, 0], sizes = [8, 96], strides = [1, 1]} : vector<8x128xf32> to vector<8x96xf32>
    %132 = arith.negf %131 : vector<8x96xf32>
    %133 = math.exp %132 : vector<8x96xf32>
    %cst_37 = arith.constant 1.000000e+00 : f32
    %134 = vector.broadcast %cst_37 : f32 to vector<8x96xf32>
    %135 = arith.addf %134, %133 : vector<8x96xf32>
    %136 = arith.divf %134, %135 : vector<8x96xf32>
    %137 = vector.extract_strided_slice %126 {offsets = [0, 96], sizes = [8, 32], strides = [1, 1]} : vector<8x128xf32> to vector<8x32xf32>
    %138 = math.tanh %137 : vector<8x32xf32>
    %139 = vector.extract_strided_slice %136 {offsets = [0, 32], sizes = [8, 32], strides = [1, 1]} : vector<8x96xf32> to vector<8x32xf32>
    %140 = arith.mulf %139, %92 : vector<8x32xf32>
    %141 = vector.extract_strided_slice %136 {offsets = [0, 0], sizes = [8, 32], strides = [1, 1]} : vector<8x96xf32> to vector<8x32xf32>
    %142 = arith.mulf %141, %138 : vector<8x32xf32>
    %143 = arith.addf %140, %142 : vector<8x32xf32>
    %144 = vector.extract_strided_slice %136 {offsets = [0, 64], sizes = [8, 32], strides = [1, 1]} : vector<8x96xf32> to vector<8x32xf32>
    %145 = math.tanh %143 : vector<8x32xf32>
    %146 = arith.mulf %144, %145 : vector<8x32xf32>
    %147 = vector.extract_strided_slice %130 {offsets = [0, 0], sizes = [8, 96], strides = [1, 1]} : vector<8x128xf32> to vector<8x96xf32>
    %148 = arith.negf %147 : vector<8x96xf32>
    %149 = math.exp %148 : vector<8x96xf32>
    %cst_38 = arith.constant 1.000000e+00 : f32
    %150 = vector.broadcast %cst_38 : f32 to vector<8x96xf32>
    %151 = arith.addf %150, %149 : vector<8x96xf32>
    %152 = arith.divf %150, %151 : vector<8x96xf32>
    %153 = vector.extract_strided_slice %130 {offsets = [0, 96], sizes = [8, 32], strides = [1, 1]} : vector<8x128xf32> to vector<8x32xf32>
    %154 = math.tanh %153 : vector<8x32xf32>
    %155 = vector.extract_strided_slice %152 {offsets = [0, 32], sizes = [8, 32], strides = [1, 1]} : vector<8x96xf32> to vector<8x32xf32>
    %156 = arith.mulf %155, %108 : vector<8x32xf32>
    %157 = vector.extract_strided_slice %152 {offsets = [0, 0], sizes = [8, 32], strides = [1, 1]} : vector<8x96xf32> to vector<8x32xf32>
    %158 = arith.mulf %157, %154 : vector<8x32xf32>
    %159 = arith.addf %156, %158 : vector<8x32xf32>
    %160 = vector.extract_strided_slice %152 {offsets = [0, 64], sizes = [8, 32], strides = [1, 1]} : vector<8x96xf32> to vector<8x32xf32>
    %161 = math.tanh %159 : vector<8x32xf32>
    %162 = arith.mulf %160, %161 : vector<8x32xf32>
    %163 = arith.index_cast %118 : i32 to index
    %c0_39 = arith.constant 0 : index
    %164 = vector.load %arg16[%163, %c0_39] : memref<112x64xf32, #tpu.memory_space<vmem>>, vector<8x32xf32>
    tpu.vector_store %arg16[%163, %c0_39], %146 {strides = array<i32>} : memref<112x64xf32, #tpu.memory_space<vmem>>, vector<8x32xf32>,
    %165 = arith.index_cast %120 : i32 to index
    %c32_40 = arith.constant 32 : index
    %166 = vector.load %arg16[%165, %c32_40] : memref<112x64xf32, #tpu.memory_space<vmem>>, vector<8x32xf32>
    tpu.vector_store %arg16[%165, %c32_40], %162 {strides = array<i32>} : memref<112x64xf32, #tpu.memory_space<vmem>>, vector<8x32xf32>,
    %c3_i32 = arith.constant 3 : i32
    %c13_i32_41 = arith.constant 13 : i32
    %167 = arith.subi %c13_i32_41, %c3_i32 : i32
    %c8_i32_42 = arith.constant 8 : i32
    %168 = arith.muli %c3_i32, %c8_i32_42 : i32
    %169 = tpu.assume_multiple %168, 8 : i32
    %c8_i32_43 = arith.constant 8 : i32
    %170 = arith.muli %167, %c8_i32_43 : i32
    %171 = tpu.assume_multiple %170, 8 : i32
    %172 = tpu.concatenate %146, %162 in 1 : vector<8x32xf32>, vector<8x32xf32> -> vector<8x64xf32>
    %cst_44 = arith.constant dense<0.000000e+00> : vector<8x256xf32>
    %173 = tpu.matmul %172, %13, %cst_44 {dimension_numbers = #tpu.dot_dimension_numbers<[1], [0], [0], [1], [0, 0, 1, 1], [], []>} : vector<8x64xf32>, vector<64x256xf32>, vector<8x256xf32> -> vector<8x256xf32>
    %174 = vector.extract_strided_slice %173 {offsets = [0, 0], sizes = [8, 128], strides = [1, 1]} : vector<8x256xf32> to vector<8x128xf32>
    %175 = arith.index_cast %169 : i32 to index
    %c0_45 = arith.constant 0 : index
    %176 = vector.load %arg15[%175, %c0_45] : memref<112x256xf32, #tpu.memory_space<vmem>>, vector<8x128xf32>
    %177 = arith.addf %174, %176 : vector<8x128xf32>
    %178 = vector.extract_strided_slice %173 {offsets = [0, 128], sizes = [8, 128], strides = [1, 1]} : vector<8x256xf32> to vector<8x128xf32>
    %179 = arith.index_cast %171 : i32 to index
    %c128_46 = arith.constant 128 : index
    %180 = vector.load %arg15[%179, %c128_46] : memref<112x256xf32, #tpu.memory_space<vmem>>, vector<8x128xf32>
    %181 = arith.addf %178, %180 : vector<8x128xf32>
    %182 = vector.extract_strided_slice %177 {offsets = [0, 0], sizes = [8, 96], strides = [1, 1]} : vector<8x128xf32> to vector<8x96xf32>
    %183 = arith.negf %182 : vector<8x96xf32>
    %184 = math.exp %183 : vector<8x96xf32>
    %cst_47 = arith.constant 1.000000e+00 : f32
    %185 = vector.broadcast %cst_47 : f32 to vector<8x96xf32>
    %186 = arith.addf %185, %184 : vector<8x96xf32>
    %187 = arith.divf %185, %186 : vector<8x96xf32>
    %188 = vector.extract_strided_slice %177 {offsets = [0, 96], sizes = [8, 32], strides = [1, 1]} : vector<8x128xf32> to vector<8x32xf32>
    %189 = math.tanh %188 : vector<8x32xf32>
    %190 = vector.extract_strided_slice %187 {offsets = [0, 32], sizes = [8, 32], strides = [1, 1]} : vector<8x96xf32> to vector<8x32xf32>
    %191 = arith.mulf %190, %143 : vector<8x32xf32>
    %192 = vector.extract_strided_slice %187 {offsets = [0, 0], sizes = [8, 32], strides = [1, 1]} : vector<8x96xf32> to vector<8x32xf32>
    %193 = arith.mulf %192, %189 : vector<8x32xf32>
    %194 = arith.addf %191, %193 : vector<8x32xf32>
    %195 = vector.extract_strided_slice %187 {offsets = [0, 64], sizes = [8, 32], strides = [1, 1]} : vector<8x96xf32> to vector<8x32xf32>
    %196 = math.tanh %194 : vector<8x32xf32>
    %197 = arith.mulf %195, %196 : vector<8x32xf32>
    %198 = vector.extract_strided_slice %181 {offsets = [0, 0], sizes = [8, 96], strides = [1, 1]} : vector<8x128xf32> to vector<8x96xf32>
    %199 = arith.negf %198 : vector<8x96xf32>
    %200 = math.exp %199 : vector<8x96xf32>
    %cst_48 = arith.constant 1.000000e+00 : f32
    %201 = vector.broadcast %cst_48 : f32 to vector<8x96xf32>
    %202 = arith.addf %201, %200 : vector<8x96xf32>
    %203 = arith.divf %201, %202 : vector<8x96xf32>
    %204 = vector.extract_strided_slice %181 {offsets = [0, 96], sizes = [8, 32], strides = [1, 1]} : vector<8x128xf32> to vector<8x32xf32>
    %205 = math.tanh %204 : vector<8x32xf32>
    %206 = vector.extract_strided_slice %203 {offsets = [0, 32], sizes = [8, 32], strides = [1, 1]} : vector<8x96xf32> to vector<8x32xf32>
    %207 = arith.mulf %206, %159 : vector<8x32xf32>
    %208 = vector.extract_strided_slice %203 {offsets = [0, 0], sizes = [8, 32], strides = [1, 1]} : vector<8x96xf32> to vector<8x32xf32>
    %209 = arith.mulf %208, %205 : vector<8x32xf32>
    %210 = arith.addf %207, %209 : vector<8x32xf32>
    %211 = vector.extract_strided_slice %203 {offsets = [0, 64], sizes = [8, 32], strides = [1, 1]} : vector<8x96xf32> to vector<8x32xf32>
    %212 = math.tanh %210 : vector<8x32xf32>
    %213 = arith.mulf %211, %212 : vector<8x32xf32>
    %214 = arith.index_cast %169 : i32 to index
    %c0_49 = arith.constant 0 : index
    %215 = vector.load %arg16[%214, %c0_49] : memref<112x64xf32, #tpu.memory_space<vmem>>, vector<8x32xf32>
    tpu.vector_store %arg16[%214, %c0_49], %197 {strides = array<i32>} : memref<112x64xf32, #tpu.memory_space<vmem>>, vector<8x32xf32>,
    %216 = arith.index_cast %171 : i32 to index
    %c32_50 = arith.constant 32 : index
    %217 = vector.load %arg16[%216, %c32_50] : memref<112x64xf32, #tpu.memory_space<vmem>>, vector<8x32xf32>
    tpu.vector_store %arg16[%216, %c32_50], %213 {strides = array<i32>} : memref<112x64xf32, #tpu.memory_space<vmem>>, vector<8x32xf32>,
    %c4_i32 = arith.constant 4 : i32
    %c13_i32_51 = arith.constant 13 : i32
    %218 = arith.subi %c13_i32_51, %c4_i32 : i32
    %c8_i32_52 = arith.constant 8 : i32
    %219 = arith.muli %c4_i32, %c8_i32_52 : i32
    %220 = tpu.assume_multiple %219, 8 : i32
    %c8_i32_53 = arith.constant 8 : i32
    %221 = arith.muli %218, %c8_i32_53 : i32
    %222 = tpu.assume_multiple %221, 8 : i32
    %223 = tpu.concatenate %197, %213 in 1 : vector<8x32xf32>, vector<8x32xf32> -> vector<8x64xf32>
    %cst_54 = arith.constant dense<0.000000e+00> : vector<8x256xf32>
    %224 = tpu.matmul %223, %13, %cst_54 {dimension_numbers = #tpu.dot_dimension_numbers<[1], [0], [0], [1], [0, 0, 1, 1], [], []>} : vector<8x64xf32>, vector<64x256xf32>, vector<8x256xf32> -> vector<8x256xf32>
    %225 = vector.extract_strided_slice %224 {offsets = [0, 0], sizes = [8, 128], strides = [1, 1]} : vector<8x256xf32> to vector<8x128xf32>
    %226 = arith.index_cast %220 : i32 to index
    %c0_55 = arith.constant 0 : index
    %227 = vector.load %arg15[%226, %c0_55] : memref<112x256xf32, #tpu.memory_space<vmem>>, vector<8x128xf32>
    %228 = arith.addf %225, %227 : vector<8x128xf32>
    %229 = vector.extract_strided_slice %224 {offsets = [0, 128], sizes = [8, 128], strides = [1, 1]} : vector<8x256xf32> to vector<8x128xf32>
    %230 = arith.index_cast %222 : i32 to index
    %c128_56 = arith.constant 128 : index
    %231 = vector.load %arg15[%230, %c128_56] : memref<112x256xf32, #tpu.memory_space<vmem>>, vector<8x128xf32>
    %232 = arith.addf %229, %231 : vector<8x128xf32>
    %233 = vector.extract_strided_slice %228 {offsets = [0, 0], sizes = [8, 96], strides = [1, 1]} : vector<8x128xf32> to vector<8x96xf32>
    %234 = arith.negf %233 : vector<8x96xf32>
    %235 = math.exp %234 : vector<8x96xf32>
    %cst_57 = arith.constant 1.000000e+00 : f32
    %236 = vector.broadcast %cst_57 : f32 to vector<8x96xf32>
    %237 = arith.addf %236, %235 : vector<8x96xf32>
    %238 = arith.divf %236, %237 : vector<8x96xf32>
    %239 = vector.extract_strided_slice %228 {offsets = [0, 96], sizes = [8, 32], strides = [1, 1]} : vector<8x128xf32> to vector<8x32xf32>
    %240 = math.tanh %239 : vector<8x32xf32>
    %241 = vector.extract_strided_slice %238 {offsets = [0, 32], sizes = [8, 32], strides = [1, 1]} : vector<8x96xf32> to vector<8x32xf32>
    %242 = arith.mulf %241, %194 : vector<8x32xf32>
    %243 = vector.extract_strided_slice %238 {offsets = [0, 0], sizes = [8, 32], strides = [1, 1]} : vector<8x96xf32> to vector<8x32xf32>
    %244 = arith.mulf %243, %240 : vector<8x32xf32>
    %245 = arith.addf %242, %244 : vector<8x32xf32>
    %246 = vector.extract_strided_slice %238 {offsets = [0, 64], sizes = [8, 32], strides = [1, 1]} : vector<8x96xf32> to vector<8x32xf32>
    %247 = math.tanh %245 : vector<8x32xf32>
    %248 = arith.mulf %246, %247 : vector<8x32xf32>
    %249 = vector.extract_strided_slice %232 {offsets = [0, 0], sizes = [8, 96], strides = [1, 1]} : vector<8x128xf32> to vector<8x96xf32>
    %250 = arith.negf %249 : vector<8x96xf32>
    %251 = math.exp %250 : vector<8x96xf32>
    %cst_58 = arith.constant 1.000000e+00 : f32
    %252 = vector.broadcast %cst_58 : f32 to vector<8x96xf32>
    %253 = arith.addf %252, %251 : vector<8x96xf32>
    %254 = arith.divf %252, %253 : vector<8x96xf32>
    %255 = vector.extract_strided_slice %232 {offsets = [0, 96], sizes = [8, 32], strides = [1, 1]} : vector<8x128xf32> to vector<8x32xf32>
    %256 = math.tanh %255 : vector<8x32xf32>
    %257 = vector.extract_strided_slice %254 {offsets = [0, 32], sizes = [8, 32], strides = [1, 1]} : vector<8x96xf32> to vector<8x32xf32>
    %258 = arith.mulf %257, %210 : vector<8x32xf32>
    %259 = vector.extract_strided_slice %254 {offsets = [0, 0], sizes = [8, 32], strides = [1, 1]} : vector<8x96xf32> to vector<8x32xf32>
    %260 = arith.mulf %259, %256 : vector<8x32xf32>
    %261 = arith.addf %258, %260 : vector<8x32xf32>
    %262 = vector.extract_strided_slice %254 {offsets = [0, 64], sizes = [8, 32], strides = [1, 1]} : vector<8x96xf32> to vector<8x32xf32>
    %263 = math.tanh %261 : vector<8x32xf32>
    %264 = arith.mulf %262, %263 : vector<8x32xf32>
    %265 = arith.index_cast %220 : i32 to index
    %c0_59 = arith.constant 0 : index
    %266 = vector.load %arg16[%265, %c0_59] : memref<112x64xf32, #tpu.memory_space<vmem>>, vector<8x32xf32>
    tpu.vector_store %arg16[%265, %c0_59], %248 {strides = array<i32>} : memref<112x64xf32, #tpu.memory_space<vmem>>, vector<8x32xf32>,
    %267 = arith.index_cast %222 : i32 to index
    %c32_60 = arith.constant 32 : index
    %268 = vector.load %arg16[%267, %c32_60] : memref<112x64xf32, #tpu.memory_space<vmem>>, vector<8x32xf32>
    tpu.vector_store %arg16[%267, %c32_60], %264 {strides = array<i32>} : memref<112x64xf32, #tpu.memory_space<vmem>>, vector<8x32xf32>,
    %c5_i32 = arith.constant 5 : i32
    %c13_i32_61 = arith.constant 13 : i32
    %269 = arith.subi %c13_i32_61, %c5_i32 : i32
    %c8_i32_62 = arith.constant 8 : i32
    %270 = arith.muli %c5_i32, %c8_i32_62 : i32
    %271 = tpu.assume_multiple %270, 8 : i32
    %c8_i32_63 = arith.constant 8 : i32
    %272 = arith.muli %269, %c8_i32_63 : i32
    %273 = tpu.assume_multiple %272, 8 : i32
    %274 = tpu.concatenate %248, %264 in 1 : vector<8x32xf32>, vector<8x32xf32> -> vector<8x64xf32>
    %cst_64 = arith.constant dense<0.000000e+00> : vector<8x256xf32>
    %275 = tpu.matmul %274, %13, %cst_64 {dimension_numbers = #tpu.dot_dimension_numbers<[1], [0], [0], [1], [0, 0, 1, 1], [], []>} : vector<8x64xf32>, vector<64x256xf32>, vector<8x256xf32> -> vector<8x256xf32>
    %276 = vector.extract_strided_slice %275 {offsets = [0, 0], sizes = [8, 128], strides = [1, 1]} : vector<8x256xf32> to vector<8x128xf32>
    %277 = arith.index_cast %271 : i32 to index
    %c0_65 = arith.constant 0 : index
    %278 = vector.load %arg15[%277, %c0_65] : memref<112x256xf32, #tpu.memory_space<vmem>>, vector<8x128xf32>
    %279 = arith.addf %276, %278 : vector<8x128xf32>
    %280 = vector.extract_strided_slice %275 {offsets = [0, 128], sizes = [8, 128], strides = [1, 1]} : vector<8x256xf32> to vector<8x128xf32>
    %281 = arith.index_cast %273 : i32 to index
    %c128_66 = arith.constant 128 : index
    %282 = vector.load %arg15[%281, %c128_66] : memref<112x256xf32, #tpu.memory_space<vmem>>, vector<8x128xf32>
    %283 = arith.addf %280, %282 : vector<8x128xf32>
    %284 = vector.extract_strided_slice %279 {offsets = [0, 0], sizes = [8, 96], strides = [1, 1]} : vector<8x128xf32> to vector<8x96xf32>
    %285 = arith.negf %284 : vector<8x96xf32>
    %286 = math.exp %285 : vector<8x96xf32>
    %cst_67 = arith.constant 1.000000e+00 : f32
    %287 = vector.broadcast %cst_67 : f32 to vector<8x96xf32>
    %288 = arith.addf %287, %286 : vector<8x96xf32>
    %289 = arith.divf %287, %288 : vector<8x96xf32>
    %290 = vector.extract_strided_slice %279 {offsets = [0, 96], sizes = [8, 32], strides = [1, 1]} : vector<8x128xf32> to vector<8x32xf32>
    %291 = math.tanh %290 : vector<8x32xf32>
    %292 = vector.extract_strided_slice %289 {offsets = [0, 32], sizes = [8, 32], strides = [1, 1]} : vector<8x96xf32> to vector<8x32xf32>
    %293 = arith.mulf %292, %245 : vector<8x32xf32>
    %294 = vector.extract_strided_slice %289 {offsets = [0, 0], sizes = [8, 32], strides = [1, 1]} : vector<8x96xf32> to vector<8x32xf32>
    %295 = arith.mulf %294, %291 : vector<8x32xf32>
    %296 = arith.addf %293, %295 : vector<8x32xf32>
    %297 = vector.extract_strided_slice %289 {offsets = [0, 64], sizes = [8, 32], strides = [1, 1]} : vector<8x96xf32> to vector<8x32xf32>
    %298 = math.tanh %296 : vector<8x32xf32>
    %299 = arith.mulf %297, %298 : vector<8x32xf32>
    %300 = vector.extract_strided_slice %283 {offsets = [0, 0], sizes = [8, 96], strides = [1, 1]} : vector<8x128xf32> to vector<8x96xf32>
    %301 = arith.negf %300 : vector<8x96xf32>
    %302 = math.exp %301 : vector<8x96xf32>
    %cst_68 = arith.constant 1.000000e+00 : f32
    %303 = vector.broadcast %cst_68 : f32 to vector<8x96xf32>
    %304 = arith.addf %303, %302 : vector<8x96xf32>
    %305 = arith.divf %303, %304 : vector<8x96xf32>
    %306 = vector.extract_strided_slice %283 {offsets = [0, 96], sizes = [8, 32], strides = [1, 1]} : vector<8x128xf32> to vector<8x32xf32>
    %307 = math.tanh %306 : vector<8x32xf32>
    %308 = vector.extract_strided_slice %305 {offsets = [0, 32], sizes = [8, 32], strides = [1, 1]} : vector<8x96xf32> to vector<8x32xf32>
    %309 = arith.mulf %308, %261 : vector<8x32xf32>
    %310 = vector.extract_strided_slice %305 {offsets = [0, 0], sizes = [8, 32], strides = [1, 1]} : vector<8x96xf32> to vector<8x32xf32>
    %311 = arith.mulf %310, %307 : vector<8x32xf32>
    %312 = arith.addf %309, %311 : vector<8x32xf32>
    %313 = vector.extract_strided_slice %305 {offsets = [0, 64], sizes = [8, 32], strides = [1, 1]} : vector<8x96xf32> to vector<8x32xf32>
    %314 = math.tanh %312 : vector<8x32xf32>
    %315 = arith.mulf %313, %314 : vector<8x32xf32>
    %316 = arith.index_cast %271 : i32 to index
    %c0_69 = arith.constant 0 : index
    %317 = vector.load %arg16[%316, %c0_69] : memref<112x64xf32, #tpu.memory_space<vmem>>, vector<8x32xf32>
    tpu.vector_store %arg16[%316, %c0_69], %299 {strides = array<i32>} : memref<112x64xf32, #tpu.memory_space<vmem>>, vector<8x32xf32>,
    %318 = arith.index_cast %273 : i32 to index
    %c32_70 = arith.constant 32 : index
    %319 = vector.load %arg16[%318, %c32_70] : memref<112x64xf32, #tpu.memory_space<vmem>>, vector<8x32xf32>
    tpu.vector_store %arg16[%318, %c32_70], %315 {strides = array<i32>} : memref<112x64xf32, #tpu.memory_space<vmem>>, vector<8x32xf32>,
    %c6_i32 = arith.constant 6 : i32
    %c13_i32_71 = arith.constant 13 : i32
    %320 = arith.subi %c13_i32_71, %c6_i32 : i32
    %c8_i32_72 = arith.constant 8 : i32
    %321 = arith.muli %c6_i32, %c8_i32_72 : i32
    %322 = tpu.assume_multiple %321, 8 : i32
    %c8_i32_73 = arith.constant 8 : i32
    %323 = arith.muli %320, %c8_i32_73 : i32
    %324 = tpu.assume_multiple %323, 8 : i32
    %325 = tpu.concatenate %299, %315 in 1 : vector<8x32xf32>, vector<8x32xf32> -> vector<8x64xf32>
    %cst_74 = arith.constant dense<0.000000e+00> : vector<8x256xf32>
    %326 = tpu.matmul %325, %13, %cst_74 {dimension_numbers = #tpu.dot_dimension_numbers<[1], [0], [0], [1], [0, 0, 1, 1], [], []>} : vector<8x64xf32>, vector<64x256xf32>, vector<8x256xf32> -> vector<8x256xf32>
    %327 = vector.extract_strided_slice %326 {offsets = [0, 0], sizes = [8, 128], strides = [1, 1]} : vector<8x256xf32> to vector<8x128xf32>
    %328 = arith.index_cast %322 : i32 to index
    %c0_75 = arith.constant 0 : index
    %329 = vector.load %arg15[%328, %c0_75] : memref<112x256xf32, #tpu.memory_space<vmem>>, vector<8x128xf32>
    %330 = arith.addf %327, %329 : vector<8x128xf32>
    %331 = vector.extract_strided_slice %326 {offsets = [0, 128], sizes = [8, 128], strides = [1, 1]} : vector<8x256xf32> to vector<8x128xf32>
    %332 = arith.index_cast %324 : i32 to index
    %c128_76 = arith.constant 128 : index
    %333 = vector.load %arg15[%332, %c128_76] : memref<112x256xf32, #tpu.memory_space<vmem>>, vector<8x128xf32>
    %334 = arith.addf %331, %333 : vector<8x128xf32>
    %335 = vector.extract_strided_slice %330 {offsets = [0, 0], sizes = [8, 96], strides = [1, 1]} : vector<8x128xf32> to vector<8x96xf32>
    %336 = arith.negf %335 : vector<8x96xf32>
    %337 = math.exp %336 : vector<8x96xf32>
    %cst_77 = arith.constant 1.000000e+00 : f32
    %338 = vector.broadcast %cst_77 : f32 to vector<8x96xf32>
    %339 = arith.addf %338, %337 : vector<8x96xf32>
    %340 = arith.divf %338, %339 : vector<8x96xf32>
    %341 = vector.extract_strided_slice %330 {offsets = [0, 96], sizes = [8, 32], strides = [1, 1]} : vector<8x128xf32> to vector<8x32xf32>
    %342 = math.tanh %341 : vector<8x32xf32>
    %343 = vector.extract_strided_slice %340 {offsets = [0, 32], sizes = [8, 32], strides = [1, 1]} : vector<8x96xf32> to vector<8x32xf32>
    %344 = arith.mulf %343, %296 : vector<8x32xf32>
    %345 = vector.extract_strided_slice %340 {offsets = [0, 0], sizes = [8, 32], strides = [1, 1]} : vector<8x96xf32> to vector<8x32xf32>
    %346 = arith.mulf %345, %342 : vector<8x32xf32>
    %347 = arith.addf %344, %346 : vector<8x32xf32>
    %348 = vector.extract_strided_slice %340 {offsets = [0, 64], sizes = [8, 32], strides = [1, 1]} : vector<8x96xf32> to vector<8x32xf32>
    %349 = math.tanh %347 : vector<8x32xf32>
    %350 = arith.mulf %348, %349 : vector<8x32xf32>
    %351 = vector.extract_strided_slice %334 {offsets = [0, 0], sizes = [8, 96], strides = [1, 1]} : vector<8x128xf32> to vector<8x96xf32>
    %352 = arith.negf %351 : vector<8x96xf32>
    %353 = math.exp %352 : vector<8x96xf32>
    %cst_78 = arith.constant 1.000000e+00 : f32
    %354 = vector.broadcast %cst_78 : f32 to vector<8x96xf32>
    %355 = arith.addf %354, %353 : vector<8x96xf32>
    %356 = arith.divf %354, %355 : vector<8x96xf32>
    %357 = vector.extract_strided_slice %334 {offsets = [0, 96], sizes = [8, 32], strides = [1, 1]} : vector<8x128xf32> to vector<8x32xf32>
    %358 = math.tanh %357 : vector<8x32xf32>
    %359 = vector.extract_strided_slice %356 {offsets = [0, 32], sizes = [8, 32], strides = [1, 1]} : vector<8x96xf32> to vector<8x32xf32>
    %360 = arith.mulf %359, %312 : vector<8x32xf32>
    %361 = vector.extract_strided_slice %356 {offsets = [0, 0], sizes = [8, 32], strides = [1, 1]} : vector<8x96xf32> to vector<8x32xf32>
    %362 = arith.mulf %361, %358 : vector<8x32xf32>
    %363 = arith.addf %360, %362 : vector<8x32xf32>
    %364 = vector.extract_strided_slice %356 {offsets = [0, 64], sizes = [8, 32], strides = [1, 1]} : vector<8x96xf32> to vector<8x32xf32>
    %365 = math.tanh %363 : vector<8x32xf32>
    %366 = arith.mulf %364, %365 : vector<8x32xf32>
    %367 = arith.index_cast %322 : i32 to index
    %c0_79 = arith.constant 0 : index
    %368 = vector.load %arg16[%367, %c0_79] : memref<112x64xf32, #tpu.memory_space<vmem>>, vector<8x32xf32>
    tpu.vector_store %arg16[%367, %c0_79], %350 {strides = array<i32>} : memref<112x64xf32, #tpu.memory_space<vmem>>, vector<8x32xf32>,
    %369 = arith.index_cast %324 : i32 to index
    %c32_80 = arith.constant 32 : index
    %370 = vector.load %arg16[%369, %c32_80] : memref<112x64xf32, #tpu.memory_space<vmem>>, vector<8x32xf32>
    tpu.vector_store %arg16[%369, %c32_80], %366 {strides = array<i32>} : memref<112x64xf32, #tpu.memory_space<vmem>>, vector<8x32xf32>,
    %c7_i32 = arith.constant 7 : i32
    %c13_i32_81 = arith.constant 13 : i32
    %371 = arith.subi %c13_i32_81, %c7_i32 : i32
    %c8_i32_82 = arith.constant 8 : i32
    %372 = arith.muli %c7_i32, %c8_i32_82 : i32
    %373 = tpu.assume_multiple %372, 8 : i32
    %c8_i32_83 = arith.constant 8 : i32
    %374 = arith.muli %371, %c8_i32_83 : i32
    %375 = tpu.assume_multiple %374, 8 : i32
    %376 = tpu.concatenate %350, %366 in 1 : vector<8x32xf32>, vector<8x32xf32> -> vector<8x64xf32>
    %cst_84 = arith.constant dense<0.000000e+00> : vector<8x256xf32>
    %377 = tpu.matmul %376, %13, %cst_84 {dimension_numbers = #tpu.dot_dimension_numbers<[1], [0], [0], [1], [0, 0, 1, 1], [], []>} : vector<8x64xf32>, vector<64x256xf32>, vector<8x256xf32> -> vector<8x256xf32>
    %378 = vector.extract_strided_slice %377 {offsets = [0, 0], sizes = [8, 128], strides = [1, 1]} : vector<8x256xf32> to vector<8x128xf32>
    %379 = arith.index_cast %373 : i32 to index
    %c0_85 = arith.constant 0 : index
    %380 = vector.load %arg15[%379, %c0_85] : memref<112x256xf32, #tpu.memory_space<vmem>>, vector<8x128xf32>
    %381 = arith.addf %378, %380 : vector<8x128xf32>
    %382 = vector.extract_strided_slice %377 {offsets = [0, 128], sizes = [8, 128], strides = [1, 1]} : vector<8x256xf32> to vector<8x128xf32>
    %383 = arith.index_cast %375 : i32 to index
    %c128_86 = arith.constant 128 : index
    %384 = vector.load %arg15[%383, %c128_86] : memref<112x256xf32, #tpu.memory_space<vmem>>, vector<8x128xf32>
    %385 = arith.addf %382, %384 : vector<8x128xf32>
    %386 = vector.extract_strided_slice %381 {offsets = [0, 0], sizes = [8, 96], strides = [1, 1]} : vector<8x128xf32> to vector<8x96xf32>
    %387 = arith.negf %386 : vector<8x96xf32>
    %388 = math.exp %387 : vector<8x96xf32>
    %cst_87 = arith.constant 1.000000e+00 : f32
    %389 = vector.broadcast %cst_87 : f32 to vector<8x96xf32>
    %390 = arith.addf %389, %388 : vector<8x96xf32>
    %391 = arith.divf %389, %390 : vector<8x96xf32>
    %392 = vector.extract_strided_slice %381 {offsets = [0, 96], sizes = [8, 32], strides = [1, 1]} : vector<8x128xf32> to vector<8x32xf32>
    %393 = math.tanh %392 : vector<8x32xf32>
    %394 = vector.extract_strided_slice %391 {offsets = [0, 32], sizes = [8, 32], strides = [1, 1]} : vector<8x96xf32> to vector<8x32xf32>
    %395 = arith.mulf %394, %347 : vector<8x32xf32>
    %396 = vector.extract_strided_slice %391 {offsets = [0, 0], sizes = [8, 32], strides = [1, 1]} : vector<8x96xf32> to vector<8x32xf32>
    %397 = arith.mulf %396, %393 : vector<8x32xf32>
    %398 = arith.addf %395, %397 : vector<8x32xf32>
    %399 = vector.extract_strided_slice %391 {offsets = [0, 64], sizes = [8, 32], strides = [1, 1]} : vector<8x96xf32> to vector<8x32xf32>
    %400 = math.tanh %398 : vector<8x32xf32>
    %401 = arith.mulf %399, %400 : vector<8x32xf32>
    %402 = vector.extract_strided_slice %385 {offsets = [0, 0], sizes = [8, 96], strides = [1, 1]} : vector<8x128xf32> to vector<8x96xf32>
    %403 = arith.negf %402 : vector<8x96xf32>
    %404 = math.exp %403 : vector<8x96xf32>
    %cst_88 = arith.constant 1.000000e+00 : f32
    %405 = vector.broadcast %cst_88 : f32 to vector<8x96xf32>
    %406 = arith.addf %405, %404 : vector<8x96xf32>
    %407 = arith.divf %405, %406 : vector<8x96xf32>
    %408 = vector.extract_strided_slice %385 {offsets = [0, 96], sizes = [8, 32], strides = [1, 1]} : vector<8x128xf32> to vector<8x32xf32>
    %409 = math.tanh %408 : vector<8x32xf32>
    %410 = vector.extract_strided_slice %407 {offsets = [0, 32], sizes = [8, 32], strides = [1, 1]} : vector<8x96xf32> to vector<8x32xf32>
    %411 = arith.mulf %410, %363 : vector<8x32xf32>
    %412 = vector.extract_strided_slice %407 {offsets = [0, 0], sizes = [8, 32], strides = [1, 1]} : vector<8x96xf32> to vector<8x32xf32>
    %413 = arith.mulf %412, %409 : vector<8x32xf32>
    %414 = arith.addf %411, %413 : vector<8x32xf32>
    %415 = vector.extract_strided_slice %407 {offsets = [0, 64], sizes = [8, 32], strides = [1, 1]} : vector<8x96xf32> to vector<8x32xf32>
    %416 = math.tanh %414 : vector<8x32xf32>
    %417 = arith.mulf %415, %416 : vector<8x32xf32>
    %418 = arith.index_cast %373 : i32 to index
    %c0_89 = arith.constant 0 : index
    %419 = vector.load %arg16[%418, %c0_89] : memref<112x64xf32, #tpu.memory_space<vmem>>, vector<8x32xf32>
    tpu.vector_store %arg16[%418, %c0_89], %401 {strides = array<i32>} : memref<112x64xf32, #tpu.memory_space<vmem>>, vector<8x32xf32>,
    %420 = arith.index_cast %375 : i32 to index
    %c32_90 = arith.constant 32 : index
    %421 = vector.load %arg16[%420, %c32_90] : memref<112x64xf32, #tpu.memory_space<vmem>>, vector<8x32xf32>
    tpu.vector_store %arg16[%420, %c32_90], %417 {strides = array<i32>} : memref<112x64xf32, #tpu.memory_space<vmem>>, vector<8x32xf32>,
    %c8_i32_91 = arith.constant 8 : i32
    %c13_i32_92 = arith.constant 13 : i32
    %422 = arith.subi %c13_i32_92, %c8_i32_91 : i32
    %c8_i32_93 = arith.constant 8 : i32
    %423 = arith.muli %c8_i32_91, %c8_i32_93 : i32
    %424 = tpu.assume_multiple %423, 8 : i32
    %c8_i32_94 = arith.constant 8 : i32
    %425 = arith.muli %422, %c8_i32_94 : i32
    %426 = tpu.assume_multiple %425, 8 : i32
    %427 = tpu.concatenate %401, %417 in 1 : vector<8x32xf32>, vector<8x32xf32> -> vector<8x64xf32>
    %cst_95 = arith.constant dense<0.000000e+00> : vector<8x256xf32>
    %428 = tpu.matmul %427, %13, %cst_95 {dimension_numbers = #tpu.dot_dimension_numbers<[1], [0], [0], [1], [0, 0, 1, 1], [], []>} : vector<8x64xf32>, vector<64x256xf32>, vector<8x256xf32> -> vector<8x256xf32>
    %429 = vector.extract_strided_slice %428 {offsets = [0, 0], sizes = [8, 128], strides = [1, 1]} : vector<8x256xf32> to vector<8x128xf32>
    %430 = arith.index_cast %424 : i32 to index
    %c0_96 = arith.constant 0 : index
    %431 = vector.load %arg15[%430, %c0_96] : memref<112x256xf32, #tpu.memory_space<vmem>>, vector<8x128xf32>
    %432 = arith.addf %429, %431 : vector<8x128xf32>
    %433 = vector.extract_strided_slice %428 {offsets = [0, 128], sizes = [8, 128], strides = [1, 1]} : vector<8x256xf32> to vector<8x128xf32>
    %434 = arith.index_cast %426 : i32 to index
    %c128_97 = arith.constant 128 : index
    %435 = vector.load %arg15[%434, %c128_97] : memref<112x256xf32, #tpu.memory_space<vmem>>, vector<8x128xf32>
    %436 = arith.addf %433, %435 : vector<8x128xf32>
    %437 = vector.extract_strided_slice %432 {offsets = [0, 0], sizes = [8, 96], strides = [1, 1]} : vector<8x128xf32> to vector<8x96xf32>
    %438 = arith.negf %437 : vector<8x96xf32>
    %439 = math.exp %438 : vector<8x96xf32>
    %cst_98 = arith.constant 1.000000e+00 : f32
    %440 = vector.broadcast %cst_98 : f32 to vector<8x96xf32>
    %441 = arith.addf %440, %439 : vector<8x96xf32>
    %442 = arith.divf %440, %441 : vector<8x96xf32>
    %443 = vector.extract_strided_slice %432 {offsets = [0, 96], sizes = [8, 32], strides = [1, 1]} : vector<8x128xf32> to vector<8x32xf32>
    %444 = math.tanh %443 : vector<8x32xf32>
    %445 = vector.extract_strided_slice %442 {offsets = [0, 32], sizes = [8, 32], strides = [1, 1]} : vector<8x96xf32> to vector<8x32xf32>
    %446 = arith.mulf %445, %398 : vector<8x32xf32>
    %447 = vector.extract_strided_slice %442 {offsets = [0, 0], sizes = [8, 32], strides = [1, 1]} : vector<8x96xf32> to vector<8x32xf32>
    %448 = arith.mulf %447, %444 : vector<8x32xf32>
    %449 = arith.addf %446, %448 : vector<8x32xf32>
    %450 = vector.extract_strided_slice %442 {offsets = [0, 64], sizes = [8, 32], strides = [1, 1]} : vector<8x96xf32> to vector<8x32xf32>
    %451 = math.tanh %449 : vector<8x32xf32>
    %452 = arith.mulf %450, %451 : vector<8x32xf32>
    %453 = vector.extract_strided_slice %436 {offsets = [0, 0], sizes = [8, 96], strides = [1, 1]} : vector<8x128xf32> to vector<8x96xf32>
    %454 = arith.negf %453 : vector<8x96xf32>
    %455 = math.exp %454 : vector<8x96xf32>
    %cst_99 = arith.constant 1.000000e+00 : f32
    %456 = vector.broadcast %cst_99 : f32 to vector<8x96xf32>
    %457 = arith.addf %456, %455 : vector<8x96xf32>
    %458 = arith.divf %456, %457 : vector<8x96xf32>
    %459 = vector.extract_strided_slice %436 {offsets = [0, 96], sizes = [8, 32], strides = [1, 1]} : vector<8x128xf32> to vector<8x32xf32>
    %460 = math.tanh %459 : vector<8x32xf32>
    %461 = vector.extract_strided_slice %458 {offsets = [0, 32], sizes = [8, 32], strides = [1, 1]} : vector<8x96xf32> to vector<8x32xf32>
    %462 = arith.mulf %461, %414 : vector<8x32xf32>
    %463 = vector.extract_strided_slice %458 {offsets = [0, 0], sizes = [8, 32], strides = [1, 1]} : vector<8x96xf32> to vector<8x32xf32>
    %464 = arith.mulf %463, %460 : vector<8x32xf32>
    %465 = arith.addf %462, %464 : vector<8x32xf32>
    %466 = vector.extract_strided_slice %458 {offsets = [0, 64], sizes = [8, 32], strides = [1, 1]} : vector<8x96xf32> to vector<8x32xf32>
    %467 = math.tanh %465 : vector<8x32xf32>
    %468 = arith.mulf %466, %467 : vector<8x32xf32>
    %469 = arith.index_cast %424 : i32 to index
    %c0_100 = arith.constant 0 : index
    %470 = vector.load %arg16[%469, %c0_100] : memref<112x64xf32, #tpu.memory_space<vmem>>, vector<8x32xf32>
    tpu.vector_store %arg16[%469, %c0_100], %452 {strides = array<i32>} : memref<112x64xf32, #tpu.memory_space<vmem>>, vector<8x32xf32>,
    %471 = arith.index_cast %426 : i32 to index
    %c32_101 = arith.constant 32 : index
    %472 = vector.load %arg16[%471, %c32_101] : memref<112x64xf32, #tpu.memory_space<vmem>>, vector<8x32xf32>
    tpu.vector_store %arg16[%471, %c32_101], %468 {strides = array<i32>} : memref<112x64xf32, #tpu.memory_space<vmem>>, vector<8x32xf32>,
    %c9_i32 = arith.constant 9 : i32
    %c13_i32_102 = arith.constant 13 : i32
    %473 = arith.subi %c13_i32_102, %c9_i32 : i32
    %c8_i32_103 = arith.constant 8 : i32
    %474 = arith.muli %c9_i32, %c8_i32_103 : i32
    %475 = tpu.assume_multiple %474, 8 : i32
    %c8_i32_104 = arith.constant 8 : i32
    %476 = arith.muli %473, %c8_i32_104 : i32
    %477 = tpu.assume_multiple %476, 8 : i32
    %478 = tpu.concatenate %452, %468 in 1 : vector<8x32xf32>, vector<8x32xf32> -> vector<8x64xf32>
    %cst_105 = arith.constant dense<0.000000e+00> : vector<8x256xf32>
    %479 = tpu.matmul %478, %13, %cst_105 {dimension_numbers = #tpu.dot_dimension_numbers<[1], [0], [0], [1], [0, 0, 1, 1], [], []>} : vector<8x64xf32>, vector<64x256xf32>, vector<8x256xf32> -> vector<8x256xf32>
    %480 = vector.extract_strided_slice %479 {offsets = [0, 0], sizes = [8, 128], strides = [1, 1]} : vector<8x256xf32> to vector<8x128xf32>
    %481 = arith.index_cast %475 : i32 to index
    %c0_106 = arith.constant 0 : index
    %482 = vector.load %arg15[%481, %c0_106] : memref<112x256xf32, #tpu.memory_space<vmem>>, vector<8x128xf32>
    %483 = arith.addf %480, %482 : vector<8x128xf32>
    %484 = vector.extract_strided_slice %479 {offsets = [0, 128], sizes = [8, 128], strides = [1, 1]} : vector<8x256xf32> to vector<8x128xf32>
    %485 = arith.index_cast %477 : i32 to index
    %c128_107 = arith.constant 128 : index
    %486 = vector.load %arg15[%485, %c128_107] : memref<112x256xf32, #tpu.memory_space<vmem>>, vector<8x128xf32>
    %487 = arith.addf %484, %486 : vector<8x128xf32>
    %488 = vector.extract_strided_slice %483 {offsets = [0, 0], sizes = [8, 96], strides = [1, 1]} : vector<8x128xf32> to vector<8x96xf32>
    %489 = arith.negf %488 : vector<8x96xf32>
    %490 = math.exp %489 : vector<8x96xf32>
    %cst_108 = arith.constant 1.000000e+00 : f32
    %491 = vector.broadcast %cst_108 : f32 to vector<8x96xf32>
    %492 = arith.addf %491, %490 : vector<8x96xf32>
    %493 = arith.divf %491, %492 : vector<8x96xf32>
    %494 = vector.extract_strided_slice %483 {offsets = [0, 96], sizes = [8, 32], strides = [1, 1]} : vector<8x128xf32> to vector<8x32xf32>
    %495 = math.tanh %494 : vector<8x32xf32>
    %496 = vector.extract_strided_slice %493 {offsets = [0, 32], sizes = [8, 32], strides = [1, 1]} : vector<8x96xf32> to vector<8x32xf32>
    %497 = arith.mulf %496, %449 : vector<8x32xf32>
    %498 = vector.extract_strided_slice %493 {offsets = [0, 0], sizes = [8, 32], strides = [1, 1]} : vector<8x96xf32> to vector<8x32xf32>
    %499 = arith.mulf %498, %495 : vector<8x32xf32>
    %500 = arith.addf %497, %499 : vector<8x32xf32>
    %501 = vector.extract_strided_slice %493 {offsets = [0, 64], sizes = [8, 32], strides = [1, 1]} : vector<8x96xf32> to vector<8x32xf32>
    %502 = math.tanh %500 : vector<8x32xf32>
    %503 = arith.mulf %501, %502 : vector<8x32xf32>
    %504 = vector.extract_strided_slice %487 {offsets = [0, 0], sizes = [8, 96], strides = [1, 1]} : vector<8x128xf32> to vector<8x96xf32>
    %505 = arith.negf %504 : vector<8x96xf32>
    %506 = math.exp %505 : vector<8x96xf32>
    %cst_109 = arith.constant 1.000000e+00 : f32
    %507 = vector.broadcast %cst_109 : f32 to vector<8x96xf32>
    %508 = arith.addf %507, %506 : vector<8x96xf32>
    %509 = arith.divf %507, %508 : vector<8x96xf32>
    %510 = vector.extract_strided_slice %487 {offsets = [0, 96], sizes = [8, 32], strides = [1, 1]} : vector<8x128xf32> to vector<8x32xf32>
    %511 = math.tanh %510 : vector<8x32xf32>
    %512 = vector.extract_strided_slice %509 {offsets = [0, 32], sizes = [8, 32], strides = [1, 1]} : vector<8x96xf32> to vector<8x32xf32>
    %513 = arith.mulf %512, %465 : vector<8x32xf32>
    %514 = vector.extract_strided_slice %509 {offsets = [0, 0], sizes = [8, 32], strides = [1, 1]} : vector<8x96xf32> to vector<8x32xf32>
    %515 = arith.mulf %514, %511 : vector<8x32xf32>
    %516 = arith.addf %513, %515 : vector<8x32xf32>
    %517 = vector.extract_strided_slice %509 {offsets = [0, 64], sizes = [8, 32], strides = [1, 1]} : vector<8x96xf32> to vector<8x32xf32>
    %518 = math.tanh %516 : vector<8x32xf32>
    %519 = arith.mulf %517, %518 : vector<8x32xf32>
    %520 = arith.index_cast %475 : i32 to index
    %c0_110 = arith.constant 0 : index
    %521 = vector.load %arg16[%520, %c0_110] : memref<112x64xf32, #tpu.memory_space<vmem>>, vector<8x32xf32>
    tpu.vector_store %arg16[%520, %c0_110], %503 {strides = array<i32>} : memref<112x64xf32, #tpu.memory_space<vmem>>, vector<8x32xf32>,
    %522 = arith.index_cast %477 : i32 to index
    %c32_111 = arith.constant 32 : index
    %523 = vector.load %arg16[%522, %c32_111] : memref<112x64xf32, #tpu.memory_space<vmem>>, vector<8x32xf32>
    tpu.vector_store %arg16[%522, %c32_111], %519 {strides = array<i32>} : memref<112x64xf32, #tpu.memory_space<vmem>>, vector<8x32xf32>,
    %c10_i32 = arith.constant 10 : i32
    %c13_i32_112 = arith.constant 13 : i32
    %524 = arith.subi %c13_i32_112, %c10_i32 : i32
    %c8_i32_113 = arith.constant 8 : i32
    %525 = arith.muli %c10_i32, %c8_i32_113 : i32
    %526 = tpu.assume_multiple %525, 8 : i32
    %c8_i32_114 = arith.constant 8 : i32
    %527 = arith.muli %524, %c8_i32_114 : i32
    %528 = tpu.assume_multiple %527, 8 : i32
    %529 = tpu.concatenate %503, %519 in 1 : vector<8x32xf32>, vector<8x32xf32> -> vector<8x64xf32>
    %cst_115 = arith.constant dense<0.000000e+00> : vector<8x256xf32>
    %530 = tpu.matmul %529, %13, %cst_115 {dimension_numbers = #tpu.dot_dimension_numbers<[1], [0], [0], [1], [0, 0, 1, 1], [], []>} : vector<8x64xf32>, vector<64x256xf32>, vector<8x256xf32> -> vector<8x256xf32>
    %531 = vector.extract_strided_slice %530 {offsets = [0, 0], sizes = [8, 128], strides = [1, 1]} : vector<8x256xf32> to vector<8x128xf32>
    %532 = arith.index_cast %526 : i32 to index
    %c0_116 = arith.constant 0 : index
    %533 = vector.load %arg15[%532, %c0_116] : memref<112x256xf32, #tpu.memory_space<vmem>>, vector<8x128xf32>
    %534 = arith.addf %531, %533 : vector<8x128xf32>
    %535 = vector.extract_strided_slice %530 {offsets = [0, 128], sizes = [8, 128], strides = [1, 1]} : vector<8x256xf32> to vector<8x128xf32>
    %536 = arith.index_cast %528 : i32 to index
    %c128_117 = arith.constant 128 : index
    %537 = vector.load %arg15[%536, %c128_117] : memref<112x256xf32, #tpu.memory_space<vmem>>, vector<8x128xf32>
    %538 = arith.addf %535, %537 : vector<8x128xf32>
    %539 = vector.extract_strided_slice %534 {offsets = [0, 0], sizes = [8, 96], strides = [1, 1]} : vector<8x128xf32> to vector<8x96xf32>
    %540 = arith.negf %539 : vector<8x96xf32>
    %541 = math.exp %540 : vector<8x96xf32>
    %cst_118 = arith.constant 1.000000e+00 : f32
    %542 = vector.broadcast %cst_118 : f32 to vector<8x96xf32>
    %543 = arith.addf %542, %541 : vector<8x96xf32>
    %544 = arith.divf %542, %543 : vector<8x96xf32>
    %545 = vector.extract_strided_slice %534 {offsets = [0, 96], sizes = [8, 32], strides = [1, 1]} : vector<8x128xf32> to vector<8x32xf32>
    %546 = math.tanh %545 : vector<8x32xf32>
    %547 = vector.extract_strided_slice %544 {offsets = [0, 32], sizes = [8, 32], strides = [1, 1]} : vector<8x96xf32> to vector<8x32xf32>
    %548 = arith.mulf %547, %500 : vector<8x32xf32>
    %549 = vector.extract_strided_slice %544 {offsets = [0, 0], sizes = [8, 32], strides = [1, 1]} : vector<8x96xf32> to vector<8x32xf32>
    %550 = arith.mulf %549, %546 : vector<8x32xf32>
    %551 = arith.addf %548, %550 : vector<8x32xf32>
    %552 = vector.extract_strided_slice %544 {offsets = [0, 64], sizes = [8, 32], strides = [1, 1]} : vector<8x96xf32> to vector<8x32xf32>
    %553 = math.tanh %551 : vector<8x32xf32>
    %554 = arith.mulf %552, %553 : vector<8x32xf32>
    %555 = vector.extract_strided_slice %538 {offsets = [0, 0], sizes = [8, 96], strides = [1, 1]} : vector<8x128xf32> to vector<8x96xf32>
    %556 = arith.negf %555 : vector<8x96xf32>
    %557 = math.exp %556 : vector<8x96xf32>
    %cst_119 = arith.constant 1.000000e+00 : f32
    %558 = vector.broadcast %cst_119 : f32 to vector<8x96xf32>
    %559 = arith.addf %558, %557 : vector<8x96xf32>
    %560 = arith.divf %558, %559 : vector<8x96xf32>
    %561 = vector.extract_strided_slice %538 {offsets = [0, 96], sizes = [8, 32], strides = [1, 1]} : vector<8x128xf32> to vector<8x32xf32>
    %562 = math.tanh %561 : vector<8x32xf32>
    %563 = vector.extract_strided_slice %560 {offsets = [0, 32], sizes = [8, 32], strides = [1, 1]} : vector<8x96xf32> to vector<8x32xf32>
    %564 = arith.mulf %563, %516 : vector<8x32xf32>
    %565 = vector.extract_strided_slice %560 {offsets = [0, 0], sizes = [8, 32], strides = [1, 1]} : vector<8x96xf32> to vector<8x32xf32>
    %566 = arith.mulf %565, %562 : vector<8x32xf32>
    %567 = arith.addf %564, %566 : vector<8x32xf32>
    %568 = vector.extract_strided_slice %560 {offsets = [0, 64], sizes = [8, 32], strides = [1, 1]} : vector<8x96xf32> to vector<8x32xf32>
    %569 = math.tanh %567 : vector<8x32xf32>
    %570 = arith.mulf %568, %569 : vector<8x32xf32>
    %571 = arith.index_cast %526 : i32 to index
    %c0_120 = arith.constant 0 : index
    %572 = vector.load %arg16[%571, %c0_120] : memref<112x64xf32, #tpu.memory_space<vmem>>, vector<8x32xf32>
    tpu.vector_store %arg16[%571, %c0_120], %554 {strides = array<i32>} : memref<112x64xf32, #tpu.memory_space<vmem>>, vector<8x32xf32>,
    %573 = arith.index_cast %528 : i32 to index
    %c32_121 = arith.constant 32 : index
    %574 = vector.load %arg16[%573, %c32_121] : memref<112x64xf32, #tpu.memory_space<vmem>>, vector<8x32xf32>
    tpu.vector_store %arg16[%573, %c32_121], %570 {strides = array<i32>} : memref<112x64xf32, #tpu.memory_space<vmem>>, vector<8x32xf32>,
    %c11_i32 = arith.constant 11 : i32
    %c13_i32_122 = arith.constant 13 : i32
    %575 = arith.subi %c13_i32_122, %c11_i32 : i32
    %c8_i32_123 = arith.constant 8 : i32
    %576 = arith.muli %c11_i32, %c8_i32_123 : i32
    %577 = tpu.assume_multiple %576, 8 : i32
    %c8_i32_124 = arith.constant 8 : i32
    %578 = arith.muli %575, %c8_i32_124 : i32
    %579 = tpu.assume_multiple %578, 8 : i32
    %580 = tpu.concatenate %554, %570 in 1 : vector<8x32xf32>, vector<8x32xf32> -> vector<8x64xf32>
    %cst_125 = arith.constant dense<0.000000e+00> : vector<8x256xf32>
    %581 = tpu.matmul %580, %13, %cst_125 {dimension_numbers = #tpu.dot_dimension_numbers<[1], [0], [0], [1], [0, 0, 1, 1], [], []>} : vector<8x64xf32>, vector<64x256xf32>, vector<8x256xf32> -> vector<8x256xf32>
    %582 = vector.extract_strided_slice %581 {offsets = [0, 0], sizes = [8, 128], strides = [1, 1]} : vector<8x256xf32> to vector<8x128xf32>
    %583 = arith.index_cast %577 : i32 to index
    %c0_126 = arith.constant 0 : index
    %584 = vector.load %arg15[%583, %c0_126] : memref<112x256xf32, #tpu.memory_space<vmem>>, vector<8x128xf32>
    %585 = arith.addf %582, %584 : vector<8x128xf32>
    %586 = vector.extract_strided_slice %581 {offsets = [0, 128], sizes = [8, 128], strides = [1, 1]} : vector<8x256xf32> to vector<8x128xf32>
    %587 = arith.index_cast %579 : i32 to index
    %c128_127 = arith.constant 128 : index
    %588 = vector.load %arg15[%587, %c128_127] : memref<112x256xf32, #tpu.memory_space<vmem>>, vector<8x128xf32>
    %589 = arith.addf %586, %588 : vector<8x128xf32>
    %590 = vector.extract_strided_slice %585 {offsets = [0, 0], sizes = [8, 96], strides = [1, 1]} : vector<8x128xf32> to vector<8x96xf32>
    %591 = arith.negf %590 : vector<8x96xf32>
    %592 = math.exp %591 : vector<8x96xf32>
    %cst_128 = arith.constant 1.000000e+00 : f32
    %593 = vector.broadcast %cst_128 : f32 to vector<8x96xf32>
    %594 = arith.addf %593, %592 : vector<8x96xf32>
    %595 = arith.divf %593, %594 : vector<8x96xf32>
    %596 = vector.extract_strided_slice %585 {offsets = [0, 96], sizes = [8, 32], strides = [1, 1]} : vector<8x128xf32> to vector<8x32xf32>
    %597 = math.tanh %596 : vector<8x32xf32>
    %598 = vector.extract_strided_slice %595 {offsets = [0, 32], sizes = [8, 32], strides = [1, 1]} : vector<8x96xf32> to vector<8x32xf32>
    %599 = arith.mulf %598, %551 : vector<8x32xf32>
    %600 = vector.extract_strided_slice %595 {offsets = [0, 0], sizes = [8, 32], strides = [1, 1]} : vector<8x96xf32> to vector<8x32xf32>
    %601 = arith.mulf %600, %597 : vector<8x32xf32>
    %602 = arith.addf %599, %601 : vector<8x32xf32>
    %603 = vector.extract_strided_slice %595 {offsets = [0, 64], sizes = [8, 32], strides = [1, 1]} : vector<8x96xf32> to vector<8x32xf32>
    %604 = math.tanh %602 : vector<8x32xf32>
    %605 = arith.mulf %603, %604 : vector<8x32xf32>
    %606 = vector.extract_strided_slice %589 {offsets = [0, 0], sizes = [8, 96], strides = [1, 1]} : vector<8x128xf32> to vector<8x96xf32>
    %607 = arith.negf %606 : vector<8x96xf32>
    %608 = math.exp %607 : vector<8x96xf32>
    %cst_129 = arith.constant 1.000000e+00 : f32
    %609 = vector.broadcast %cst_129 : f32 to vector<8x96xf32>
    %610 = arith.addf %609, %608 : vector<8x96xf32>
    %611 = arith.divf %609, %610 : vector<8x96xf32>
    %612 = vector.extract_strided_slice %589 {offsets = [0, 96], sizes = [8, 32], strides = [1, 1]} : vector<8x128xf32> to vector<8x32xf32>
    %613 = math.tanh %612 : vector<8x32xf32>
    %614 = vector.extract_strided_slice %611 {offsets = [0, 32], sizes = [8, 32], strides = [1, 1]} : vector<8x96xf32> to vector<8x32xf32>
    %615 = arith.mulf %614, %567 : vector<8x32xf32>
    %616 = vector.extract_strided_slice %611 {offsets = [0, 0], sizes = [8, 32], strides = [1, 1]} : vector<8x96xf32> to vector<8x32xf32>
    %617 = arith.mulf %616, %613 : vector<8x32xf32>
    %618 = arith.addf %615, %617 : vector<8x32xf32>
    %619 = vector.extract_strided_slice %611 {offsets = [0, 64], sizes = [8, 32], strides = [1, 1]} : vector<8x96xf32> to vector<8x32xf32>
    %620 = math.tanh %618 : vector<8x32xf32>
    %621 = arith.mulf %619, %620 : vector<8x32xf32>
    %622 = arith.index_cast %577 : i32 to index
    %c0_130 = arith.constant 0 : index
    %623 = vector.load %arg16[%622, %c0_130] : memref<112x64xf32, #tpu.memory_space<vmem>>, vector<8x32xf32>
    tpu.vector_store %arg16[%622, %c0_130], %605 {strides = array<i32>} : memref<112x64xf32, #tpu.memory_space<vmem>>, vector<8x32xf32>,
    %624 = arith.index_cast %579 : i32 to index
    %c32_131 = arith.constant 32 : index
    %625 = vector.load %arg16[%624, %c32_131] : memref<112x64xf32, #tpu.memory_space<vmem>>, vector<8x32xf32>
    tpu.vector_store %arg16[%624, %c32_131], %621 {strides = array<i32>} : memref<112x64xf32, #tpu.memory_space<vmem>>, vector<8x32xf32>,
    %c12_i32 = arith.constant 12 : i32
    %c13_i32_132 = arith.constant 13 : i32
    %626 = arith.subi %c13_i32_132, %c12_i32 : i32
    %c8_i32_133 = arith.constant 8 : i32
    %627 = arith.muli %c12_i32, %c8_i32_133 : i32
    %628 = tpu.assume_multiple %627, 8 : i32
    %c8_i32_134 = arith.constant 8 : i32
    %629 = arith.muli %626, %c8_i32_134 : i32
    %630 = tpu.assume_multiple %629, 8 : i32
    %631 = tpu.concatenate %605, %621 in 1 : vector<8x32xf32>, vector<8x32xf32> -> vector<8x64xf32>
    %cst_135 = arith.constant dense<0.000000e+00> : vector<8x256xf32>
    %632 = tpu.matmul %631, %13, %cst_135 {dimension_numbers = #tpu.dot_dimension_numbers<[1], [0], [0], [1], [0, 0, 1, 1], [], []>} : vector<8x64xf32>, vector<64x256xf32>, vector<8x256xf32> -> vector<8x256xf32>
    %633 = vector.extract_strided_slice %632 {offsets = [0, 0], sizes = [8, 128], strides = [1, 1]} : vector<8x256xf32> to vector<8x128xf32>
    %634 = arith.index_cast %628 : i32 to index
    %c0_136 = arith.constant 0 : index
    %635 = vector.load %arg15[%634, %c0_136] : memref<112x256xf32, #tpu.memory_space<vmem>>, vector<8x128xf32>
    %636 = arith.addf %633, %635 : vector<8x128xf32>
    %637 = vector.extract_strided_slice %632 {offsets = [0, 128], sizes = [8, 128], strides = [1, 1]} : vector<8x256xf32> to vector<8x128xf32>
    %638 = arith.index_cast %630 : i32 to index
    %c128_137 = arith.constant 128 : index
    %639 = vector.load %arg15[%638, %c128_137] : memref<112x256xf32, #tpu.memory_space<vmem>>, vector<8x128xf32>
    %640 = arith.addf %637, %639 : vector<8x128xf32>
    %641 = vector.extract_strided_slice %636 {offsets = [0, 0], sizes = [8, 96], strides = [1, 1]} : vector<8x128xf32> to vector<8x96xf32>
    %642 = arith.negf %641 : vector<8x96xf32>
    %643 = math.exp %642 : vector<8x96xf32>
    %cst_138 = arith.constant 1.000000e+00 : f32
    %644 = vector.broadcast %cst_138 : f32 to vector<8x96xf32>
    %645 = arith.addf %644, %643 : vector<8x96xf32>
    %646 = arith.divf %644, %645 : vector<8x96xf32>
    %647 = vector.extract_strided_slice %636 {offsets = [0, 96], sizes = [8, 32], strides = [1, 1]} : vector<8x128xf32> to vector<8x32xf32>
    %648 = math.tanh %647 : vector<8x32xf32>
    %649 = vector.extract_strided_slice %646 {offsets = [0, 32], sizes = [8, 32], strides = [1, 1]} : vector<8x96xf32> to vector<8x32xf32>
    %650 = arith.mulf %649, %602 : vector<8x32xf32>
    %651 = vector.extract_strided_slice %646 {offsets = [0, 0], sizes = [8, 32], strides = [1, 1]} : vector<8x96xf32> to vector<8x32xf32>
    %652 = arith.mulf %651, %648 : vector<8x32xf32>
    %653 = arith.addf %650, %652 : vector<8x32xf32>
    %654 = vector.extract_strided_slice %646 {offsets = [0, 64], sizes = [8, 32], strides = [1, 1]} : vector<8x96xf32> to vector<8x32xf32>
    %655 = math.tanh %653 : vector<8x32xf32>
    %656 = arith.mulf %654, %655 : vector<8x32xf32>
    %657 = vector.extract_strided_slice %640 {offsets = [0, 0], sizes = [8, 96], strides = [1, 1]} : vector<8x128xf32> to vector<8x96xf32>
    %658 = arith.negf %657 : vector<8x96xf32>
    %659 = math.exp %658 : vector<8x96xf32>
    %cst_139 = arith.constant 1.000000e+00 : f32
    %660 = vector.broadcast %cst_139 : f32 to vector<8x96xf32>
    %661 = arith.addf %660, %659 : vector<8x96xf32>
    %662 = arith.divf %660, %661 : vector<8x96xf32>
    %663 = vector.extract_strided_slice %640 {offsets = [0, 96], sizes = [8, 32], strides = [1, 1]} : vector<8x128xf32> to vector<8x32xf32>
    %664 = math.tanh %663 : vector<8x32xf32>
    %665 = vector.extract_strided_slice %662 {offsets = [0, 32], sizes = [8, 32], strides = [1, 1]} : vector<8x96xf32> to vector<8x32xf32>
    %666 = arith.mulf %665, %618 : vector<8x32xf32>
    %667 = vector.extract_strided_slice %662 {offsets = [0, 0], sizes = [8, 32], strides = [1, 1]} : vector<8x96xf32> to vector<8x32xf32>
    %668 = arith.mulf %667, %664 : vector<8x32xf32>
    %669 = arith.addf %666, %668 : vector<8x32xf32>
    %670 = vector.extract_strided_slice %662 {offsets = [0, 64], sizes = [8, 32], strides = [1, 1]} : vector<8x96xf32> to vector<8x32xf32>
    %671 = math.tanh %669 : vector<8x32xf32>
    %672 = arith.mulf %670, %671 : vector<8x32xf32>
    %673 = arith.index_cast %628 : i32 to index
    %c0_140 = arith.constant 0 : index
    %674 = vector.load %arg16[%673, %c0_140] : memref<112x64xf32, #tpu.memory_space<vmem>>, vector<8x32xf32>
    tpu.vector_store %arg16[%673, %c0_140], %656 {strides = array<i32>} : memref<112x64xf32, #tpu.memory_space<vmem>>, vector<8x32xf32>,
    %675 = arith.index_cast %630 : i32 to index
    %c32_141 = arith.constant 32 : index
    %676 = vector.load %arg16[%675, %c32_141] : memref<112x64xf32, #tpu.memory_space<vmem>>, vector<8x32xf32>
    tpu.vector_store %arg16[%675, %c32_141], %672 {strides = array<i32>} : memref<112x64xf32, #tpu.memory_space<vmem>>, vector<8x32xf32>,
    %c13_i32_142 = arith.constant 13 : i32
    %c13_i32_143 = arith.constant 13 : i32
    %677 = arith.subi %c13_i32_143, %c13_i32_142 : i32
    %c8_i32_144 = arith.constant 8 : i32
    %678 = arith.muli %c13_i32_142, %c8_i32_144 : i32
    %679 = tpu.assume_multiple %678, 8 : i32
    %c8_i32_145 = arith.constant 8 : i32
    %680 = arith.muli %677, %c8_i32_145 : i32
    %681 = tpu.assume_multiple %680, 8 : i32
    %682 = tpu.concatenate %656, %672 in 1 : vector<8x32xf32>, vector<8x32xf32> -> vector<8x64xf32>
    %cst_146 = arith.constant dense<0.000000e+00> : vector<8x256xf32>
    %683 = tpu.matmul %682, %13, %cst_146 {dimension_numbers = #tpu.dot_dimension_numbers<[1], [0], [0], [1], [0, 0, 1, 1], [], []>} : vector<8x64xf32>, vector<64x256xf32>, vector<8x256xf32> -> vector<8x256xf32>
    %684 = vector.extract_strided_slice %683 {offsets = [0, 0], sizes = [8, 128], strides = [1, 1]} : vector<8x256xf32> to vector<8x128xf32>
    %685 = arith.index_cast %679 : i32 to index
    %c0_147 = arith.constant 0 : index
    %686 = vector.load %arg15[%685, %c0_147] : memref<112x256xf32, #tpu.memory_space<vmem>>, vector<8x128xf32>
    %687 = arith.addf %684, %686 : vector<8x128xf32>
    %688 = vector.extract_strided_slice %683 {offsets = [0, 128], sizes = [8, 128], strides = [1, 1]} : vector<8x256xf32> to vector<8x128xf32>
    %689 = arith.index_cast %681 : i32 to index
    %c128_148 = arith.constant 128 : index
    %690 = vector.load %arg15[%689, %c128_148] : memref<112x256xf32, #tpu.memory_space<vmem>>, vector<8x128xf32>
    %691 = arith.addf %688, %690 : vector<8x128xf32>
    %692 = vector.extract_strided_slice %687 {offsets = [0, 0], sizes = [8, 96], strides = [1, 1]} : vector<8x128xf32> to vector<8x96xf32>
    %693 = arith.negf %692 : vector<8x96xf32>
    %694 = math.exp %693 : vector<8x96xf32>
    %cst_149 = arith.constant 1.000000e+00 : f32
    %695 = vector.broadcast %cst_149 : f32 to vector<8x96xf32>
    %696 = arith.addf %695, %694 : vector<8x96xf32>
    %697 = arith.divf %695, %696 : vector<8x96xf32>
    %698 = vector.extract_strided_slice %687 {offsets = [0, 96], sizes = [8, 32], strides = [1, 1]} : vector<8x128xf32> to vector<8x32xf32>
    %699 = math.tanh %698 : vector<8x32xf32>
    %700 = vector.extract_strided_slice %697 {offsets = [0, 32], sizes = [8, 32], strides = [1, 1]} : vector<8x96xf32> to vector<8x32xf32>
    %701 = arith.mulf %700, %653 : vector<8x32xf32>
    %702 = vector.extract_strided_slice %697 {offsets = [0, 0], sizes = [8, 32], strides = [1, 1]} : vector<8x96xf32> to vector<8x32xf32>
    %703 = arith.mulf %702, %699 : vector<8x32xf32>
    %704 = arith.addf %701, %703 : vector<8x32xf32>
    %705 = vector.extract_strided_slice %697 {offsets = [0, 64], sizes = [8, 32], strides = [1, 1]} : vector<8x96xf32> to vector<8x32xf32>
    %706 = math.tanh %704 : vector<8x32xf32>
    %707 = arith.mulf %705, %706 : vector<8x32xf32>
    %708 = vector.extract_strided_slice %691 {offsets = [0, 0], sizes = [8, 96], strides = [1, 1]} : vector<8x128xf32> to vector<8x96xf32>
    %709 = arith.negf %708 : vector<8x96xf32>
    %710 = math.exp %709 : vector<8x96xf32>
    %cst_150 = arith.constant 1.000000e+00 : f32
    %711 = vector.broadcast %cst_150 : f32 to vector<8x96xf32>
    %712 = arith.addf %711, %710 : vector<8x96xf32>
    %713 = arith.divf %711, %712 : vector<8x96xf32>
    %714 = vector.extract_strided_slice %691 {offsets = [0, 96], sizes = [8, 32], strides = [1, 1]} : vector<8x128xf32> to vector<8x32xf32>
    %715 = math.tanh %714 : vector<8x32xf32>
    %716 = vector.extract_strided_slice %713 {offsets = [0, 32], sizes = [8, 32], strides = [1, 1]} : vector<8x96xf32> to vector<8x32xf32>
    %717 = arith.mulf %716, %669 : vector<8x32xf32>
    %718 = vector.extract_strided_slice %713 {offsets = [0, 0], sizes = [8, 32], strides = [1, 1]} : vector<8x96xf32> to vector<8x32xf32>
    %719 = arith.mulf %718, %715 : vector<8x32xf32>
    %720 = arith.addf %717, %719 : vector<8x32xf32>
    %721 = vector.extract_strided_slice %713 {offsets = [0, 64], sizes = [8, 32], strides = [1, 1]} : vector<8x96xf32> to vector<8x32xf32>
    %722 = math.tanh %720 : vector<8x32xf32>
    %723 = arith.mulf %721, %722 : vector<8x32xf32>
    %724 = arith.index_cast %679 : i32 to index
    %c0_151 = arith.constant 0 : index
    %725 = vector.load %arg16[%724, %c0_151] : memref<112x64xf32, #tpu.memory_space<vmem>>, vector<8x32xf32>
    tpu.vector_store %arg16[%724, %c0_151], %707 {strides = array<i32>} : memref<112x64xf32, #tpu.memory_space<vmem>>, vector<8x32xf32>,
    %726 = arith.index_cast %681 : i32 to index
    %c32_152 = arith.constant 32 : index
    %727 = vector.load %arg16[%726, %c32_152] : memref<112x64xf32, #tpu.memory_space<vmem>>, vector<8x32xf32>
    tpu.vector_store %arg16[%726, %c32_152], %723 {strides = array<i32>} : memref<112x64xf32, #tpu.memory_space<vmem>>, vector<8x32xf32>,
    %c14_i32 = arith.constant 14 : i32
    %c0_153 = arith.constant 0 : index
    %c0_154 = arith.constant 0 : index
    %728 = vector.load %arg16[%c0_153, %c0_154] : memref<112x64xf32, #tpu.memory_space<vmem>>, vector<112x64xf32>
    %c0_155 = arith.constant 0 : index
    %c0_156 = arith.constant 0 : index
    %729 = vector.load %arg6[%c0_155, %c0_156] : memref<64x256xf32, #tpu.memory_space<vmem>>, vector<64x256xf32>
    %cst_157 = arith.constant dense<0.000000e+00> : vector<112x256xf32>
    %730 = tpu.matmul %728, %729, %cst_157 {dimension_numbers = #tpu.dot_dimension_numbers<[1], [0], [0], [1], [0, 0, 1, 1], [], []>} : vector<112x64xf32>, vector<64x256xf32>, vector<112x256xf32> -> vector<112x256xf32>
    %c0_158 = arith.constant 0 : index
    %c0_159 = arith.constant 0 : index
    %731 = vector.load %arg7[%c0_158, %c0_159] : memref<1x256xf32, #tpu.memory_space<vmem>>, vector<1x256xf32>
    %732 = vector.broadcast %731 : vector<1x256xf32> to vector<112x256xf32>
    %733 = arith.addf %730, %732 : vector<112x256xf32>
    %c0_160 = arith.constant 0 : index
    %c0_161 = arith.constant 0 : index
    %734 = vector.load %arg15[%c0_160, %c0_161] : memref<112x256xf32, #tpu.memory_space<vmem>>, vector<112x256xf32>
    tpu.vector_store %arg15[%c0_160, %c0_161], %733 {strides = array<i32>} : memref<112x256xf32, #tpu.memory_space<vmem>>, vector<112x256xf32>,
    %c0_162 = arith.constant 0 : index
    %c0_163 = arith.constant 0 : index
    %735 = vector.load %arg8[%c0_162, %c0_163] : memref<64x256xf32, #tpu.memory_space<vmem>>, vector<64x256xf32>
    %c0_i32_164 = arith.constant 0 : i32
    %c13_i32_165 = arith.constant 13 : i32
    %736 = arith.subi %c13_i32_165, %c0_i32_164 : i32
    %c8_i32_166 = arith.constant 8 : i32
    %737 = arith.muli %c0_i32_164, %c8_i32_166 : i32
    %738 = tpu.assume_multiple %737, 8 : i32
    %c8_i32_167 = arith.constant 8 : i32
    %739 = arith.muli %736, %c8_i32_167 : i32
    %740 = tpu.assume_multiple %739, 8 : i32
    %741 = tpu.concatenate %12, %12 in 1 : vector<8x32xf32>, vector<8x32xf32> -> vector<8x64xf32>
    %cst_168 = arith.constant dense<0.000000e+00> : vector<8x256xf32>
    %742 = tpu.matmul %741, %735, %cst_168 {dimension_numbers = #tpu.dot_dimension_numbers<[1], [0], [0], [1], [0, 0, 1, 1], [], []>} : vector<8x64xf32>, vector<64x256xf32>, vector<8x256xf32> -> vector<8x256xf32>
    %743 = vector.extract_strided_slice %742 {offsets = [0, 0], sizes = [8, 128], strides = [1, 1]} : vector<8x256xf32> to vector<8x128xf32>
    %744 = arith.index_cast %738 : i32 to index
    %c0_169 = arith.constant 0 : index
    %745 = vector.load %arg15[%744, %c0_169] : memref<112x256xf32, #tpu.memory_space<vmem>>, vector<8x128xf32>
    %746 = arith.addf %743, %745 : vector<8x128xf32>
    %747 = vector.extract_strided_slice %742 {offsets = [0, 128], sizes = [8, 128], strides = [1, 1]} : vector<8x256xf32> to vector<8x128xf32>
    %748 = arith.index_cast %740 : i32 to index
    %c128_170 = arith.constant 128 : index
    %749 = vector.load %arg15[%748, %c128_170] : memref<112x256xf32, #tpu.memory_space<vmem>>, vector<8x128xf32>
    %750 = arith.addf %747, %749 : vector<8x128xf32>
    %751 = vector.extract_strided_slice %746 {offsets = [0, 0], sizes = [8, 96], strides = [1, 1]} : vector<8x128xf32> to vector<8x96xf32>
    %752 = arith.negf %751 : vector<8x96xf32>
    %753 = math.exp %752 : vector<8x96xf32>
    %cst_171 = arith.constant 1.000000e+00 : f32
    %754 = vector.broadcast %cst_171 : f32 to vector<8x96xf32>
    %755 = arith.addf %754, %753 : vector<8x96xf32>
    %756 = arith.divf %754, %755 : vector<8x96xf32>
    %757 = vector.extract_strided_slice %746 {offsets = [0, 96], sizes = [8, 32], strides = [1, 1]} : vector<8x128xf32> to vector<8x32xf32>
    %758 = math.tanh %757 : vector<8x32xf32>
    %759 = vector.extract_strided_slice %756 {offsets = [0, 32], sizes = [8, 32], strides = [1, 1]} : vector<8x96xf32> to vector<8x32xf32>
    %760 = arith.mulf %759, %12 : vector<8x32xf32>
    %761 = vector.extract_strided_slice %756 {offsets = [0, 0], sizes = [8, 32], strides = [1, 1]} : vector<8x96xf32> to vector<8x32xf32>
    %762 = arith.mulf %761, %758 : vector<8x32xf32>
    %763 = arith.addf %760, %762 : vector<8x32xf32>
    %764 = vector.extract_strided_slice %756 {offsets = [0, 64], sizes = [8, 32], strides = [1, 1]} : vector<8x96xf32> to vector<8x32xf32>
    %765 = math.tanh %763 : vector<8x32xf32>
    %766 = arith.mulf %764, %765 : vector<8x32xf32>
    %767 = vector.extract_strided_slice %750 {offsets = [0, 0], sizes = [8, 96], strides = [1, 1]} : vector<8x128xf32> to vector<8x96xf32>
    %768 = arith.negf %767 : vector<8x96xf32>
    %769 = math.exp %768 : vector<8x96xf32>
    %cst_172 = arith.constant 1.000000e+00 : f32
    %770 = vector.broadcast %cst_172 : f32 to vector<8x96xf32>
    %771 = arith.addf %770, %769 : vector<8x96xf32>
    %772 = arith.divf %770, %771 : vector<8x96xf32>
    %773 = vector.extract_strided_slice %750 {offsets = [0, 96], sizes = [8, 32], strides = [1, 1]} : vector<8x128xf32> to vector<8x32xf32>
    %774 = math.tanh %773 : vector<8x32xf32>
    %775 = vector.extract_strided_slice %772 {offsets = [0, 32], sizes = [8, 32], strides = [1, 1]} : vector<8x96xf32> to vector<8x32xf32>
    %776 = arith.mulf %775, %12 : vector<8x32xf32>
    %777 = vector.extract_strided_slice %772 {offsets = [0, 0], sizes = [8, 32], strides = [1, 1]} : vector<8x96xf32> to vector<8x32xf32>
    %778 = arith.mulf %777, %774 : vector<8x32xf32>
    %779 = arith.addf %776, %778 : vector<8x32xf32>
    %780 = vector.extract_strided_slice %772 {offsets = [0, 64], sizes = [8, 32], strides = [1, 1]} : vector<8x96xf32> to vector<8x32xf32>
    %781 = math.tanh %779 : vector<8x32xf32>
    %782 = arith.mulf %780, %781 : vector<8x32xf32>
    %783 = arith.index_cast %c0_i32_164 : i32 to index
    %784 = memref.load %arg9[%783] : memref<14xf32, #tpu.memory_space<smem>>
    %785 = vector.broadcast %784 : f32 to vector<8x32xf32>
    %786 = arith.mulf %785, %766 : vector<8x32xf32>
    %787 = arith.addf %12, %786 : vector<8x32xf32>
    %788 = arith.index_cast %736 : i32 to index
    %789 = memref.load %arg9[%788] : memref<14xf32, #tpu.memory_space<smem>>
    %790 = vector.broadcast %789 : f32 to vector<8x32xf32>
    %791 = arith.mulf %790, %782 : vector<8x32xf32>
    %792 = arith.addf %12, %791 : vector<8x32xf32>
    %c1_i32_173 = arith.constant 1 : i32
    %c13_i32_174 = arith.constant 13 : i32
    %793 = arith.subi %c13_i32_174, %c1_i32_173 : i32
    %c8_i32_175 = arith.constant 8 : i32
    %794 = arith.muli %c1_i32_173, %c8_i32_175 : i32
    %795 = tpu.assume_multiple %794, 8 : i32
    %c8_i32_176 = arith.constant 8 : i32
    %796 = arith.muli %793, %c8_i32_176 : i32
    %797 = tpu.assume_multiple %796, 8 : i32
    %798 = tpu.concatenate %766, %782 in 1 : vector<8x32xf32>, vector<8x32xf32> -> vector<8x64xf32>
    %cst_177 = arith.constant dense<0.000000e+00> : vector<8x256xf32>
    %799 = tpu.matmul %798, %735, %cst_177 {dimension_numbers = #tpu.dot_dimension_numbers<[1], [0], [0], [1], [0, 0, 1, 1], [], []>} : vector<8x64xf32>, vector<64x256xf32>, vector<8x256xf32> -> vector<8x256xf32>
    %800 = vector.extract_strided_slice %799 {offsets = [0, 0], sizes = [8, 128], strides = [1, 1]} : vector<8x256xf32> to vector<8x128xf32>
    %801 = arith.index_cast %795 : i32 to index
    %c0_178 = arith.constant 0 : index
    %802 = vector.load %arg15[%801, %c0_178] : memref<112x256xf32, #tpu.memory_space<vmem>>, vector<8x128xf32>
    %803 = arith.addf %800, %802 : vector<8x128xf32>
    %804 = vector.extract_strided_slice %799 {offsets = [0, 128], sizes = [8, 128], strides = [1, 1]} : vector<8x256xf32> to vector<8x128xf32>
    %805 = arith.index_cast %797 : i32 to index
    %c128_179 = arith.constant 128 : index
    %806 = vector.load %arg15[%805, %c128_179] : memref<112x256xf32, #tpu.memory_space<vmem>>, vector<8x128xf32>
    %807 = arith.addf %804, %806 : vector<8x128xf32>
    %808 = vector.extract_strided_slice %803 {offsets = [0, 0], sizes = [8, 96], strides = [1, 1]} : vector<8x128xf32> to vector<8x96xf32>
    %809 = arith.negf %808 : vector<8x96xf32>
    %810 = math.exp %809 : vector<8x96xf32>
    %cst_180 = arith.constant 1.000000e+00 : f32
    %811 = vector.broadcast %cst_180 : f32 to vector<8x96xf32>
    %812 = arith.addf %811, %810 : vector<8x96xf32>
    %813 = arith.divf %811, %812 : vector<8x96xf32>
    %814 = vector.extract_strided_slice %803 {offsets = [0, 96], sizes = [8, 32], strides = [1, 1]} : vector<8x128xf32> to vector<8x32xf32>
    %815 = math.tanh %814 : vector<8x32xf32>
    %816 = vector.extract_strided_slice %813 {offsets = [0, 32], sizes = [8, 32], strides = [1, 1]} : vector<8x96xf32> to vector<8x32xf32>
    %817 = arith.mulf %816, %763 : vector<8x32xf32>
    %818 = vector.extract_strided_slice %813 {offsets = [0, 0], sizes = [8, 32], strides = [1, 1]} : vector<8x96xf32> to vector<8x32xf32>
    %819 = arith.mulf %818, %815 : vector<8x32xf32>
    %820 = arith.addf %817, %819 : vector<8x32xf32>
    %821 = vector.extract_strided_slice %813 {offsets = [0, 64], sizes = [8, 32], strides = [1, 1]} : vector<8x96xf32> to vector<8x32xf32>
    %822 = math.tanh %820 : vector<8x32xf32>
    %823 = arith.mulf %821, %822 : vector<8x32xf32>
    %824 = vector.extract_strided_slice %807 {offsets = [0, 0], sizes = [8, 96], strides = [1, 1]} : vector<8x128xf32> to vector<8x96xf32>
    %825 = arith.negf %824 : vector<8x96xf32>
    %826 = math.exp %825 : vector<8x96xf32>
    %cst_181 = arith.constant 1.000000e+00 : f32
    %827 = vector.broadcast %cst_181 : f32 to vector<8x96xf32>
    %828 = arith.addf %827, %826 : vector<8x96xf32>
    %829 = arith.divf %827, %828 : vector<8x96xf32>
    %830 = vector.extract_strided_slice %807 {offsets = [0, 96], sizes = [8, 32], strides = [1, 1]} : vector<8x128xf32> to vector<8x32xf32>
    %831 = math.tanh %830 : vector<8x32xf32>
    %832 = vector.extract_strided_slice %829 {offsets = [0, 32], sizes = [8, 32], strides = [1, 1]} : vector<8x96xf32> to vector<8x32xf32>
    %833 = arith.mulf %832, %779 : vector<8x32xf32>
    %834 = vector.extract_strided_slice %829 {offsets = [0, 0], sizes = [8, 32], strides = [1, 1]} : vector<8x96xf32> to vector<8x32xf32>
    %835 = arith.mulf %834, %831 : vector<8x32xf32>
    %836 = arith.addf %833, %835 : vector<8x32xf32>
    %837 = vector.extract_strided_slice %829 {offsets = [0, 64], sizes = [8, 32], strides = [1, 1]} : vector<8x96xf32> to vector<8x32xf32>
    %838 = math.tanh %836 : vector<8x32xf32>
    %839 = arith.mulf %837, %838 : vector<8x32xf32>
    %840 = arith.index_cast %c1_i32_173 : i32 to index
    %841 = memref.load %arg9[%840] : memref<14xf32, #tpu.memory_space<smem>>
    %842 = vector.broadcast %841 : f32 to vector<8x32xf32>
    %843 = arith.mulf %842, %823 : vector<8x32xf32>
    %844 = arith.addf %787, %843 : vector<8x32xf32>
    %845 = arith.index_cast %793 : i32 to index
    %846 = memref.load %arg9[%845] : memref<14xf32, #tpu.memory_space<smem>>
    %847 = vector.broadcast %846 : f32 to vector<8x32xf32>
    %848 = arith.mulf %847, %839 : vector<8x32xf32>
    %849 = arith.addf %792, %848 : vector<8x32xf32>
    %c2_i32_182 = arith.constant 2 : i32
    %c13_i32_183 = arith.constant 13 : i32
    %850 = arith.subi %c13_i32_183, %c2_i32_182 : i32
    %c8_i32_184 = arith.constant 8 : i32
    %851 = arith.muli %c2_i32_182, %c8_i32_184 : i32
    %852 = tpu.assume_multiple %851, 8 : i32
    %c8_i32_185 = arith.constant 8 : i32
    %853 = arith.muli %850, %c8_i32_185 : i32
    %854 = tpu.assume_multiple %853, 8 : i32
    %855 = tpu.concatenate %823, %839 in 1 : vector<8x32xf32>, vector<8x32xf32> -> vector<8x64xf32>
    %cst_186 = arith.constant dense<0.000000e+00> : vector<8x256xf32>
    %856 = tpu.matmul %855, %735, %cst_186 {dimension_numbers = #tpu.dot_dimension_numbers<[1], [0], [0], [1], [0, 0, 1, 1], [], []>} : vector<8x64xf32>, vector<64x256xf32>, vector<8x256xf32> -> vector<8x256xf32>
    %857 = vector.extract_strided_slice %856 {offsets = [0, 0], sizes = [8, 128], strides = [1, 1]} : vector<8x256xf32> to vector<8x128xf32>
    %858 = arith.index_cast %852 : i32 to index
    %c0_187 = arith.constant 0 : index
    %859 = vector.load %arg15[%858, %c0_187] : memref<112x256xf32, #tpu.memory_space<vmem>>, vector<8x128xf32>
    %860 = arith.addf %857, %859 : vector<8x128xf32>
    %861 = vector.extract_strided_slice %856 {offsets = [0, 128], sizes = [8, 128], strides = [1, 1]} : vector<8x256xf32> to vector<8x128xf32>
    %862 = arith.index_cast %854 : i32 to index
    %c128_188 = arith.constant 128 : index
    %863 = vector.load %arg15[%862, %c128_188] : memref<112x256xf32, #tpu.memory_space<vmem>>, vector<8x128xf32>
    %864 = arith.addf %861, %863 : vector<8x128xf32>
    %865 = vector.extract_strided_slice %860 {offsets = [0, 0], sizes = [8, 96], strides = [1, 1]} : vector<8x128xf32> to vector<8x96xf32>
    %866 = arith.negf %865 : vector<8x96xf32>
    %867 = math.exp %866 : vector<8x96xf32>
    %cst_189 = arith.constant 1.000000e+00 : f32
    %868 = vector.broadcast %cst_189 : f32 to vector<8x96xf32>
    %869 = arith.addf %868, %867 : vector<8x96xf32>
    %870 = arith.divf %868, %869 : vector<8x96xf32>
    %871 = vector.extract_strided_slice %860 {offsets = [0, 96], sizes = [8, 32], strides = [1, 1]} : vector<8x128xf32> to vector<8x32xf32>
    %872 = math.tanh %871 : vector<8x32xf32>
    %873 = vector.extract_strided_slice %870 {offsets = [0, 32], sizes = [8, 32], strides = [1, 1]} : vector<8x96xf32> to vector<8x32xf32>
    %874 = arith.mulf %873, %820 : vector<8x32xf32>
    %875 = vector.extract_strided_slice %870 {offsets = [0, 0], sizes = [8, 32], strides = [1, 1]} : vector<8x96xf32> to vector<8x32xf32>
    %876 = arith.mulf %875, %872 : vector<8x32xf32>
    %877 = arith.addf %874, %876 : vector<8x32xf32>
    %878 = vector.extract_strided_slice %870 {offsets = [0, 64], sizes = [8, 32], strides = [1, 1]} : vector<8x96xf32> to vector<8x32xf32>
    %879 = math.tanh %877 : vector<8x32xf32>
    %880 = arith.mulf %878, %879 : vector<8x32xf32>
    %881 = vector.extract_strided_slice %864 {offsets = [0, 0], sizes = [8, 96], strides = [1, 1]} : vector<8x128xf32> to vector<8x96xf32>
    %882 = arith.negf %881 : vector<8x96xf32>
    %883 = math.exp %882 : vector<8x96xf32>
    %cst_190 = arith.constant 1.000000e+00 : f32
    %884 = vector.broadcast %cst_190 : f32 to vector<8x96xf32>
    %885 = arith.addf %884, %883 : vector<8x96xf32>
    %886 = arith.divf %884, %885 : vector<8x96xf32>
    %887 = vector.extract_strided_slice %864 {offsets = [0, 96], sizes = [8, 32], strides = [1, 1]} : vector<8x128xf32> to vector<8x32xf32>
    %888 = math.tanh %887 : vector<8x32xf32>
    %889 = vector.extract_strided_slice %886 {offsets = [0, 32], sizes = [8, 32], strides = [1, 1]} : vector<8x96xf32> to vector<8x32xf32>
    %890 = arith.mulf %889, %836 : vector<8x32xf32>
    %891 = vector.extract_strided_slice %886 {offsets = [0, 0], sizes = [8, 32], strides = [1, 1]} : vector<8x96xf32> to vector<8x32xf32>
    %892 = arith.mulf %891, %888 : vector<8x32xf32>
    %893 = arith.addf %890, %892 : vector<8x32xf32>
    %894 = vector.extract_strided_slice %886 {offsets = [0, 64], sizes = [8, 32], strides = [1, 1]} : vector<8x96xf32> to vector<8x32xf32>
    %895 = math.tanh %893 : vector<8x32xf32>
    %896 = arith.mulf %894, %895 : vector<8x32xf32>
    %897 = arith.index_cast %c2_i32_182 : i32 to index
    %898 = memref.load %arg9[%897] : memref<14xf32, #tpu.memory_space<smem>>
    %899 = vector.broadcast %898 : f32 to vector<8x32xf32>
    %900 = arith.mulf %899, %880 : vector<8x32xf32>
    %901 = arith.addf %844, %900 : vector<8x32xf32>
    %902 = arith.index_cast %850 : i32 to index
    %903 = memref.load %arg9[%902] : memref<14xf32, #tpu.memory_space<smem>>
    %904 = vector.broadcast %903 : f32 to vector<8x32xf32>
    %905 = arith.mulf %904, %896 : vector<8x32xf32>
    %906 = arith.addf %849, %905 : vector<8x32xf32>
    %c3_i32_191 = arith.constant 3 : i32
    %c13_i32_192 = arith.constant 13 : i32
    %907 = arith.subi %c13_i32_192, %c3_i32_191 : i32
    %c8_i32_193 = arith.constant 8 : i32
    %908 = arith.muli %c3_i32_191, %c8_i32_193 : i32
    %909 = tpu.assume_multiple %908, 8 : i32
    %c8_i32_194 = arith.constant 8 : i32
    %910 = arith.muli %907, %c8_i32_194 : i32
    %911 = tpu.assume_multiple %910, 8 : i32
    %912 = tpu.concatenate %880, %896 in 1 : vector<8x32xf32>, vector<8x32xf32> -> vector<8x64xf32>
    %cst_195 = arith.constant dense<0.000000e+00> : vector<8x256xf32>
    %913 = tpu.matmul %912, %735, %cst_195 {dimension_numbers = #tpu.dot_dimension_numbers<[1], [0], [0], [1], [0, 0, 1, 1], [], []>} : vector<8x64xf32>, vector<64x256xf32>, vector<8x256xf32> -> vector<8x256xf32>
    %914 = vector.extract_strided_slice %913 {offsets = [0, 0], sizes = [8, 128], strides = [1, 1]} : vector<8x256xf32> to vector<8x128xf32>
    %915 = arith.index_cast %909 : i32 to index
    %c0_196 = arith.constant 0 : index
    %916 = vector.load %arg15[%915, %c0_196] : memref<112x256xf32, #tpu.memory_space<vmem>>, vector<8x128xf32>
    %917 = arith.addf %914, %916 : vector<8x128xf32>
    %918 = vector.extract_strided_slice %913 {offsets = [0, 128], sizes = [8, 128], strides = [1, 1]} : vector<8x256xf32> to vector<8x128xf32>
    %919 = arith.index_cast %911 : i32 to index
    %c128_197 = arith.constant 128 : index
    %920 = vector.load %arg15[%919, %c128_197] : memref<112x256xf32, #tpu.memory_space<vmem>>, vector<8x128xf32>
    %921 = arith.addf %918, %920 : vector<8x128xf32>
    %922 = vector.extract_strided_slice %917 {offsets = [0, 0], sizes = [8, 96], strides = [1, 1]} : vector<8x128xf32> to vector<8x96xf32>
    %923 = arith.negf %922 : vector<8x96xf32>
    %924 = math.exp %923 : vector<8x96xf32>
    %cst_198 = arith.constant 1.000000e+00 : f32
    %925 = vector.broadcast %cst_198 : f32 to vector<8x96xf32>
    %926 = arith.addf %925, %924 : vector<8x96xf32>
    %927 = arith.divf %925, %926 : vector<8x96xf32>
    %928 = vector.extract_strided_slice %917 {offsets = [0, 96], sizes = [8, 32], strides = [1, 1]} : vector<8x128xf32> to vector<8x32xf32>
    %929 = math.tanh %928 : vector<8x32xf32>
    %930 = vector.extract_strided_slice %927 {offsets = [0, 32], sizes = [8, 32], strides = [1, 1]} : vector<8x96xf32> to vector<8x32xf32>
    %931 = arith.mulf %930, %877 : vector<8x32xf32>
    %932 = vector.extract_strided_slice %927 {offsets = [0, 0], sizes = [8, 32], strides = [1, 1]} : vector<8x96xf32> to vector<8x32xf32>
    %933 = arith.mulf %932, %929 : vector<8x32xf32>
    %934 = arith.addf %931, %933 : vector<8x32xf32>
    %935 = vector.extract_strided_slice %927 {offsets = [0, 64], sizes = [8, 32], strides = [1, 1]} : vector<8x96xf32> to vector<8x32xf32>
    %936 = math.tanh %934 : vector<8x32xf32>
    %937 = arith.mulf %935, %936 : vector<8x32xf32>
    %938 = vector.extract_strided_slice %921 {offsets = [0, 0], sizes = [8, 96], strides = [1, 1]} : vector<8x128xf32> to vector<8x96xf32>
    %939 = arith.negf %938 : vector<8x96xf32>
    %940 = math.exp %939 : vector<8x96xf32>
    %cst_199 = arith.constant 1.000000e+00 : f32
    %941 = vector.broadcast %cst_199 : f32 to vector<8x96xf32>
    %942 = arith.addf %941, %940 : vector<8x96xf32>
    %943 = arith.divf %941, %942 : vector<8x96xf32>
    %944 = vector.extract_strided_slice %921 {offsets = [0, 96], sizes = [8, 32], strides = [1, 1]} : vector<8x128xf32> to vector<8x32xf32>
    %945 = math.tanh %944 : vector<8x32xf32>
    %946 = vector.extract_strided_slice %943 {offsets = [0, 32], sizes = [8, 32], strides = [1, 1]} : vector<8x96xf32> to vector<8x32xf32>
    %947 = arith.mulf %946, %893 : vector<8x32xf32>
    %948 = vector.extract_strided_slice %943 {offsets = [0, 0], sizes = [8, 32], strides = [1, 1]} : vector<8x96xf32> to vector<8x32xf32>
    %949 = arith.mulf %948, %945 : vector<8x32xf32>
    %950 = arith.addf %947, %949 : vector<8x32xf32>
    %951 = vector.extract_strided_slice %943 {offsets = [0, 64], sizes = [8, 32], strides = [1, 1]} : vector<8x96xf32> to vector<8x32xf32>
    %952 = math.tanh %950 : vector<8x32xf32>
    %953 = arith.mulf %951, %952 : vector<8x32xf32>
    %954 = arith.index_cast %c3_i32_191 : i32 to index
    %955 = memref.load %arg9[%954] : memref<14xf32, #tpu.memory_space<smem>>
    %956 = vector.broadcast %955 : f32 to vector<8x32xf32>
    %957 = arith.mulf %956, %937 : vector<8x32xf32>
    %958 = arith.addf %901, %957 : vector<8x32xf32>
    %959 = arith.index_cast %907 : i32 to index
    %960 = memref.load %arg9[%959] : memref<14xf32, #tpu.memory_space<smem>>
    %961 = vector.broadcast %960 : f32 to vector<8x32xf32>
    %962 = arith.mulf %961, %953 : vector<8x32xf32>
    %963 = arith.addf %906, %962 : vector<8x32xf32>
    %c4_i32_200 = arith.constant 4 : i32
    %c13_i32_201 = arith.constant 13 : i32
    %964 = arith.subi %c13_i32_201, %c4_i32_200 : i32
    %c8_i32_202 = arith.constant 8 : i32
    %965 = arith.muli %c4_i32_200, %c8_i32_202 : i32
    %966 = tpu.assume_multiple %965, 8 : i32
    %c8_i32_203 = arith.constant 8 : i32
    %967 = arith.muli %964, %c8_i32_203 : i32
    %968 = tpu.assume_multiple %967, 8 : i32
    %969 = tpu.concatenate %937, %953 in 1 : vector<8x32xf32>, vector<8x32xf32> -> vector<8x64xf32>
    %cst_204 = arith.constant dense<0.000000e+00> : vector<8x256xf32>
    %970 = tpu.matmul %969, %735, %cst_204 {dimension_numbers = #tpu.dot_dimension_numbers<[1], [0], [0], [1], [0, 0, 1, 1], [], []>} : vector<8x64xf32>, vector<64x256xf32>, vector<8x256xf32> -> vector<8x256xf32>
    %971 = vector.extract_strided_slice %970 {offsets = [0, 0], sizes = [8, 128], strides = [1, 1]} : vector<8x256xf32> to vector<8x128xf32>
    %972 = arith.index_cast %966 : i32 to index
    %c0_205 = arith.constant 0 : index
    %973 = vector.load %arg15[%972, %c0_205] : memref<112x256xf32, #tpu.memory_space<vmem>>, vector<8x128xf32>
    %974 = arith.addf %971, %973 : vector<8x128xf32>
    %975 = vector.extract_strided_slice %970 {offsets = [0, 128], sizes = [8, 128], strides = [1, 1]} : vector<8x256xf32> to vector<8x128xf32>
    %976 = arith.index_cast %968 : i32 to index
    %c128_206 = arith.constant 128 : index
    %977 = vector.load %arg15[%976, %c128_206] : memref<112x256xf32, #tpu.memory_space<vmem>>, vector<8x128xf32>
    %978 = arith.addf %975, %977 : vector<8x128xf32>
    %979 = vector.extract_strided_slice %974 {offsets = [0, 0], sizes = [8, 96], strides = [1, 1]} : vector<8x128xf32> to vector<8x96xf32>
    %980 = arith.negf %979 : vector<8x96xf32>
    %981 = math.exp %980 : vector<8x96xf32>
    %cst_207 = arith.constant 1.000000e+00 : f32
    %982 = vector.broadcast %cst_207 : f32 to vector<8x96xf32>
    %983 = arith.addf %982, %981 : vector<8x96xf32>
    %984 = arith.divf %982, %983 : vector<8x96xf32>
    %985 = vector.extract_strided_slice %974 {offsets = [0, 96], sizes = [8, 32], strides = [1, 1]} : vector<8x128xf32> to vector<8x32xf32>
    %986 = math.tanh %985 : vector<8x32xf32>
    %987 = vector.extract_strided_slice %984 {offsets = [0, 32], sizes = [8, 32], strides = [1, 1]} : vector<8x96xf32> to vector<8x32xf32>
    %988 = arith.mulf %987, %934 : vector<8x32xf32>
    %989 = vector.extract_strided_slice %984 {offsets = [0, 0], sizes = [8, 32], strides = [1, 1]} : vector<8x96xf32> to vector<8x32xf32>
    %990 = arith.mulf %989, %986 : vector<8x32xf32>
    %991 = arith.addf %988, %990 : vector<8x32xf32>
    %992 = vector.extract_strided_slice %984 {offsets = [0, 64], sizes = [8, 32], strides = [1, 1]} : vector<8x96xf32> to vector<8x32xf32>
    %993 = math.tanh %991 : vector<8x32xf32>
    %994 = arith.mulf %992, %993 : vector<8x32xf32>
    %995 = vector.extract_strided_slice %978 {offsets = [0, 0], sizes = [8, 96], strides = [1, 1]} : vector<8x128xf32> to vector<8x96xf32>
    %996 = arith.negf %995 : vector<8x96xf32>
    %997 = math.exp %996 : vector<8x96xf32>
    %cst_208 = arith.constant 1.000000e+00 : f32
    %998 = vector.broadcast %cst_208 : f32 to vector<8x96xf32>
    %999 = arith.addf %998, %997 : vector<8x96xf32>
    %1000 = arith.divf %998, %999 : vector<8x96xf32>
    %1001 = vector.extract_strided_slice %978 {offsets = [0, 96], sizes = [8, 32], strides = [1, 1]} : vector<8x128xf32> to vector<8x32xf32>
    %1002 = math.tanh %1001 : vector<8x32xf32>
    %1003 = vector.extract_strided_slice %1000 {offsets = [0, 32], sizes = [8, 32], strides = [1, 1]} : vector<8x96xf32> to vector<8x32xf32>
    %1004 = arith.mulf %1003, %950 : vector<8x32xf32>
    %1005 = vector.extract_strided_slice %1000 {offsets = [0, 0], sizes = [8, 32], strides = [1, 1]} : vector<8x96xf32> to vector<8x32xf32>
    %1006 = arith.mulf %1005, %1002 : vector<8x32xf32>
    %1007 = arith.addf %1004, %1006 : vector<8x32xf32>
    %1008 = vector.extract_strided_slice %1000 {offsets = [0, 64], sizes = [8, 32], strides = [1, 1]} : vector<8x96xf32> to vector<8x32xf32>
    %1009 = math.tanh %1007 : vector<8x32xf32>
    %1010 = arith.mulf %1008, %1009 : vector<8x32xf32>
    %1011 = arith.index_cast %c4_i32_200 : i32 to index
    %1012 = memref.load %arg9[%1011] : memref<14xf32, #tpu.memory_space<smem>>
    %1013 = vector.broadcast %1012 : f32 to vector<8x32xf32>
    %1014 = arith.mulf %1013, %994 : vector<8x32xf32>
    %1015 = arith.addf %958, %1014 : vector<8x32xf32>
    %1016 = arith.index_cast %964 : i32 to index
    %1017 = memref.load %arg9[%1016] : memref<14xf32, #tpu.memory_space<smem>>
    %1018 = vector.broadcast %1017 : f32 to vector<8x32xf32>
    %1019 = arith.mulf %1018, %1010 : vector<8x32xf32>
    %1020 = arith.addf %963, %1019 : vector<8x32xf32>
    %c5_i32_209 = arith.constant 5 : i32
    %c13_i32_210 = arith.constant 13 : i32
    %1021 = arith.subi %c13_i32_210, %c5_i32_209 : i32
    %c8_i32_211 = arith.constant 8 : i32
    %1022 = arith.muli %c5_i32_209, %c8_i32_211 : i32
    %1023 = tpu.assume_multiple %1022, 8 : i32
    %c8_i32_212 = arith.constant 8 : i32
    %1024 = arith.muli %1021, %c8_i32_212 : i32
    %1025 = tpu.assume_multiple %1024, 8 : i32
    %1026 = tpu.concatenate %994, %1010 in 1 : vector<8x32xf32>, vector<8x32xf32> -> vector<8x64xf32>
    %cst_213 = arith.constant dense<0.000000e+00> : vector<8x256xf32>
    %1027 = tpu.matmul %1026, %735, %cst_213 {dimension_numbers = #tpu.dot_dimension_numbers<[1], [0], [0], [1], [0, 0, 1, 1], [], []>} : vector<8x64xf32>, vector<64x256xf32>, vector<8x256xf32> -> vector<8x256xf32>
    %1028 = vector.extract_strided_slice %1027 {offsets = [0, 0], sizes = [8, 128], strides = [1, 1]} : vector<8x256xf32> to vector<8x128xf32>
    %1029 = arith.index_cast %1023 : i32 to index
    %c0_214 = arith.constant 0 : index
    %1030 = vector.load %arg15[%1029, %c0_214] : memref<112x256xf32, #tpu.memory_space<vmem>>, vector<8x128xf32>
    %1031 = arith.addf %1028, %1030 : vector<8x128xf32>
    %1032 = vector.extract_strided_slice %1027 {offsets = [0, 128], sizes = [8, 128], strides = [1, 1]} : vector<8x256xf32> to vector<8x128xf32>
    %1033 = arith.index_cast %1025 : i32 to index
    %c128_215 = arith.constant 128 : index
    %1034 = vector.load %arg15[%1033, %c128_215] : memref<112x256xf32, #tpu.memory_space<vmem>>, vector<8x128xf32>
    %1035 = arith.addf %1032, %1034 : vector<8x128xf32>
    %1036 = vector.extract_strided_slice %1031 {offsets = [0, 0], sizes = [8, 96], strides = [1, 1]} : vector<8x128xf32> to vector<8x96xf32>
    %1037 = arith.negf %1036 : vector<8x96xf32>
    %1038 = math.exp %1037 : vector<8x96xf32>
    %cst_216 = arith.constant 1.000000e+00 : f32
    %1039 = vector.broadcast %cst_216 : f32 to vector<8x96xf32>
    %1040 = arith.addf %1039, %1038 : vector<8x96xf32>
    %1041 = arith.divf %1039, %1040 : vector<8x96xf32>
    %1042 = vector.extract_strided_slice %1031 {offsets = [0, 96], sizes = [8, 32], strides = [1, 1]} : vector<8x128xf32> to vector<8x32xf32>
    %1043 = math.tanh %1042 : vector<8x32xf32>
    %1044 = vector.extract_strided_slice %1041 {offsets = [0, 32], sizes = [8, 32], strides = [1, 1]} : vector<8x96xf32> to vector<8x32xf32>
    %1045 = arith.mulf %1044, %991 : vector<8x32xf32>
    %1046 = vector.extract_strided_slice %1041 {offsets = [0, 0], sizes = [8, 32], strides = [1, 1]} : vector<8x96xf32> to vector<8x32xf32>
    %1047 = arith.mulf %1046, %1043 : vector<8x32xf32>
    %1048 = arith.addf %1045, %1047 : vector<8x32xf32>
    %1049 = vector.extract_strided_slice %1041 {offsets = [0, 64], sizes = [8, 32], strides = [1, 1]} : vector<8x96xf32> to vector<8x32xf32>
    %1050 = math.tanh %1048 : vector<8x32xf32>
    %1051 = arith.mulf %1049, %1050 : vector<8x32xf32>
    %1052 = vector.extract_strided_slice %1035 {offsets = [0, 0], sizes = [8, 96], strides = [1, 1]} : vector<8x128xf32> to vector<8x96xf32>
    %1053 = arith.negf %1052 : vector<8x96xf32>
    %1054 = math.exp %1053 : vector<8x96xf32>
    %cst_217 = arith.constant 1.000000e+00 : f32
    %1055 = vector.broadcast %cst_217 : f32 to vector<8x96xf32>
    %1056 = arith.addf %1055, %1054 : vector<8x96xf32>
    %1057 = arith.divf %1055, %1056 : vector<8x96xf32>
    %1058 = vector.extract_strided_slice %1035 {offsets = [0, 96], sizes = [8, 32], strides = [1, 1]} : vector<8x128xf32> to vector<8x32xf32>
    %1059 = math.tanh %1058 : vector<8x32xf32>
    %1060 = vector.extract_strided_slice %1057 {offsets = [0, 32], sizes = [8, 32], strides = [1, 1]} : vector<8x96xf32> to vector<8x32xf32>
    %1061 = arith.mulf %1060, %1007 : vector<8x32xf32>
    %1062 = vector.extract_strided_slice %1057 {offsets = [0, 0], sizes = [8, 32], strides = [1, 1]} : vector<8x96xf32> to vector<8x32xf32>
    %1063 = arith.mulf %1062, %1059 : vector<8x32xf32>
    %1064 = arith.addf %1061, %1063 : vector<8x32xf32>
    %1065 = vector.extract_strided_slice %1057 {offsets = [0, 64], sizes = [8, 32], strides = [1, 1]} : vector<8x96xf32> to vector<8x32xf32>
    %1066 = math.tanh %1064 : vector<8x32xf32>
    %1067 = arith.mulf %1065, %1066 : vector<8x32xf32>
    %1068 = arith.index_cast %c5_i32_209 : i32 to index
    %1069 = memref.load %arg9[%1068] : memref<14xf32, #tpu.memory_space<smem>>
    %1070 = vector.broadcast %1069 : f32 to vector<8x32xf32>
    %1071 = arith.mulf %1070, %1051 : vector<8x32xf32>
    %1072 = arith.addf %1015, %1071 : vector<8x32xf32>
    %1073 = arith.index_cast %1021 : i32 to index
    %1074 = memref.load %arg9[%1073] : memref<14xf32, #tpu.memory_space<smem>>
    %1075 = vector.broadcast %1074 : f32 to vector<8x32xf32>
    %1076 = arith.mulf %1075, %1067 : vector<8x32xf32>
    %1077 = arith.addf %1020, %1076 : vector<8x32xf32>
    %c6_i32_218 = arith.constant 6 : i32
    %c13_i32_219 = arith.constant 13 : i32
    %1078 = arith.subi %c13_i32_219, %c6_i32_218 : i32
    %c8_i32_220 = arith.constant 8 : i32
    %1079 = arith.muli %c6_i32_218, %c8_i32_220 : i32
    %1080 = tpu.assume_multiple %1079, 8 : i32
    %c8_i32_221 = arith.constant 8 : i32
    %1081 = arith.muli %1078, %c8_i32_221 : i32
    %1082 = tpu.assume_multiple %1081, 8 : i32
    %1083 = tpu.concatenate %1051, %1067 in 1 : vector<8x32xf32>, vector<8x32xf32> -> vector<8x64xf32>
    %cst_222 = arith.constant dense<0.000000e+00> : vector<8x256xf32>
    %1084 = tpu.matmul %1083, %735, %cst_222 {dimension_numbers = #tpu.dot_dimension_numbers<[1], [0], [0], [1], [0, 0, 1, 1], [], []>} : vector<8x64xf32>, vector<64x256xf32>, vector<8x256xf32> -> vector<8x256xf32>
    %1085 = vector.extract_strided_slice %1084 {offsets = [0, 0], sizes = [8, 128], strides = [1, 1]} : vector<8x256xf32> to vector<8x128xf32>
    %1086 = arith.index_cast %1080 : i32 to index
    %c0_223 = arith.constant 0 : index
    %1087 = vector.load %arg15[%1086, %c0_223] : memref<112x256xf32, #tpu.memory_space<vmem>>, vector<8x128xf32>
    %1088 = arith.addf %1085, %1087 : vector<8x128xf32>
    %1089 = vector.extract_strided_slice %1084 {offsets = [0, 128], sizes = [8, 128], strides = [1, 1]} : vector<8x256xf32> to vector<8x128xf32>
    %1090 = arith.index_cast %1082 : i32 to index
    %c128_224 = arith.constant 128 : index
    %1091 = vector.load %arg15[%1090, %c128_224] : memref<112x256xf32, #tpu.memory_space<vmem>>, vector<8x128xf32>
    %1092 = arith.addf %1089, %1091 : vector<8x128xf32>
    %1093 = vector.extract_strided_slice %1088 {offsets = [0, 0], sizes = [8, 96], strides = [1, 1]} : vector<8x128xf32> to vector<8x96xf32>
    %1094 = arith.negf %1093 : vector<8x96xf32>
    %1095 = math.exp %1094 : vector<8x96xf32>
    %cst_225 = arith.constant 1.000000e+00 : f32
    %1096 = vector.broadcast %cst_225 : f32 to vector<8x96xf32>
    %1097 = arith.addf %1096, %1095 : vector<8x96xf32>
    %1098 = arith.divf %1096, %1097 : vector<8x96xf32>
    %1099 = vector.extract_strided_slice %1088 {offsets = [0, 96], sizes = [8, 32], strides = [1, 1]} : vector<8x128xf32> to vector<8x32xf32>
    %1100 = math.tanh %1099 : vector<8x32xf32>
    %1101 = vector.extract_strided_slice %1098 {offsets = [0, 32], sizes = [8, 32], strides = [1, 1]} : vector<8x96xf32> to vector<8x32xf32>
    %1102 = arith.mulf %1101, %1048 : vector<8x32xf32>
    %1103 = vector.extract_strided_slice %1098 {offsets = [0, 0], sizes = [8, 32], strides = [1, 1]} : vector<8x96xf32> to vector<8x32xf32>
    %1104 = arith.mulf %1103, %1100 : vector<8x32xf32>
    %1105 = arith.addf %1102, %1104 : vector<8x32xf32>
    %1106 = vector.extract_strided_slice %1098 {offsets = [0, 64], sizes = [8, 32], strides = [1, 1]} : vector<8x96xf32> to vector<8x32xf32>
    %1107 = math.tanh %1105 : vector<8x32xf32>
    %1108 = arith.mulf %1106, %1107 : vector<8x32xf32>
    %1109 = vector.extract_strided_slice %1092 {offsets = [0, 0], sizes = [8, 96], strides = [1, 1]} : vector<8x128xf32> to vector<8x96xf32>
    %1110 = arith.negf %1109 : vector<8x96xf32>
    %1111 = math.exp %1110 : vector<8x96xf32>
    %cst_226 = arith.constant 1.000000e+00 : f32
    %1112 = vector.broadcast %cst_226 : f32 to vector<8x96xf32>
    %1113 = arith.addf %1112, %1111 : vector<8x96xf32>
    %1114 = arith.divf %1112, %1113 : vector<8x96xf32>
    %1115 = vector.extract_strided_slice %1092 {offsets = [0, 96], sizes = [8, 32], strides = [1, 1]} : vector<8x128xf32> to vector<8x32xf32>
    %1116 = math.tanh %1115 : vector<8x32xf32>
    %1117 = vector.extract_strided_slice %1114 {offsets = [0, 32], sizes = [8, 32], strides = [1, 1]} : vector<8x96xf32> to vector<8x32xf32>
    %1118 = arith.mulf %1117, %1064 : vector<8x32xf32>
    %1119 = vector.extract_strided_slice %1114 {offsets = [0, 0], sizes = [8, 32], strides = [1, 1]} : vector<8x96xf32> to vector<8x32xf32>
    %1120 = arith.mulf %1119, %1116 : vector<8x32xf32>
    %1121 = arith.addf %1118, %1120 : vector<8x32xf32>
    %1122 = vector.extract_strided_slice %1114 {offsets = [0, 64], sizes = [8, 32], strides = [1, 1]} : vector<8x96xf32> to vector<8x32xf32>
    %1123 = math.tanh %1121 : vector<8x32xf32>
    %1124 = arith.mulf %1122, %1123 : vector<8x32xf32>
    %1125 = arith.index_cast %c6_i32_218 : i32 to index
    %1126 = memref.load %arg9[%1125] : memref<14xf32, #tpu.memory_space<smem>>
    %1127 = vector.broadcast %1126 : f32 to vector<8x32xf32>
    %1128 = arith.mulf %1127, %1108 : vector<8x32xf32>
    %1129 = arith.addf %1072, %1128 : vector<8x32xf32>
    %1130 = arith.index_cast %1078 : i32 to index
    %1131 = memref.load %arg9[%1130] : memref<14xf32, #tpu.memory_space<smem>>
    %1132 = vector.broadcast %1131 : f32 to vector<8x32xf32>
    %1133 = arith.mulf %1132, %1124 : vector<8x32xf32>
    %1134 = arith.addf %1077, %1133 : vector<8x32xf32>
    %c7_i32_227 = arith.constant 7 : i32
    %c13_i32_228 = arith.constant 13 : i32
    %1135 = arith.subi %c13_i32_228, %c7_i32_227 : i32
    %c8_i32_229 = arith.constant 8 : i32
    %1136 = arith.muli %c7_i32_227, %c8_i32_229 : i32
    %1137 = tpu.assume_multiple %1136, 8 : i32
    %c8_i32_230 = arith.constant 8 : i32
    %1138 = arith.muli %1135, %c8_i32_230 : i32
    %1139 = tpu.assume_multiple %1138, 8 : i32
    %1140 = tpu.concatenate %1108, %1124 in 1 : vector<8x32xf32>, vector<8x32xf32> -> vector<8x64xf32>
    %cst_231 = arith.constant dense<0.000000e+00> : vector<8x256xf32>
    %1141 = tpu.matmul %1140, %735, %cst_231 {dimension_numbers = #tpu.dot_dimension_numbers<[1], [0], [0], [1], [0, 0, 1, 1], [], []>} : vector<8x64xf32>, vector<64x256xf32>, vector<8x256xf32> -> vector<8x256xf32>
    %1142 = vector.extract_strided_slice %1141 {offsets = [0, 0], sizes = [8, 128], strides = [1, 1]} : vector<8x256xf32> to vector<8x128xf32>
    %1143 = arith.index_cast %1137 : i32 to index
    %c0_232 = arith.constant 0 : index
    %1144 = vector.load %arg15[%1143, %c0_232] : memref<112x256xf32, #tpu.memory_space<vmem>>, vector<8x128xf32>
    %1145 = arith.addf %1142, %1144 : vector<8x128xf32>
    %1146 = vector.extract_strided_slice %1141 {offsets = [0, 128], sizes = [8, 128], strides = [1, 1]} : vector<8x256xf32> to vector<8x128xf32>
    %1147 = arith.index_cast %1139 : i32 to index
    %c128_233 = arith.constant 128 : index
    %1148 = vector.load %arg15[%1147, %c128_233] : memref<112x256xf32, #tpu.memory_space<vmem>>, vector<8x128xf32>
    %1149 = arith.addf %1146, %1148 : vector<8x128xf32>
    %1150 = vector.extract_strided_slice %1145 {offsets = [0, 0], sizes = [8, 96], strides = [1, 1]} : vector<8x128xf32> to vector<8x96xf32>
    %1151 = arith.negf %1150 : vector<8x96xf32>
    %1152 = math.exp %1151 : vector<8x96xf32>
    %cst_234 = arith.constant 1.000000e+00 : f32
    %1153 = vector.broadcast %cst_234 : f32 to vector<8x96xf32>
    %1154 = arith.addf %1153, %1152 : vector<8x96xf32>
    %1155 = arith.divf %1153, %1154 : vector<8x96xf32>
    %1156 = vector.extract_strided_slice %1145 {offsets = [0, 96], sizes = [8, 32], strides = [1, 1]} : vector<8x128xf32> to vector<8x32xf32>
    %1157 = math.tanh %1156 : vector<8x32xf32>
    %1158 = vector.extract_strided_slice %1155 {offsets = [0, 32], sizes = [8, 32], strides = [1, 1]} : vector<8x96xf32> to vector<8x32xf32>
    %1159 = arith.mulf %1158, %1105 : vector<8x32xf32>
    %1160 = vector.extract_strided_slice %1155 {offsets = [0, 0], sizes = [8, 32], strides = [1, 1]} : vector<8x96xf32> to vector<8x32xf32>
    %1161 = arith.mulf %1160, %1157 : vector<8x32xf32>
    %1162 = arith.addf %1159, %1161 : vector<8x32xf32>
    %1163 = vector.extract_strided_slice %1155 {offsets = [0, 64], sizes = [8, 32], strides = [1, 1]} : vector<8x96xf32> to vector<8x32xf32>
    %1164 = math.tanh %1162 : vector<8x32xf32>
    %1165 = arith.mulf %1163, %1164 : vector<8x32xf32>
    %1166 = vector.extract_strided_slice %1149 {offsets = [0, 0], sizes = [8, 96], strides = [1, 1]} : vector<8x128xf32> to vector<8x96xf32>
    %1167 = arith.negf %1166 : vector<8x96xf32>
    %1168 = math.exp %1167 : vector<8x96xf32>
    %cst_235 = arith.constant 1.000000e+00 : f32
    %1169 = vector.broadcast %cst_235 : f32 to vector<8x96xf32>
    %1170 = arith.addf %1169, %1168 : vector<8x96xf32>
    %1171 = arith.divf %1169, %1170 : vector<8x96xf32>
    %1172 = vector.extract_strided_slice %1149 {offsets = [0, 96], sizes = [8, 32], strides = [1, 1]} : vector<8x128xf32> to vector<8x32xf32>
    %1173 = math.tanh %1172 : vector<8x32xf32>
    %1174 = vector.extract_strided_slice %1171 {offsets = [0, 32], sizes = [8, 32], strides = [1, 1]} : vector<8x96xf32> to vector<8x32xf32>
    %1175 = arith.mulf %1174, %1121 : vector<8x32xf32>
    %1176 = vector.extract_strided_slice %1171 {offsets = [0, 0], sizes = [8, 32], strides = [1, 1]} : vector<8x96xf32> to vector<8x32xf32>
    %1177 = arith.mulf %1176, %1173 : vector<8x32xf32>
    %1178 = arith.addf %1175, %1177 : vector<8x32xf32>
    %1179 = vector.extract_strided_slice %1171 {offsets = [0, 64], sizes = [8, 32], strides = [1, 1]} : vector<8x96xf32> to vector<8x32xf32>
    %1180 = math.tanh %1178 : vector<8x32xf32>
    %1181 = arith.mulf %1179, %1180 : vector<8x32xf32>
    %1182 = arith.index_cast %c7_i32_227 : i32 to index
    %1183 = memref.load %arg9[%1182] : memref<14xf32, #tpu.memory_space<smem>>
    %1184 = vector.broadcast %1183 : f32 to vector<8x32xf32>
    %1185 = arith.mulf %1184, %1165 : vector<8x32xf32>
    %1186 = arith.addf %1129, %1185 : vector<8x32xf32>
    %1187 = arith.index_cast %1135 : i32 to index
    %1188 = memref.load %arg9[%1187] : memref<14xf32, #tpu.memory_space<smem>>
    %1189 = vector.broadcast %1188 : f32 to vector<8x32xf32>
    %1190 = arith.mulf %1189, %1181 : vector<8x32xf32>
    %1191 = arith.addf %1134, %1190 : vector<8x32xf32>
    %c8_i32_236 = arith.constant 8 : i32
    %c13_i32_237 = arith.constant 13 : i32
    %1192 = arith.subi %c13_i32_237, %c8_i32_236 : i32
    %c8_i32_238 = arith.constant 8 : i32
    %1193 = arith.muli %c8_i32_236, %c8_i32_238 : i32
    %1194 = tpu.assume_multiple %1193, 8 : i32
    %c8_i32_239 = arith.constant 8 : i32
    %1195 = arith.muli %1192, %c8_i32_239 : i32
    %1196 = tpu.assume_multiple %1195, 8 : i32
    %1197 = tpu.concatenate %1165, %1181 in 1 : vector<8x32xf32>, vector<8x32xf32> -> vector<8x64xf32>
    %cst_240 = arith.constant dense<0.000000e+00> : vector<8x256xf32>
    %1198 = tpu.matmul %1197, %735, %cst_240 {dimension_numbers = #tpu.dot_dimension_numbers<[1], [0], [0], [1], [0, 0, 1, 1], [], []>} : vector<8x64xf32>, vector<64x256xf32>, vector<8x256xf32> -> vector<8x256xf32>
    %1199 = vector.extract_strided_slice %1198 {offsets = [0, 0], sizes = [8, 128], strides = [1, 1]} : vector<8x256xf32> to vector<8x128xf32>
    %1200 = arith.index_cast %1194 : i32 to index
    %c0_241 = arith.constant 0 : index
    %1201 = vector.load %arg15[%1200, %c0_241] : memref<112x256xf32, #tpu.memory_space<vmem>>, vector<8x128xf32>
    %1202 = arith.addf %1199, %1201 : vector<8x128xf32>
    %1203 = vector.extract_strided_slice %1198 {offsets = [0, 128], sizes = [8, 128], strides = [1, 1]} : vector<8x256xf32> to vector<8x128xf32>
    %1204 = arith.index_cast %1196 : i32 to index
    %c128_242 = arith.constant 128 : index
    %1205 = vector.load %arg15[%1204, %c128_242] : memref<112x256xf32, #tpu.memory_space<vmem>>, vector<8x128xf32>
    %1206 = arith.addf %1203, %1205 : vector<8x128xf32>
    %1207 = vector.extract_strided_slice %1202 {offsets = [0, 0], sizes = [8, 96], strides = [1, 1]} : vector<8x128xf32> to vector<8x96xf32>
    %1208 = arith.negf %1207 : vector<8x96xf32>
    %1209 = math.exp %1208 : vector<8x96xf32>
    %cst_243 = arith.constant 1.000000e+00 : f32
    %1210 = vector.broadcast %cst_243 : f32 to vector<8x96xf32>
    %1211 = arith.addf %1210, %1209 : vector<8x96xf32>
    %1212 = arith.divf %1210, %1211 : vector<8x96xf32>
    %1213 = vector.extract_strided_slice %1202 {offsets = [0, 96], sizes = [8, 32], strides = [1, 1]} : vector<8x128xf32> to vector<8x32xf32>
    %1214 = math.tanh %1213 : vector<8x32xf32>
    %1215 = vector.extract_strided_slice %1212 {offsets = [0, 32], sizes = [8, 32], strides = [1, 1]} : vector<8x96xf32> to vector<8x32xf32>
    %1216 = arith.mulf %1215, %1162 : vector<8x32xf32>
    %1217 = vector.extract_strided_slice %1212 {offsets = [0, 0], sizes = [8, 32], strides = [1, 1]} : vector<8x96xf32> to vector<8x32xf32>
    %1218 = arith.mulf %1217, %1214 : vector<8x32xf32>
    %1219 = arith.addf %1216, %1218 : vector<8x32xf32>
    %1220 = vector.extract_strided_slice %1212 {offsets = [0, 64], sizes = [8, 32], strides = [1, 1]} : vector<8x96xf32> to vector<8x32xf32>
    %1221 = math.tanh %1219 : vector<8x32xf32>
    %1222 = arith.mulf %1220, %1221 : vector<8x32xf32>
    %1223 = vector.extract_strided_slice %1206 {offsets = [0, 0], sizes = [8, 96], strides = [1, 1]} : vector<8x128xf32> to vector<8x96xf32>
    %1224 = arith.negf %1223 : vector<8x96xf32>
    %1225 = math.exp %1224 : vector<8x96xf32>
    %cst_244 = arith.constant 1.000000e+00 : f32
    %1226 = vector.broadcast %cst_244 : f32 to vector<8x96xf32>
    %1227 = arith.addf %1226, %1225 : vector<8x96xf32>
    %1228 = arith.divf %1226, %1227 : vector<8x96xf32>
    %1229 = vector.extract_strided_slice %1206 {offsets = [0, 96], sizes = [8, 32], strides = [1, 1]} : vector<8x128xf32> to vector<8x32xf32>
    %1230 = math.tanh %1229 : vector<8x32xf32>
    %1231 = vector.extract_strided_slice %1228 {offsets = [0, 32], sizes = [8, 32], strides = [1, 1]} : vector<8x96xf32> to vector<8x32xf32>
    %1232 = arith.mulf %1231, %1178 : vector<8x32xf32>
    %1233 = vector.extract_strided_slice %1228 {offsets = [0, 0], sizes = [8, 32], strides = [1, 1]} : vector<8x96xf32> to vector<8x32xf32>
    %1234 = arith.mulf %1233, %1230 : vector<8x32xf32>
    %1235 = arith.addf %1232, %1234 : vector<8x32xf32>
    %1236 = vector.extract_strided_slice %1228 {offsets = [0, 64], sizes = [8, 32], strides = [1, 1]} : vector<8x96xf32> to vector<8x32xf32>
    %1237 = math.tanh %1235 : vector<8x32xf32>
    %1238 = arith.mulf %1236, %1237 : vector<8x32xf32>
    %1239 = arith.index_cast %c8_i32_236 : i32 to index
    %1240 = memref.load %arg9[%1239] : memref<14xf32, #tpu.memory_space<smem>>
    %1241 = vector.broadcast %1240 : f32 to vector<8x32xf32>
    %1242 = arith.mulf %1241, %1222 : vector<8x32xf32>
    %1243 = arith.addf %1186, %1242 : vector<8x32xf32>
    %1244 = arith.index_cast %1192 : i32 to index
    %1245 = memref.load %arg9[%1244] : memref<14xf32, #tpu.memory_space<smem>>
    %1246 = vector.broadcast %1245 : f32 to vector<8x32xf32>
    %1247 = arith.mulf %1246, %1238 : vector<8x32xf32>
    %1248 = arith.addf %1191, %1247 : vector<8x32xf32>
    %c9_i32_245 = arith.constant 9 : i32
    %c13_i32_246 = arith.constant 13 : i32
    %1249 = arith.subi %c13_i32_246, %c9_i32_245 : i32
    %c8_i32_247 = arith.constant 8 : i32
    %1250 = arith.muli %c9_i32_245, %c8_i32_247 : i32
    %1251 = tpu.assume_multiple %1250, 8 : i32
    %c8_i32_248 = arith.constant 8 : i32
    %1252 = arith.muli %1249, %c8_i32_248 : i32
    %1253 = tpu.assume_multiple %1252, 8 : i32
    %1254 = tpu.concatenate %1222, %1238 in 1 : vector<8x32xf32>, vector<8x32xf32> -> vector<8x64xf32>
    %cst_249 = arith.constant dense<0.000000e+00> : vector<8x256xf32>
    %1255 = tpu.matmul %1254, %735, %cst_249 {dimension_numbers = #tpu.dot_dimension_numbers<[1], [0], [0], [1], [0, 0, 1, 1], [], []>} : vector<8x64xf32>, vector<64x256xf32>, vector<8x256xf32> -> vector<8x256xf32>
    %1256 = vector.extract_strided_slice %1255 {offsets = [0, 0], sizes = [8, 128], strides = [1, 1]} : vector<8x256xf32> to vector<8x128xf32>
    %1257 = arith.index_cast %1251 : i32 to index
    %c0_250 = arith.constant 0 : index
    %1258 = vector.load %arg15[%1257, %c0_250] : memref<112x256xf32, #tpu.memory_space<vmem>>, vector<8x128xf32>
    %1259 = arith.addf %1256, %1258 : vector<8x128xf32>
    %1260 = vector.extract_strided_slice %1255 {offsets = [0, 128], sizes = [8, 128], strides = [1, 1]} : vector<8x256xf32> to vector<8x128xf32>
    %1261 = arith.index_cast %1253 : i32 to index
    %c128_251 = arith.constant 128 : index
    %1262 = vector.load %arg15[%1261, %c128_251] : memref<112x256xf32, #tpu.memory_space<vmem>>, vector<8x128xf32>
    %1263 = arith.addf %1260, %1262 : vector<8x128xf32>
    %1264 = vector.extract_strided_slice %1259 {offsets = [0, 0], sizes = [8, 96], strides = [1, 1]} : vector<8x128xf32> to vector<8x96xf32>
    %1265 = arith.negf %1264 : vector<8x96xf32>
    %1266 = math.exp %1265 : vector<8x96xf32>
    %cst_252 = arith.constant 1.000000e+00 : f32
    %1267 = vector.broadcast %cst_252 : f32 to vector<8x96xf32>
    %1268 = arith.addf %1267, %1266 : vector<8x96xf32>
    %1269 = arith.divf %1267, %1268 : vector<8x96xf32>
    %1270 = vector.extract_strided_slice %1259 {offsets = [0, 96], sizes = [8, 32], strides = [1, 1]} : vector<8x128xf32> to vector<8x32xf32>
    %1271 = math.tanh %1270 : vector<8x32xf32>
    %1272 = vector.extract_strided_slice %1269 {offsets = [0, 32], sizes = [8, 32], strides = [1, 1]} : vector<8x96xf32> to vector<8x32xf32>
    %1273 = arith.mulf %1272, %1219 : vector<8x32xf32>
    %1274 = vector.extract_strided_slice %1269 {offsets = [0, 0], sizes = [8, 32], strides = [1, 1]} : vector<8x96xf32> to vector<8x32xf32>
    %1275 = arith.mulf %1274, %1271 : vector<8x32xf32>
    %1276 = arith.addf %1273, %1275 : vector<8x32xf32>
    %1277 = vector.extract_strided_slice %1269 {offsets = [0, 64], sizes = [8, 32], strides = [1, 1]} : vector<8x96xf32> to vector<8x32xf32>
    %1278 = math.tanh %1276 : vector<8x32xf32>
    %1279 = arith.mulf %1277, %1278 : vector<8x32xf32>
    %1280 = vector.extract_strided_slice %1263 {offsets = [0, 0], sizes = [8, 96], strides = [1, 1]} : vector<8x128xf32> to vector<8x96xf32>
    %1281 = arith.negf %1280 : vector<8x96xf32>
    %1282 = math.exp %1281 : vector<8x96xf32>
    %cst_253 = arith.constant 1.000000e+00 : f32
    %1283 = vector.broadcast %cst_253 : f32 to vector<8x96xf32>
    %1284 = arith.addf %1283, %1282 : vector<8x96xf32>
    %1285 = arith.divf %1283, %1284 : vector<8x96xf32>
    %1286 = vector.extract_strided_slice %1263 {offsets = [0, 96], sizes = [8, 32], strides = [1, 1]} : vector<8x128xf32> to vector<8x32xf32>
    %1287 = math.tanh %1286 : vector<8x32xf32>
    %1288 = vector.extract_strided_slice %1285 {offsets = [0, 32], sizes = [8, 32], strides = [1, 1]} : vector<8x96xf32> to vector<8x32xf32>
    %1289 = arith.mulf %1288, %1235 : vector<8x32xf32>
    %1290 = vector.extract_strided_slice %1285 {offsets = [0, 0], sizes = [8, 32], strides = [1, 1]} : vector<8x96xf32> to vector<8x32xf32>
    %1291 = arith.mulf %1290, %1287 : vector<8x32xf32>
    %1292 = arith.addf %1289, %1291 : vector<8x32xf32>
    %1293 = vector.extract_strided_slice %1285 {offsets = [0, 64], sizes = [8, 32], strides = [1, 1]} : vector<8x96xf32> to vector<8x32xf32>
    %1294 = math.tanh %1292 : vector<8x32xf32>
    %1295 = arith.mulf %1293, %1294 : vector<8x32xf32>
    %1296 = arith.index_cast %c9_i32_245 : i32 to index
    %1297 = memref.load %arg9[%1296] : memref<14xf32, #tpu.memory_space<smem>>
    %1298 = vector.broadcast %1297 : f32 to vector<8x32xf32>
    %1299 = arith.mulf %1298, %1279 : vector<8x32xf32>
    %1300 = arith.addf %1243, %1299 : vector<8x32xf32>
    %1301 = arith.index_cast %1249 : i32 to index
    %1302 = memref.load %arg9[%1301] : memref<14xf32, #tpu.memory_space<smem>>
    %1303 = vector.broadcast %1302 : f32 to vector<8x32xf32>
    %1304 = arith.mulf %1303, %1295 : vector<8x32xf32>
    %1305 = arith.addf %1248, %1304 : vector<8x32xf32>
    %c10_i32_254 = arith.constant 10 : i32
    %c13_i32_255 = arith.constant 13 : i32
    %1306 = arith.subi %c13_i32_255, %c10_i32_254 : i32
    %c8_i32_256 = arith.constant 8 : i32
    %1307 = arith.muli %c10_i32_254, %c8_i32_256 : i32
    %1308 = tpu.assume_multiple %1307, 8 : i32
    %c8_i32_257 = arith.constant 8 : i32
    %1309 = arith.muli %1306, %c8_i32_257 : i32
    %1310 = tpu.assume_multiple %1309, 8 : i32
    %1311 = tpu.concatenate %1279, %1295 in 1 : vector<8x32xf32>, vector<8x32xf32> -> vector<8x64xf32>
    %cst_258 = arith.constant dense<0.000000e+00> : vector<8x256xf32>
    %1312 = tpu.matmul %1311, %735, %cst_258 {dimension_numbers = #tpu.dot_dimension_numbers<[1], [0], [0], [1], [0, 0, 1, 1], [], []>} : vector<8x64xf32>, vector<64x256xf32>, vector<8x256xf32> -> vector<8x256xf32>
    %1313 = vector.extract_strided_slice %1312 {offsets = [0, 0], sizes = [8, 128], strides = [1, 1]} : vector<8x256xf32> to vector<8x128xf32>
    %1314 = arith.index_cast %1308 : i32 to index
    %c0_259 = arith.constant 0 : index
    %1315 = vector.load %arg15[%1314, %c0_259] : memref<112x256xf32, #tpu.memory_space<vmem>>, vector<8x128xf32>
    %1316 = arith.addf %1313, %1315 : vector<8x128xf32>
    %1317 = vector.extract_strided_slice %1312 {offsets = [0, 128], sizes = [8, 128], strides = [1, 1]} : vector<8x256xf32> to vector<8x128xf32>
    %1318 = arith.index_cast %1310 : i32 to index
    %c128_260 = arith.constant 128 : index
    %1319 = vector.load %arg15[%1318, %c128_260] : memref<112x256xf32, #tpu.memory_space<vmem>>, vector<8x128xf32>
    %1320 = arith.addf %1317, %1319 : vector<8x128xf32>
    %1321 = vector.extract_strided_slice %1316 {offsets = [0, 0], sizes = [8, 96], strides = [1, 1]} : vector<8x128xf32> to vector<8x96xf32>
    %1322 = arith.negf %1321 : vector<8x96xf32>
    %1323 = math.exp %1322 : vector<8x96xf32>
    %cst_261 = arith.constant 1.000000e+00 : f32
    %1324 = vector.broadcast %cst_261 : f32 to vector<8x96xf32>
    %1325 = arith.addf %1324, %1323 : vector<8x96xf32>
    %1326 = arith.divf %1324, %1325 : vector<8x96xf32>
    %1327 = vector.extract_strided_slice %1316 {offsets = [0, 96], sizes = [8, 32], strides = [1, 1]} : vector<8x128xf32> to vector<8x32xf32>
    %1328 = math.tanh %1327 : vector<8x32xf32>
    %1329 = vector.extract_strided_slice %1326 {offsets = [0, 32], sizes = [8, 32], strides = [1, 1]} : vector<8x96xf32> to vector<8x32xf32>
    %1330 = arith.mulf %1329, %1276 : vector<8x32xf32>
    %1331 = vector.extract_strided_slice %1326 {offsets = [0, 0], sizes = [8, 32], strides = [1, 1]} : vector<8x96xf32> to vector<8x32xf32>
    %1332 = arith.mulf %1331, %1328 : vector<8x32xf32>
    %1333 = arith.addf %1330, %1332 : vector<8x32xf32>
    %1334 = vector.extract_strided_slice %1326 {offsets = [0, 64], sizes = [8, 32], strides = [1, 1]} : vector<8x96xf32> to vector<8x32xf32>
    %1335 = math.tanh %1333 : vector<8x32xf32>
    %1336 = arith.mulf %1334, %1335 : vector<8x32xf32>
    %1337 = vector.extract_strided_slice %1320 {offsets = [0, 0], sizes = [8, 96], strides = [1, 1]} : vector<8x128xf32> to vector<8x96xf32>
    %1338 = arith.negf %1337 : vector<8x96xf32>
    %1339 = math.exp %1338 : vector<8x96xf32>
    %cst_262 = arith.constant 1.000000e+00 : f32
    %1340 = vector.broadcast %cst_262 : f32 to vector<8x96xf32>
    %1341 = arith.addf %1340, %1339 : vector<8x96xf32>
    %1342 = arith.divf %1340, %1341 : vector<8x96xf32>
    %1343 = vector.extract_strided_slice %1320 {offsets = [0, 96], sizes = [8, 32], strides = [1, 1]} : vector<8x128xf32> to vector<8x32xf32>
    %1344 = math.tanh %1343 : vector<8x32xf32>
    %1345 = vector.extract_strided_slice %1342 {offsets = [0, 32], sizes = [8, 32], strides = [1, 1]} : vector<8x96xf32> to vector<8x32xf32>
    %1346 = arith.mulf %1345, %1292 : vector<8x32xf32>
    %1347 = vector.extract_strided_slice %1342 {offsets = [0, 0], sizes = [8, 32], strides = [1, 1]} : vector<8x96xf32> to vector<8x32xf32>
    %1348 = arith.mulf %1347, %1344 : vector<8x32xf32>
    %1349 = arith.addf %1346, %1348 : vector<8x32xf32>
    %1350 = vector.extract_strided_slice %1342 {offsets = [0, 64], sizes = [8, 32], strides = [1, 1]} : vector<8x96xf32> to vector<8x32xf32>
    %1351 = math.tanh %1349 : vector<8x32xf32>
    %1352 = arith.mulf %1350, %1351 : vector<8x32xf32>
    %1353 = arith.index_cast %c10_i32_254 : i32 to index
    %1354 = memref.load %arg9[%1353] : memref<14xf32, #tpu.memory_space<smem>>
    %1355 = vector.broadcast %1354 : f32 to vector<8x32xf32>
    %1356 = arith.mulf %1355, %1336 : vector<8x32xf32>
    %1357 = arith.addf %1300, %1356 : vector<8x32xf32>
    %1358 = arith.index_cast %1306 : i32 to index
    %1359 = memref.load %arg9[%1358] : memref<14xf32, #tpu.memory_space<smem>>
    %1360 = vector.broadcast %1359 : f32 to vector<8x32xf32>
    %1361 = arith.mulf %1360, %1352 : vector<8x32xf32>
    %1362 = arith.addf %1305, %1361 : vector<8x32xf32>
    %c11_i32_263 = arith.constant 11 : i32
    %c13_i32_264 = arith.constant 13 : i32
    %1363 = arith.subi %c13_i32_264, %c11_i32_263 : i32
    %c8_i32_265 = arith.constant 8 : i32
    %1364 = arith.muli %c11_i32_263, %c8_i32_265 : i32
    %1365 = tpu.assume_multiple %1364, 8 : i32
    %c8_i32_266 = arith.constant 8 : i32
    %1366 = arith.muli %1363, %c8_i32_266 : i32
    %1367 = tpu.assume_multiple %1366, 8 : i32
    %1368 = tpu.concatenate %1336, %1352 in 1 : vector<8x32xf32>, vector<8x32xf32> -> vector<8x64xf32>
    %cst_267 = arith.constant dense<0.000000e+00> : vector<8x256xf32>
    %1369 = tpu.matmul %1368, %735, %cst_267 {dimension_numbers = #tpu.dot_dimension_numbers<[1], [0], [0], [1], [0, 0, 1, 1], [], []>} : vector<8x64xf32>, vector<64x256xf32>, vector<8x256xf32> -> vector<8x256xf32>
    %1370 = vector.extract_strided_slice %1369 {offsets = [0, 0], sizes = [8, 128], strides = [1, 1]} : vector<8x256xf32> to vector<8x128xf32>
    %1371 = arith.index_cast %1365 : i32 to index
    %c0_268 = arith.constant 0 : index
    %1372 = vector.load %arg15[%1371, %c0_268] : memref<112x256xf32, #tpu.memory_space<vmem>>, vector<8x128xf32>
    %1373 = arith.addf %1370, %1372 : vector<8x128xf32>
    %1374 = vector.extract_strided_slice %1369 {offsets = [0, 128], sizes = [8, 128], strides = [1, 1]} : vector<8x256xf32> to vector<8x128xf32>
    %1375 = arith.index_cast %1367 : i32 to index
    %c128_269 = arith.constant 128 : index
    %1376 = vector.load %arg15[%1375, %c128_269] : memref<112x256xf32, #tpu.memory_space<vmem>>, vector<8x128xf32>
    %1377 = arith.addf %1374, %1376 : vector<8x128xf32>
    %1378 = vector.extract_strided_slice %1373 {offsets = [0, 0], sizes = [8, 96], strides = [1, 1]} : vector<8x128xf32> to vector<8x96xf32>
    %1379 = arith.negf %1378 : vector<8x96xf32>
    %1380 = math.exp %1379 : vector<8x96xf32>
    %cst_270 = arith.constant 1.000000e+00 : f32
    %1381 = vector.broadcast %cst_270 : f32 to vector<8x96xf32>
    %1382 = arith.addf %1381, %1380 : vector<8x96xf32>
    %1383 = arith.divf %1381, %1382 : vector<8x96xf32>
    %1384 = vector.extract_strided_slice %1373 {offsets = [0, 96], sizes = [8, 32], strides = [1, 1]} : vector<8x128xf32> to vector<8x32xf32>
    %1385 = math.tanh %1384 : vector<8x32xf32>
    %1386 = vector.extract_strided_slice %1383 {offsets = [0, 32], sizes = [8, 32], strides = [1, 1]} : vector<8x96xf32> to vector<8x32xf32>
    %1387 = arith.mulf %1386, %1333 : vector<8x32xf32>
    %1388 = vector.extract_strided_slice %1383 {offsets = [0, 0], sizes = [8, 32], strides = [1, 1]} : vector<8x96xf32> to vector<8x32xf32>
    %1389 = arith.mulf %1388, %1385 : vector<8x32xf32>
    %1390 = arith.addf %1387, %1389 : vector<8x32xf32>
    %1391 = vector.extract_strided_slice %1383 {offsets = [0, 64], sizes = [8, 32], strides = [1, 1]} : vector<8x96xf32> to vector<8x32xf32>
    %1392 = math.tanh %1390 : vector<8x32xf32>
    %1393 = arith.mulf %1391, %1392 : vector<8x32xf32>
    %1394 = vector.extract_strided_slice %1377 {offsets = [0, 0], sizes = [8, 96], strides = [1, 1]} : vector<8x128xf32> to vector<8x96xf32>
    %1395 = arith.negf %1394 : vector<8x96xf32>
    %1396 = math.exp %1395 : vector<8x96xf32>
    %cst_271 = arith.constant 1.000000e+00 : f32
    %1397 = vector.broadcast %cst_271 : f32 to vector<8x96xf32>
    %1398 = arith.addf %1397, %1396 : vector<8x96xf32>
    %1399 = arith.divf %1397, %1398 : vector<8x96xf32>
    %1400 = vector.extract_strided_slice %1377 {offsets = [0, 96], sizes = [8, 32], strides = [1, 1]} : vector<8x128xf32> to vector<8x32xf32>
    %1401 = math.tanh %1400 : vector<8x32xf32>
    %1402 = vector.extract_strided_slice %1399 {offsets = [0, 32], sizes = [8, 32], strides = [1, 1]} : vector<8x96xf32> to vector<8x32xf32>
    %1403 = arith.mulf %1402, %1349 : vector<8x32xf32>
    %1404 = vector.extract_strided_slice %1399 {offsets = [0, 0], sizes = [8, 32], strides = [1, 1]} : vector<8x96xf32> to vector<8x32xf32>
    %1405 = arith.mulf %1404, %1401 : vector<8x32xf32>
    %1406 = arith.addf %1403, %1405 : vector<8x32xf32>
    %1407 = vector.extract_strided_slice %1399 {offsets = [0, 64], sizes = [8, 32], strides = [1, 1]} : vector<8x96xf32> to vector<8x32xf32>
    %1408 = math.tanh %1406 : vector<8x32xf32>
    %1409 = arith.mulf %1407, %1408 : vector<8x32xf32>
    %1410 = arith.index_cast %c11_i32_263 : i32 to index
    %1411 = memref.load %arg9[%1410] : memref<14xf32, #tpu.memory_space<smem>>
    %1412 = vector.broadcast %1411 : f32 to vector<8x32xf32>
    %1413 = arith.mulf %1412, %1393 : vector<8x32xf32>
    %1414 = arith.addf %1357, %1413 : vector<8x32xf32>
    %1415 = arith.index_cast %1363 : i32 to index
    %1416 = memref.load %arg9[%1415] : memref<14xf32, #tpu.memory_space<smem>>
    %1417 = vector.broadcast %1416 : f32 to vector<8x32xf32>
    %1418 = arith.mulf %1417, %1409 : vector<8x32xf32>
    %1419 = arith.addf %1362, %1418 : vector<8x32xf32>
    %c12_i32_272 = arith.constant 12 : i32
    %c13_i32_273 = arith.constant 13 : i32
    %1420 = arith.subi %c13_i32_273, %c12_i32_272 : i32
    %c8_i32_274 = arith.constant 8 : i32
    %1421 = arith.muli %c12_i32_272, %c8_i32_274 : i32
    %1422 = tpu.assume_multiple %1421, 8 : i32
    %c8_i32_275 = arith.constant 8 : i32
    %1423 = arith.muli %1420, %c8_i32_275 : i32
    %1424 = tpu.assume_multiple %1423, 8 : i32
    %1425 = tpu.concatenate %1393, %1409 in 1 : vector<8x32xf32>, vector<8x32xf32> -> vector<8x64xf32>
    %cst_276 = arith.constant dense<0.000000e+00> : vector<8x256xf32>
    %1426 = tpu.matmul %1425, %735, %cst_276 {dimension_numbers = #tpu.dot_dimension_numbers<[1], [0], [0], [1], [0, 0, 1, 1], [], []>} : vector<8x64xf32>, vector<64x256xf32>, vector<8x256xf32> -> vector<8x256xf32>
    %1427 = vector.extract_strided_slice %1426 {offsets = [0, 0], sizes = [8, 128], strides = [1, 1]} : vector<8x256xf32> to vector<8x128xf32>
    %1428 = arith.index_cast %1422 : i32 to index
    %c0_277 = arith.constant 0 : index
    %1429 = vector.load %arg15[%1428, %c0_277] : memref<112x256xf32, #tpu.memory_space<vmem>>, vector<8x128xf32>
    %1430 = arith.addf %1427, %1429 : vector<8x128xf32>
    %1431 = vector.extract_strided_slice %1426 {offsets = [0, 128], sizes = [8, 128], strides = [1, 1]} : vector<8x256xf32> to vector<8x128xf32>
    %1432 = arith.index_cast %1424 : i32 to index
    %c128_278 = arith.constant 128 : index
    %1433 = vector.load %arg15[%1432, %c128_278] : memref<112x256xf32, #tpu.memory_space<vmem>>, vector<8x128xf32>
    %1434 = arith.addf %1431, %1433 : vector<8x128xf32>
    %1435 = vector.extract_strided_slice %1430 {offsets = [0, 0], sizes = [8, 96], strides = [1, 1]} : vector<8x128xf32> to vector<8x96xf32>
    %1436 = arith.negf %1435 : vector<8x96xf32>
    %1437 = math.exp %1436 : vector<8x96xf32>
    %cst_279 = arith.constant 1.000000e+00 : f32
    %1438 = vector.broadcast %cst_279 : f32 to vector<8x96xf32>
    %1439 = arith.addf %1438, %1437 : vector<8x96xf32>
    %1440 = arith.divf %1438, %1439 : vector<8x96xf32>
    %1441 = vector.extract_strided_slice %1430 {offsets = [0, 96], sizes = [8, 32], strides = [1, 1]} : vector<8x128xf32> to vector<8x32xf32>
    %1442 = math.tanh %1441 : vector<8x32xf32>
    %1443 = vector.extract_strided_slice %1440 {offsets = [0, 32], sizes = [8, 32], strides = [1, 1]} : vector<8x96xf32> to vector<8x32xf32>
    %1444 = arith.mulf %1443, %1390 : vector<8x32xf32>
    %1445 = vector.extract_strided_slice %1440 {offsets = [0, 0], sizes = [8, 32], strides = [1, 1]} : vector<8x96xf32> to vector<8x32xf32>
    %1446 = arith.mulf %1445, %1442 : vector<8x32xf32>
    %1447 = arith.addf %1444, %1446 : vector<8x32xf32>
    %1448 = vector.extract_strided_slice %1440 {offsets = [0, 64], sizes = [8, 32], strides = [1, 1]} : vector<8x96xf32> to vector<8x32xf32>
    %1449 = math.tanh %1447 : vector<8x32xf32>
    %1450 = arith.mulf %1448, %1449 : vector<8x32xf32>
    %1451 = vector.extract_strided_slice %1434 {offsets = [0, 0], sizes = [8, 96], strides = [1, 1]} : vector<8x128xf32> to vector<8x96xf32>
    %1452 = arith.negf %1451 : vector<8x96xf32>
    %1453 = math.exp %1452 : vector<8x96xf32>
    %cst_280 = arith.constant 1.000000e+00 : f32
    %1454 = vector.broadcast %cst_280 : f32 to vector<8x96xf32>
    %1455 = arith.addf %1454, %1453 : vector<8x96xf32>
    %1456 = arith.divf %1454, %1455 : vector<8x96xf32>
    %1457 = vector.extract_strided_slice %1434 {offsets = [0, 96], sizes = [8, 32], strides = [1, 1]} : vector<8x128xf32> to vector<8x32xf32>
    %1458 = math.tanh %1457 : vector<8x32xf32>
    %1459 = vector.extract_strided_slice %1456 {offsets = [0, 32], sizes = [8, 32], strides = [1, 1]} : vector<8x96xf32> to vector<8x32xf32>
    %1460 = arith.mulf %1459, %1406 : vector<8x32xf32>
    %1461 = vector.extract_strided_slice %1456 {offsets = [0, 0], sizes = [8, 32], strides = [1, 1]} : vector<8x96xf32> to vector<8x32xf32>
    %1462 = arith.mulf %1461, %1458 : vector<8x32xf32>
    %1463 = arith.addf %1460, %1462 : vector<8x32xf32>
    %1464 = vector.extract_strided_slice %1456 {offsets = [0, 64], sizes = [8, 32], strides = [1, 1]} : vector<8x96xf32> to vector<8x32xf32>
    %1465 = math.tanh %1463 : vector<8x32xf32>
    %1466 = arith.mulf %1464, %1465 : vector<8x32xf32>
    %1467 = arith.index_cast %c12_i32_272 : i32 to index
    %1468 = memref.load %arg9[%1467] : memref<14xf32, #tpu.memory_space<smem>>
    %1469 = vector.broadcast %1468 : f32 to vector<8x32xf32>
    %1470 = arith.mulf %1469, %1450 : vector<8x32xf32>
    %1471 = arith.addf %1414, %1470 : vector<8x32xf32>
    %1472 = arith.index_cast %1420 : i32 to index
    %1473 = memref.load %arg9[%1472] : memref<14xf32, #tpu.memory_space<smem>>
    %1474 = vector.broadcast %1473 : f32 to vector<8x32xf32>
    %1475 = arith.mulf %1474, %1466 : vector<8x32xf32>
    %1476 = arith.addf %1419, %1475 : vector<8x32xf32>
    %c13_i32_281 = arith.constant 13 : i32
    %c13_i32_282 = arith.constant 13 : i32
    %1477 = arith.subi %c13_i32_282, %c13_i32_281 : i32
    %c8_i32_283 = arith.constant 8 : i32
    %1478 = arith.muli %c13_i32_281, %c8_i32_283 : i32
    %1479 = tpu.assume_multiple %1478, 8 : i32
    %c8_i32_284 = arith.constant 8 : i32
    %1480 = arith.muli %1477, %c8_i32_284 : i32
    %1481 = tpu.assume_multiple %1480, 8 : i32
    %1482 = tpu.concatenate %1450, %1466 in 1 : vector<8x32xf32>, vector<8x32xf32> -> vector<8x64xf32>
    %cst_285 = arith.constant dense<0.000000e+00> : vector<8x256xf32>
    %1483 = tpu.matmul %1482, %735, %cst_285 {dimension_numbers = #tpu.dot_dimension_numbers<[1], [0], [0], [1], [0, 0, 1, 1], [], []>} : vector<8x64xf32>, vector<64x256xf32>, vector<8x256xf32> -> vector<8x256xf32>
    %1484 = vector.extract_strided_slice %1483 {offsets = [0, 0], sizes = [8, 128], strides = [1, 1]} : vector<8x256xf32> to vector<8x128xf32>
    %1485 = arith.index_cast %1479 : i32 to index
    %c0_286 = arith.constant 0 : index
    %1486 = vector.load %arg15[%1485, %c0_286] : memref<112x256xf32, #tpu.memory_space<vmem>>, vector<8x128xf32>
    %1487 = arith.addf %1484, %1486 : vector<8x128xf32>
    %1488 = vector.extract_strided_slice %1483 {offsets = [0, 128], sizes = [8, 128], strides = [1, 1]} : vector<8x256xf32> to vector<8x128xf32>
    %1489 = arith.index_cast %1481 : i32 to index
    %c128_287 = arith.constant 128 : index
    %1490 = vector.load %arg15[%1489, %c128_287] : memref<112x256xf32, #tpu.memory_space<vmem>>, vector<8x128xf32>
    %1491 = arith.addf %1488, %1490 : vector<8x128xf32>
    %1492 = vector.extract_strided_slice %1487 {offsets = [0, 0], sizes = [8, 96], strides = [1, 1]} : vector<8x128xf32> to vector<8x96xf32>
    %1493 = arith.negf %1492 : vector<8x96xf32>
    %1494 = math.exp %1493 : vector<8x96xf32>
    %cst_288 = arith.constant 1.000000e+00 : f32
    %1495 = vector.broadcast %cst_288 : f32 to vector<8x96xf32>
    %1496 = arith.addf %1495, %1494 : vector<8x96xf32>
    %1497 = arith.divf %1495, %1496 : vector<8x96xf32>
    %1498 = vector.extract_strided_slice %1487 {offsets = [0, 96], sizes = [8, 32], strides = [1, 1]} : vector<8x128xf32> to vector<8x32xf32>
    %1499 = math.tanh %1498 : vector<8x32xf32>
    %1500 = vector.extract_strided_slice %1497 {offsets = [0, 32], sizes = [8, 32], strides = [1, 1]} : vector<8x96xf32> to vector<8x32xf32>
    %1501 = arith.mulf %1500, %1447 : vector<8x32xf32>
    %1502 = vector.extract_strided_slice %1497 {offsets = [0, 0], sizes = [8, 32], strides = [1, 1]} : vector<8x96xf32> to vector<8x32xf32>
    %1503 = arith.mulf %1502, %1499 : vector<8x32xf32>
    %1504 = arith.addf %1501, %1503 : vector<8x32xf32>
    %1505 = vector.extract_strided_slice %1497 {offsets = [0, 64], sizes = [8, 32], strides = [1, 1]} : vector<8x96xf32> to vector<8x32xf32>
    %1506 = math.tanh %1504 : vector<8x32xf32>
    %1507 = arith.mulf %1505, %1506 : vector<8x32xf32>
    %1508 = vector.extract_strided_slice %1491 {offsets = [0, 0], sizes = [8, 96], strides = [1, 1]} : vector<8x128xf32> to vector<8x96xf32>
    %1509 = arith.negf %1508 : vector<8x96xf32>
    %1510 = math.exp %1509 : vector<8x96xf32>
    %cst_289 = arith.constant 1.000000e+00 : f32
    %1511 = vector.broadcast %cst_289 : f32 to vector<8x96xf32>
    %1512 = arith.addf %1511, %1510 : vector<8x96xf32>
    %1513 = arith.divf %1511, %1512 : vector<8x96xf32>
    %1514 = vector.extract_strided_slice %1491 {offsets = [0, 96], sizes = [8, 32], strides = [1, 1]} : vector<8x128xf32> to vector<8x32xf32>
    %1515 = math.tanh %1514 : vector<8x32xf32>
    %1516 = vector.extract_strided_slice %1513 {offsets = [0, 32], sizes = [8, 32], strides = [1, 1]} : vector<8x96xf32> to vector<8x32xf32>
    %1517 = arith.mulf %1516, %1463 : vector<8x32xf32>
    %1518 = vector.extract_strided_slice %1513 {offsets = [0, 0], sizes = [8, 32], strides = [1, 1]} : vector<8x96xf32> to vector<8x32xf32>
    %1519 = arith.mulf %1518, %1515 : vector<8x32xf32>
    %1520 = arith.addf %1517, %1519 : vector<8x32xf32>
    %1521 = vector.extract_strided_slice %1513 {offsets = [0, 64], sizes = [8, 32], strides = [1, 1]} : vector<8x96xf32> to vector<8x32xf32>
    %1522 = math.tanh %1520 : vector<8x32xf32>
    %1523 = arith.mulf %1521, %1522 : vector<8x32xf32>
    %1524 = arith.index_cast %c13_i32_281 : i32 to index
    %1525 = memref.load %arg9[%1524] : memref<14xf32, #tpu.memory_space<smem>>
    %1526 = vector.broadcast %1525 : f32 to vector<8x32xf32>
    %1527 = arith.mulf %1526, %1507 : vector<8x32xf32>
    %1528 = arith.addf %1471, %1527 : vector<8x32xf32>
    %1529 = arith.index_cast %1477 : i32 to index
    %1530 = memref.load %arg9[%1529] : memref<14xf32, #tpu.memory_space<smem>>
    %1531 = vector.broadcast %1530 : f32 to vector<8x32xf32>
    %1532 = arith.mulf %1531, %1523 : vector<8x32xf32>
    %1533 = arith.addf %1476, %1532 : vector<8x32xf32>
    %c14_i32_290 = arith.constant 14 : i32
    %1534 = tpu.concatenate %1528, %1533 in 1 : vector<8x32xf32>, vector<8x32xf32> -> vector<8x64xf32>
    %c0_291 = arith.constant 0 : index
    %c0_292 = arith.constant 0 : index
    %1535 = vector.load %arg10[%c0_291, %c0_292] : memref<64x32xf32, #tpu.memory_space<vmem>>, vector<64x32xf32>
    %cst_293 = arith.constant dense<0.000000e+00> : vector<8x32xf32>
    %1536 = tpu.matmul %1534, %1535, %cst_293 {dimension_numbers = #tpu.dot_dimension_numbers<[1], [0], [0], [1], [0, 0, 1, 1], [], []>} : vector<8x64xf32>, vector<64x32xf32>, vector<8x32xf32> -> vector<8x32xf32>
    %c0_294 = arith.constant 0 : index
    %c0_295 = arith.constant 0 : index
    %1537 = vector.load %arg11[%c0_294, %c0_295] : memref<1x32xf32, #tpu.memory_space<vmem>>, vector<1x32xf32>
    %1538 = vector.broadcast %1537 : vector<1x32xf32> to vector<8x32xf32>
    %1539 = arith.addf %1536, %1538 : vector<8x32xf32>
    %cst_296 = arith.constant 0.000000e+00 : f32
    %1540 = vector.broadcast %cst_296 : f32 to vector<8x32xf32>
    %1541 = arith.maximumf %1539, %1540 : vector<8x32xf32>
    %c0_297 = arith.constant 0 : index
    %c0_298 = arith.constant 0 : index
    %1542 = vector.load %arg12[%c0_297, %c0_298] : memref<32x8xf32, #tpu.memory_space<vmem>>, vector<32x8xf32>
    %cst_299 = arith.constant dense<0.000000e+00> : vector<8x8xf32>
    %1543 = tpu.matmul %1541, %1542, %cst_299 {dimension_numbers = #tpu.dot_dimension_numbers<[1], [0], [0], [1], [0, 0, 1, 1], [], []>} : vector<8x32xf32>, vector<32x8xf32>, vector<8x8xf32> -> vector<8x8xf32>
    %c0_300 = arith.constant 0 : index
    %c0_301 = arith.constant 0 : index
    %1544 = vector.load %arg13[%c0_300, %c0_301] : memref<1x8xf32, #tpu.memory_space<vmem>>, vector<1x8xf32>
    %1545 = vector.broadcast %1544 : vector<1x8xf32> to vector<8x8xf32>
    %1546 = arith.addf %1543, %1545 : vector<8x8xf32>
    %c0_302 = arith.constant 0 : index
    %c0_303 = arith.constant 0 : index
    %1547 = vector.load %arg14[%c0_302, %c0_303] : memref<8x8xf32, #tpu.memory_space<vmem>>, vector<8x8xf32>
    tpu.vector_store %arg14[%c0_302, %c0_303], %1546 {strides = array<i32>} : memref<8x8xf32, #tpu.memory_space<vmem>>, vector<8x8xf32>,
    return
  }
}

</mosaic_0001>

<bundles_post_ra>
// kernel: tpu_custom_call.1
= control target key start
LH: loop header
LB: loop body
LE: loop exit
PB: predicated region body
PF: predicated region fallthrough
CT: control target
= control target key end

     0   :  { %19 = vsyncpa [#allocation5], 0  ;;  %s7258_s0 = inlined_call_operand.vmem [shape: f32[112,64], index: 0, kind: input, shape index: {}]   ;;  %s7259_s1 = inlined_call_operand.vmem [shape: f32[64,16], index: 1, kind: input, shape index: {}]   ;;  %s7260_s2 = inlined_call_operand.vmem [shape: f32[1,16], index: 2, kind: input, shape index: {}]   ;;  %s7261_s3 = inlined_call_operand.vmem [shape: f32[16,256], index: 3, kind: input, shape index: {}]   ;;  %s7262_s4 = inlined_call_operand.vmem [shape: f32[1,256], index: 4, kind: input, shape index: {}]   ;;  %s7263_s5 = inlined_call_operand.vmem [shape: f32[64,256], index: 5, kind: input, shape index: {}]   ;;  %s7264_s6 = inlined_call_operand.hbm [shape: f32[64,256], index: 6, kind: input, shape index: {}]   ;;  %s7265_s7 = inlined_call_operand.vmem [shape: f32[1,256], index: 7, kind: input, shape index: {}]   ;;  %s7266_s8 = inlined_call_operand.hbm [shape: f32[64,256], index: 8, kind: input, shape index: {}]   ;;  %s7267_s9 = inlined_call_operand.vmem [shape: f32[14], index: 9, kind: input, shape index: {}]   ;;  %s7268_s10 = inlined_call_operand.vmem [shape: f32[64,32], index: 10, kind: input, shape index: {}]   ;;  %s7269_s11 = inlined_call_operand.vmem [shape: f32[1,32], index: 11, kind: input, shape index: {}]   ;;  %s7270_s12 = inlined_call_operand.vmem [shape: f32[32,8], index: 12, kind: input, shape index: {}]   ;;  %s7271_s13 = inlined_call_operand.vmem [shape: f32[1,8], index: 13, kind: input, shape index: {}]   ;;  %s7272_s14 = inlined_call_operand.hbm [shape: f32[8,8], index: 14, kind: output, shape index: {}]  }
   0x1   :  { %20 = vsyncpa [#allocation9], 0 }
   0x2   :  { %21 = vsyncpa [#allocation7], 0 }
   0x3   :  { %22 = vsyncpa [#allocation6], 0  ;;  %s39_s15 = sshll.u32 %s7264_s6, 4  ;;  %s5368_s16 = smov [#allocation4]   ;;  %s40_s15 = int_to_ptr.hbm [resolvable:$true] %s39_s15 }
   0x4   :  { %s41_s17 = sshll.u32 %s5368_s16, 4  ;;  %s54_s20 = sshll.u32 %s7266_s8, 4  ;;  %s42_s17 = int_to_ptr.vmem [resolvable:$true] %s41_s17  ;;  %s55_s20 = int_to_ptr.hbm [resolvable:$true] %s54_s20 }
   0x5   :  { %s5369_s21 = smov 256   ;;  %s5370_s22 = smov 16  }
   0x6   :  { %47 = dma.hbm_to_vmem [thread:$0]  %s40_s15, 2048, %s42_s17, [#allocation5], %s5369_s21, %s5369_s21, %s5370_s22  }
   0x7   :  { %s5371_s23 = smov [#allocation8]   ;;  %s68_s27 = sshll.u32 %s7267_s9, 4  ;;  %s69_s27 = int_to_ptr.vmem [resolvable:$true] %s68_s27 }
   0x8   :  { %s56_s24 = sshll.u32 %s5371_s23, 4  ;;  %s5372_s6 = smov [#allocation10]   ;;  %s57_s24 = int_to_ptr.vmem [resolvable:$true] %s56_s24 }
   0x9   :  { %62 = dma.hbm_to_vmem [thread:$0]  %s55_s20, 2048, %s57_s24, [#allocation9], %s5369_s21, %s5369_s21, %s5370_s22  }
   0xa   :  { %71 = dma.vmem_to_smem %s69_s27, 16, %s5372_s6, [#allocation7]  }
   0xb   :  { %5360 = dma.done.wait [#allocation5], 2048  }
   0xc   :  { %5361 = vsyncadd [#allocation5], 4294965248 }
   0xd   :  { %5362 = dma.done.wait [#allocation9], 2048  }
   0xe   :  { %5363 = vsyncadd [#allocation9], 4294965248 }
   0xf   :  { %5364 = dma.done.wait [#allocation7], 16  }
  0x10   :  { %5365 = vsyncadd [#allocation7], 4294967280 }
  0x11   :  { %92 = sfence }
  0x12   :  { %v114_v0 = vld [vmem:[%s7259_s1 + $0x38] sm:$0xff]  ;;  %v113_v1 = vld [vmem:[%s7259_s1 + $0x30] sm:$0xff]  ;;  %v112_v2 = vld [vmem:[%s7259_s1 + $0x28] sm:$0xff]  ;;  %vm119_vm0 = vcmask 523264   ;;  %v5373_v28 = vmov 0.0   ;;  %vm231_vm1 = vcmask 130048  }
  0x13   :  { %170 = vmatpush.msra.mxu0 %v114_v0  ;;  %v111_v3 = vld [vmem:[%s7259_s1 + $0x20] sm:$0xff]  ;;  %v110_v4 = vld [vmem:[%s7259_s1 + $0x18] sm:$0xff]  ;;  %v109_v5 = vld [vmem:[%s7259_s1 + $0x10] sm:$0xff]  ;;  %s5374_s15 = smov 32   ;;  %s5376_s16 = smov 96   ;;  %vm567_vm10 = vcmask 261120  }
  0x14   :  { %v108_v6 = vld [vmem:[%s7259_s1 + $0x8] sm:$0xff]  ;;  %v107_v7 = vld [vmem:[%s7259_s1] sm:$0xff]  ;;  %v95_v10 = vld [vmem:[%s7258_s0 + $0x10] sm:$0xff]  ;;  %vm574_vm11 = vcmask 523520   ;;  %s6610_s26 = sld [smem:[#allocation10 + $0xc]]  ;;  %s5377_s19 = smov [#allocation11]  }
  0x15   :  { %171 = vmatpush.msra.mxu0 %v113_v1  ;;  %v93_v8 = vld [vmem:[%s7258_s0] sm:$0xff]  ;;  %v94_v9 = vld [vmem:[%s7258_s0 + $0x8] sm:$0xff]  ;;  %v96_v11 = vld [vmem:[%s7258_s0 + $0x18] sm:$0xff]  ;;  %s6612_s27 = sld [smem:[#allocation10]]  ;;  %s4555_s20 = sshll.u32 %s5377_s19, 4  ;;  %s4556_s20 = int_to_ptr.vmem [resolvable:$true] %s4555_s20 }
  0x16   :  { %v97_v12 = vld [vmem:[%s7258_s0 + $0x20] sm:$0xff]  ;;  %v98_v13 = vld [vmem:[%s7258_s0 + $0x28] sm:$0xff]  ;;  %v99_v14 = vld [vmem:[%s7258_s0 + $0x30] sm:$0xff]  ;;  %s6614_s6 = sld [smem:[#allocation10 + $0x1]] }
  0x17   :  { %172 = vmatpush.msra.mxu0 %v112_v2  ;;  %v100_v15 = vld [vmem:[%s7258_s0 + $0x38] sm:$0xff]  ;;  %v101_v16 = vld [vmem:[%s7258_s0 + $0x40] sm:$0xff]  ;;  %v102_v17 = vld [vmem:[%s7258_s0 + $0x48] sm:$0xff]  ;;  %s6672_s8 = sld [smem:[#allocation10 + $0xb]] }
  0x18   :  { %v5529_v18 = vld [vmem:[%s7263_s5 + $0x70] sm:$0xff]  ;;  %v5534_v19 = vld [vmem:[%s7263_s5 + $0x60] sm:$0xff]  ;;  %v104_v27 = vld [vmem:[%s7258_s0 + $0x58] sm:$0xff]  ;;  %s6674_s28 = sld [smem:[#allocation10 + $0x2]] }
  0x19   :  { %173 = vmatpush.msra.mxu0 %v111_v3  ;;  %447 = vmatpush.msra.mxu3 %v5529_v18  ;;  %v5540_v20 = vld [vmem:[%s7263_s5 + $0x50] sm:$0xff]  ;;  %v5546_v21 = vld [vmem:[%s7263_s5 + $0x40] sm:$0xff]  ;;  %v224_v30 = vld [vmem:[%s7261_s3 + $0x18] sm:$0xff]  ;;  %s6726_s29 = sld [smem:[#allocation10 + $0xa]] }
  0x1a   :  { %v103_v22 = vld [vmem:[%s7258_s0 + $0x50] sm:$0xff]  ;;  %v5562_v24 = vld [vmem:[%s7263_s5 + $0x20] sm:$0xff]  ;;  %347 = vmatpush.msra.mxu2 %v224_v30  ;;  %v222_v33 = vld [vmem:[%s7261_s3 + $0x8] sm:$0xff]  ;;  %s6728_s1 = sld [smem:[#allocation10 + $0x3]] }
  0x1b   :  { %174 = vmatpush.msra.mxu0 %v110_v4  ;;  %448 = vmatpush.msra.mxu3 %v5534_v19  ;;  %v5555_v23 = vld [vmem:[%s7263_s5 + $0x30] sm:$0xff]  ;;  %v5574_v26 = vld [vmem:[%s7263_s5] sm:$0xff]  ;;  %v106_v34 = vld [vmem:[%s7258_s0 + $0x68] sm:$0xff]  ;;  %s6796_s30 = sld [smem:[#allocation10 + $0x9]] }
  0x1c   :  { %v5568_v25 = vld [vmem:[%s7263_s5 + $0x10] sm:$0xff]  ;;  %v105_v31 = vld [vmem:[%s7258_s0 + $0x60] sm:$0xff]  ;;  %348 = vmatpush.msra.mxu2 %v222_v33  ;;  %v5651_v52 = vld [vmem:[%s7263_s5 + $0x78] sm:$0xff]  ;;  %s6798_s9 = sld [smem:[#allocation10 + $0x4]] }
  0x1d   :  { %175 = vmatpush.msra.mxu0 %v109_v5  ;;  %449 = vmatpush.msra.mxu3 %v5540_v20  ;;  %v223_v29 = vld [vmem:[%s7261_s3 + $0x10] sm:$0xff]  ;;  %v221_v32 = vld [vmem:[%s7261_s3] sm:$0xff]  ;;  %v5659_v53 = vld [vmem:[%s7263_s5 + $0x68] sm:$0xff]  ;;  %s6866_s17 = sld [smem:[#allocation10 + $0x8]] }
  0x1e   :  { %288 = vmatpush.msra.mxu1 %v223_v29  ;;  %1008 = vmatpush.msrb.mxu2 %v5529_v18  ;;  %v5614_v35 = vld [vmem:[%s7260_s2] ss:$0 sm:$0xff]  ;;  %v5667_v56 = vld [vmem:[%s7263_s5 + $0x58] sm:$0xff]  ;;  %v5677_v57 = vld [vmem:[%s7263_s5 + $0x48] sm:$0xff]  ;;  %s6868_s3 = sld [smem:[#allocation10 + $0x5]] }
  0x1f   :  { %176 = vmatpush.msra.mxu0 %v108_v6  ;;  %450 = vmatpush.msra.mxu3 %v5546_v21  ;;  %v5682_v58 = vld [vmem:[%s7263_s5 + $0x38] sm:$0xff]  ;;  %v5692_v59 = vld [vmem:[%s7263_s5 + $0x28] sm:$0xff]  ;;  %s6920_s18 = sld [smem:[#allocation10 + $0x7]] }
  0x20   :  { %289 = vmatpush.msra.mxu1 %v221_v32  ;;  %1009 = vmatpush.msrb.mxu2 %v5534_v19  ;;  %v5701_v62 = vld [vmem:[%s7263_s5 + $0x18] sm:$0xff]  ;;  %v5711_v63 = vld [vmem:[%s7263_s5 + $0x8] sm:$0xff]  ;;  %s6922_s0 = sld [smem:[#allocation10 + $0x6]] }
  0x21   :  { %177 = vmatpush.msra.mxu0 %v107_v7  ;;  %451 = vmatpush.msra.mxu3 %v5555_v23 }
  0x22   :  { %4582 = vmatmul.msk.f32.vlgmr.msra.gmra.mxu0 %vm119_vm0, %v93_v8  ;;  %1010 = vmatpush.msrb.mxu2 %v5540_v20  ;;  %v225_v8 = vld [vmem:[%s7262_s4] sm:$0x3]  ;;  %s5375_s4 = smov 64  }
  0x23   :  { %452 = vmatpush.msra.mxu3 %v5562_v24  ;;  %888 = vmatpush.msrb.mxu1 %v5651_v52 }
  0x24   :  { %1011 = vmatpush.msrb.mxu2 %v5546_v21  ;;  %1028 = vmatpush.msrb.mxu0 %v5651_v52 }
  0x25   :  { %453 = vmatpush.msra.mxu3 %v5568_v25  ;;  %889 = vmatpush.msrb.mxu1 %v5659_v53 }
  0x26   :  { %1012 = vmatpush.msrb.mxu2 %v5555_v23  ;;  %1029 = vmatpush.msrb.mxu0 %v5659_v53 }
  0x27   :  { %454 = vmatpush.msra.mxu3 %v5574_v26  ;;  %890 = vmatpush.msrb.mxu1 %v5667_v56 }
  0x28   :  { %455 = vmatmul.f32.vlgmr.msra.gmra.mxu3 %v5373_v28  ;;  %1013 = vmatpush.msrb.mxu2 %v5562_v24 }
  0x29   :  { %467 = vmatpush.msrb.mxu3 %v5651_v52  ;;  %891 = vmatpush.msrb.mxu1 %v5677_v57 }
  0x2a   :  { %4583 = vmatmul.msk.f32.gmra.mxu0 %vm119_vm0, %v94_v9  ;;  %1014 = vmatpush.msrb.mxu2 %v5568_v25  ;;  %v5766_v9 = vperm.slane %v225_v8, 0 }
  0x2b   :  { %468 = vmatpush.msrb.mxu3 %v5659_v53  ;;  %1030 = vmatpush.msrb.mxu0 %v5667_v56 }
  0x2c   :  { %1015 = vmatpush.msrb.mxu2 %v5574_v26  ;;  %892 = vmatpush.msrb.mxu1 %v5682_v58 }
  0x2d   :  { %469 = vmatpush.msrb.mxu3 %v5667_v56  ;;  %1031 = vmatpush.msrb.mxu0 %v5677_v57 }
  0x2e   :  { %893 = vmatpush.msrb.mxu1 %v5692_v59 }
  0x2f   :  { %470 = vmatpush.msrb.mxu3 %v5677_v57  ;;  %1032 = vmatpush.msrb.mxu0 %v5682_v58 }
  0x30   :  { %894 = vmatpush.msrb.mxu1 %v5701_v62 }
  0x31   :  { %471 = vmatpush.msrb.mxu3 %v5682_v58  ;;  %1033 = vmatpush.msrb.mxu0 %v5692_v59 }
  0x32   :  { %4584 = vmatmul.msk.f32.gmra.mxu0 %vm119_vm0, %v95_v10  ;;  %895 = vmatpush.msrb.mxu1 %v5711_v63 }
  0x33   :  { %472 = vmatpush.msrb.mxu3 %v5692_v59  ;;  %1034 = vmatpush.msrb.mxu0 %v5701_v62 }
  0x35   :  { %473 = vmatpush.msrb.mxu3 %v5701_v62  ;;  %1035 = vmatpush.msrb.mxu0 %v5711_v63 }
  0x37   :  { %474 = vmatpush.msrb.mxu3 %v5711_v63  ;;  %1308 = vmatpush.msra.mxu0 %v5651_v52 }
  0x38   :  { %475 = vmatmul.f32.vlgmr.msrb.gmra.mxu3 %v5373_v28 }
  0x39   :  { %588 = vmatpush.msra.mxu3 %v5529_v18  ;;  %1309 = vmatpush.msra.mxu0 %v5659_v53 }
  0x3a   :  { %4585 = vmatmul.msk.f32.gmra.mxu0 %vm119_vm0, %v96_v11 }
  0x3b   :  { %589 = vmatpush.msra.mxu3 %v5534_v19  ;;  %1310 = vmatpush.msra.mxu0 %v5667_v56 }
  0x3d   :  { %590 = vmatpush.msra.mxu3 %v5540_v20  ;;  %1311 = vmatpush.msra.mxu0 %v5677_v57 }
  0x3f   :  { %591 = vmatpush.msra.mxu3 %v5546_v21  ;;  %1312 = vmatpush.msra.mxu0 %v5682_v58 }
  0x41   :  { %592 = vmatpush.msra.mxu3 %v5555_v23  ;;  %1313 = vmatpush.msra.mxu0 %v5692_v59 }
  0x42   :  { %4586 = vmatmul.msk.f32.gmra.mxu0 %vm119_vm0, %v97_v12 }
  0x43   :  { %593 = vmatpush.msra.mxu3 %v5562_v24  ;;  %1314 = vmatpush.msra.mxu0 %v5701_v62 }
  0x45   :  { %594 = vmatpush.msra.mxu3 %v5568_v25  ;;  %1315 = vmatpush.msra.mxu0 %v5711_v63 }
  0x47   :  { %595 = vmatpush.msra.mxu3 %v5574_v26 }
  0x49   :  { %608 = vmatpush.msrb.mxu3 %v5651_v52 }
  0x4a   :  { %4587 = vmatmul.msk.f32.gmra.mxu0 %vm119_vm0, %v98_v13 }
  0x4b   :  { %609 = vmatpush.msrb.mxu3 %v5659_v53 }
  0x4d   :  { %610 = vmatpush.msrb.mxu3 %v5667_v56 }
  0x4f   :  { %611 = vmatpush.msrb.mxu3 %v5677_v57 }
  0x51   :  { %612 = vmatpush.msrb.mxu3 %v5682_v58 }
  0x52   :  { %4588 = vmatmul.msk.f32.gmra.mxu0 %vm119_vm0, %v99_v14 }
  0x53   :  { %613 = vmatpush.msrb.mxu3 %v5692_v59 }
  0x55   :  { %614 = vmatpush.msrb.mxu3 %v5701_v62 }
  0x57   :  { %615 = vmatpush.msrb.mxu3 %v5711_v63 }
  0x5a   :  { %4589 = vmatmul.msk.f32.gmra.mxu0 %vm119_vm0, %v100_v15 }
  0x62   :  { %4590 = vmatmul.msk.f32.gmra.mxu0 %vm119_vm0, %v101_v16 }
  0x6a   :  { %4591 = vmatmul.msk.f32.gmra.mxu0 %vm119_vm0, %v102_v17 }
  0x72   :  { %4592 = vmatmul.msk.f32.gmra.mxu0 %vm119_vm0, %v103_v22 }
  0x7a   :  { %4593 = vmatmul.msk.f32.gmra.mxu0 %vm119_vm0, %v104_v27 }
  0x82   :  { %4594 = vmatmul.msk.f32.gmra.mxu0 %vm119_vm0, %v105_v31 }
  0x8a   :  { %4595 = vmatmul.msk.f32.gmra.mxu0 %vm119_vm0, %v106_v34 }
  0x9f   :  { %v179_v36 = vpop.f32.mrf.mxu0 }
  0xa0   :  { %v180_v37 = vadd.f32 %v5614_v35, %v179_v36 }
  0xa2   :  { %4596 = vmatmul.msk.f32.vlgmr.msra.gmra.mxu1 %vm231_vm1, %v180_v37  ;;  %4610 = vmatmul.msk.f32.vlgmr.msra.gmra.mxu2 %vm231_vm1, %v180_v37 }
  0xa3   :  { %1288 = vmatpush.msra.mxu2 %v5529_v18  ;;  %1168 = vmatpush.msra.mxu1 %v5651_v52 }
  0xa5   :  { %1289 = vmatpush.msra.mxu2 %v5534_v19  ;;  %1169 = vmatpush.msra.mxu1 %v5659_v53 }
  0xa7   :  { %v182_v38 = vpop.f32.mrf.mxu0  ;;  %1290 = vmatpush.msra.mxu2 %v5540_v20  ;;  %1170 = vmatpush.msra.mxu1 %v5667_v56 }
  0xa8   :  { %v183_v39 = vadd.f32 %v5614_v35, %v182_v38 }
  0xa9   :  { %1291 = vmatpush.msra.mxu2 %v5546_v21  ;;  %1171 = vmatpush.msra.mxu1 %v5677_v57 }
  0xaa   :  { %4597 = vmatmul.msk.f32.gmra.mxu1 %vm231_vm1, %v183_v39  ;;  %4611 = vmatmul.msk.f32.gmra.mxu2 %vm231_vm1, %v183_v39 }
  0xab   :  { %1292 = vmatpush.msra.mxu2 %v5555_v23  ;;  %1172 = vmatpush.msra.mxu1 %v5682_v58  ;;  %v456_v11 = vpop.f32.mrf.mxu3 }
  0xad   :  { %1293 = vmatpush.msra.mxu2 %v5562_v24  ;;  %1173 = vmatpush.msra.mxu1 %v5692_v59 }
  0xaf   :  { %v185_v40 = vpop.f32.mrf.mxu0  ;;  %1294 = vmatpush.msra.mxu2 %v5568_v25  ;;  %1174 = vmatpush.msra.mxu1 %v5701_v62 }
  0xb0   :  { %v186_v41 = vadd.f32 %v5614_v35, %v185_v40 }
  0xb1   :  { %1295 = vmatpush.msra.mxu2 %v5574_v26  ;;  %1175 = vmatpush.msra.mxu1 %v5711_v63 }
  0xb2   :  { %4598 = vmatmul.msk.f32.gmra.mxu1 %vm231_vm1, %v186_v41  ;;  %4612 = vmatmul.msk.f32.gmra.mxu2 %vm231_vm1, %v186_v41 }
  0xb7   :  { %v188_v42 = vpop.f32.mrf.mxu0 }
  0xb8   :  { %v189_v43 = vadd.f32 %v5614_v35, %v188_v42  ;;  %v5796_v42 = vperm.slane %v225_v8, 1 }
  0xba   :  { %4599 = vmatmul.msk.f32.gmra.mxu1 %vm231_vm1, %v189_v43  ;;  %4613 = vmatmul.msk.f32.gmra.mxu2 %vm231_vm1, %v189_v43 }
  0xbf   :  { %v191_v44 = vpop.f32.mrf.mxu0 }
  0xc0   :  { %v192_v45 = vadd.f32 %v5614_v35, %v191_v44  ;;  %v476_v44 = vpop.f32.mrf.mxu3 }
  0xc2   :  { %4600 = vmatmul.msk.f32.gmra.mxu1 %vm231_vm1, %v192_v45  ;;  %4614 = vmatmul.msk.f32.gmra.mxu2 %vm231_vm1, %v192_v45 }
  0xc7   :  { %v194_v46 = vpop.f32.mrf.mxu0 }
  0xc8   :  { %v195_v47 = vadd.f32 %v5614_v35, %v194_v46 }
  0xca   :  { %4601 = vmatmul.msk.f32.gmra.mxu1 %vm231_vm1, %v195_v47  ;;  %4615 = vmatmul.msk.f32.gmra.mxu2 %vm231_vm1, %v195_v47 }
  0xcf   :  { %v197_v48 = vpop.f32.mrf.mxu0 }
  0xd0   :  { %v198_v49 = vadd.f32 %v5614_v35, %v197_v48 }
  0xd2   :  { %4602 = vmatmul.msk.f32.gmra.mxu1 %vm231_vm1, %v198_v49  ;;  %4616 = vmatmul.msk.f32.gmra.mxu2 %vm231_vm1, %v198_v49 }
  0xd7   :  { %v200_v50 = vpop.f32.mrf.mxu0 }
  0xd8   :  { %v201_v51 = vadd.f32 %v5614_v35, %v200_v50 }
  0xda   :  { %4603 = vmatmul.msk.f32.gmra.mxu1 %vm231_vm1, %v201_v51  ;;  %4617 = vmatmul.msk.f32.gmra.mxu2 %vm231_vm1, %v201_v51 }
  0xdf   :  { %v203_v54 = vpop.f32.mrf.mxu0 }
  0xe0   :  { %v204_v55 = vadd.f32 %v5614_v35, %v203_v54 }
  0xe2   :  { %4604 = vmatmul.msk.f32.gmra.mxu1 %vm231_vm1, %v204_v55  ;;  %4618 = vmatmul.msk.f32.gmra.mxu2 %vm231_vm1, %v204_v55 }
  0xe7   :  { %v206_v60 = vpop.f32.mrf.mxu0 }
  0xe8   :  { %v207_v61 = vadd.f32 %v5614_v35, %v206_v60 }
  0xea   :  { %4605 = vmatmul.msk.f32.gmra.mxu1 %vm231_vm1, %v207_v61  ;;  %4619 = vmatmul.msk.f32.gmra.mxu2 %vm231_vm1, %v207_v61 }
  0xef   :  { %v209_v0 = vpop.f32.mrf.mxu0 }
  0xf0   :  { %v210_v1 = vadd.f32 %v5614_v35, %v209_v0 }
  0xf2   :  { %4606 = vmatmul.msk.f32.gmra.mxu1 %vm231_vm1, %v210_v1  ;;  %4620 = vmatmul.msk.f32.gmra.mxu2 %vm231_vm1, %v210_v1 }
  0xf7   :  { %v212_v2 = vpop.f32.mrf.mxu0 }
  0xf8   :  { %v213_v3 = vadd.f32 %v5614_v35, %v212_v2 }
  0xfa   :  { %4607 = vmatmul.msk.f32.gmra.mxu1 %vm231_vm1, %v213_v3  ;;  %4621 = vmatmul.msk.f32.gmra.mxu2 %vm231_vm1, %v213_v3 }
  0xff   :  { %v215_v4 = vpop.f32.mrf.mxu0 }
 0x100   :  { %v216_v5 = vadd.f32 %v5614_v35, %v215_v4 }
 0x102   :  { %4608 = vmatmul.msk.f32.gmra.mxu1 %vm231_vm1, %v216_v5  ;;  %4622 = vmatmul.msk.f32.gmra.mxu2 %vm231_vm1, %v216_v5 }
 0x107   :  { %v218_v6 = vpop.f32.mrf.mxu0 }
 0x108   :  { %v219_v7 = vadd.f32 %v5614_v35, %v218_v6 }
 0x10a   :  { %4609 = vmatmul.msk.f32.gmra.mxu1 %vm231_vm1, %v219_v7  ;;  %4623 = vmatmul.msk.f32.gmra.mxu2 %vm231_vm1, %v219_v7 }
 0x11f   :  { %v291_v10 = vpop.f32.mrf.mxu1 }
 0x120   :  { %v292_v12 = vadd.f32 %v291_v10, %v5766_v9 }
 0x122   :  { %v483_v13 = vadd.f32 %v456_v11, %v292_v12 }
 0x124   :  { %4788 = vtanh.f32 %v483_v13  ;;  %v4624_v34 = vmul.f32 -1.442695, %v483_v13 }
 0x125   :  { %v5769_v14 = vpop.f32.mrf.mxu2 }
 0x126   :  { %4790 = vpow2.f32 %v4624_v34 }
 0x12a   :  { %v4789_v15 = vpop.eup %4788 }
 0x12b   :  { %511 = vrot.lane.b32.xlu0 %v4789_v15, %s5374_s15 }
 0x12c   :  { %v4791_v36 = vpop.eup %4790 }
 0x12d   :  { %v5772_v16 = vpop.f32.mrf.mxu2  ;;  %v492_v37 = vadd.f32 1.0, %v4791_v36 }
 0x12f   :  { %4792 = vrcp.f32 %v492_v37  ;;  %v504_v50 = vand.u32 2147483648, %v492_v37  ;;  %vm498_vm3 = vweird.f32 %v492_v37  ;;  %v502_v54 = vand.u32 2147483647, %v492_v37 }
 0x131   :  { %v505_v60 = vor.u32 1.1754944e-38, %v504_v50  ;;  %vm503_vm5 = vcmp.eq.f32.partialorder %v502_v54, 8.507059e+37 }
 0x135   :  { %v5774_v17 = vpop.f32.mrf.mxu2  ;;  %v4793_v40 = vpop.eup %4792 }
 0x136   :  { %v494_v41 = vmul.f32 %v4793_v40, %v492_v37  ;;  %vm499_vm2 = vweird.f32 %v4793_v40 }
 0x137   :  { %vm500_vm4 = vmor %vm498_vm3, %vm499_vm2 }
 0x138   :  { %v495_v46 = vsub.f32 1.0, %v494_v41 }
 0x13a   :  { %v496_v48 = vmul.f32 %v4793_v40, %v495_v46 }
 0x13c   :  { %v497_v49 = vadd.f32 %v4793_v40, %v496_v48 }
 0x13d   :  { %v5776_v22 = vpop.f32.mrf.mxu2 }
 0x13e   :  { %v501_v55 = vsel %vm500_vm4, %v4793_v40, %v497_v49 }
 0x13f   :  { %v506_v0 = vsel %vm503_vm5, %v505_v60, %v501_v55 }
 0x140   :  { %v509_v40 = vmul.f32 0.0, %v506_v0 }
 0x145   :  { %v5778_v27 = vpop.f32.mrf.mxu2 }
 0x14d   :  { %v5780_v29 = vpop.f32.mrf.mxu2 }
 0x155   :  { %v5782_v30 = vpop.f32.mrf.mxu2 }
 0x15d   :  { %v5784_v31 = vpop.f32.mrf.mxu2 }
 0x165   :  { %v5786_v32 = vpop.f32.mrf.mxu2 }
 0x16d   :  { %v5788_v33 = vpop.f32.mrf.mxu2 }
 0x175   :  { %v5790_v35 = vpop.f32.mrf.mxu2 }
 0x17d   :  { %v5792_v38 = vpop.f32.mrf.mxu2 }
 0x185   :  { %v5794_v39 = vpop.f32.mrf.mxu2 }
 0x18d   :  { %v389_v43 = vpop.f32.mrf.mxu2 }
 0x18e   :  { %v390_v45 = vadd.f32 %v389_v43, %v5796_v42 }
 0x190   :  { %v488_v47 = vadd.f32 %v476_v44, %v390_v45 }
 0x192   :  { %4794 = vtanh.f32 %v488_v47  ;;  %v4625_v2 = vmul.f32 -1.442695, %v488_v47 }
 0x194   :  { %4796 = vpow2.f32 %v4625_v2 }
 0x198   :  { %v4795_v51 = vpop.eup %4794 }
 0x199   :  { %548 = vrot.lane.b32.xlu0 %v4795_v51, %s5374_s15 }
 0x19a   :  { %v4797_v3 = vpop.eup %4796 }
 0x19b   :  { %v529_v4 = vadd.f32 1.0, %v4797_v3 }
 0x19d   :  { %v512_v61 = vpop.permute.xlu0 %511  ;;  %4798 = vrcp.f32 %v529_v4  ;;  %v541_v11 = vand.u32 2147483648, %v529_v4  ;;  %vm535_vm7 = vweird.f32 %v529_v4  ;;  %v539_v12 = vand.u32 2147483647, %v529_v4 }
 0x19e   :  { %v514_v1 = vmul.f32 %v512_v61, %v506_v0 }
 0x19f   :  { %v542_v15 = vor.u32 1.1754944e-38, %v541_v11  ;;  %vm540_vm9 = vcmp.eq.f32.partialorder %v539_v12, 8.507059e+37 }
 0x1a0   :  { %516 = vrot.lane.b32.xlu1 %v514_v1, %s5374_s15 }
 0x1a3   :  { %v4799_v5 = vpop.eup %4798 }
 0x1a4   :  { %v531_v6 = vmul.f32 %v4799_v5, %v529_v4  ;;  %vm536_vm6 = vweird.f32 %v4799_v5  ;;  %v387_v4 = vadd.f32 %v5794_v39, %v5796_v42 }
 0x1a5   :  { %vm537_vm8 = vmor %vm535_vm7, %vm536_vm6 }
 0x1a6   :  { %v532_v7 = vsub.f32 1.0, %v531_v6 }
 0x1a8   :  { %v533_v8 = vmul.f32 %v4799_v5, %v532_v7 }
 0x1aa   :  { %v534_v10 = vadd.f32 %v4799_v5, %v533_v8 }
 0x1ac   :  { %v538_v13 = vsel %vm537_vm8, %v4799_v5, %v534_v10 }
 0x1ad   :  { %v543_v34 = vsel %vm540_vm9, %v542_v15, %v538_v13 }
 0x1ae   :  { %v546_v47 = vmul.f32 0.0, %v543_v34 }
 0x20b   :  { %v549_v36 = vpop.permute.xlu0 %548 }
 0x20c   :  { %v551_v37 = vmul.f32 %v549_v36, %v543_v34 }
 0x20e   :  { %553 = vrot.lane.b32.xlu1 %v551_v37, %s5374_s15 }
 0x212   :  { %v517_v41 = vpop.permute.xlu1 %516 }
 0x213   :  { %v5802_v43 = vadd.f32 %v517_v41, %v509_v40 }
 0x215   :  { %4800 = vtanh.f32 %v5802_v43 }
 0x21b   :  { %v4801_v44 = vpop.eup %4800 }
 0x21c   :  { %522 = vrot.lane.b32.xlu2 %v4801_v44, %s5374_s15 }
 0x276   :  { %v523_v45 = vpop.permute.xlu2 %522 }
 0x277   :  { %v525_v46 = vmul.f32 %v523_v45, %v506_v0  ;;  %v294_v0 = vpop.f32.mrf.mxu1 }
 0x278   :  { %v295_v1 = vadd.f32 %v294_v0, %v5766_v9 }
 0x279   :  { %564 = vrot.lane.b32.xlu0 %v525_v46, %s5375_s4 }
 0x280   :  { %v554_v48 = vpop.permute.xlu1 %553 }
 0x281   :  { %v5807_v49 = vadd.f32 %v554_v48, %v546_v47 }
 0x283   :  { %4802 = vtanh.f32 %v5807_v49 }
 0x289   :  { %v4803_v50 = vpop.eup %4802 }
 0x28a   :  { %559 = vrot.lane.b32.xlu2 %v4803_v50, %s5374_s15 }
 0x2e4   :  { %v560_v51 = vpop.permute.xlu2 %559 }
 0x2e5   :  { %v562_v54 = vmul.f32 %v560_v51, %v543_v34 }
 0x2e7   :  { %570 = vrot.lane.b32.xlu1 %v562_v54, %s5376_s16 }
 0x2eb   :  { %v565_v55 = vpop.permute.xlu0 %564 }
 0x2ec   :  { %568 = vst.msk [vmem:[#allocation3] sm:$0xff] %vm567_vm10, %v565_v55 }
 0x359   :  { %v571_v60 = vpop.permute.xlu1 %570 }
 0x35a   :  { %575 = vst.msk [vmem:[#allocation3 + $0x68] sm:$0xff] %vm574_vm11, %v571_v60  ;;  %v576_v61 = vsel %vm567_vm10, %v565_v55, %v571_v60 }
 0x35b   :  { %4626 = vmatmul.msk.f32.vlgmr.msra.gmra.mxu3 %vm119_vm0, %v576_v61 }
 0x35c   :  { %728 = vmatpush.msra.mxu3 %v5529_v18 }
 0x35e   :  { %729 = vmatpush.msra.mxu3 %v5534_v19 }
 0x360   :  { %730 = vmatpush.msra.mxu3 %v5540_v20 }
 0x362   :  { %731 = vmatpush.msra.mxu3 %v5546_v21 }
 0x363   :  { %4627 = vmatmul.msk.f32.vlgmr.msrb.gmra.mxu3 %vm119_vm0, %v576_v61 }
 0x364   :  { %732 = vmatpush.msra.mxu3 %v5555_v23 }
 0x366   :  { %733 = vmatpush.msra.mxu3 %v5562_v24 }
 0x368   :  { %734 = vmatpush.msra.mxu3 %v5568_v25 }
 0x36a   :  { %735 = vmatpush.msra.mxu3 %v5574_v26 }
 0x36c   :  { %748 = vmatpush.msrb.mxu3 %v5651_v52 }
 0x36e   :  { %749 = vmatpush.msrb.mxu3 %v5659_v53 }
 0x370   :  { %750 = vmatpush.msrb.mxu3 %v5667_v56 }
 0x372   :  { %751 = vmatpush.msrb.mxu3 %v5677_v57 }
 0x374   :  { %752 = vmatpush.msrb.mxu3 %v5682_v58 }
 0x376   :  { %753 = vmatpush.msrb.mxu3 %v5692_v59 }
 0x378   :  { %754 = vmatpush.msrb.mxu3 %v5701_v62 }
 0x37a   :  { %755 = vmatpush.msrb.mxu3 %v5711_v63 }
 0x3de   :  { %v597_v2 = vpop.f32.mrf.mxu3 }
 0x3df   :  { %v624_v3 = vadd.f32 %v597_v2, %v295_v1 }
 0x3e1   :  { %4804 = vtanh.f32 %v624_v3  ;;  %v4628_v10 = vmul.f32 -1.442695, %v624_v3 }
 0x3e6   :  { %v617_v5 = vpop.f32.mrf.mxu3 }
 0x3e7   :  { %v4805_v6 = vpop.eup %4804  ;;  %v629_v7 = vadd.f32 %v617_v5, %v387_v4 }
 0x3e8   :  { %652 = vrot.lane.b32.xlu2 %v4805_v6, %s5374_s15 }
 0x3e9   :  { %4806 = vtanh.f32 %v629_v7  ;;  %v4629_v36 = vmul.f32 -1.442695, %v629_v7 }
 0x3ea   :  { %4808 = vpow2.f32 %v4628_v10 }
 0x3ef   :  { %v4807_v8 = vpop.eup %4806 }
 0x3f0   :  { %689 = vrot.lane.b32.xlu0 %v4807_v8, %s5374_s15  ;;  %v4809_v11 = vpop.eup %4808 }
 0x3f1   :  { %v633_v12 = vadd.f32 1.0, %v4809_v11 }
 0x3f3   :  { %4810 = vrcp.f32 %v633_v12  ;;  %v645_v40 = vand.u32 2147483648, %v633_v12  ;;  %vm639_vm13 = vweird.f32 %v633_v12  ;;  %v643_v41 = vand.u32 2147483647, %v633_v12 }
 0x3f4   :  { %4812 = vpow2.f32 %v4629_v36 }
 0x3f5   :  { %v646_v46 = vor.u32 1.1754944e-38, %v645_v40  ;;  %vm644_vm15 = vcmp.eq.f32.partialorder %v643_v41, 8.507059e+37 }
 0x3f9   :  { %v4811_v13 = vpop.eup %4810 }
 0x3fa   :  { %v635_v15 = vmul.f32 %v4811_v13, %v633_v12  ;;  %vm640_vm12 = vweird.f32 %v4811_v13  ;;  %v4813_v44 = vpop.eup %4812 }
 0x3fb   :  { %vm641_vm14 = vmor %vm639_vm13, %vm640_vm12  ;;  %v670_v47 = vadd.f32 1.0, %v4813_v44 }
 0x3fc   :  { %v636_v34 = vsub.f32 1.0, %v635_v15 }
 0x3fd   :  { %4814 = vrcp.f32 %v670_v47  ;;  %v682_v1 = vand.u32 2147483648, %v670_v47  ;;  %vm676_vm2 = vweird.f32 %v670_v47  ;;  %v680_v2 = vand.u32 2147483647, %v670_v47 }
 0x3fe   :  { %v637_v37 = vmul.f32 %v4811_v13, %v636_v34 }
 0x3ff   :  { %v683_v4 = vor.u32 1.1754944e-38, %v682_v1  ;;  %vm681_vm4 = vcmp.eq.f32.partialorder %v680_v2, 8.507059e+37 }
 0x400   :  { %v638_v39 = vadd.f32 %v4811_v13, %v637_v37 }
 0x402   :  { %v642_v45 = vsel %vm641_vm14, %v4811_v13, %v638_v39 }
 0x403   :  { %v647_v50 = vsel %vm644_vm15, %v646_v46, %v642_v45  ;;  %v4815_v54 = vpop.eup %4814  ;;  %v297_v45 = vpop.f32.mrf.mxu1 }
 0x404   :  { %v672_v55 = vmul.f32 %v4815_v54, %v670_v47  ;;  %vm677_vm1 = vweird.f32 %v4815_v54  ;;  %v650_v8 = vmul.f32 %v647_v50, %v5802_v43  ;;  %v298_v46 = vadd.f32 %v297_v45, %v5766_v9 }
 0x405   :  { %vm678_vm3 = vmor %vm676_vm2, %vm677_vm1 }
 0x406   :  { %v673_v60 = vsub.f32 1.0, %v672_v55 }
 0x408   :  { %v674_v61 = vmul.f32 %v4815_v54, %v673_v60 }
 0x40a   :  { %v675_v0 = vadd.f32 %v4815_v54, %v674_v61 }
 0x40c   :  { %v679_v3 = vsel %vm678_vm3, %v4815_v54, %v675_v0 }
 0x40d   :  { %v684_v6 = vsel %vm681_vm4, %v683_v4, %v679_v3 }
 0x40e   :  { %v687_v12 = vmul.f32 %v684_v6, %v5807_v49 }
 0x442   :  { %v653_v48 = vpop.permute.xlu2 %652 }
 0x443   :  { %v655_v51 = vmul.f32 %v653_v48, %v647_v50 }
 0x445   :  { %657 = vrot.lane.b32.xlu1 %v655_v51, %s5374_s15 }
 0x462   :  { %v690_v5 = vpop.permute.xlu0 %689 }
 0x463   :  { %v692_v7 = vmul.f32 %v690_v5, %v684_v6 }
 0x465   :  { %694 = vrot.lane.b32.xlu2 %v692_v7, %s5374_s15 }
 0x4b7   :  { %v658_v10 = vpop.permute.xlu1 %657 }
 0x4b8   :  { %v5841_v11 = vadd.f32 %v658_v10, %v650_v8 }
 0x4ba   :  { %4816 = vtanh.f32 %v5841_v11 }
 0x4bf   :  { %v695_v13 = vpop.permute.xlu2 %694 }
 0x4c0   :  { %v4817_v15 = vpop.eup %4816  ;;  %v5845_v34 = vadd.f32 %v695_v13, %v687_v12 }
 0x4c1   :  { %663 = vrot.lane.b32.xlu0 %v4817_v15, %s5374_s15 }
 0x4c2   :  { %4818 = vtanh.f32 %v5845_v34 }
 0x4c8   :  { %v4819_v36 = vpop.eup %4818 }
 0x4c9   :  { %700 = vrot.lane.b32.xlu1 %v4819_v36, %s5374_s15 }
 0x533   :  { %v664_v37 = vpop.permute.xlu0 %663 }
 0x534   :  { %v666_v43 = vmul.f32 %v664_v37, %v647_v50  ;;  %v384_v50 = vadd.f32 %v5792_v38, %v5796_v42 }
 0x536   :  { %705 = vrot.lane.b32.xlu2 %v666_v43, %s5375_s4 }
 0x53b   :  { %v701_v39 = vpop.permute.xlu1 %700 }
 0x53c   :  { %v703_v40 = vmul.f32 %v701_v39, %v684_v6 }
 0x53e   :  { %711 = vrot.lane.b32.xlu0 %v703_v40, %s5376_s16 }
 0x590   :  { %v706_v49 = vpop.permute.xlu2 %705 }
 0x591   :  { %709 = vst.msk [vmem:[#allocation3 + $0x8] sm:$0xff] %vm567_vm10, %v706_v49 }
 0x5b0   :  { %v712_v41 = vpop.permute.xlu0 %711 }
 0x5b1   :  { %715 = vst.msk [vmem:[#allocation3 + $0x60] sm:$0xff] %vm574_vm11, %v712_v41  ;;  %v716_v44 = vsel %vm567_vm10, %v706_v49, %v712_v41 }
 0x5b2   :  { %4630 = vmatmul.msk.f32.vlgmr.msra.gmra.mxu3 %vm119_vm0, %v716_v44 }
 0x5b3   :  { %868 = vmatpush.msra.mxu3 %v5529_v18 }
 0x5b5   :  { %869 = vmatpush.msra.mxu3 %v5534_v19 }
 0x5b7   :  { %870 = vmatpush.msra.mxu3 %v5540_v20 }
 0x5b9   :  { %871 = vmatpush.msra.mxu3 %v5546_v21 }
 0x5ba   :  { %4631 = vmatmul.msk.f32.vlgmr.msrb.gmra.mxu3 %vm119_vm0, %v716_v44 }
 0x5bb   :  { %872 = vmatpush.msra.mxu3 %v5555_v23 }
 0x5bd   :  { %873 = vmatpush.msra.mxu3 %v5562_v24 }
 0x5bf   :  { %874 = vmatpush.msra.mxu3 %v5568_v25 }
 0x5c1   :  { %875 = vmatpush.msra.mxu3 %v5574_v26 }
 0x5c3   :  { %1148 = vmatpush.msrb.mxu3 %v5529_v18 }
 0x5c5   :  { %1149 = vmatpush.msrb.mxu3 %v5534_v19 }
 0x5c7   :  { %1150 = vmatpush.msrb.mxu3 %v5540_v20 }
 0x5c9   :  { %1151 = vmatpush.msrb.mxu3 %v5546_v21 }
 0x5cb   :  { %1152 = vmatpush.msrb.mxu3 %v5555_v23 }
 0x5cd   :  { %1153 = vmatpush.msrb.mxu3 %v5562_v24 }
 0x5cf   :  { %1154 = vmatpush.msrb.mxu3 %v5568_v25 }
 0x5d1   :  { %1155 = vmatpush.msrb.mxu3 %v5574_v26 }
 0x635   :  { %v737_v47 = vpop.f32.mrf.mxu3 }
 0x636   :  { %v764_v48 = vadd.f32 %v737_v47, %v298_v46 }
 0x638   :  { %4820 = vtanh.f32 %v764_v48  ;;  %v4632_v2 = vmul.f32 -1.442695, %v764_v48 }
 0x63d   :  { %v757_v51 = vpop.f32.mrf.mxu3 }
 0x63e   :  { %v4821_v54 = vpop.eup %4820  ;;  %v769_v55 = vadd.f32 %v757_v51, %v384_v50 }
 0x63f   :  { %792 = vrot.lane.b32.xlu1 %v4821_v54, %s5374_s15 }
 0x640   :  { %4822 = vtanh.f32 %v769_v55  ;;  %v4633_v61 = vmul.f32 -1.442695, %v769_v55 }
 0x642   :  { %4824 = vpow2.f32 %v4633_v61 }
 0x646   :  { %v4823_v60 = vpop.eup %4822 }
 0x647   :  { %829 = vrot.lane.b32.xlu2 %v4823_v60, %s5374_s15 }
 0x648   :  { %v4825_v0 = vpop.eup %4824 }
 0x649   :  { %v810_v1 = vadd.f32 1.0, %v4825_v0 }
 0x64b   :  { %4826 = vrcp.f32 %v810_v1  ;;  %v822_v12 = vand.u32 2147483648, %v810_v1  ;;  %vm816_vm6 = vweird.f32 %v810_v1  ;;  %v820_v13 = vand.u32 2147483647, %v810_v1 }
 0x64c   :  { %4828 = vpow2.f32 %v4632_v2 }
 0x64d   :  { %v823_v37 = vor.u32 1.1754944e-38, %v822_v12  ;;  %vm821_vm8 = vcmp.eq.f32.partialorder %v820_v13, 8.507059e+37 }
 0x651   :  { %v4827_v3 = vpop.eup %4826 }
 0x652   :  { %v4829_v4 = vpop.eup %4828  ;;  %v812_v5 = vmul.f32 %v4827_v3, %v810_v1  ;;  %vm817_vm5 = vweird.f32 %v4827_v3 }
 0x653   :  { %v773_v38 = vadd.f32 1.0, %v4829_v4  ;;  %vm818_vm7 = vmor %vm816_vm6, %vm817_vm5 }
 0x654   :  { %v813_v6 = vsub.f32 1.0, %v812_v5 }
 0x655   :  { %4830 = vrcp.f32 %v773_v38  ;;  %v785_v45 = vand.u32 2147483648, %v773_v38  ;;  %vm779_vm12 = vweird.f32 %v773_v38  ;;  %v783_v46 = vand.u32 2147483647, %v773_v38 }
 0x656   :  { %v814_v7 = vmul.f32 %v4827_v3, %v813_v6 }
 0x657   :  { %v786_v48 = vor.u32 1.1754944e-38, %v785_v45  ;;  %vm784_vm14 = vcmp.eq.f32.partialorder %v783_v46, 8.507059e+37 }
 0x658   :  { %v815_v8 = vadd.f32 %v4827_v3, %v814_v7 }
 0x65a   :  { %v819_v15 = vsel %vm818_vm7, %v4827_v3, %v815_v8 }
 0x65b   :  { %v4831_v10 = vpop.eup %4830  ;;  %v824_v39 = vsel %vm821_vm8, %v823_v37, %v819_v15  ;;  %v381_v15 = vadd.f32 %v5790_v35, %v5796_v42 }
 0x65c   :  { %v775_v36 = vmul.f32 %v4831_v10, %v773_v38  ;;  %vm780_vm9 = vweird.f32 %v4831_v10  ;;  %v827_v55 = vmul.f32 %v824_v39, %v5845_v34 }
 0x65d   :  { %vm781_vm13 = vmor %vm779_vm12, %vm780_vm9 }
 0x65e   :  { %v776_v49 = vsub.f32 1.0, %v775_v36 }
 0x660   :  { %v777_v41 = vmul.f32 %v4831_v10, %v776_v49 }
 0x662   :  { %v778_v44 = vadd.f32 %v4831_v10, %v777_v41 }
 0x664   :  { %v782_v47 = vsel %vm781_vm13, %v4831_v10, %v778_v44 }
 0x665   :  { %v787_v51 = vsel %vm784_vm14, %v786_v48, %v782_v47 }
 0x666   :  { %v790_v1 = vmul.f32 %v787_v51, %v5841_v11 }
 0x6a1   :  { %v830_v43 = vpop.permute.xlu2 %829 }
 0x6a2   :  { %v832_v40 = vmul.f32 %v830_v43, %v824_v39 }
 0x6a4   :  { %834 = vrot.lane.b32.xlu1 %v832_v40, %s5374_s15 }
 0x6b1   :  { %v793_v50 = vpop.permute.xlu1 %792 }
 0x6b2   :  { %v795_v54 = vmul.f32 %v793_v50, %v787_v51 }
 0x6b4   :  { %797 = vrot.lane.b32.xlu0 %v795_v54, %s5374_s15 }
 0x716   :  { %v835_v60 = vpop.permute.xlu1 %834 }
 0x717   :  { %v5881_v61 = vadd.f32 %v835_v60, %v827_v55 }
 0x719   :  { %4832 = vtanh.f32 %v5881_v61 }
 0x71f   :  { %v4833_v0 = vpop.eup %4832 }
 0x720   :  { %840 = vrot.lane.b32.xlu0 %v4833_v0, %s5374_s15 }
 0x726   :  { %v798_v2 = vpop.permute.xlu0 %797 }
 0x727   :  { %v5886_v3 = vadd.f32 %v798_v2, %v790_v1 }
 0x729   :  { %4834 = vtanh.f32 %v5886_v3 }
 0x72f   :  { %v4835_v4 = vpop.eup %4834 }
 0x730   :  { %803 = vrot.lane.b32.xlu2 %v4835_v4, %s5374_s15 }
 0x78a   :  { %v804_v5 = vpop.permute.xlu2 %803 }
 0x78b   :  { %v806_v34 = vmul.f32 %v804_v5, %v787_v51 }
 0x78d   :  { %845 = vrot.lane.b32.xlu1 %v806_v34, %s5375_s4 }
 0x792   :  { %v841_v38 = vpop.permute.xlu0 %840 }
 0x793   :  { %v843_v6 = vmul.f32 %v841_v38, %v824_v39 }
 0x795   :  { %851 = vrot.lane.b32.xlu2 %v843_v6, %s5376_s16 }
 0x7ef   :  { %v852_v7 = vpop.permute.xlu2 %851 }
 0x7f0   :  { %855 = vst.msk [vmem:[#allocation3 + $0x58] sm:$0xff] %vm574_vm11, %v852_v7 }
 0x7ff   :  { %v846_v11 = vpop.permute.xlu1 %845 }
 0x800   :  { %849 = vst.msk [vmem:[#allocation3 + $0x10] sm:$0xff] %vm567_vm10, %v846_v11  ;;  %v856_v8 = vsel %vm567_vm10, %v846_v11, %v852_v7 }
 0x801   :  { %4634 = vmatmul.msk.f32.vlgmr.msra.gmra.mxu3 %vm119_vm0, %v856_v8  ;;  %4635 = vmatmul.msk.f32.vlgmr.msrb.gmra.mxu1 %vm119_vm0, %v856_v8 }
 0x802   :  { %1428 = vmatpush.msra.mxu3 %v5529_v18  ;;  %1448 = vmatpush.msrb.mxu1 %v5651_v52  ;;  %v300_v18 = vpop.f32.mrf.mxu1 }
 0x803   :  { %v301_v43 = vadd.f32 %v300_v18, %v5766_v9 }
 0x804   :  { %1429 = vmatpush.msra.mxu3 %v5534_v19  ;;  %1449 = vmatpush.msrb.mxu1 %v5659_v53 }
 0x806   :  { %1430 = vmatpush.msra.mxu3 %v5540_v20  ;;  %1450 = vmatpush.msrb.mxu1 %v5667_v56 }
 0x808   :  { %1431 = vmatpush.msra.mxu3 %v5546_v21  ;;  %1451 = vmatpush.msrb.mxu1 %v5677_v57 }
 0x80a   :  { %1432 = vmatpush.msra.mxu3 %v5555_v23  ;;  %1452 = vmatpush.msrb.mxu1 %v5682_v58  ;;  %v5913_v19 = vpop.f32.mrf.mxu1 }
 0x80c   :  { %1433 = vmatpush.msra.mxu3 %v5562_v24  ;;  %1453 = vmatpush.msrb.mxu1 %v5692_v59 }
 0x80e   :  { %1434 = vmatpush.msra.mxu3 %v5568_v25  ;;  %1454 = vmatpush.msrb.mxu1 %v5701_v62 }
 0x810   :  { %1435 = vmatpush.msra.mxu3 %v5574_v26  ;;  %1455 = vmatpush.msrb.mxu1 %v5711_v63 }
 0x812   :  { %v5915_v20 = vpop.f32.mrf.mxu1 }
 0x81a   :  { %v5917_v21 = vpop.f32.mrf.mxu1 }
 0x822   :  { %v5919_v23 = vpop.f32.mrf.mxu1 }
 0x82a   :  { %v5921_v24 = vpop.f32.mrf.mxu1 }
 0x832   :  { %v5923_v10 = vpop.f32.mrf.mxu1 }
 0x83a   :  { %v5925_v25 = vpop.f32.mrf.mxu1 }
 0x842   :  { %v5927_v12 = vpop.f32.mrf.mxu1 }
 0x84a   :  { %v5929_v26 = vpop.f32.mrf.mxu1 }
 0x852   :  { %v5931_v13 = vpop.f32.mrf.mxu1 }
 0x87e   :  { %v897_v36 = vpop.f32.mrf.mxu1 }
 0x87f   :  { %v909_v37 = vadd.f32 %v897_v36, %v381_v15 }
 0x881   :  { %4836 = vtanh.f32 %v909_v37  ;;  %v4637_v44 = vmul.f32 -1.442695, %v909_v37 }
 0x884   :  { %v877_v39 = vpop.f32.mrf.mxu3 }
 0x885   :  { %v904_v40 = vadd.f32 %v877_v39, %v301_v43 }
 0x887   :  { %v4837_v49 = vpop.eup %4836  ;;  %4838 = vtanh.f32 %v904_v40  ;;  %v4636_v45 = vmul.f32 -1.442695, %v904_v40 }
 0x888   :  { %969 = vrot.lane.b32.xlu1 %v4837_v49, %s5374_s15  ;;  %4840 = vpow2.f32 %v4637_v44 }
 0x889   :  { %4842 = vpow2.f32 %v4636_v45 }
 0x88d   :  { %v4839_v41 = vpop.eup %4838 }
 0x88e   :  { %932 = vrot.lane.b32.xlu0 %v4839_v41, %s5374_s15  ;;  %v4841_v46 = vpop.eup %4840 }
 0x88f   :  { %v950_v35 = vadd.f32 1.0, %v4841_v46  ;;  %v4843_v47 = vpop.eup %4842 }
 0x890   :  { %v913_v48 = vadd.f32 1.0, %v4843_v47 }
 0x891   :  { %4844 = vrcp.f32 %v950_v35  ;;  %v962_v4 = vand.u32 2147483648, %v950_v35  ;;  %vm956_vm1 = vweird.f32 %v950_v35  ;;  %v960_v5 = vand.u32 2147483647, %v950_v35 }
 0x892   :  { %4846 = vrcp.f32 %v913_v48  ;;  %v925_v18 = vand.u32 2147483648, %v913_v48  ;;  %vm919_vm5 = vweird.f32 %v913_v48  ;;  %v923_v36 = vand.u32 2147483647, %v913_v48 }
 0x893   :  { %v963_v6 = vor.u32 1.1754944e-38, %v962_v4  ;;  %vm961_vm3 = vcmp.eq.f32.partialorder %v960_v5, 8.507059e+37  ;;  %v5974_v4 = vld [vmem:[%s7263_s5 + $0x50] sm:$0xff] }
 0x894   :  { %v926_v43 = vor.u32 1.1754944e-38, %v925_v18  ;;  %vm924_vm7 = vcmp.eq.f32.partialorder %v923_v36, 8.507059e+37 }
 0x897   :  { %v4845_v50 = vpop.eup %4844 }
 0x898   :  { %v952_v51 = vmul.f32 %v4845_v50, %v950_v35  ;;  %v4847_v54 = vpop.eup %4846  ;;  %vm957_vm15 = vweird.f32 %v4845_v50 }
 0x899   :  { %v915_v60 = vmul.f32 %v4847_v54, %v913_v48  ;;  %vm958_vm2 = vmor %vm956_vm1, %vm957_vm15  ;;  %vm920_vm4 = vweird.f32 %v4847_v54 }
 0x89a   :  { %v953_v55 = vsub.f32 1.0, %v952_v51  ;;  %vm921_vm6 = vmor %vm919_vm5, %vm920_vm4 }
 0x89b   :  { %v916_v1 = vsub.f32 1.0, %v915_v60 }
 0x89c   :  { %v954_v0 = vmul.f32 %v4845_v50, %v953_v55 }
 0x89d   :  { %v917_v34 = vmul.f32 %v4847_v54, %v916_v1  ;;  %v5960_v1 = vld [vmem:[%s7263_s5 + $0x70] sm:$0xff] }
 0x89e   :  { %v955_v2 = vadd.f32 %v4845_v50, %v954_v0 }
 0x89f   :  { %v918_v7 = vadd.f32 %v4847_v54, %v917_v34 }
 0x8a0   :  { %v959_v38 = vsel %vm958_vm2, %v4845_v50, %v955_v2  ;;  %v5967_v2 = vld [vmem:[%s7263_s5 + $0x60] sm:$0xff] }
 0x8a1   :  { %v964_v8 = vsel %vm961_vm3, %v963_v6, %v959_v38  ;;  %v922_v37 = vsel %vm921_vm6, %v4847_v54, %v918_v7  ;;  %v304_v38 = vadd.f32 %v5913_v19, %v5766_v9 }
 0x8a2   :  { %v927_v40 = vsel %vm924_vm7, %v926_v43, %v922_v37  ;;  %v967_v35 = vmul.f32 %v964_v8, %v5881_v61 }
 0x8a3   :  { %v930_v41 = vmul.f32 %v927_v40, %v5886_v3 }
 0x8fa   :  { %v970_v11 = vpop.permute.xlu1 %969 }
 0x8fb   :  { %v972_v15 = vmul.f32 %v970_v11, %v964_v8 }
 0x8fd   :  { %974 = vrot.lane.b32.xlu0 %v972_v15, %s5374_s15 }
 0x900   :  { %v933_v39 = vpop.permute.xlu0 %932 }
 0x901   :  { %v935_v49 = vmul.f32 %v933_v39, %v927_v40 }
 0x903   :  { %937 = vrot.lane.b32.xlu2 %v935_v49, %s5374_s15 }
 0x95d   :  { %v938_v44 = vpop.permute.xlu2 %937 }
 0x95e   :  { %v5941_v45 = vadd.f32 %v938_v44, %v930_v41 }
 0x960   :  { %4848 = vtanh.f32 %v5941_v45 }
 0x966   :  { %v4849_v46 = vpop.eup %4848 }
 0x967   :  { %943 = vrot.lane.b32.xlu1 %v4849_v46, %s5374_s15 }
 0x96f   :  { %v975_v47 = vpop.permute.xlu0 %974 }
 0x970   :  { %v5946_v48 = vadd.f32 %v975_v47, %v967_v35 }
 0x972   :  { %4850 = vtanh.f32 %v5946_v48 }
 0x978   :  { %v4851_v50 = vpop.eup %4850 }
 0x979   :  { %980 = vrot.lane.b32.xlu2 %v4851_v50, %s5374_s15 }
 0x9d3   :  { %v981_v51 = vpop.permute.xlu2 %980 }
 0x9d4   :  { %v983_v3 = vmul.f32 %v981_v51, %v964_v8 }
 0x9d6   :  { %991 = vrot.lane.b32.xlu1 %v983_v3, %s5376_s16 }
 0x9d9   :  { %v944_v54 = vpop.permute.xlu1 %943 }
 0x9da   :  { %v946_v55 = vmul.f32 %v944_v54, %v927_v40 }
 0x9dc   :  { %985 = vrot.lane.b32.xlu0 %v946_v55, %s5375_s4 }
 0xa48   :  { %v992_v60 = vpop.permute.xlu1 %991 }
 0xa49   :  { %995 = vst.msk [vmem:[#allocation3 + $0x50] sm:$0xff] %vm574_vm11, %v992_v60 }
 0xa4e   :  { %v986_v61 = vpop.permute.xlu0 %985 }
 0xa4f   :  { %989 = vst.msk [vmem:[#allocation3 + $0x18] sm:$0xff] %vm567_vm10, %v986_v61  ;;  %v996_v0 = vsel %vm567_vm10, %v986_v61, %v992_v60 }
 0xa50   :  { %4638 = vmatmul.msk.f32.vlgmr.msrb.gmra.mxu2 %vm119_vm0, %v996_v0  ;;  %4639 = vmatmul.msk.f32.vlgmr.msrb.gmra.mxu0 %vm119_vm0, %v996_v0 }
 0xa51   :  { %1560 = vmatpush.msrb.mxu2 %v5960_v1  ;;  %1580 = vmatpush.msrb.mxu0 %v5651_v52  ;;  %v5981_v52 = vld [vmem:[%s7263_s5 + $0x40] sm:$0xff] }
 0xa53   :  { %1561 = vmatpush.msrb.mxu2 %v5967_v2  ;;  %1581 = vmatpush.msrb.mxu0 %v5659_v53  ;;  %v5988_v53 = vld [vmem:[%s7263_s5 + $0x30] sm:$0xff] }
 0xa55   :  { %1562 = vmatpush.msrb.mxu2 %v5974_v4  ;;  %1582 = vmatpush.msrb.mxu0 %v5667_v56  ;;  %v5995_v56 = vld [vmem:[%s7263_s5 + $0x20] sm:$0xff] }
 0xa57   :  { %1563 = vmatpush.msrb.mxu2 %v5981_v52  ;;  %1583 = vmatpush.msrb.mxu0 %v5677_v57  ;;  %v6002_v57 = vld [vmem:[%s7263_s5 + $0x10] sm:$0xff] }
 0xa59   :  { %1564 = vmatpush.msrb.mxu2 %v5988_v53  ;;  %1584 = vmatpush.msrb.mxu0 %v5682_v58  ;;  %v6009_v58 = vld [vmem:[%s7263_s5] sm:$0xff] }
 0xa5b   :  { %1565 = vmatpush.msrb.mxu2 %v5995_v56  ;;  %1585 = vmatpush.msrb.mxu0 %v5692_v59  ;;  %v378_v59 = vadd.f32 %v5788_v33, %v5796_v42 }
 0xa5d   :  { %1566 = vmatpush.msrb.mxu2 %v6002_v57  ;;  %1586 = vmatpush.msrb.mxu0 %v5701_v62 }
 0xa5f   :  { %1567 = vmatpush.msrb.mxu2 %v6009_v58  ;;  %1587 = vmatpush.msrb.mxu0 %v5711_v63 }
 0xacd   :  { %v1037_v5 = vpop.f32.mrf.mxu0 }
 0xace   :  { %v1049_v34 = vadd.f32 %v1037_v5, %v378_v59 }
 0xad0   :  { %4852 = vtanh.f32 %v1049_v34  ;;  %v4641_v33 = vmul.f32 -1.442695, %v1049_v34 }
 0xad3   :  { %v1017_v6 = vpop.f32.mrf.mxu2 }
 0xad4   :  { %v1044_v62 = vadd.f32 %v1017_v6, %v304_v38 }
 0xad6   :  { %v4853_v7 = vpop.eup %4852  ;;  %4854 = vtanh.f32 %v1044_v62  ;;  %v4640_v8 = vmul.f32 -1.442695, %v1044_v62 }
 0xad7   :  { %1109 = vrot.lane.b32.xlu0 %v4853_v7, %s5374_s15 }
 0xad8   :  { %4856 = vpow2.f32 %v4640_v8 }
 0xadc   :  { %v4855_v11 = vpop.eup %4854 }
 0xadd   :  { %1072 = vrot.lane.b32.xlu2 %v4855_v11, %s5374_s15 }
 0xade   :  { %v4857_v63 = vpop.eup %4856 }
 0xadf   :  { %v1053_v18 = vadd.f32 1.0, %v4857_v63 }
 0xae1   :  { %4858 = vrcp.f32 %v1053_v18  ;;  %v1065_v49 = vand.u32 2147483648, %v1053_v18  ;;  %vm1059_vm9 = vweird.f32 %v1053_v18  ;;  %v1063_v41 = vand.u32 2147483647, %v1053_v18 }
 0xae2   :  { %4860 = vpow2.f32 %v4641_v33 }
 0xae3   :  { %v1066_v35 = vor.u32 1.1754944e-38, %v1065_v49  ;;  %vm1064_vm13 = vcmp.eq.f32.partialorder %v1063_v41, 8.507059e+37  ;;  %v6049_v49 = vld [vmem:[%s7263_s5 + $0x68] sm:$0xff]  ;;  %v6056_v41 = vld [vmem:[%s7263_s5 + $0x58] sm:$0xff] }
 0xae7   :  { %v4859_v15 = vpop.eup %4858 }
 0xae8   :  { %v1055_v36 = vmul.f32 %v4859_v15, %v1053_v18  ;;  %v4861_v37 = vpop.eup %4860  ;;  %vm1060_vm8 = vweird.f32 %v4859_v15 }
 0xae9   :  { %v1090_v43 = vadd.f32 1.0, %v4861_v37  ;;  %vm1061_vm12 = vmor %vm1059_vm9, %vm1060_vm8 }
 0xaea   :  { %v1056_v19 = vsub.f32 1.0, %v1055_v36 }
 0xaeb   :  { %4862 = vrcp.f32 %v1090_v43  ;;  %v1102_v61 = vand.u32 2147483648, %v1090_v43  ;;  %vm1096_vm15 = vweird.f32 %v1090_v43  ;;  %v1100_v0 = vand.u32 2147483647, %v1090_v43 }
 0xaec   :  { %v1057_v39 = vmul.f32 %v4859_v15, %v1056_v19 }
 0xaed   :  { %v1103_v5 = vor.u32 1.1754944e-38, %v1102_v61  ;;  %vm1101_vm2 = vcmp.eq.f32.partialorder %v1100_v0, 8.507059e+37 }
 0xaee   :  { %v1058_v40 = vadd.f32 %v4859_v15, %v1057_v39 }
 0xaf0   :  { %v1062_v46 = vsel %vm1061_vm12, %v4859_v15, %v1058_v40  ;;  %v6042_v40 = vld [vmem:[%s7263_s5 + $0x78] sm:$0xff] }
 0xaf1   :  { %v4863_v44 = vpop.eup %4862  ;;  %v1067_v51 = vsel %vm1064_vm13, %v1066_v35, %v1062_v46  ;;  %v6070_v46 = vld [vmem:[%s7263_s5 + $0x38] sm:$0xff]  ;;  %v6077_v35 = vld [vmem:[%s7263_s5 + $0x28] sm:$0xff] }
 0xaf2   :  { %v1092_v47 = vmul.f32 %v4863_v44, %v1090_v43  ;;  %vm1097_vm14 = vweird.f32 %v4863_v44  ;;  %v1070_v8 = vmul.f32 %v1067_v51, %v5941_v45 }
 0xaf3   :  { %vm1098_vm1 = vmor %vm1096_vm15, %vm1097_vm14 }
 0xaf4   :  { %v1093_v54 = vsub.f32 1.0, %v1092_v47  ;;  %v6084_v47 = vld [vmem:[%s7263_s5 + $0x18] sm:$0xff] }
 0xaf6   :  { %v1094_v55 = vmul.f32 %v4863_v44, %v1093_v54 }
 0xaf8   :  { %v1095_v60 = vadd.f32 %v4863_v44, %v1094_v55  ;;  %v307_v55 = vadd.f32 %v5915_v20, %v5766_v9 }
 0xafa   :  { %v1099_v59 = vsel %vm1098_vm1, %v4863_v44, %v1095_v60  ;;  %v6063_v44 = vld [vmem:[%s7263_s5 + $0x48] sm:$0xff] }
 0xafb   :  { %v1104_v38 = vsel %vm1101_vm2, %v1103_v5, %v1099_v59 }
 0xafc   :  { %v1107_v62 = vmul.f32 %v1104_v38, %v5946_v48 }
 0xb37   :  { %v1073_v50 = vpop.permute.xlu2 %1072 }
 0xb38   :  { %v1075_v3 = vmul.f32 %v1073_v50, %v1067_v51  ;;  %v6091_v50 = vld [vmem:[%s7263_s5 + $0x8] sm:$0xff] }
 0xb3a   :  { %1077 = vrot.lane.b32.xlu1 %v1075_v3, %s5374_s15 }
 0xb49   :  { %v1110_v34 = vpop.permute.xlu0 %1109 }
 0xb4a   :  { %v1112_v6 = vmul.f32 %v1110_v34, %v1104_v38 }
 0xb4c   :  { %1114 = vrot.lane.b32.xlu2 %v1112_v6, %s5374_s15 }
 0xba6   :  { %v1115_v7 = vpop.permute.xlu2 %1114 }
 0xba7   :  { %v6022_v11 = vadd.f32 %v1115_v7, %v1107_v62 }
 0xba9   :  { %4864 = vtanh.f32 %v6022_v11 }
 0xbac   :  { %v1078_v63 = vpop.permute.xlu1 %1077 }
 0xbad   :  { %v6026_v18 = vadd.f32 %v1078_v63, %v1070_v8 }
 0xbaf   :  { %v4865_v33 = vpop.eup %4864  ;;  %4866 = vtanh.f32 %v6026_v18 }
 0xbb0   :  { %1120 = vrot.lane.b32.xlu1 %v4865_v33, %s5374_s15 }
 0xbb5   :  { %v4867_v15 = vpop.eup %4866 }
 0xbb6   :  { %1083 = vrot.lane.b32.xlu0 %v4867_v15, %s5374_s15 }
 0xc22   :  { %v1121_v36 = vpop.permute.xlu1 %1120 }
 0xc23   :  { %v1123_v48 = vmul.f32 %v1121_v36, %v1104_v38 }
 0xc25   :  { %1131 = vrot.lane.b32.xlu0 %v1123_v48, %s5376_s16 }
 0xc28   :  { %v1084_v37 = vpop.permute.xlu0 %1083 }
 0xc29   :  { %v1086_v19 = vmul.f32 %v1084_v37, %v1067_v51  ;;  %v375_v51 = vadd.f32 %v5786_v32, %v5796_v42 }
 0xc2b   :  { %1125 = vrot.lane.b32.xlu2 %v1086_v19, %s5375_s4 }
 0xc85   :  { %v1126_v45 = vpop.permute.xlu2 %1125 }
 0xc86   :  { %1129 = vst.msk [vmem:[#allocation3 + $0x20] sm:$0xff] %vm567_vm10, %v1126_v45 }
 0xc97   :  { %v1132_v43 = vpop.permute.xlu0 %1131 }
 0xc98   :  { %1135 = vst.msk [vmem:[#allocation3 + $0x48] sm:$0xff] %vm574_vm11, %v1132_v43  ;;  %v1136_v39 = vsel %vm567_vm10, %v1126_v45, %v1132_v43 }
 0xc99   :  { %4642 = vmatmul.msk.f32.vlgmr.msrb.gmra.mxu3 %vm119_vm0, %v1136_v39  ;;  %4643 = vmatmul.msk.f32.vlgmr.msra.gmra.mxu1 %vm119_vm0, %v1136_v39 }
 0xc9a   :  { %1692 = vmatpush.msrb.mxu3 %v5960_v1  ;;  %1712 = vmatpush.msra.mxu1 %v6042_v40 }
 0xc9c   :  { %1693 = vmatpush.msrb.mxu3 %v5967_v2  ;;  %1713 = vmatpush.msra.mxu1 %v6049_v49 }
 0xc9e   :  { %1694 = vmatpush.msrb.mxu3 %v5974_v4  ;;  %1714 = vmatpush.msra.mxu1 %v6056_v41 }
 0xca0   :  { %1695 = vmatpush.msrb.mxu3 %v5981_v52  ;;  %1715 = vmatpush.msra.mxu1 %v6063_v44 }
 0xca2   :  { %1696 = vmatpush.msrb.mxu3 %v5988_v53  ;;  %1716 = vmatpush.msra.mxu1 %v6070_v46 }
 0xca4   :  { %1697 = vmatpush.msrb.mxu3 %v5995_v56  ;;  %1717 = vmatpush.msra.mxu1 %v6077_v35 }
 0xca6   :  { %1698 = vmatpush.msrb.mxu3 %v6002_v57  ;;  %1718 = vmatpush.msra.mxu1 %v6084_v47 }
 0xca8   :  { %1699 = vmatpush.msrb.mxu3 %v6009_v58  ;;  %1719 = vmatpush.msra.mxu1 %v6091_v50 }
 0xd16   :  { %v1177_v3 = vpop.f32.mrf.mxu1 }
 0xd17   :  { %v1189_v54 = vadd.f32 %v1177_v3, %v375_v51 }
 0xd19   :  { %4868 = vtanh.f32 %v1189_v54  ;;  %v4645_v5 = vmul.f32 -1.442695, %v1189_v54 }
 0xd1c   :  { %v1157_v60 = vpop.f32.mrf.mxu3 }
 0xd1d   :  { %v1184_v61 = vadd.f32 %v1157_v60, %v307_v55 }
 0xd1f   :  { %v4869_v0 = vpop.eup %4868  ;;  %4870 = vtanh.f32 %v1184_v61  ;;  %v4644_v62 = vmul.f32 -1.442695, %v1184_v61 }
 0xd20   :  { %1249 = vrot.lane.b32.xlu2 %v4869_v0, %s5374_s15  ;;  %4872 = vpow2.f32 %v4645_v5 }
 0xd25   :  { %v4871_v59 = vpop.eup %4870 }
 0xd26   :  { %1212 = vrot.lane.b32.xlu1 %v4871_v59, %s5374_s15  ;;  %v4873_v34 = vpop.eup %4872 }
 0xd27   :  { %v1230_v38 = vadd.f32 1.0, %v4873_v34 }
 0xd29   :  { %4874 = vrcp.f32 %v1230_v38  ;;  %v1242_v63 = vand.u32 2147483648, %v1230_v38  ;;  %vm1236_vm4 = vweird.f32 %v1230_v38  ;;  %v1240_v15 = vand.u32 2147483647, %v1230_v38 }
 0xd2a   :  { %4876 = vpow2.f32 %v4644_v62 }
 0xd2b   :  { %v1243_v37 = vor.u32 1.1754944e-38, %v1242_v63  ;;  %vm1241_vm6 = vcmp.eq.f32.partialorder %v1240_v15, 8.507059e+37 }
 0xd2f   :  { %v4875_v32 = vpop.eup %4874 }
 0xd30   :  { %v1232_v6 = vmul.f32 %v4875_v32, %v1230_v38  ;;  %vm1237_vm3 = vweird.f32 %v4875_v32  ;;  %v4877_v33 = vpop.eup %4876 }
 0xd31   :  { %vm1238_vm5 = vmor %vm1236_vm4, %vm1237_vm3  ;;  %v1193_v48 = vadd.f32 1.0, %v4877_v33 }
 0xd32   :  { %v1233_v7 = vsub.f32 1.0, %v1232_v6 }
 0xd33   :  { %4878 = vrcp.f32 %v1193_v48  ;;  %v1205_v60 = vand.u32 2147483648, %v1193_v48  ;;  %vm1199_vm8 = vweird.f32 %v1193_v48  ;;  %v1203_v61 = vand.u32 2147483647, %v1193_v48 }
 0xd34   :  { %v1234_v20 = vmul.f32 %v4875_v32, %v1233_v7 }
 0xd35   :  { %v1206_v59 = vor.u32 1.1754944e-38, %v1205_v60  ;;  %vm1204_vm12 = vcmp.eq.f32.partialorder %v1203_v61, 8.507059e+37 }
 0xd36   :  { %v1235_v8 = vadd.f32 %v4875_v32, %v1234_v20 }
 0xd38   :  { %v1239_v36 = vsel %vm1238_vm5, %v4875_v32, %v1235_v8 }
 0xd39   :  { %v1244_v45 = vsel %vm1241_vm6, %v1243_v37, %v1239_v36  ;;  %v4879_v39 = vpop.eup %4878 }
 0xd3a   :  { %v1195_v51 = vmul.f32 %v4879_v39, %v1193_v48  ;;  %vm1200_vm7 = vweird.f32 %v4879_v39  ;;  %v1247_v32 = vmul.f32 %v1244_v45, %v6022_v11 }
 0xd3b   :  { %vm1201_vm9 = vmor %vm1199_vm8, %vm1200_vm7 }
 0xd3c   :  { %v1196_v3 = vsub.f32 1.0, %v1195_v51  ;;  %v310_v51 = vadd.f32 %v5917_v21, %v5766_v9 }
 0xd3e   :  { %v1197_v54 = vmul.f32 %v4879_v39, %v1196_v3 }
 0xd40   :  { %v1198_v55 = vadd.f32 %v4879_v39, %v1197_v54 }
 0xd42   :  { %v1202_v0 = vsel %vm1201_vm9, %v4879_v39, %v1198_v55 }
 0xd43   :  { %v1207_v34 = vsel %vm1204_vm12, %v1206_v59, %v1202_v0 }
 0xd44   :  { %v1210_v20 = vmul.f32 %v1207_v34, %v6026_v18 }
 0xd7a   :  { %v1250_v19 = vpop.permute.xlu2 %1249 }
 0xd7b   :  { %v1252_v43 = vmul.f32 %v1250_v19, %v1244_v45 }
 0xd7d   :  { %1254 = vrot.lane.b32.xlu1 %v1252_v43, %s5374_s15 }
 0xd98   :  { %v1213_v5 = vpop.permute.xlu1 %1212 }
 0xd99   :  { %v1215_v38 = vmul.f32 %v1213_v5, %v1207_v34 }
 0xd9b   :  { %1217 = vrot.lane.b32.xlu0 %v1215_v38, %s5374_s15 }
 0xdef   :  { %v1255_v6 = vpop.permute.xlu1 %1254 }
 0xdf0   :  { %v6103_v62 = vadd.f32 %v1255_v6, %v1247_v32 }
 0xdf2   :  { %4880 = vtanh.f32 %v6103_v62 }
 0xdf8   :  { %v4881_v7 = vpop.eup %4880 }
 0xdf9   :  { %1260 = vrot.lane.b32.xlu0 %v4881_v7, %s5374_s15 }
 0xe0d   :  { %v1218_v8 = vpop.permute.xlu0 %1217 }
 0xe0e   :  { %v6108_v63 = vadd.f32 %v1218_v8, %v1210_v20 }
 0xe10   :  { %4882 = vtanh.f32 %v6108_v63 }
 0xe16   :  { %v4883_v33 = vpop.eup %4882 }
 0xe17   :  { %1223 = vrot.lane.b32.xlu2 %v4883_v33, %s5374_s15 }
 0xe6b   :  { %v1261_v15 = vpop.permute.xlu0 %1260 }
 0xe6c   :  { %v1263_v11 = vmul.f32 %v1261_v15, %v1244_v45  ;;  %v372_v45 = vadd.f32 %v5784_v31, %v5796_v42 }
 0xe6e   :  { %1271 = vrot.lane.b32.xlu2 %v1263_v11, %s5376_s16 }
 0xe71   :  { %v1224_v36 = vpop.permute.xlu2 %1223 }
 0xe72   :  { %v1226_v48 = vmul.f32 %v1224_v36, %v1207_v34 }
 0xe74   :  { %1265 = vrot.lane.b32.xlu1 %v1226_v48, %s5375_s4 }
 0xec8   :  { %v1272_v37 = vpop.permute.xlu2 %1271 }
 0xec9   :  { %1275 = vst.msk [vmem:[#allocation3 + $0x40] sm:$0xff] %vm574_vm11, %v1272_v37 }
 0xee6   :  { %v1266_v18 = vpop.permute.xlu1 %1265 }
 0xee7   :  { %1269 = vst.msk [vmem:[#allocation3 + $0x28] sm:$0xff] %vm567_vm10, %v1266_v18  ;;  %v1276_v19 = vsel %vm567_vm10, %v1266_v18, %v1272_v37 }
 0xee8   :  { %4646 = vmatmul.msk.f32.vlgmr.msra.gmra.mxu2 %vm119_vm0, %v1276_v19  ;;  %4647 = vmatmul.msk.f32.vlgmr.msra.gmra.mxu0 %vm119_vm0, %v1276_v19 }
 0xee9   :  { %1824 = vmatpush.msra.mxu2 %v5960_v1  ;;  %1844 = vmatpush.msra.mxu0 %v6042_v40 }
 0xeeb   :  { %1825 = vmatpush.msra.mxu2 %v5967_v2  ;;  %1845 = vmatpush.msra.mxu0 %v6049_v49 }
 0xeed   :  { %1826 = vmatpush.msra.mxu2 %v5974_v4  ;;  %1846 = vmatpush.msra.mxu0 %v6056_v41 }
 0xeef   :  { %1827 = vmatpush.msra.mxu2 %v5981_v52  ;;  %1847 = vmatpush.msra.mxu0 %v6063_v44 }
 0xef1   :  { %1828 = vmatpush.msra.mxu2 %v5988_v53  ;;  %1848 = vmatpush.msra.mxu0 %v6070_v46 }
 0xef3   :  { %1829 = vmatpush.msra.mxu2 %v5995_v56  ;;  %1849 = vmatpush.msra.mxu0 %v6077_v35 }
 0xef5   :  { %1830 = vmatpush.msra.mxu2 %v6002_v57  ;;  %1850 = vmatpush.msra.mxu0 %v6084_v47 }
 0xef7   :  { %1831 = vmatpush.msra.mxu2 %v6009_v58  ;;  %1851 = vmatpush.msra.mxu0 %v6091_v50 }
 0xf65   :  { %v1317_v43 = vpop.f32.mrf.mxu0 }
 0xf66   :  { %v1329_v39 = vadd.f32 %v1317_v43, %v372_v45 }
 0xf68   :  { %4884 = vtanh.f32 %v1329_v39  ;;  %v4649_v61 = vmul.f32 -1.442695, %v1329_v39 }
 0xf6b   :  { %v1297_v3 = vpop.f32.mrf.mxu2 }
 0xf6c   :  { %v1324_v54 = vadd.f32 %v1297_v3, %v310_v51 }
 0xf6e   :  { %v4885_v55 = vpop.eup %4884  ;;  %4886 = vtanh.f32 %v1324_v54  ;;  %v4648_v0 = vmul.f32 -1.442695, %v1324_v54 }
 0xf6f   :  { %1389 = vrot.lane.b32.xlu1 %v4885_v55, %s5374_s15  ;;  %4888 = vpow2.f32 %v4649_v61 }
 0xf70   :  { %4890 = vpow2.f32 %v4648_v0 }
 0xf74   :  { %v4887_v60 = vpop.eup %4886 }
 0xf75   :  { %1352 = vrot.lane.b32.xlu0 %v4887_v60, %s5374_s15  ;;  %v4889_v59 = vpop.eup %4888 }
 0xf76   :  { %v1370_v31 = vadd.f32 1.0, %v4889_v59  ;;  %v4891_v5 = vpop.eup %4890 }
 0xf77   :  { %v1333_v34 = vadd.f32 1.0, %v4891_v5 }
 0xf78   :  { %4892 = vrcp.f32 %v1370_v31  ;;  %v1382_v15 = vand.u32 2147483648, %v1370_v31  ;;  %vm1376_vm14 = vweird.f32 %v1370_v31  ;;  %v1380_v11 = vand.u32 2147483647, %v1370_v31 }
 0xf79   :  { %4894 = vrcp.f32 %v1333_v34  ;;  %v1345_v43 = vand.u32 2147483648, %v1333_v34  ;;  %vm1339_vm3 = vweird.f32 %v1333_v34  ;;  %v1343_v51 = vand.u32 2147483647, %v1333_v34 }
 0xf7a   :  { %v1383_v37 = vor.u32 1.1754944e-38, %v1382_v15  ;;  %vm1381_vm1 = vcmp.eq.f32.partialorder %v1380_v11, 8.507059e+37  ;;  %v369_v15 = vadd.f32 %v5782_v30, %v5796_v42 }
 0xf7b   :  { %v1346_v54 = vor.u32 1.1754944e-38, %v1345_v43  ;;  %vm1344_vm5 = vcmp.eq.f32.partialorder %v1343_v51, 8.507059e+37 }
 0xf7e   :  { %v4893_v38 = vpop.eup %4892 }
 0xf7f   :  { %v1372_v21 = vmul.f32 %v4893_v38, %v1370_v31  ;;  %v4895_v32 = vpop.eup %4894  ;;  %vm1377_vm13 = vweird.f32 %v4893_v38 }
 0xf80   :  { %v1335_v7 = vmul.f32 %v4895_v32, %v1333_v34  ;;  %vm1378_vm15 = vmor %vm1376_vm14, %vm1377_vm13  ;;  %vm1340_vm2 = vweird.f32 %v4895_v32 }
 0xf81   :  { %v1373_v6 = vsub.f32 1.0, %v1372_v21  ;;  %vm1341_vm4 = vmor %vm1339_vm3, %vm1340_vm2 }
 0xf82   :  { %v1336_v8 = vsub.f32 1.0, %v1335_v7 }
 0xf83   :  { %v1374_v20 = vmul.f32 %v4893_v38, %v1373_v6 }
 0xf84   :  { %v1337_v36 = vmul.f32 %v4895_v32, %v1336_v8 }
 0xf85   :  { %v1375_v33 = vadd.f32 %v4893_v38, %v1374_v20 }
 0xf86   :  { %v1338_v18 = vadd.f32 %v4895_v32, %v1337_v36 }
 0xf87   :  { %v1379_v48 = vsel %vm1378_vm15, %v4893_v38, %v1375_v33 }
 0xf88   :  { %v1384_v45 = vsel %vm1381_vm1, %v1383_v37, %v1379_v48  ;;  %v1342_v3 = vsel %vm1341_vm4, %v4895_v32, %v1338_v18  ;;  %v313_v48 = vadd.f32 %v5919_v23, %v5766_v9 }
 0xf89   :  { %v1347_v60 = vsel %vm1344_vm5, %v1346_v54, %v1342_v3  ;;  %v1387_v34 = vmul.f32 %v1384_v45, %v6103_v62 }
 0xf8a   :  { %v1350_v0 = vmul.f32 %v1347_v60, %v6108_v63 }
 0xfe1   :  { %v1390_v19 = vpop.permute.xlu1 %1389 }
 0xfe2   :  { %v1392_v39 = vmul.f32 %v1390_v19, %v1384_v45 }
 0xfe4   :  { %1394 = vrot.lane.b32.xlu0 %v1392_v39, %s5374_s15 }
 0xfe7   :  { %v1353_v55 = vpop.permute.xlu0 %1352 }
 0xfe8   :  { %v1355_v61 = vmul.f32 %v1353_v55, %v1347_v60 }
 0xfea   :  { %1357 = vrot.lane.b32.xlu2 %v1355_v61, %s5374_s15 }
0x1044   :  { %v1358_v59 = vpop.permute.xlu2 %1357 }
0x1045   :  { %v6144_v31 = vadd.f32 %v1358_v59, %v1350_v0 }
0x1047   :  { %4896 = vtanh.f32 %v6144_v31 }
0x104d   :  { %v4897_v5 = vpop.eup %4896 }
0x104e   :  { %1363 = vrot.lane.b32.xlu1 %v4897_v5, %s5374_s15 }
0x1056   :  { %v1395_v38 = vpop.permute.xlu0 %1394 }
0x1057   :  { %v6149_v21 = vadd.f32 %v1395_v38, %v1387_v34 }
0x1059   :  { %4898 = vtanh.f32 %v6149_v21 }
0x105f   :  { %v4899_v32 = vpop.eup %4898 }
0x1060   :  { %1400 = vrot.lane.b32.xlu2 %v4899_v32, %s5374_s15 }
0x10ba   :  { %v1401_v6 = vpop.permute.xlu2 %1400 }
0x10bb   :  { %v1403_v63 = vmul.f32 %v1401_v6, %v1384_v45 }
0x10bd   :  { %1411 = vrot.lane.b32.xlu1 %v1403_v63, %s5376_s16 }
0x10c0   :  { %v1364_v7 = vpop.permute.xlu1 %1363 }
0x10c1   :  { %v1366_v20 = vmul.f32 %v1364_v7, %v1347_v60 }
0x10c3   :  { %1405 = vrot.lane.b32.xlu0 %v1366_v20, %s5375_s4 }
0x112f   :  { %v1412_v8 = vpop.permute.xlu1 %1411 }
0x1130   :  { %1415 = vst.msk [vmem:[#allocation3 + $0x38] sm:$0xff] %vm574_vm11, %v1412_v8 }
0x1135   :  { %v1406_v62 = vpop.permute.xlu0 %1405 }
0x1136   :  { %1409 = vst.msk [vmem:[#allocation3 + $0x30] sm:$0xff] %vm567_vm10, %v1406_v62  ;;  %v1416_v33 = vsel %vm567_vm10, %v1406_v62, %v1412_v8 }
0x1137   :  { %4650 = vmatmul.msk.f32.vlgmr.msra.gmra.mxu3 %vm119_vm0, %v1416_v33  ;;  %4651 = vmatmul.msk.f32.vlgmr.msrb.gmra.mxu1 %vm119_vm0, %v1416_v33 }
0x1138   :  { %1956 = vmatpush.msra.mxu3 %v5960_v1  ;;  %1976 = vmatpush.msrb.mxu1 %v6042_v40 }
0x113a   :  { %1957 = vmatpush.msra.mxu3 %v5967_v2  ;;  %1977 = vmatpush.msrb.mxu1 %v6049_v49 }
0x113c   :  { %1958 = vmatpush.msra.mxu3 %v5974_v4  ;;  %1978 = vmatpush.msrb.mxu1 %v6056_v41 }
0x113e   :  { %1959 = vmatpush.msra.mxu3 %v5981_v52  ;;  %1979 = vmatpush.msrb.mxu1 %v6063_v44 }
0x1140   :  { %1960 = vmatpush.msra.mxu3 %v5988_v53  ;;  %1980 = vmatpush.msrb.mxu1 %v6070_v46 }
0x1142   :  { %1961 = vmatpush.msra.mxu3 %v5995_v56  ;;  %1981 = vmatpush.msrb.mxu1 %v6077_v35 }
0x1144   :  { %1962 = vmatpush.msra.mxu3 %v6002_v57  ;;  %1982 = vmatpush.msrb.mxu1 %v6084_v47 }
0x1146   :  { %1963 = vmatpush.msra.mxu3 %v6009_v58  ;;  %1983 = vmatpush.msrb.mxu1 %v6091_v50 }
0x11b4   :  { %v1457_v11 = vpop.f32.mrf.mxu1 }
0x11b5   :  { %v1463_v36 = vadd.f32 %v1457_v11, %v369_v15 }
0x11b7   :  { %4900 = vtanh.f32 %v1463_v36  ;;  %v4653_v30 = vmul.f32 -1.442695, %v1463_v36 }
0x11ba   :  { %v1437_v37 = vpop.f32.mrf.mxu3 }
0x11bb   :  { %v1461_v18 = vadd.f32 %v1437_v37, %v313_v48 }
0x11bd   :  { %v4901_v19 = vpop.eup %4900  ;;  %4902 = vtanh.f32 %v1461_v18  ;;  %v4652_v43 = vmul.f32 -1.442695, %v1461_v18 }
0x11be   :  { %1523 = vrot.lane.b32.xlu0 %v4901_v19, %s5374_s15 }
0x11bf   :  { %4904 = vpow2.f32 %v4652_v43 }
0x11c3   :  { %v4903_v45 = vpop.eup %4902 }
0x11c4   :  { %1486 = vrot.lane.b32.xlu2 %v4903_v45, %s5374_s15 }
0x11c5   :  { %v4905_v39 = vpop.eup %4904 }
0x11c6   :  { %v1467_v51 = vadd.f32 1.0, %v4905_v39 }
0x11c8   :  { %4906 = vrcp.f32 %v1467_v51  ;;  %v1479_v59 = vand.u32 2147483648, %v1467_v51  ;;  %vm1473_vm7 = vweird.f32 %v1467_v51  ;;  %v1477_v5 = vand.u32 2147483647, %v1467_v51 }
0x11c9   :  { %4908 = vpow2.f32 %v4653_v30 }
0x11ca   :  { %v1480_v32 = vor.u32 1.1754944e-38, %v1479_v59  ;;  %vm1478_vm9 = vcmp.eq.f32.partialorder %v1477_v5, 8.507059e+37  ;;  %v366_v5 = vadd.f32 %v5780_v29, %v5796_v42 }
0x11ce   :  { %v4907_v3 = vpop.eup %4906 }
0x11cf   :  { %v1469_v54 = vmul.f32 %v4907_v3, %v1467_v51  ;;  %v4909_v55 = vpop.eup %4908  ;;  %vm1474_vm6 = vweird.f32 %v4907_v3 }
0x11d0   :  { %v1504_v60 = vadd.f32 1.0, %v4909_v55  ;;  %vm1475_vm8 = vmor %vm1473_vm7, %vm1474_vm6 }
0x11d1   :  { %v1470_v23 = vsub.f32 1.0, %v1469_v54 }
0x11d2   :  { %4910 = vrcp.f32 %v1504_v60  ;;  %v1516_v15 = vand.u32 2147483648, %v1504_v60  ;;  %vm1510_vm13 = vweird.f32 %v1504_v60  ;;  %v1514_v11 = vand.u32 2147483647, %v1504_v60 }
0x11d3   :  { %v1471_v61 = vmul.f32 %v4907_v3, %v1470_v23 }
0x11d4   :  { %v1517_v48 = vor.u32 1.1754944e-38, %v1516_v15  ;;  %vm1515_vm15 = vcmp.eq.f32.partialorder %v1514_v11, 8.507059e+37 }
0x11d5   :  { %v1472_v0 = vadd.f32 %v4907_v3, %v1471_v61 }
0x11d7   :  { %v1476_v38 = vsel %vm1475_vm8, %v4907_v3, %v1472_v0 }
0x11d8   :  { %v4911_v34 = vpop.eup %4910  ;;  %v1481_v7 = vsel %vm1478_vm9, %v1480_v32, %v1476_v38  ;;  %v316_v32 = vadd.f32 %v5921_v24, %v5766_v9 }
0x11d9   :  { %v1506_v6 = vmul.f32 %v4911_v34, %v1504_v60  ;;  %vm1511_vm12 = vweird.f32 %v4911_v34  ;;  %v1484_v51 = vmul.f32 %v1481_v7, %v6144_v31 }
0x11da   :  { %vm1512_vm14 = vmor %vm1510_vm13, %vm1511_vm12 }
0x11db   :  { %v1507_v8 = vsub.f32 1.0, %v1506_v6 }
0x11dd   :  { %v1508_v62 = vmul.f32 %v4911_v34, %v1507_v8 }
0x11df   :  { %v1509_v33 = vadd.f32 %v4911_v34, %v1508_v62 }
0x11e1   :  { %v1513_v36 = vsel %vm1512_vm14, %v4911_v34, %v1509_v33 }
0x11e2   :  { %v1518_v18 = vsel %vm1515_vm15, %v1517_v48, %v1513_v36 }
0x11e3   :  { %v1521_v45 = vmul.f32 %v1518_v18, %v6149_v21 }
0x121e   :  { %v1487_v63 = vpop.permute.xlu2 %1486 }
0x121f   :  { %v1489_v20 = vmul.f32 %v1487_v63, %v1481_v7 }
0x1221   :  { %1491 = vrot.lane.b32.xlu1 %v1489_v20, %s5374_s15 }
0x1230   :  { %v1524_v37 = vpop.permute.xlu0 %1523 }
0x1231   :  { %v1526_v19 = vmul.f32 %v1524_v37, %v1518_v18 }
0x1233   :  { %1528 = vrot.lane.b32.xlu2 %v1526_v19, %s5374_s15 }
0x128d   :  { %v1529_v43 = vpop.permute.xlu2 %1528 }
0x128e   :  { %v6185_v39 = vadd.f32 %v1529_v43, %v1521_v45 }
0x1290   :  { %4912 = vtanh.f32 %v6185_v39 }
0x1293   :  { %v1492_v30 = vpop.permute.xlu1 %1491 }
0x1294   :  { %v6189_v3 = vadd.f32 %v1492_v30, %v1484_v51 }
0x1296   :  { %v4913_v54 = vpop.eup %4912  ;;  %4914 = vtanh.f32 %v6189_v3 }
0x1297   :  { %1534 = vrot.lane.b32.xlu1 %v4913_v54, %s5374_s15 }
0x129c   :  { %v4915_v55 = vpop.eup %4914 }
0x129d   :  { %1497 = vrot.lane.b32.xlu0 %v4915_v55, %s5374_s15 }
0x1309   :  { %v1535_v23 = vpop.permute.xlu1 %1534 }
0x130a   :  { %v1537_v21 = vmul.f32 %v1535_v23, %v1518_v18 }
0x130c   :  { %1544 = vrot.lane.b32.xlu0 %v1537_v21, %s5376_s16 }
0x130f   :  { %v1498_v60 = vpop.permute.xlu0 %1497 }
0x1310   :  { %v1500_v61 = vmul.f32 %v1498_v60, %v1481_v7 }
0x1312   :  { %1539 = vrot.lane.b32.xlu2 %v1500_v61, %s5375_s4 }
0x136c   :  { %v1540_v31 = vpop.permute.xlu2 %1539 }
0x136d   :  { %1542 = vst.msk [vmem:[#allocation3 + $0x38] sm:$0xff] %vm567_vm10, %v1540_v31 }
0x137e   :  { %v1545_v0 = vpop.permute.xlu0 %1544 }
0x137f   :  { %1547 = vst.msk [vmem:[#allocation3 + $0x30] sm:$0xff] %vm574_vm11, %v1545_v0  ;;  %v1548_v59 = vsel %vm567_vm10, %v1540_v31, %v1545_v0 }
0x1380   :  { %4654 = vmatmul.msk.f32.vlgmr.msrb.gmra.mxu2 %vm119_vm0, %v1548_v59  ;;  %4655 = vmatmul.msk.f32.vlgmr.msrb.gmra.mxu0 %vm119_vm0, %v1548_v59 }
0x1381   :  { %2088 = vmatpush.msrb.mxu2 %v5960_v1  ;;  %2108 = vmatpush.msrb.mxu0 %v6042_v40 }
0x1383   :  { %2089 = vmatpush.msrb.mxu2 %v5967_v2  ;;  %2109 = vmatpush.msrb.mxu0 %v6049_v49 }
0x1385   :  { %2090 = vmatpush.msrb.mxu2 %v5974_v4  ;;  %2110 = vmatpush.msrb.mxu0 %v6056_v41 }
0x1387   :  { %2091 = vmatpush.msrb.mxu2 %v5981_v52  ;;  %2111 = vmatpush.msrb.mxu0 %v6063_v44 }
0x1389   :  { %2092 = vmatpush.msrb.mxu2 %v5988_v53  ;;  %2112 = vmatpush.msrb.mxu0 %v6070_v46 }
0x138b   :  { %2093 = vmatpush.msrb.mxu2 %v5995_v56  ;;  %2113 = vmatpush.msrb.mxu0 %v6077_v35 }
0x138d   :  { %2094 = vmatpush.msrb.mxu2 %v6002_v57  ;;  %2114 = vmatpush.msrb.mxu0 %v6084_v47 }
0x138f   :  { %2095 = vmatpush.msrb.mxu2 %v6009_v58  ;;  %2115 = vmatpush.msrb.mxu0 %v6091_v50 }
0x13fd   :  { %v1589_v34 = vpop.f32.mrf.mxu0 }
0x13fe   :  { %v1595_v38 = vadd.f32 %v1589_v34, %v366_v5 }
0x1400   :  { %4916 = vtanh.f32 %v1595_v38  ;;  %v4657_v8 = vmul.f32 -1.442695, %v1595_v38 }
0x1403   :  { %v1569_v6 = vpop.f32.mrf.mxu2 }
0x1404   :  { %v1593_v63 = vadd.f32 %v1569_v6, %v316_v32 }
0x1406   :  { %v4917_v7 = vpop.eup %4916  ;;  %4918 = vtanh.f32 %v1593_v63  ;;  %v4656_v11 = vmul.f32 -1.442695, %v1593_v63 }
0x1407   :  { %1655 = vrot.lane.b32.xlu2 %v4917_v7, %s5374_s15  ;;  %4920 = vpow2.f32 %v4657_v8 }
0x140c   :  { %v4919_v20 = vpop.eup %4918 }
0x140d   :  { %1618 = vrot.lane.b32.xlu1 %v4919_v20, %s5374_s15  ;;  %v4921_v62 = vpop.eup %4920 }
0x140e   :  { %v1636_v33 = vadd.f32 1.0, %v4921_v62 }
0x1410   :  { %4922 = vrcp.f32 %v1636_v33  ;;  %v1648_v37 = vand.u32 2147483648, %v1636_v33  ;;  %vm1642_vm2 = vweird.f32 %v1636_v33  ;;  %v1646_v19 = vand.u32 2147483647, %v1636_v33 }
0x1411   :  { %4924 = vpow2.f32 %v4656_v11 }
0x1412   :  { %v1649_v51 = vor.u32 1.1754944e-38, %v1648_v37  ;;  %vm1647_vm4 = vcmp.eq.f32.partialorder %v1646_v19, 8.507059e+37 }
0x1416   :  { %v4923_v29 = vpop.eup %4922 }
0x1417   :  { %v1638_v15 = vmul.f32 %v4923_v29, %v1636_v33  ;;  %vm1643_vm1 = vweird.f32 %v4923_v29  ;;  %v4925_v18 = vpop.eup %4924 }
0x1418   :  { %vm1644_vm3 = vmor %vm1642_vm2, %vm1643_vm1  ;;  %v1599_v43 = vadd.f32 1.0, %v4925_v18 }
0x1419   :  { %v1639_v36 = vsub.f32 1.0, %v1638_v15 }
0x141a   :  { %4926 = vrcp.f32 %v1599_v43  ;;  %v1611_v0 = vand.u32 2147483648, %v1599_v43  ;;  %vm1605_vm6 = vweird.f32 %v1599_v43  ;;  %v1609_v59 = vand.u32 2147483647, %v1599_v43 }
0x141b   :  { %v1640_v24 = vmul.f32 %v4923_v29, %v1639_v36 }
0x141c   :  { %v1612_v34 = vor.u32 1.1754944e-38, %v1611_v0  ;;  %vm1610_vm8 = vcmp.eq.f32.partialorder %v1609_v59, 8.507059e+37 }
0x141d   :  { %v1641_v48 = vadd.f32 %v4923_v29, %v1640_v24 }
0x141f   :  { %v1645_v45 = vsel %vm1644_vm3, %v4923_v29, %v1641_v48 }
0x1420   :  { %v1650_v54 = vsel %vm1647_vm4, %v1649_v51, %v1645_v45  ;;  %v4927_v23 = vpop.eup %4926 }
0x1421   :  { %v1601_v21 = vmul.f32 %v4927_v23, %v1599_v43  ;;  %vm1606_vm5 = vweird.f32 %v4927_v23  ;;  %v1653_v63 = vmul.f32 %v1650_v54, %v6185_v39 }
0x1422   :  { %vm1607_vm7 = vmor %vm1605_vm6, %vm1606_vm5 }
0x1423   :  { %v1602_v60 = vsub.f32 1.0, %v1601_v21 }
0x1425   :  { %v1603_v61 = vmul.f32 %v4927_v23, %v1602_v60 }
0x1427   :  { %v1604_v31 = vadd.f32 %v4927_v23, %v1603_v61 }
0x1429   :  { %v1608_v5 = vsel %vm1607_vm7, %v4927_v23, %v1604_v31 }
0x142a   :  { %v1613_v32 = vsel %vm1610_vm8, %v1612_v34, %v1608_v5 }
0x142b   :  { %v1616_v62 = vmul.f32 %v1613_v32, %v6189_v3 }
0x1461   :  { %v1656_v30 = vpop.permute.xlu2 %1655 }
0x1462   :  { %v1658_v55 = vmul.f32 %v1656_v30, %v1650_v54 }
0x1464   :  { %1660 = vrot.lane.b32.xlu1 %v1658_v55, %s5374_s15 }
0x147f   :  { %v1619_v38 = vpop.permute.xlu1 %1618 }
0x1480   :  { %v1621_v6 = vmul.f32 %v1619_v38, %v1613_v32 }
0x1482   :  { %1623 = vrot.lane.b32.xlu0 %v1621_v6, %s5374_s15 }
0x14d6   :  { %v1661_v7 = vpop.permute.xlu1 %1660 }
0x14d7   :  { %v6226_v20 = vadd.f32 %v1661_v7, %v1653_v63 }
0x14d9   :  { %4928 = vtanh.f32 %v6226_v20 }
0x14df   :  { %v4929_v8 = vpop.eup %4928 }
0x14e0   :  { %1666 = vrot.lane.b32.xlu0 %v4929_v8, %s5374_s15 }
0x14f4   :  { %v1624_v33 = vpop.permute.xlu0 %1623 }
0x14f5   :  { %v6231_v29 = vadd.f32 %v1624_v33, %v1616_v62 }
0x14f7   :  { %4930 = vtanh.f32 %v6231_v29 }
0x14fd   :  { %v4931_v15 = vpop.eup %4930 }
0x14fe   :  { %1629 = vrot.lane.b32.xlu2 %v4931_v15, %s5374_s15 }
0x1552   :  { %v1667_v11 = vpop.permute.xlu0 %1666 }
0x1553   :  { %v1669_v39 = vmul.f32 %v1667_v11, %v1650_v54 }
0x1555   :  { %1676 = vrot.lane.b32.xlu2 %v1669_v39, %s5376_s16 }
0x1558   :  { %v1630_v36 = vpop.permute.xlu2 %1629 }
0x1559   :  { %v1632_v24 = vmul.f32 %v1630_v36, %v1613_v32 }
0x155b   :  { %1671 = vrot.lane.b32.xlu1 %v1632_v24, %s5375_s4 }
0x15af   :  { %v1677_v48 = vpop.permute.xlu2 %1676 }
0x15b0   :  { %1679 = vst.msk [vmem:[#allocation3 + $0x28] sm:$0xff] %vm574_vm11, %v1677_v48 }
0x15cd   :  { %v1672_v3 = vpop.permute.xlu1 %1671 }
0x15ce   :  { %1674 = vst.msk [vmem:[#allocation3 + $0x40] sm:$0xff] %vm567_vm10, %v1672_v3  ;;  %v1680_v37 = vsel %vm567_vm10, %v1672_v3, %v1677_v48 }
0x15cf   :  { %4658 = vmatmul.msk.f32.vlgmr.msrb.gmra.mxu3 %vm119_vm0, %v1680_v37  ;;  %4659 = vmatmul.msk.f32.vlgmr.msra.gmra.mxu1 %vm119_vm0, %v1680_v37 }
0x15d0   :  { %2220 = vmatpush.msrb.mxu3 %v5960_v1  ;;  %2240 = vmatpush.msra.mxu1 %v6042_v40  ;;  %v363_v1 = vadd.f32 %v5778_v27, %v5796_v42 }
0x15d2   :  { %2221 = vmatpush.msrb.mxu3 %v5967_v2  ;;  %2241 = vmatpush.msra.mxu1 %v6049_v49 }
0x15d4   :  { %2222 = vmatpush.msrb.mxu3 %v5974_v4  ;;  %2242 = vmatpush.msra.mxu1 %v6056_v41 }
0x15d6   :  { %2223 = vmatpush.msrb.mxu3 %v5981_v52  ;;  %2243 = vmatpush.msra.mxu1 %v6063_v44  ;;  %v319_v52 = vadd.f32 %v5923_v10, %v5766_v9 }
0x15d8   :  { %2224 = vmatpush.msrb.mxu3 %v5988_v53  ;;  %2244 = vmatpush.msra.mxu1 %v6070_v46 }
0x15da   :  { %2225 = vmatpush.msrb.mxu3 %v5995_v56  ;;  %2245 = vmatpush.msra.mxu1 %v6077_v35 }
0x15dc   :  { %2226 = vmatpush.msrb.mxu3 %v6002_v57  ;;  %2246 = vmatpush.msra.mxu1 %v6084_v47 }
0x15de   :  { %2227 = vmatpush.msrb.mxu3 %v6009_v58  ;;  %2247 = vmatpush.msra.mxu1 %v6091_v50 }
0x164c   :  { %v1721_v2 = vpop.f32.mrf.mxu1 }
0x164d   :  { %v1727_v4 = vadd.f32 %v1721_v2, %v363_v1  ;;  %v360_v1 = vadd.f32 %v5776_v22, %v5796_v42 }
0x164f   :  { %4932 = vtanh.f32 %v1727_v4  ;;  %v4661_v58 = vmul.f32 -1.442695, %v1727_v4 }
0x1652   :  { %v1701_v53 = vpop.f32.mrf.mxu3 }
0x1653   :  { %v1725_v56 = vadd.f32 %v1701_v53, %v319_v52  ;;  %v322_v52 = vadd.f32 %v5925_v25, %v5766_v9 }
0x1655   :  { %v4933_v40 = vpop.eup %4932  ;;  %4934 = vtanh.f32 %v1725_v56  ;;  %v4660_v49 = vmul.f32 -1.442695, %v1725_v56 }
0x1656   :  { %1787 = vrot.lane.b32.xlu1 %v4933_v40, %s5374_s15  ;;  %4936 = vpow2.f32 %v4661_v58 }
0x1657   :  { %4938 = vpow2.f32 %v4660_v49 }
0x165b   :  { %v4935_v57 = vpop.eup %4934 }
0x165c   :  { %1750 = vrot.lane.b32.xlu0 %v4935_v57, %s5374_s15  ;;  %v4937_v41 = vpop.eup %4936 }
0x165d   :  { %v1768_v27 = vadd.f32 1.0, %v4937_v41  ;;  %v4939_v44 = vpop.eup %4938 }
0x165e   :  { %v1731_v46 = vadd.f32 1.0, %v4939_v44 }
0x165f   :  { %4940 = vrcp.f32 %v1768_v27  ;;  %v1780_v51 = vand.u32 2147483648, %v1768_v27  ;;  %vm1774_vm12 = vweird.f32 %v1768_v27  ;;  %v1778_v30 = vand.u32 2147483647, %v1768_v27 }
0x1660   :  { %4942 = vrcp.f32 %v1731_v46  ;;  %v1743_v31 = vand.u32 2147483648, %v1731_v46  ;;  %vm1737_vm1 = vweird.f32 %v1731_v46  ;;  %v1741_v59 = vand.u32 2147483647, %v1731_v46 }
0x1661   :  { %v1781_v23 = vor.u32 1.1754944e-38, %v1780_v51  ;;  %vm1779_vm14 = vcmp.eq.f32.partialorder %v1778_v30, 8.507059e+37 }
0x1662   :  { %v1744_v34 = vor.u32 1.1754944e-38, %v1743_v31  ;;  %vm1742_vm3 = vcmp.eq.f32.partialorder %v1741_v59, 8.507059e+37 }
0x1665   :  { %v4941_v35 = vpop.eup %4940 }
0x1666   :  { %v1770_v10 = vmul.f32 %v4941_v35, %v1768_v27  ;;  %v4943_v47 = vpop.eup %4942  ;;  %vm1775_vm9 = vweird.f32 %v4941_v35 }
0x1667   :  { %v1733_v18 = vmul.f32 %v4943_v47, %v1731_v46  ;;  %vm1776_vm13 = vmor %vm1774_vm12, %vm1775_vm9  ;;  %vm1738_vm15 = vweird.f32 %v4943_v47 }
0x1668   :  { %v1771_v50 = vsub.f32 1.0, %v1770_v10  ;;  %vm1739_vm2 = vmor %vm1737_vm1, %vm1738_vm15 }
0x1669   :  { %v1734_v45 = vsub.f32 1.0, %v1733_v18 }
0x166a   :  { %v1772_v19 = vmul.f32 %v4941_v35, %v1771_v50 }
0x166b   :  { %v1735_v54 = vmul.f32 %v4943_v47, %v1734_v45 }
0x166c   :  { %v1773_v43 = vadd.f32 %v4941_v35, %v1772_v19 }
0x166d   :  { %v1736_v21 = vadd.f32 %v4943_v47, %v1735_v54 }
0x166e   :  { %v1777_v55 = vsel %vm1776_vm13, %v4941_v35, %v1773_v43 }
0x166f   :  { %v1782_v61 = vsel %vm1779_vm14, %v1781_v23, %v1777_v55  ;;  %v1740_v5 = vsel %vm1739_vm2, %v4943_v47, %v1736_v21 }
0x1670   :  { %v1745_v32 = vsel %vm1742_vm3, %v1744_v34, %v1740_v5  ;;  %v1785_v33 = vmul.f32 %v1782_v61, %v6226_v20 }
0x1671   :  { %v1748_v63 = vmul.f32 %v1745_v32, %v6231_v29 }
0x16c8   :  { %v1788_v60 = vpop.permute.xlu1 %1787 }
0x16c9   :  { %v1790_v0 = vmul.f32 %v1788_v60, %v1782_v61 }
0x16cb   :  { %1792 = vrot.lane.b32.xlu0 %v1790_v0, %s5374_s15 }
0x16ce   :  { %v1751_v38 = vpop.permute.xlu0 %1750 }
0x16cf   :  { %v1753_v6 = vmul.f32 %v1751_v38, %v1745_v32 }
0x16d1   :  { %1755 = vrot.lane.b32.xlu2 %v1753_v6, %s5374_s15 }
0x172b   :  { %v1756_v7 = vpop.permute.xlu2 %1755 }
0x172c   :  { %v6267_v8 = vadd.f32 %v1756_v7, %v1748_v63 }
0x172e   :  { %4944 = vtanh.f32 %v6267_v8 }
0x1734   :  { %v4945_v62 = vpop.eup %4944 }
0x1735   :  { %1761 = vrot.lane.b32.xlu1 %v4945_v62, %s5374_s15 }
0x173d   :  { %v1793_v15 = vpop.permute.xlu0 %1792 }
0x173e   :  { %v6272_v11 = vadd.f32 %v1793_v15, %v1785_v33 }
0x1740   :  { %4946 = vtanh.f32 %v6272_v11 }
0x1746   :  { %v4947_v39 = vpop.eup %4946 }
0x1747   :  { %1798 = vrot.lane.b32.xlu2 %v4947_v39, %s5374_s15 }
0x17a1   :  { %v1799_v36 = vpop.permute.xlu2 %1798 }
0x17a2   :  { %v1801_v29 = vmul.f32 %v1799_v36, %v1782_v61 }
0x17a4   :  { %1808 = vrot.lane.b32.xlu1 %v1801_v29, %s5376_s16 }
0x17a7   :  { %v1762_v24 = vpop.permute.xlu1 %1761 }
0x17a8   :  { %v1764_v48 = vmul.f32 %v1762_v24, %v1745_v32 }
0x17aa   :  { %1803 = vrot.lane.b32.xlu0 %v1764_v48, %s5375_s4 }
0x1816   :  { %v1809_v3 = vpop.permute.xlu1 %1808 }
0x1817   :  { %1811 = vst.msk [vmem:[#allocation3 + $0x20] sm:$0xff] %vm574_vm11, %v1809_v3 }
0x181c   :  { %v1804_v20 = vpop.permute.xlu0 %1803 }
0x181d   :  { %1806 = vst.msk [vmem:[#allocation3 + $0x48] sm:$0xff] %vm567_vm10, %v1804_v20  ;;  %v1812_v37 = vsel %vm567_vm10, %v1804_v20, %v1809_v3  ;;  %v357_v20 = vadd.f32 %v5774_v17, %v5796_v42 }
0x181e   :  { %4662 = vmatmul.msk.f32.vlgmr.msra.gmra.mxu2 %vm119_vm0, %v1812_v37  ;;  %4663 = vmatmul.msk.f32.vlgmr.msra.gmra.mxu0 %vm119_vm0, %v1812_v37 }
0x189b   :  { %v1853_v2 = vpop.f32.mrf.mxu0 }
0x189c   :  { %v1859_v4 = vadd.f32 %v1853_v2, %v360_v1  ;;  %v325_v2 = vadd.f32 %v5927_v12, %v5766_v9 }
0x189e   :  { %4948 = vtanh.f32 %v1859_v4  ;;  %v4665_v22 = vmul.f32 -1.442695, %v1859_v4 }
0x18a1   :  { %v1833_v53 = vpop.f32.mrf.mxu2 }
0x18a2   :  { %v1857_v56 = vadd.f32 %v1833_v53, %v322_v52 }
0x18a4   :  { %v4949_v40 = vpop.eup %4948  ;;  %4950 = vtanh.f32 %v1857_v56  ;;  %v4664_v58 = vmul.f32 -1.442695, %v1857_v56 }
0x18a5   :  { %1919 = vrot.lane.b32.xlu0 %v4949_v40, %s5374_s15 }
0x18a6   :  { %4952 = vpow2.f32 %v4664_v58 }
0x18aa   :  { %v4951_v57 = vpop.eup %4950 }
0x18ab   :  { %1882 = vrot.lane.b32.xlu2 %v4951_v57, %s5374_s15 }
0x18ac   :  { %v4953_v49 = vpop.eup %4952 }
0x18ad   :  { %v1863_v41 = vadd.f32 1.0, %v4953_v49 }
0x18af   :  { %4954 = vrcp.f32 %v1863_v41  ;;  %v1875_v50 = vand.u32 2147483648, %v1863_v41  ;;  %vm1869_vm5 = vweird.f32 %v1863_v41  ;;  %v1873_v18 = vand.u32 2147483647, %v1863_v41 }
0x18b0   :  { %4956 = vpow2.f32 %v4665_v22 }
0x18b1   :  { %v1876_v43 = vor.u32 1.1754944e-38, %v1875_v50  ;;  %vm1874_vm7 = vcmp.eq.f32.partialorder %v1873_v18, 8.507059e+37 }
0x18b5   :  { %v4955_v27 = vpop.eup %4954 }
0x18b6   :  { %v1865_v44 = vmul.f32 %v4955_v27, %v1863_v41  ;;  %v4957_v46 = vpop.eup %4956  ;;  %vm1870_vm4 = vweird.f32 %v4955_v27 }
0x18b7   :  { %v1900_v35 = vadd.f32 1.0, %v4957_v46  ;;  %vm1871_vm6 = vmor %vm1869_vm5, %vm1870_vm4 }
0x18b8   :  { %v1866_v25 = vsub.f32 1.0, %v1865_v44 }
0x18b9   :  { %4958 = vrcp.f32 %v1900_v35  ;;  %v1912_v61 = vand.u32 2147483648, %v1900_v35  ;;  %vm1906_vm9 = vweird.f32 %v1900_v35  ;;  %v1910_v31 = vand.u32 2147483647, %v1900_v35 }
0x18ba   :  { %v1867_v10 = vmul.f32 %v4955_v27, %v1866_v25 }
0x18bb   :  { %v1913_v59 = vor.u32 1.1754944e-38, %v1912_v61  ;;  %vm1911_vm13 = vcmp.eq.f32.partialorder %v1910_v31, 8.507059e+37 }
0x18bc   :  { %v1868_v47 = vadd.f32 %v4955_v27, %v1867_v10 }
0x18be   :  { %v1872_v45 = vsel %vm1871_vm6, %v4955_v27, %v1868_v47 }
0x18bf   :  { %v4959_v19 = vpop.eup %4958  ;;  %v1877_v54 = vsel %vm1874_vm7, %v1876_v43, %v1872_v45 }
0x18c0   :  { %v1902_v51 = vmul.f32 %v4959_v19, %v1900_v35  ;;  %vm1907_vm8 = vweird.f32 %v4959_v19  ;;  %v1880_v7 = vmul.f32 %v1877_v54, %v6267_v8 }
0x18c1   :  { %vm1908_vm12 = vmor %vm1906_vm9, %vm1907_vm8 }
0x18c2   :  { %v1903_v23 = vsub.f32 1.0, %v1902_v51 }
0x18c4   :  { %v1904_v21 = vmul.f32 %v4959_v19, %v1903_v23 }
0x18c6   :  { %v1905_v60 = vadd.f32 %v4959_v19, %v1904_v21 }
0x18c8   :  { %v1909_v0 = vsel %vm1908_vm12, %v4959_v19, %v1905_v60 }
0x18c9   :  { %v1914_v34 = vsel %vm1911_vm13, %v1913_v59, %v1909_v0 }
0x18ca   :  { %v1917_v32 = vmul.f32 %v1914_v34, %v6272_v11 }
0x1905   :  { %v1883_v30 = vpop.permute.xlu2 %1882 }
0x1906   :  { %v1885_v55 = vmul.f32 %v1883_v30, %v1877_v54 }
0x1908   :  { %1887 = vrot.lane.b32.xlu1 %v1885_v55, %s5374_s15 }
0x1917   :  { %v1920_v5 = vpop.permute.xlu0 %1919 }
0x1918   :  { %v1922_v38 = vmul.f32 %v1920_v5, %v1914_v34 }
0x191a   :  { %1924 = vrot.lane.b32.xlu2 %v1922_v38, %s5374_s15 }
0x1974   :  { %v1925_v6 = vpop.permute.xlu2 %1924 }
0x1975   :  { %v6292_v63 = vadd.f32 %v1925_v6, %v1917_v32 }
0x1977   :  { %4960 = vtanh.f32 %v6292_v63 }
0x197a   :  { %v1888_v62 = vpop.permute.xlu1 %1887 }
0x197b   :  { %v6296_v33 = vadd.f32 %v1888_v62, %v1880_v7 }
0x197d   :  { %v4961_v15 = vpop.eup %4960  ;;  %4962 = vtanh.f32 %v6296_v33 }
0x197e   :  { %1930 = vrot.lane.b32.xlu1 %v4961_v15, %s5374_s15 }
0x1983   :  { %v4963_v39 = vpop.eup %4962 }
0x1984   :  { %1893 = vrot.lane.b32.xlu0 %v4963_v39, %s5374_s15 }
0x19f0   :  { %v1931_v36 = vpop.permute.xlu1 %1930 }
0x19f1   :  { %v1933_v11 = vmul.f32 %v1931_v36, %v1914_v34 }
0x19f3   :  { %1940 = vrot.lane.b32.xlu0 %v1933_v11, %s5376_s16 }
0x19f6   :  { %v1894_v29 = vpop.permute.xlu0 %1893 }
0x19f7   :  { %v1896_v24 = vmul.f32 %v1894_v29, %v1877_v54 }
0x19f9   :  { %1935 = vrot.lane.b32.xlu2 %v1896_v24, %s5375_s4  ;;  %v354_v24 = vadd.f32 %v5772_v16, %v5796_v42 }
0x1a53   :  { %v1936_v8 = vpop.permute.xlu2 %1935 }
0x1a54   :  { %1938 = vst.msk [vmem:[#allocation3 + $0x50] sm:$0xff] %vm567_vm10, %v1936_v8 }
0x1a65   :  { %v1941_v48 = vpop.permute.xlu0 %1940 }
0x1a66   :  { %1943 = vst.msk [vmem:[#allocation3 + $0x18] sm:$0xff] %vm574_vm11, %v1941_v48  ;;  %v1944_v3 = vsel %vm567_vm10, %v1936_v8, %v1941_v48 }
0x1a67   :  { %4666 = vmatmul.msk.f32.vlgmr.msra.gmra.mxu3 %vm119_vm0, %v1944_v3  ;;  %4667 = vmatmul.msk.f32.vlgmr.msrb.gmra.mxu1 %vm119_vm0, %v1944_v3  ;;  %v328_v3 = vadd.f32 %v5929_v26, %v5766_v9 }
0x1ae4   :  { %v1985_v37 = vpop.f32.mrf.mxu1 }
0x1ae5   :  { %v1991_v1 = vadd.f32 %v1985_v37, %v357_v20 }
0x1ae7   :  { %4964 = vtanh.f32 %v1991_v1  ;;  %v4669_v40 = vmul.f32 -1.442695, %v1991_v1 }
0x1aea   :  { %v1965_v4 = vpop.f32.mrf.mxu3 }
0x1aeb   :  { %v1989_v52 = vadd.f32 %v1965_v4, %v325_v2 }
0x1aed   :  { %v4965_v53 = vpop.eup %4964  ;;  %4966 = vtanh.f32 %v1989_v52  ;;  %v4668_v41 = vmul.f32 -1.442695, %v1989_v52 }
0x1aee   :  { %2051 = vrot.lane.b32.xlu2 %v4965_v53, %s5374_s15  ;;  %4968 = vpow2.f32 %v4669_v40 }
0x1af3   :  { %v4967_v56 = vpop.eup %4966 }
0x1af4   :  { %2014 = vrot.lane.b32.xlu1 %v4967_v56, %s5374_s15  ;;  %v4969_v57 = vpop.eup %4968 }
0x1af5   :  { %v2032_v58 = vadd.f32 1.0, %v4969_v57 }
0x1af7   :  { %4970 = vrcp.f32 %v2032_v58  ;;  %v2044_v44 = vand.u32 2147483648, %v2032_v58  ;;  %vm2038_vm15 = vweird.f32 %v2032_v58  ;;  %v2042_v25 = vand.u32 2147483647, %v2032_v58 }
0x1af8   :  { %4972 = vpow2.f32 %v4668_v41 }
0x1af9   :  { %v2045_v47 = vor.u32 1.1754944e-38, %v2044_v44  ;;  %vm2043_vm2 = vcmp.eq.f32.partialorder %v2042_v25, 8.507059e+37 }
0x1afd   :  { %v4971_v17 = vpop.eup %4970 }
0x1afe   :  { %v2034_v49 = vmul.f32 %v4971_v17, %v2032_v58  ;;  %vm2039_vm14 = vweird.f32 %v4971_v17  ;;  %v4973_v46 = vpop.eup %4972 }
0x1aff   :  { %vm2040_vm1 = vmor %vm2038_vm15, %vm2039_vm14  ;;  %v1995_v10 = vadd.f32 1.0, %v4973_v46 }
0x1b00   :  { %v2035_v22 = vsub.f32 1.0, %v2034_v49 }
0x1b01   :  { %4974 = vrcp.f32 %v1995_v10  ;;  %v2007_v55 = vand.u32 2147483648, %v1995_v10  ;;  %vm2001_vm4 = vweird.f32 %v1995_v10  ;;  %v2005_v23 = vand.u32 2147483647, %v1995_v10 }
0x1b02   :  { %v2036_v12 = vmul.f32 %v4971_v17, %v2035_v22 }
0x1b03   :  { %v2008_v60 = vor.u32 1.1754944e-38, %v2007_v55  ;;  %vm2006_vm6 = vcmp.eq.f32.partialorder %v2005_v23, 8.507059e+37 }
0x1b04   :  { %v2037_v27 = vadd.f32 %v4971_v17, %v2036_v12 }
0x1b06   :  { %v2041_v35 = vsel %vm2040_vm1, %v4971_v17, %v2037_v27 }
0x1b07   :  { %v2046_v18 = vsel %vm2043_vm2, %v2045_v47, %v2041_v35  ;;  %v4975_v45 = vpop.eup %4974 }
0x1b08   :  { %v1997_v43 = vmul.f32 %v4975_v45, %v1995_v10  ;;  %vm2002_vm3 = vweird.f32 %v4975_v45  ;;  %v2049_v59 = vmul.f32 %v2046_v18, %v6292_v63 }
0x1b09   :  { %vm2003_vm5 = vmor %vm2001_vm4, %vm2002_vm3 }
0x1b0a   :  { %v1998_v51 = vsub.f32 1.0, %v1997_v43 }
0x1b0c   :  { %v1999_v30 = vmul.f32 %v4975_v45, %v1998_v51 }
0x1b0e   :  { %v2000_v54 = vadd.f32 %v4975_v45, %v1999_v30 }
0x1b10   :  { %v2004_v21 = vsel %vm2003_vm5, %v4975_v45, %v2000_v54 }
0x1b11   :  { %v2009_v31 = vsel %vm2006_vm6, %v2008_v60, %v2004_v21 }
0x1b12   :  { %v2012_v32 = vmul.f32 %v2009_v31, %v6296_v33 }
0x1b48   :  { %v2052_v50 = vpop.permute.xlu2 %2051 }
0x1b49   :  { %v2054_v19 = vmul.f32 %v2052_v50, %v2046_v18 }
0x1b4b   :  { %2056 = vrot.lane.b32.xlu1 %v2054_v19, %s5374_s15 }
0x1b66   :  { %v2015_v61 = vpop.permute.xlu1 %2014 }
0x1b67   :  { %v2017_v0 = vmul.f32 %v2015_v61, %v2009_v31 }
0x1b69   :  { %2019 = vrot.lane.b32.xlu0 %v2017_v0, %s5374_s15 }
0x1bbd   :  { %v2057_v5 = vpop.permute.xlu1 %2056 }
0x1bbe   :  { %v6317_v34 = vadd.f32 %v2057_v5, %v2049_v59 }
0x1bc0   :  { %4976 = vtanh.f32 %v6317_v34 }
0x1bc6   :  { %v4977_v38 = vpop.eup %4976 }
0x1bc7   :  { %2062 = vrot.lane.b32.xlu0 %v4977_v38, %s5374_s15 }
0x1bdb   :  { %v2020_v6 = vpop.permute.xlu0 %2019 }
0x1bdc   :  { %v6322_v7 = vadd.f32 %v2020_v6, %v2012_v32 }
0x1bde   :  { %4978 = vtanh.f32 %v6322_v7 }
0x1be4   :  { %v4979_v62 = vpop.eup %4978 }
0x1be5   :  { %2025 = vrot.lane.b32.xlu2 %v4979_v62, %s5374_s15 }
0x1c39   :  { %v2063_v15 = vpop.permute.xlu0 %2062 }
0x1c3a   :  { %v2065_v63 = vmul.f32 %v2063_v15, %v2046_v18 }
0x1c3c   :  { %2072 = vrot.lane.b32.xlu2 %v2065_v63, %s5376_s16  ;;  %v351_v63 = vadd.f32 %v5769_v14, %v5796_v42 }
0x1c3f   :  { %v2026_v39 = vpop.permute.xlu2 %2025 }
0x1c40   :  { %v2028_v36 = vmul.f32 %v2026_v39, %v2009_v31 }
0x1c42   :  { %2067 = vrot.lane.b32.xlu1 %v2028_v36, %s5375_s4 }
0x1c96   :  { %v2073_v11 = vpop.permute.xlu2 %2072 }
0x1c97   :  { %2075 = vst.msk [vmem:[#allocation3 + $0x10] sm:$0xff] %vm574_vm11, %v2073_v11 }
0x1cb4   :  { %v2068_v33 = vpop.permute.xlu1 %2067 }
0x1cb5   :  { %2070 = vst.msk [vmem:[#allocation3 + $0x58] sm:$0xff] %vm567_vm10, %v2068_v33  ;;  %v2076_v29 = vsel %vm567_vm10, %v2068_v33, %v2073_v11  ;;  %v331_v11 = vadd.f32 %v5931_v13, %v5766_v9 }
0x1cb6   :  { %4670 = vmatmul.msk.f32.vlgmr.msrb.gmra.mxu2 %vm119_vm0, %v2076_v29  ;;  %4671 = vmatmul.msk.f32.vlgmr.msrb.gmra.mxu0 %vm119_vm0, %v2076_v29 }
0x1d33   :  { %v2117_v8 = vpop.f32.mrf.mxu0 }
0x1d34   :  { %v2123_v48 = vadd.f32 %v2117_v8, %v354_v24 }
0x1d36   :  { %4980 = vtanh.f32 %v2123_v48  ;;  %v4673_v4 = vmul.f32 -1.442695, %v2123_v48 }
0x1d39   :  { %v2097_v20 = vpop.f32.mrf.mxu2 }
0x1d3a   :  { %v2121_v37 = vadd.f32 %v2097_v20, %v328_v3 }
0x1d3c   :  { %v4981_v1 = vpop.eup %4980  ;;  %4982 = vtanh.f32 %v2121_v37  ;;  %v4672_v52 = vmul.f32 -1.442695, %v2121_v37 }
0x1d3d   :  { %2183 = vrot.lane.b32.xlu1 %v4981_v1, %s5374_s15  ;;  %4984 = vpow2.f32 %v4673_v4 }
0x1d3e   :  { %4986 = vpow2.f32 %v4672_v52 }
0x1d42   :  { %v4983_v2 = vpop.eup %4982 }
0x1d43   :  { %2146 = vrot.lane.b32.xlu0 %v4983_v2, %s5374_s15  ;;  %v4985_v53 = vpop.eup %4984 }
0x1d44   :  { %v2164_v16 = vadd.f32 1.0, %v4985_v53  ;;  %v4987_v56 = vpop.eup %4986 }
0x1d45   :  { %v2127_v40 = vadd.f32 1.0, %v4987_v56 }
0x1d46   :  { %4988 = vrcp.f32 %v2164_v16  ;;  %v2176_v27 = vand.u32 2147483648, %v2164_v16  ;;  %vm2170_vm8 = vweird.f32 %v2164_v16  ;;  %v2174_v44 = vand.u32 2147483647, %v2164_v16 }
0x1d47   :  { %4990 = vrcp.f32 %v2127_v40  ;;  %v2139_v18 = vand.u32 2147483648, %v2127_v40  ;;  %vm2133_vm14 = vweird.f32 %v2127_v40  ;;  %v2137_v45 = vand.u32 2147483647, %v2127_v40 }
0x1d48   :  { %v2177_v35 = vor.u32 1.1754944e-38, %v2176_v27  ;;  %vm2175_vm12 = vcmp.eq.f32.partialorder %v2174_v44, 8.507059e+37 }
0x1d49   :  { %v2140_v51 = vor.u32 1.1754944e-38, %v2139_v18  ;;  %vm2138_vm1 = vcmp.eq.f32.partialorder %v2137_v45, 8.507059e+37 }
0x1d4c   :  { %v4989_v57 = vpop.eup %4988 }
0x1d4d   :  { %v2166_v26 = vmul.f32 %v4989_v57, %v2164_v16  ;;  %v4991_v58 = vpop.eup %4990  ;;  %vm2171_vm7 = vweird.f32 %v4989_v57 }
0x1d4e   :  { %v2129_v49 = vmul.f32 %v4991_v58, %v2127_v40  ;;  %vm2172_vm9 = vmor %vm2170_vm8, %vm2171_vm7  ;;  %vm2134_vm13 = vweird.f32 %v4991_v58 }
0x1d4f   :  { %v2167_v17 = vsub.f32 1.0, %v2166_v26  ;;  %vm2135_vm15 = vmor %vm2133_vm14, %vm2134_vm13 }
0x1d50   :  { %v2130_v22 = vsub.f32 1.0, %v2129_v49 }
0x1d51   :  { %v2168_v41 = vmul.f32 %v4989_v57, %v2167_v17 }
0x1d52   :  { %v2131_v46 = vmul.f32 %v4991_v58, %v2130_v22 }
0x1d53   :  { %v2169_v12 = vadd.f32 %v4989_v57, %v2168_v41 }
0x1d54   :  { %v2132_v10 = vadd.f32 %v4991_v58, %v2131_v46 }
0x1d55   :  { %v2173_v25 = vsel %vm2172_vm9, %v4989_v57, %v2169_v12 }
0x1d56   :  { %v2178_v50 = vsel %vm2175_vm12, %v2177_v35, %v2173_v25  ;;  %v2136_v43 = vsel %vm2135_vm15, %v4991_v58, %v2132_v10 }
0x1d57   :  { %v2141_v54 = vsel %vm2138_vm1, %v2140_v51, %v2136_v43  ;;  %v2181_v31 = vmul.f32 %v2178_v50, %v6317_v34 }
0x1d58   :  { %v2144_v23 = vmul.f32 %v2141_v54, %v6322_v7 }
0x1daf   :  { %v2184_v47 = vpop.permute.xlu1 %2183 }
0x1db0   :  { %v2186_v19 = vmul.f32 %v2184_v47, %v2178_v50 }
0x1db2   :  { %2188 = vrot.lane.b32.xlu0 %v2186_v19, %s5374_s15 }
0x1db5   :  { %v2147_v30 = vpop.permute.xlu0 %2146 }
0x1db6   :  { %v2149_v55 = vmul.f32 %v2147_v30, %v2141_v54 }
0x1db8   :  { %2151 = vrot.lane.b32.xlu2 %v2149_v55, %s5374_s15 }
0x1e12   :  { %v2152_v21 = vpop.permute.xlu2 %2151 }
0x1e13   :  { %v6342_v60 = vadd.f32 %v2152_v21, %v2144_v23  ;;  %v2368_v23 = vld [vmem:[#allocation4 + $0x70] sm:$0xff]  ;;  %v2369_v21 = vld [vmem:[#allocation4 + $0x78] sm:$0xff] }
0x1e14   :  { %2426 = vmatpush.msra.mxu2 %v2368_v23  ;;  %2485 = vmatpush.msra.mxu0 %v2369_v21 }
0x1e15   :  { %4992 = vtanh.f32 %v6342_v60 }
0x1e1b   :  { %v4993_v61 = vpop.eup %4992 }
0x1e1c   :  { %2157 = vrot.lane.b32.xlu1 %v4993_v61, %s5374_s15  ;;  %v2366_v61 = vld [vmem:[#allocation4 + $0x60] sm:$0xff] }
0x1e1d   :  { %2427 = vmatpush.msra.mxu2 %v2366_v61 }
0x1e24   :  { %v2189_v0 = vpop.permute.xlu0 %2188 }
0x1e25   :  { %v2191_v59 = vadd.f32 %v2189_v0, %v2181_v31  ;;  %v2367_v31 = vld [vmem:[#allocation4 + $0x68] sm:$0xff]  ;;  %v6371_v0 = vld [vmem:[#allocation8 + $0x70] sm:$0xff] }
0x1e26   :  { %2486 = vmatpush.msra.mxu0 %v2367_v31  ;;  %2588 = vmatpush.msra.mxu3 %v6371_v0 }
0x1e27   :  { %4994 = vtanh.f32 %v2191_v59 }
0x1e2d   :  { %v4995_v5 = vpop.eup %4994 }
0x1e2e   :  { %2194 = vrot.lane.b32.xlu2 %v4995_v5, %s5374_s15  ;;  %v2365_v5 = vld [vmem:[#allocation4 + $0x58] sm:$0xff] }
0x1e2f   :  { %2487 = vmatpush.msra.mxu0 %v2365_v5 }
0x1e88   :  { %v2195_v38 = vpop.permute.xlu2 %2194 }
0x1e89   :  { %v2197_v32 = vmul.f32 %v2195_v38, %v2178_v50  ;;  %v6373_v38 = vld [vmem:[#allocation8 + $0x60] sm:$0xff] }
0x1e8a   :  { %2589 = vmatpush.msra.mxu3 %v6373_v38 }
0x1e8b   :  { %2204 = vrot.lane.b32.xlu1 %v2197_v32, %s5376_s16  ;;  %v2363_v32 = vld [vmem:[#allocation4 + $0x48] sm:$0xff] }
0x1e8c   :  { %2488 = vmatpush.msra.mxu0 %v2363_v32 }
0x1e8e   :  { %v2158_v6 = vpop.permute.xlu1 %2157 }
0x1e8f   :  { %v2160_v7 = vmul.f32 %v2158_v6, %v2141_v54  ;;  %v6376_v6 = vld [vmem:[#allocation8 + $0x50] sm:$0xff] }
0x1e90   :  { %2590 = vmatpush.msra.mxu3 %v6376_v6 }
0x1e91   :  { %2199 = vrot.lane.b32.xlu0 %v2160_v7, %s5375_s4  ;;  %v2360_v7 = vld [vmem:[#allocation4 + $0x30] sm:$0xff] }
0x1efd   :  { %v2205_v62 = vpop.permute.xlu1 %2204 }
0x1efe   :  { %2207 = vst.msk [vmem:[#allocation3 + $0x8] sm:$0xff] %vm574_vm11, %v2205_v62 }
0x1f03   :  { %v2200_v15 = vpop.permute.xlu0 %2199 }
0x1f04   :  { %2202 = vst.msk [vmem:[#allocation3 + $0x60] sm:$0xff] %vm567_vm10, %v2200_v15  ;;  %v2208_v34 = vsel %vm567_vm10, %v2200_v15, %v2205_v62  ;;  %v2361_v62 = vld [vmem:[#allocation4 + $0x38] sm:$0xff]  ;;  %v6380_v15 = vld [vmem:[#allocation8 + $0x40] sm:$0xff] }
0x1f05   :  { %4674 = vmatmul.msk.f32.vlgmr.msrb.gmra.mxu3 %vm119_vm0, %v2208_v34  ;;  %4675 = vmatmul.msk.f32.vlgmr.msra.gmra.mxu1 %vm119_vm0, %v2208_v34  ;;  %v2358_v34 = vld [vmem:[#allocation4 + $0x20] sm:$0xff] }
0x1f06   :  { %2489 = vmatpush.msra.mxu0 %v2361_v62  ;;  %2591 = vmatpush.msra.mxu3 %v6380_v15 }
0x1f82   :  { %v2249_v39 = vpop.f32.mrf.mxu1 }
0x1f83   :  { %v2255_v36 = vadd.f32 %v2249_v39, %v351_v63  ;;  %v2359_v63 = vld [vmem:[#allocation4 + $0x28] sm:$0xff]  ;;  %v6382_v39 = vld [vmem:[#allocation8 + $0x30] sm:$0xff] }
0x1f84   :  { %2490 = vmatpush.msra.mxu0 %v2359_v63  ;;  %2592 = vmatpush.msra.mxu3 %v6382_v39 }
0x1f85   :  { %4996 = vtanh.f32 %v2255_v36  ;;  %v4677_v48 = vmul.f32 -1.442695, %v2255_v36  ;;  %v2356_v36 = vld [vmem:[#allocation4 + $0x10] sm:$0xff] }
0x1f88   :  { %v2229_v33 = vpop.f32.mrf.mxu3 }
0x1f89   :  { %v2253_v29 = vadd.f32 %v2229_v33, %v331_v11  ;;  %v2357_v11 = vld [vmem:[#allocation4 + $0x18] sm:$0xff]  ;;  %v6385_v33 = vld [vmem:[#allocation8 + $0x20] sm:$0xff] }
0x1f8a   :  { %2491 = vmatpush.msra.mxu0 %v2357_v11  ;;  %2593 = vmatpush.msra.mxu3 %v6385_v33 }
0x1f8b   :  { %v4997_v24 = vpop.eup %4996  ;;  %4998 = vtanh.f32 %v2253_v29  ;;  %v4676_v40 = vmul.f32 -1.442695, %v2253_v29  ;;  %v2354_v29 = vld [vmem:[#allocation4] sm:$0xff] }
0x1f8c   :  { %2315 = vrot.lane.b32.xlu2 %v4997_v24, %s5374_s15  ;;  %5000 = vpow2.f32 %v4677_v48  ;;  %v2355_v24 = vld [vmem:[#allocation4 + $0x8] sm:$0xff]  ;;  %v6392_v48 = vld [vmem:[#allocation8] sm:$0xff] }
0x1f8d   :  { %2492 = vmatpush.msra.mxu0 %v2355_v24 }
0x1f91   :  { %v4999_v8 = vpop.eup %4998 }
0x1f92   :  { %v5001_v3 = vpop.eup %5000 }
0x1f93   :  { %v2296_v20 = vadd.f32 1.0, %v5001_v3 }
0x1f94   :  { %2278 = vrot.lane.b32.xlu2 %v4999_v8, %s5374_s15  ;;  %v6388_v8 = vld [vmem:[#allocation8 + $0x10] sm:$0xff] }
0x1f95   :  { %5002 = vrcp.f32 %v2296_v20  ;;  %v2308_v9 = vand.u32 2147483648, %v2296_v20  ;;  %vm2302_vm3 = vweird.f32 %v2296_v20  ;;  %v2306_v13 = vand.u32 2147483647, %v2296_v20  ;;  %2594 = vmatpush.msra.mxu3 %v6388_v8 }
0x1f96   :  { %5004 = vpow2.f32 %v4676_v40  ;;  %v6455_v40 = vld [vmem:[#allocation8 + $0x58] sm:$0xff] }
0x1f97   :  { %v2309_v52 = vor.u32 1.1754944e-38, %v2308_v9  ;;  %vm2307_vm5 = vcmp.eq.f32.partialorder %v2306_v13, 8.507059e+37  ;;  %2595 = vmatpush.msra.mxu3 %v6392_v48  ;;  %v2344_v9 = vld [vmem:[#allocation3 + $0x20] sm:$0xff]  ;;  %v2345_v13 = vld [vmem:[#allocation3 + $0x28] sm:$0xff] }
0x1f98   :  { %2596 = vmatmul.f32.vlgmr.msra.gmra.mxu3 %v5373_v28 }
0x1f99   :  { %2726 = vmatpush.msrb.mxu3 %v6371_v0 }
0x1f9b   :  { %v5003_v14 = vpop.eup %5002  ;;  %2727 = vmatpush.msrb.mxu3 %v6373_v38 }
0x1f9c   :  { %v2298_v42 = vmul.f32 %v5003_v14, %v2296_v20  ;;  %vm2303_vm2 = vweird.f32 %v5003_v14  ;;  %v5005_v57 = vpop.eup %5004 }
0x1f9d   :  { %vm2304_vm4 = vmor %vm2302_vm3, %vm2303_vm2  ;;  %v2259_v26 = vadd.f32 1.0, %v5005_v57  ;;  %2728 = vmatpush.msrb.mxu3 %v6376_v6  ;;  %v6461_v57 = vld [vmem:[#allocation8 + $0x48] sm:$0xff] }
0x1f9e   :  { %v2299_v37 = vsub.f32 1.0, %v2298_v42 }
0x1f9f   :  { %5006 = vrcp.f32 %v2259_v26  ;;  %v2271_v25 = vand.u32 2147483648, %v2259_v26  ;;  %vm2265_vm7 = vweird.f32 %v2259_v26  ;;  %v2269_v35 = vand.u32 2147483647, %v2259_v26  ;;  %2729 = vmatpush.msrb.mxu3 %v6380_v15 }
0x1fa0   :  { %v2300_v1 = vmul.f32 %v5003_v14, %v2299_v37  ;;  %v2341_v37 = vld [vmem:[#allocation3 + $0x8] sm:$0xff] }
0x1fa1   :  { %v2272_v50 = vor.u32 1.1754944e-38, %v2271_v25  ;;  %vm2270_vm9 = vcmp.eq.f32.partialorder %v2269_v35, 8.507059e+37  ;;  %2730 = vmatpush.msrb.mxu3 %v6382_v39  ;;  %v2370_v25 = vld [vmem:[%s7265_s7] sm:$0x3]  ;;  %s6608_s7 = sld [smem:[#allocation10 + $0xd]] }
0x1fa2   :  { %v2301_v2 = vadd.f32 %v5003_v14, %v2300_v1  ;;  %v2342_v1 = vld [vmem:[#allocation3 + $0x10] sm:$0xff]  ;;  %v6522_v35 = vperm.slane %v2370_v25, 0  ;;  %v6550_v62 = vperm.slane %v2370_v25, 1 }
0x1fa3   :  { %2731 = vmatpush.msrb.mxu3 %v6385_v33 }
0x1fa4   :  { %v2305_v4 = vsel %vm2304_vm4, %v5003_v14, %v2301_v2  ;;  %v2343_v2 = vld [vmem:[#allocation3 + $0x18] sm:$0xff] }
0x1fa5   :  { %v2310_v16 = vsel %vm2307_vm5, %v2309_v52, %v2305_v4  ;;  %v5007_v58 = vpop.eup %5006  ;;  %2732 = vmatpush.msrb.mxu3 %v6388_v8  ;;  %v2346_v4 = vld [vmem:[#allocation3 + $0x30] sm:$0xff]  ;;  %v2347_v52 = vld [vmem:[#allocation3 + $0x38] sm:$0xff] }
0x1fa6   :  { %v2261_v17 = vmul.f32 %v5007_v58, %v2259_v26  ;;  %v2313_v49 = vmul.f32 %v2310_v16, %v2191_v59  ;;  %vm2266_vm6 = vweird.f32 %v5007_v58  ;;  %v2364_v59 = vld [vmem:[#allocation4 + $0x50] sm:$0xff]  ;;  %v6463_v26 = vld [vmem:[#allocation8 + $0x38] sm:$0xff] }
0x1fa7   :  { %vm2267_vm8 = vmor %vm2265_vm7, %vm2266_vm6  ;;  %2428 = vmatpush.msra.mxu2 %v2364_v59  ;;  %2733 = vmatpush.msrb.mxu3 %v6392_v48 }
0x1fa8   :  { %v2262_v41 = vsub.f32 1.0, %v2261_v17  ;;  %v2349_v17 = vld [vmem:[#allocation3 + $0x48] sm:$0xff] }
0x1fa9   :  { %2864 = vmatpush.msra.mxu3 %v6371_v0 }
0x1faa   :  { %v2263_v27 = vmul.f32 %v5007_v58, %v2262_v41  ;;  %v6479_v41 = vld [vmem:[#allocation8 + $0x8] sm:$0xff] }
0x1fab   :  { %2865 = vmatpush.msra.mxu3 %v6373_v38 }
0x1fac   :  { %v2264_v44 = vadd.f32 %v5007_v58, %v2263_v27 }
0x1fad   :  { %2866 = vmatpush.msra.mxu3 %v6376_v6 }
0x1fae   :  { %v2268_v10 = vsel %vm2267_vm8, %v5007_v58, %v2264_v44  ;;  %v6467_v58 = vld [vmem:[#allocation8 + $0x28] sm:$0xff] }
0x1faf   :  { %v6363_v18 = vsel %vm2270_vm9, %v2272_v50, %v2268_v10  ;;  %2867 = vmatpush.msra.mxu3 %v6380_v15 }
0x1fb0   :  { %v2276_v51 = vmul.f32 %v6363_v18, %v6342_v60  ;;  %v2362_v60 = vld [vmem:[#allocation4 + $0x40] sm:$0xff] }
0x1fb1   :  { %2429 = vmatpush.msra.mxu2 %v2362_v60  ;;  %2868 = vmatpush.msra.mxu3 %v6382_v39 }
0x1fb3   :  { %2430 = vmatpush.msra.mxu2 %v2360_v7  ;;  %2869 = vmatpush.msra.mxu3 %v6385_v33 }
0x1fb5   :  { %2431 = vmatpush.msra.mxu2 %v2358_v34  ;;  %2870 = vmatpush.msra.mxu3 %v6388_v8 }
0x1fb7   :  { %2432 = vmatpush.msra.mxu2 %v2356_v36  ;;  %2871 = vmatpush.msra.mxu3 %v6392_v48 }
0x1fb9   :  { %2433 = vmatpush.msra.mxu2 %v2354_v29 }
0x1fbb   :  { %3554 = vmatpush.msrb.mxu2 %v6371_v0 }
0x1fbd   :  { %3555 = vmatpush.msrb.mxu2 %v6373_v38 }
0x1fbf   :  { %3556 = vmatpush.msrb.mxu2 %v6376_v6 }
0x1fc1   :  { %3557 = vmatpush.msrb.mxu2 %v6380_v15 }
0x1fc3   :  { %3558 = vmatpush.msrb.mxu2 %v6382_v39 }
0x1fc5   :  { %3559 = vmatpush.msrb.mxu2 %v6385_v33 }
0x1fc7   :  { %3560 = vmatpush.msrb.mxu2 %v6388_v8 }
0x1fc9   :  { %3561 = vmatpush.msrb.mxu2 %v6392_v48 }
0x1fe6   :  { %v2316_v53 = vpop.permute.xlu2 %2315 }
0x1fe7   :  { %v2318_v56 = vmul.f32 %v2316_v53, %v2310_v16  ;;  %v6447_v53 = vld [vmem:[#allocation8 + $0x78] sm:$0xff] }
0x1fe8   :  { %2608 = vmatpush.msrb.mxu1 %v6447_v53  ;;  %3574 = vmatpush.msrb.mxu0 %v6447_v53 }
0x1fe9   :  { %2320 = vrot.lane.b32.xlu0 %v2318_v56, %s5374_s15  ;;  %v6453_v56 = vld [vmem:[#allocation8 + $0x68] sm:$0xff] }
0x1fea   :  { %2609 = vmatpush.msrb.mxu1 %v6453_v56  ;;  %3575 = vmatpush.msrb.mxu0 %v6453_v56 }
0x1fec   :  { %2610 = vmatpush.msrb.mxu1 %v6455_v40  ;;  %3576 = vmatpush.msrb.mxu0 %v6455_v40 }
0x1fee   :  { %v2279_v47 = vpop.permute.xlu2 %2278  ;;  %2611 = vmatpush.msrb.mxu1 %v6461_v57  ;;  %3577 = vmatpush.msrb.mxu0 %v6461_v57 }
0x1fef   :  { %v2281_v19 = vmul.f32 %v2279_v47, %v6363_v18 }
0x1ff0   :  { %2612 = vmatpush.msrb.mxu1 %v6463_v26  ;;  %3578 = vmatpush.msrb.mxu0 %v6463_v26 }
0x1ff2   :  { %2613 = vmatpush.msrb.mxu1 %v6467_v58  ;;  %3579 = vmatpush.msrb.mxu0 %v6467_v58 }
0x201b   :  { %v2597_v47 = vpop.f32.mrf.mxu3 }
0x205b   :  { %v2321_v22 = vpop.permute.xlu0 %2320 }
0x205c   :  { %v2323_v12 = vadd.f32 %v2321_v22, %v2313_v49  ;;  %v6473_v49 = vld [vmem:[#allocation8 + $0x18] sm:$0xff]  ;;  %v2350_v22 = vld [vmem:[#allocation3 + $0x50] sm:$0xff] }
0x205d   :  { %2614 = vmatpush.msrb.mxu1 %v6473_v49  ;;  %3580 = vmatpush.msrb.mxu0 %v6473_v49 }
0x205e   :  { %5008 = vtanh.f32 %v2323_v12  ;;  %v2352_v12 = vld [vmem:[#allocation3 + $0x60] sm:$0xff] }
0x205f   :  { %2615 = vmatpush.msrb.mxu1 %v6479_v41  ;;  %3581 = vmatpush.msrb.mxu0 %v6479_v41 }
0x2060   :  { %2616 = vmatmul.f32.vlgmr.msrb.gmra.mxu1 %v5373_v28  ;;  %v2351_v28 = vld [vmem:[#allocation3 + $0x58] sm:$0xff] }
0x2061   :  { %2746 = vmatpush.msra.mxu1 %v6447_v53 }
0x2063   :  { %2747 = vmatpush.msra.mxu1 %v6453_v56 }
0x2064   :  { %v5009_v46 = vpop.eup %5008 }
0x2065   :  { %2326 = vrot.lane.b32.xlu1 %v5009_v46, %s5374_s15  ;;  %2748 = vmatpush.msra.mxu1 %v6455_v40 }
0x2067   :  { %2749 = vmatpush.msra.mxu1 %v6461_v57 }
0x2069   :  { %2750 = vmatpush.msra.mxu1 %v6463_v26 }
0x206b   :  { %2751 = vmatpush.msra.mxu1 %v6467_v58 }
0x206d   :  { %2283 = vrot.lane.b32.xlu1 %v2281_v19, %s5374_s15  ;;  %2752 = vmatpush.msra.mxu1 %v6473_v49 }
0x206f   :  { %2753 = vmatpush.msra.mxu1 %v6479_v41 }
0x2071   :  { %2884 = vmatpush.msrb.mxu1 %v6447_v53 }
0x2073   :  { %2885 = vmatpush.msrb.mxu1 %v6453_v56 }
0x2075   :  { %2886 = vmatpush.msrb.mxu1 %v6455_v40 }
0x2077   :  { %2887 = vmatpush.msrb.mxu1 %v6461_v57 }
0x2079   :  { %2888 = vmatpush.msrb.mxu1 %v6463_v26 }
0x207b   :  { %2889 = vmatpush.msrb.mxu1 %v6467_v58 }
0x207d   :  { %2890 = vmatpush.msrb.mxu1 %v6473_v49 }
0x207f   :  { %2891 = vmatpush.msrb.mxu1 %v6479_v41 }
0x20d7   :  { %v2327_v45 = vpop.permute.xlu1 %2326 }
0x20d8   :  { %v2329_v43 = vmul.f32 %v2327_v45, %v2310_v16  ;;  %v2348_v16 = vld [vmem:[#allocation3 + $0x40] sm:$0xff] }
0x20da   :  { %2336 = vrot.lane.b32.xlu0 %v2329_v43, %s5376_s16 }
0x20dd   :  { %v2617_v63 = vpop.f32.mrf.mxu1 }
0x20df   :  { %v2284_v30 = vpop.permute.xlu1 %2283 }
0x20e0   :  { %v2286_v54 = vadd.f32 %v2284_v30, %v2276_v51 }
0x20e2   :  { %5010 = vtanh.f32 %v2286_v54 }
0x20e8   :  { %v5011_v55 = vpop.eup %5010 }
0x20e9   :  { %2289 = vrot.lane.b32.xlu2 %v5011_v55, %s5374_s15 }
0x2143   :  { %v2290_v3 = vpop.permute.xlu2 %2289 }
0x2144   :  { %v2292_v20 = vmul.f32 %v2290_v3, %v6363_v18 }
0x2146   :  { %2331 = vrot.lane.b32.xlu0 %v2292_v20, %s5375_s4 }
0x214c   :  { %v2337_v14 = vpop.permute.xlu0 %2336 }
0x214d   :  { %2339 = vst.msk [vmem:[#allocation3] sm:$0xff] %vm574_vm11, %v2337_v14 }
0x2154   :  { %v2340_v42 = vld [vmem:[#allocation3] sm:$0xff] }
0x2155   :  { %4678 = vmatmul.msk.f32.vlgmr.msra.gmra.mxu2 %vm119_vm0, %v2340_v42  ;;  %4692 = vmatmul.msk.f32.vlgmr.msra.gmra.mxu0 %vm119_vm0, %v2340_v42 }
0x2156   :  { %3822 = vmatpush.msra.mxu2 %v6371_v0  ;;  %3842 = vmatpush.msra.mxu0 %v6447_v53 }
0x2158   :  { %3823 = vmatpush.msra.mxu2 %v6373_v38  ;;  %3843 = vmatpush.msra.mxu0 %v6453_v56 }
0x215a   :  { %3824 = vmatpush.msra.mxu2 %v6376_v6  ;;  %3844 = vmatpush.msra.mxu0 %v6455_v40 }
0x215c   :  { %3825 = vmatpush.msra.mxu2 %v6380_v15  ;;  %3845 = vmatpush.msra.mxu0 %v6461_v57 }
0x215d   :  { %4679 = vmatmul.msk.f32.gmra.mxu2 %vm119_vm0, %v2341_v37  ;;  %4693 = vmatmul.msk.f32.gmra.mxu0 %vm119_vm0, %v2341_v37 }
0x215e   :  { %3826 = vmatpush.msra.mxu2 %v6382_v39  ;;  %3846 = vmatpush.msra.mxu0 %v6463_v26 }
0x2160   :  { %3827 = vmatpush.msra.mxu2 %v6385_v33  ;;  %3847 = vmatpush.msra.mxu0 %v6467_v58 }
0x2162   :  { %3828 = vmatpush.msra.mxu2 %v6388_v8  ;;  %3848 = vmatpush.msra.mxu0 %v6473_v49 }
0x2164   :  { %3829 = vmatpush.msra.mxu2 %v6392_v48  ;;  %3849 = vmatpush.msra.mxu0 %v6479_v41 }
0x2165   :  { %4680 = vmatmul.msk.f32.gmra.mxu2 %vm119_vm0, %v2342_v1  ;;  %4694 = vmatmul.msk.f32.gmra.mxu0 %vm119_vm0, %v2342_v1 }
0x216d   :  { %4681 = vmatmul.msk.f32.gmra.mxu2 %vm119_vm0, %v2343_v2  ;;  %4695 = vmatmul.msk.f32.gmra.mxu0 %vm119_vm0, %v2343_v2 }
0x2175   :  { %4682 = vmatmul.msk.f32.gmra.mxu2 %vm119_vm0, %v2344_v9  ;;  %4696 = vmatmul.msk.f32.gmra.mxu0 %vm119_vm0, %v2344_v9 }
0x217d   :  { %4683 = vmatmul.msk.f32.gmra.mxu2 %vm119_vm0, %v2345_v13  ;;  %4697 = vmatmul.msk.f32.gmra.mxu0 %vm119_vm0, %v2345_v13 }
0x2185   :  { %4684 = vmatmul.msk.f32.gmra.mxu2 %vm119_vm0, %v2346_v4  ;;  %4698 = vmatmul.msk.f32.gmra.mxu0 %vm119_vm0, %v2346_v4 }
0x218d   :  { %4685 = vmatmul.msk.f32.gmra.mxu2 %vm119_vm0, %v2347_v52  ;;  %4699 = vmatmul.msk.f32.gmra.mxu0 %vm119_vm0, %v2347_v52 }
0x2195   :  { %4686 = vmatmul.msk.f32.gmra.mxu2 %vm119_vm0, %v2348_v16  ;;  %4700 = vmatmul.msk.f32.gmra.mxu0 %vm119_vm0, %v2348_v16 }
0x219d   :  { %4687 = vmatmul.msk.f32.gmra.mxu2 %vm119_vm0, %v2349_v17  ;;  %4701 = vmatmul.msk.f32.gmra.mxu0 %vm119_vm0, %v2349_v17 }
0x21a5   :  { %4688 = vmatmul.msk.f32.gmra.mxu2 %vm119_vm0, %v2350_v22  ;;  %4702 = vmatmul.msk.f32.gmra.mxu0 %vm119_vm0, %v2350_v22 }
0x21ad   :  { %4689 = vmatmul.msk.f32.gmra.mxu2 %vm119_vm0, %v2351_v28  ;;  %4703 = vmatmul.msk.f32.gmra.mxu0 %vm119_vm0, %v2351_v28 }
0x21b5   :  { %4690 = vmatmul.msk.f32.gmra.mxu2 %vm119_vm0, %v2352_v12  ;;  %4704 = vmatmul.msk.f32.gmra.mxu0 %vm119_vm0, %v2352_v12 }
0x21b8   :  { %v2332_v27 = vpop.permute.xlu0 %2331 }
0x21b9   :  { %2334 = vst.msk [vmem:[#allocation3 + $0x68] sm:$0xff] %vm567_vm10, %v2332_v27 }
0x21c0   :  { %v2353_v44 = vld [vmem:[#allocation3 + $0x68] sm:$0xff] }
0x21c1   :  { %4691 = vmatmul.msk.f32.gmra.mxu2 %vm119_vm0, %v2353_v44  ;;  %4705 = vmatmul.msk.f32.gmra.mxu0 %vm119_vm0, %v2353_v44 }
0x21d2   :  { %v6517_v46 = vpop.f32.mrf.mxu0 }
0x21d8   :  { %v2435_v10 = vpop.f32.mrf.mxu2 }
0x21d9   :  { %v2436_v50 = vadd.f32 %v2435_v10, %v6522_v35 }
0x21da   :  { %v6525_v18 = vpop.f32.mrf.mxu0 }
0x21db   :  { %v2621_v19 = vadd.f32 %v2597_v47, %v2436_v50 }
0x21dd   :  { %5012 = vtanh.f32 %v2621_v19  ;;  %v4706_v59 = vmul.f32 -1.442695, %v2621_v19 }
0x21df   :  { %5014 = vpow2.f32 %v4706_v59 }
0x21e2   :  { %v6527_v45 = vpop.f32.mrf.mxu0 }
0x21e3   :  { %v5013_v43 = vpop.eup %5012 }
0x21e4   :  { %2646 = vrot.lane.b32.xlu1 %v5013_v43, %s5374_s15 }
0x21e5   :  { %v5015_v60 = vpop.eup %5014 }
0x21e6   :  { %v2627_v32 = vadd.f32 1.0, %v5015_v60 }
0x21e8   :  { %5016 = vrcp.f32 %v2627_v32  ;;  %v2639_v37 = vand.u32 2147483648, %v2627_v32  ;;  %vm2633_vm12 = vweird.f32 %v2627_v32  ;;  %v2637_v1 = vand.u32 2147483647, %v2627_v32 }
0x21ea   :  { %v6530_v51 = vpop.f32.mrf.mxu0  ;;  %v2640_v9 = vor.u32 1.1754944e-38, %v2639_v37  ;;  %vm2638_vm14 = vcmp.eq.f32.partialorder %v2637_v1, 8.507059e+37 }
0x21ee   :  { %v5017_v11 = vpop.eup %5016 }
0x21ef   :  { %v2629_v24 = vmul.f32 %v5017_v11, %v2627_v32  ;;  %vm2634_vm11 = vweird.f32 %v5017_v11 }
0x21f0   :  { %vm2635_vm13 = vmor %vm2633_vm12, %vm2634_vm11 }
0x21f1   :  { %v2630_v3 = vsub.f32 1.0, %v2629_v24 }
0x21f2   :  { %v6532_v30 = vpop.f32.mrf.mxu0 }
0x21f3   :  { %v2631_v14 = vmul.f32 %v5017_v11, %v2630_v3 }
0x21f5   :  { %v2632_v42 = vadd.f32 %v5017_v11, %v2631_v14 }
0x21f7   :  { %v2636_v2 = vsel %vm2635_vm13, %v5017_v11, %v2632_v42 }
0x21f8   :  { %v2641_v13 = vsel %vm2638_vm14, %v2640_v9, %v2636_v2 }
0x21f9   :  { %v2644_v32 = vmul.f32 0.0, %v2641_v13 }
0x21fa   :  { %v6534_v54 = vpop.f32.mrf.mxu0 }
0x2202   :  { %v6536_v55 = vpop.f32.mrf.mxu0 }
0x220a   :  { %v6538_v23 = vpop.f32.mrf.mxu0 }
0x2212   :  { %v6540_v21 = vpop.f32.mrf.mxu0 }
0x221a   :  { %v6542_v61 = vpop.f32.mrf.mxu0 }
0x2222   :  { %v6544_v31 = vpop.f32.mrf.mxu0 }
0x222a   :  { %v6546_v5 = vpop.f32.mrf.mxu0 }
0x2232   :  { %v6548_v7 = vpop.f32.mrf.mxu0 }
0x223e   :  { %v2533_v34 = vpop.f32.mrf.mxu0 }
0x223f   :  { %v2534_v36 = vadd.f32 %v2533_v34, %v6550_v62 }
0x2241   :  { %v2623_v29 = vadd.f32 %v2617_v63, %v2534_v36 }
0x2243   :  { %5018 = vtanh.f32 %v2623_v29  ;;  %v4707_v16 = vmul.f32 -1.442695, %v2623_v29 }
0x2245   :  { %5020 = vpow2.f32 %v4707_v16  ;;  %v2438_v16 = vpop.f32.mrf.mxu2 }
0x2249   :  { %v5019_v20 = vpop.eup %5018 }
0x224a   :  { %2683 = vrot.lane.b32.xlu2 %v5019_v20, %s5374_s15 }
0x224b   :  { %v5021_v17 = vpop.eup %5020 }
0x224c   :  { %v2664_v22 = vadd.f32 1.0, %v5021_v17  ;;  %v2439_v17 = vadd.f32 %v2438_v16, %v6522_v35 }
0x224e   :  { %5022 = vrcp.f32 %v2664_v22  ;;  %v2676_v10 = vand.u32 2147483648, %v2664_v22  ;;  %vm2670_vm1 = vweird.f32 %v2664_v22  ;;  %v2674_v47 = vand.u32 2147483647, %v2664_v22 }
0x2250   :  { %v2677_v19 = vor.u32 1.1754944e-38, %v2676_v10  ;;  %vm2675_vm3 = vcmp.eq.f32.partialorder %v2674_v47, 8.507059e+37 }
0x2254   :  { %v5023_v28 = vpop.eup %5022 }
0x2255   :  { %v2666_v12 = vmul.f32 %v5023_v28, %v2664_v22  ;;  %vm2671_vm15 = vweird.f32 %v5023_v28 }
0x2256   :  { %v2647_v4 = vpop.permute.xlu1 %2646  ;;  %vm2672_vm2 = vmor %vm2670_vm1, %vm2671_vm15 }
0x2257   :  { %v2649_v52 = vmul.f32 %v2647_v4, %v2641_v13  ;;  %v2667_v27 = vsub.f32 1.0, %v2666_v12 }
0x2259   :  { %2651 = vrot.lane.b32.xlu0 %v2649_v52, %s5374_s15  ;;  %v2668_v44 = vmul.f32 %v5023_v28, %v2667_v27 }
0x225b   :  { %v2669_v25 = vadd.f32 %v5023_v28, %v2668_v44 }
0x225d   :  { %v2673_v50 = vsel %vm2672_vm2, %v5023_v28, %v2669_v25 }
0x225e   :  { %v2678_v59 = vsel %vm2675_vm3, %v2677_v19, %v2673_v50 }
0x225f   :  { %v2681_v11 = vmul.f32 0.0, %v2678_v59 }
0x22a4   :  { %v2684_v43 = vpop.permute.xlu2 %2683 }
0x22a5   :  { %v2686_v60 = vmul.f32 %v2684_v43, %v2678_v59 }
0x22a7   :  { %2688 = vrot.lane.b32.xlu1 %v2686_v60, %s5374_s15 }
0x22cb   :  { %v2652_v34 = vpop.permute.xlu0 %2651 }
0x22cc   :  { %v6556_v63 = vadd.f32 %v2652_v34, %v2644_v32 }
0x22ce   :  { %5024 = vtanh.f32 %v6556_v63 }
0x22d4   :  { %v5025_v36 = vpop.eup %5024 }
0x22d5   :  { %2657 = vrot.lane.b32.xlu2 %v5025_v36, %s5374_s15 }
0x2319   :  { %v2689_v29 = vpop.permute.xlu1 %2688 }
0x231a   :  { %v6560_v24 = vadd.f32 %v2689_v29, %v2681_v11 }
0x231c   :  { %5026 = vtanh.f32 %v6560_v24 }
0x2322   :  { %v5027_v3 = vpop.eup %5026 }
0x2323   :  { %2694 = vrot.lane.b32.xlu0 %v5027_v3, %s5374_s15 }
0x232f   :  { %v2658_v20 = vpop.permute.xlu2 %2657 }
0x2330   :  { %v6564_v14 = vmul.f32 %v2658_v20, %v2641_v13  ;;  %v2531_v13 = vadd.f32 %v6548_v7, %v6550_v62 }
0x2332   :  { %2707 = vrot.lane.b32.xlu1 %v6564_v14, %s5375_s4 }
0x2395   :  { %v2695_v42 = vpop.permute.xlu0 %2694 }
0x2396   :  { %v6568_v37 = vmul.f32 %v2695_v42, %v2678_v59 }
0x2398   :  { %2711 = vrot.lane.b32.xlu2 %v6568_v37, %s5376_s16 }
0x23a4   :  { %v2708_v1 = vpop.permute.xlu1 %2707 }
0x23f2   :  { %v2712_v2 = vpop.permute.xlu2 %2711 }
0x23f3   :  { %v2714_v9 = vsel %vm567_vm10, %v2708_v1, %v2712_v2 }
0x23f4   :  { %4709 = vmatmul.msk.f32.vlgmr.msrb.gmra.mxu3 %vm119_vm0, %v2714_v9  ;;  %4710 = vmatmul.msk.f32.vlgmr.msra.gmra.mxu1 %vm119_vm0, %v2714_v9 }
0x23f5   :  { %3002 = vmatpush.msrb.mxu3 %v6371_v0  ;;  %3022 = vmatpush.msra.mxu1 %v6447_v53 }
0x23f7   :  { %3003 = vmatpush.msrb.mxu3 %v6373_v38  ;;  %3023 = vmatpush.msra.mxu1 %v6453_v56 }
0x23f9   :  { %3004 = vmatpush.msrb.mxu3 %v6376_v6  ;;  %3024 = vmatpush.msra.mxu1 %v6455_v40 }
0x23fb   :  { %3005 = vmatpush.msrb.mxu3 %v6380_v15  ;;  %3025 = vmatpush.msra.mxu1 %v6461_v57 }
0x23fd   :  { %3006 = vmatpush.msrb.mxu3 %v6382_v39  ;;  %3026 = vmatpush.msra.mxu1 %v6463_v26 }
0x23ff   :  { %3007 = vmatpush.msrb.mxu3 %v6385_v33  ;;  %3027 = vmatpush.msra.mxu1 %v6467_v58 }
0x2401   :  { %3008 = vmatpush.msrb.mxu3 %v6388_v8  ;;  %3028 = vmatpush.msra.mxu1 %v6473_v49 }
0x2403   :  { %3009 = vmatpush.msrb.mxu3 %v6392_v48  ;;  %3029 = vmatpush.msra.mxu1 %v6479_v41 }
0x2471   :  { %v2755_v4 = vpop.f32.mrf.mxu1 }
0x2472   :  { %v2761_v52 = vadd.f32 %v2755_v4, %v2531_v13 }
0x2474   :  { %5028 = vtanh.f32 %v2761_v52  ;;  %v4712_v44 = vmul.f32 -1.442695, %v2761_v52 }
0x2477   :  { %v2735_v22 = vpop.f32.mrf.mxu3 }
0x2478   :  { %v2759_v28 = vadd.f32 %v2735_v22, %v2439_v17 }
0x247a   :  { %v5029_v12 = vpop.eup %5028  ;;  %5030 = vtanh.f32 %v2759_v28  ;;  %v4711_v25 = vmul.f32 -1.442695, %v2759_v28 }
0x247b   :  { %2821 = vrot.lane.b32.xlu1 %v5029_v12, %s5374_s15  ;;  %5032 = vpow2.f32 %v4712_v44 }
0x247c   :  { %5034 = vpow2.f32 %v4711_v25 }
0x2480   :  { %v5031_v27 = vpop.eup %5030 }
0x2481   :  { %2784 = vrot.lane.b32.xlu0 %v5031_v27, %s5374_s15  ;;  %v5033_v10 = vpop.eup %5032 }
0x2482   :  { %v2802_v7 = vadd.f32 1.0, %v5033_v10  ;;  %v5035_v47 = vpop.eup %5034 }
0x2483   :  { %v2765_v50 = vadd.f32 1.0, %v5035_v47 }
0x2484   :  { %5036 = vrcp.f32 %v2802_v7  ;;  %v2814_v29 = vand.u32 2147483648, %v2802_v7  ;;  %vm2808_vm5 = vweird.f32 %v2802_v7  ;;  %v2812_v3 = vand.u32 2147483647, %v2802_v7 }
0x2485   :  { %5038 = vrcp.f32 %v2765_v50  ;;  %v2777_v4 = vand.u32 2147483648, %v2765_v50  ;;  %vm2771_vm9 = vweird.f32 %v2765_v50  ;;  %v2775_v16 = vand.u32 2147483647, %v2765_v50 }
0x2486   :  { %v2815_v1 = vor.u32 1.1754944e-38, %v2814_v29  ;;  %vm2813_vm7 = vcmp.eq.f32.partialorder %v2812_v3, 8.507059e+37  ;;  %v7276_v29 = vstv %s6614_s6 }
0x2487   :  { %v2778_v22 = vor.u32 1.1754944e-38, %v2777_v4  ;;  %vm2776_vm12 = vcmp.eq.f32.partialorder %v2775_v16, 8.507059e+37  ;;  %v2441_v16 = vpop.f32.mrf.mxu2 }
0x248a   :  { %v5037_v19 = vpop.eup %5036 }
0x248b   :  { %v2804_v43 = vmul.f32 %v5037_v19, %v2802_v7  ;;  %v5039_v59 = vpop.eup %5038  ;;  %vm2809_vm4 = vweird.f32 %v5037_v19 }
0x248c   :  { %v2767_v32 = vmul.f32 %v5039_v59, %v2765_v50  ;;  %vm2810_vm6 = vmor %vm2808_vm5, %vm2809_vm4  ;;  %vm2772_vm8 = vweird.f32 %v5039_v59 }
0x248d   :  { %v2805_v60 = vsub.f32 1.0, %v2804_v43  ;;  %vm2773_vm11 = vmor %vm2771_vm9, %vm2772_vm8 }
0x248e   :  { %v2768_v36 = vsub.f32 1.0, %v2767_v32 }
0x248f   :  { %v2806_v34 = vmul.f32 %v5037_v19, %v2805_v60 }
0x2490   :  { %v2769_v20 = vmul.f32 %v5039_v59, %v2768_v36 }
0x2491   :  { %v2807_v11 = vadd.f32 %v5037_v19, %v2806_v34 }
0x2492   :  { %v2770_v2 = vadd.f32 %v5039_v59, %v2769_v20 }
0x2493   :  { %v2811_v42 = vsel %vm2810_vm6, %v5037_v19, %v2807_v11  ;;  %v7274_v11 = vstv %s6612_s27 }
0x2494   :  { %v2816_v13 = vsel %vm2813_vm7, %v2815_v1, %v2811_v42  ;;  %v2774_v17 = vsel %vm2773_vm11, %v5039_v59, %v2770_v2  ;;  %v2700_v42 = vmul.f32 %v7274_v11, %v6564_v14  ;;  %v2528_v14 = vadd.f32 %v6546_v5, %v6550_v62 }
0x2495   :  { %v2779_v12 = vsel %vm2776_vm12, %v2778_v22, %v2774_v17  ;;  %v2819_v47 = vmul.f32 %v2816_v13, %v6560_v24  ;;  %v7275_v24 = vstv %s6610_s26  ;;  %v2442_v17 = vadd.f32 %v2441_v16, %v6522_v35 }
0x2496   :  { %v2782_v44 = vmul.f32 %v2779_v12, %v6556_v63  ;;  %v7273_v63 = vstv %s6608_s7 }
0x2497   :  { %v2704_v32 = vmul.f32 %v7273_v63, %v6568_v37 }
0x24ed   :  { %v2822_v9 = vpop.permute.xlu1 %2821 }
0x24ee   :  { %v2824_v52 = vmul.f32 %v2822_v9, %v2816_v13 }
0x24f0   :  { %2826 = vrot.lane.b32.xlu0 %v2824_v52, %s5374_s15 }
0x24f3   :  { %v2785_v28 = vpop.permute.xlu0 %2784 }
0x24f4   :  { %v2787_v27 = vmul.f32 %v2785_v28, %v2779_v12 }
0x24f6   :  { %2789 = vrot.lane.b32.xlu2 %v2787_v27, %s5374_s15 }
0x2550   :  { %v2790_v25 = vpop.permute.xlu2 %2789 }
0x2551   :  { %v6599_v10 = vadd.f32 %v2790_v25, %v2782_v44 }
0x2553   :  { %5040 = vtanh.f32 %v6599_v10 }
0x2559   :  { %v5041_v7 = vpop.eup %5040 }
0x255a   :  { %2795 = vrot.lane.b32.xlu1 %v5041_v7, %s5374_s15 }
0x2562   :  { %v2827_v50 = vpop.permute.xlu0 %2826 }
0x2563   :  { %v6604_v19 = vadd.f32 %v2827_v50, %v2819_v47 }
0x2565   :  { %5042 = vtanh.f32 %v6604_v19 }
0x256b   :  { %v5043_v43 = vpop.eup %5042 }
0x256c   :  { %2832 = vrot.lane.b32.xlu2 %v5043_v43, %s5374_s15 }
0x25c6   :  { %v2833_v59 = vpop.permute.xlu2 %2832 }
0x25c7   :  { %v2835_v60 = vmul.f32 %v2833_v59, %v2816_v13 }
0x25c9   :  { %v2842_v34 = vmul.f32 %v7275_v24, %v2835_v60  ;;  %2849 = vrot.lane.b32.xlu1 %v2835_v60, %s5376_s16 }
0x25cb   :  { %v6624_v36 = vadd.f32 %v2842_v34, %v2704_v32 }
0x25cc   :  { %v2796_v3 = vpop.permute.xlu1 %2795 }
0x25cd   :  { %v2798_v20 = vmul.f32 %v2796_v3, %v2779_v12 }
0x25cf   :  { %v2838_v1 = vmul.f32 %v7276_v29, %v2798_v20  ;;  %2845 = vrot.lane.b32.xlu0 %v2798_v20, %s5375_s4 }
0x25d1   :  { %v6634_v2 = vadd.f32 %v2838_v1, %v2700_v42 }
0x263b   :  { %v2850_v37 = vpop.permute.xlu1 %2849 }
0x2641   :  { %v2846_v9 = vpop.permute.xlu0 %2845 }
0x2642   :  { %v2852_v13 = vsel %vm567_vm10, %v2846_v9, %v2850_v37 }
0x2643   :  { %4715 = vmatmul.msk.f32.vlgmr.msra.gmra.mxu3 %vm119_vm0, %v2852_v13  ;;  %4716 = vmatmul.msk.f32.vlgmr.msrb.gmra.mxu1 %vm119_vm0, %v2852_v13 }
0x2644   :  { %3140 = vmatpush.msra.mxu3 %v6371_v0  ;;  %3160 = vmatpush.msrb.mxu1 %v6447_v53 }
0x2646   :  { %3141 = vmatpush.msra.mxu3 %v6373_v38  ;;  %3161 = vmatpush.msrb.mxu1 %v6453_v56 }
0x2648   :  { %3142 = vmatpush.msra.mxu3 %v6376_v6  ;;  %3162 = vmatpush.msrb.mxu1 %v6455_v40 }
0x264a   :  { %3143 = vmatpush.msra.mxu3 %v6380_v15  ;;  %3163 = vmatpush.msrb.mxu1 %v6461_v57 }
0x264c   :  { %3144 = vmatpush.msra.mxu3 %v6382_v39  ;;  %3164 = vmatpush.msrb.mxu1 %v6463_v26 }
0x264e   :  { %3145 = vmatpush.msra.mxu3 %v6385_v33  ;;  %3165 = vmatpush.msrb.mxu1 %v6467_v58 }
0x2650   :  { %3146 = vmatpush.msra.mxu3 %v6388_v8  ;;  %3166 = vmatpush.msrb.mxu1 %v6473_v49 }
0x2652   :  { %3147 = vmatpush.msra.mxu3 %v6392_v48  ;;  %3167 = vmatpush.msrb.mxu1 %v6479_v41 }
0x26c0   :  { %v2893_v4 = vpop.f32.mrf.mxu1 }
0x26c1   :  { %v2899_v52 = vadd.f32 %v2893_v4, %v2528_v14 }
0x26c3   :  { %5044 = vtanh.f32 %v2899_v52  ;;  %v4718_v5 = vmul.f32 -1.442695, %v2899_v52 }
0x26c6   :  { %v2873_v22 = vpop.f32.mrf.mxu3 }
0x26c7   :  { %v2897_v28 = vadd.f32 %v2873_v22, %v2442_v17 }
0x26c9   :  { %v5045_v12 = vpop.eup %5044  ;;  %5046 = vtanh.f32 %v2897_v28  ;;  %v4717_v44 = vmul.f32 -1.442695, %v2897_v28 }
0x26ca   :  { %2959 = vrot.lane.b32.xlu0 %v5045_v12, %s5374_s15 }
0x26cb   :  { %5048 = vpow2.f32 %v4717_v44 }
0x26cf   :  { %v5047_v27 = vpop.eup %5046 }
0x26d0   :  { %2922 = vrot.lane.b32.xlu2 %v5047_v27, %s5374_s15 }
0x26d1   :  { %v5049_v25 = vpop.eup %5048 }
0x26d2   :  { %v2903_v7 = vadd.f32 1.0, %v5049_v25 }
0x26d4   :  { %5050 = vrcp.f32 %v2903_v7  ;;  %v2915_v3 = vand.u32 2147483648, %v2903_v7  ;;  %vm2909_vm14 = vweird.f32 %v2903_v7  ;;  %v2913_v20 = vand.u32 2147483647, %v2903_v7 }
0x26d5   :  { %5052 = vpow2.f32 %v4718_v5 }
0x26d6   :  { %v2916_v37 = vor.u32 1.1754944e-38, %v2915_v3  ;;  %vm2914_vm1 = vcmp.eq.f32.partialorder %v2913_v20, 8.507059e+37 }
0x26da   :  { %v5051_v47 = vpop.eup %5050 }
0x26db   :  { %v2905_v50 = vmul.f32 %v5051_v47, %v2903_v7  ;;  %v5053_v43 = vpop.eup %5052  ;;  %vm2910_vm13 = vweird.f32 %v5051_v47 }
0x26dc   :  { %v2940_v60 = vadd.f32 1.0, %v5053_v43  ;;  %vm2911_vm15 = vmor %vm2909_vm14, %vm2910_vm13 }
0x26dd   :  { %v2906_v59 = vsub.f32 1.0, %v2905_v50 }
0x26de   :  { %5054 = vrcp.f32 %v2940_v60  ;;  %v2952_v22 = vand.u32 2147483648, %v2940_v60  ;;  %vm2946_vm3 = vweird.f32 %v2940_v60  ;;  %v2950_v28 = vand.u32 2147483647, %v2940_v60 }
0x26df   :  { %v2907_v32 = vmul.f32 %v5051_v47, %v2906_v59 }
0x26e0   :  { %v2953_v27 = vor.u32 1.1754944e-38, %v2952_v22  ;;  %vm2951_vm5 = vcmp.eq.f32.partialorder %v2950_v28, 8.507059e+37 }
0x26e1   :  { %v2908_v34 = vadd.f32 %v5051_v47, %v2907_v32 }
0x26e3   :  { %v2912_v1 = vsel %vm2911_vm15, %v5051_v47, %v2908_v34 }
0x26e4   :  { %v5055_v42 = vpop.eup %5054  ;;  %v2917_v14 = vsel %vm2914_vm1, %v2916_v37, %v2912_v1  ;;  %v2975_v1 = vstv %s6674_s28 }
0x26e5   :  { %v2942_v9 = vmul.f32 %v5055_v42, %v2940_v60  ;;  %vm2947_vm2 = vweird.f32 %v5055_v42  ;;  %v2920_v43 = vmul.f32 %v2917_v14, %v6599_v10  ;;  %v2979_v10 = vstv %s6672_s8 }
0x26e6   :  { %vm2948_vm4 = vmor %vm2946_vm3, %vm2947_vm2 }
0x26e7   :  { %v2943_v52 = vsub.f32 1.0, %v2942_v9 }
0x26e9   :  { %v2944_v16 = vmul.f32 %v5055_v42, %v2943_v52 }
0x26eb   :  { %v2945_v17 = vadd.f32 %v5055_v42, %v2944_v16 }
0x26ed   :  { %v2949_v12 = vsel %vm2948_vm4, %v5055_v42, %v2945_v17 }
0x26ee   :  { %v2954_v25 = vsel %vm2951_vm5, %v2953_v27, %v2949_v12 }
0x26ef   :  { %v2957_v5 = vmul.f32 %v2954_v25, %v6604_v19 }
0x272a   :  { %v2923_v13 = vpop.permute.xlu2 %2922 }
0x272b   :  { %v2925_v4 = vmul.f32 %v2923_v13, %v2917_v14 }
0x272d   :  { %2927 = vrot.lane.b32.xlu1 %v2925_v4, %s5374_s15 }
0x273c   :  { %v2960_v44 = vpop.permute.xlu0 %2959 }
0x273d   :  { %v2962_v7 = vmul.f32 %v2960_v44, %v2954_v25 }
0x273f   :  { %2964 = vrot.lane.b32.xlu2 %v2962_v7, %s5374_s15 }
0x2799   :  { %v2965_v47 = vpop.permute.xlu2 %2964 }
0x279a   :  { %v6663_v50 = vadd.f32 %v2965_v47, %v2957_v5 }
0x279c   :  { %5056 = vtanh.f32 %v6663_v50 }
0x279f   :  { %v2928_v59 = vpop.permute.xlu1 %2927 }
0x27a0   :  { %v6667_v60 = vadd.f32 %v2928_v59, %v2920_v43 }
0x27a2   :  { %v5057_v32 = vpop.eup %5056  ;;  %5058 = vtanh.f32 %v6667_v60 }
0x27a3   :  { %2970 = vrot.lane.b32.xlu1 %v5057_v32, %s5374_s15 }
0x27a8   :  { %v5059_v34 = vpop.eup %5058 }
0x27a9   :  { %2933 = vrot.lane.b32.xlu0 %v5059_v34, %s5374_s15 }
0x2815   :  { %v2971_v19 = vpop.permute.xlu1 %2970 }
0x2816   :  { %v2973_v3 = vmul.f32 %v2971_v19, %v2954_v25 }
0x2818   :  { %v2980_v20 = vmul.f32 %v2979_v10, %v2973_v3  ;;  %2987 = vrot.lane.b32.xlu0 %v2973_v3, %s5376_s16 }
0x281a   :  { %v6681_v42 = vadd.f32 %v2980_v20, %v6624_v36 }
0x281b   :  { %v2934_v37 = vpop.permute.xlu0 %2933 }
0x281c   :  { %v2936_v9 = vmul.f32 %v2934_v37, %v2917_v14 }
0x281e   :  { %v2976_v13 = vmul.f32 %v2975_v1, %v2936_v9  ;;  %2983 = vrot.lane.b32.xlu2 %v2936_v9, %s5375_s4 }
0x2820   :  { %v6688_v4 = vadd.f32 %v2976_v13, %v6634_v2 }
0x2878   :  { %v2984_v52 = vpop.permute.xlu2 %2983 }
0x288a   :  { %v2988_v16 = vpop.permute.xlu0 %2987 }
0x288b   :  { %v2990_v17 = vsel %vm567_vm10, %v2984_v52, %v2988_v16 }
0x288c   :  { %4721 = vmatmul.msk.f32.vlgmr.msrb.gmra.mxu3 %vm119_vm0, %v2990_v17  ;;  %4722 = vmatmul.msk.f32.vlgmr.msra.gmra.mxu1 %vm119_vm0, %v2990_v17 }
0x288d   :  { %3278 = vmatpush.msrb.mxu3 %v6371_v0  ;;  %3298 = vmatpush.msra.mxu1 %v6447_v53  ;;  %v2525_v0 = vadd.f32 %v6544_v31, %v6550_v62 }
0x288f   :  { %3279 = vmatpush.msrb.mxu3 %v6373_v38  ;;  %3299 = vmatpush.msra.mxu1 %v6453_v56 }
0x2891   :  { %3280 = vmatpush.msrb.mxu3 %v6376_v6  ;;  %3300 = vmatpush.msra.mxu1 %v6455_v40 }
0x2893   :  { %3281 = vmatpush.msrb.mxu3 %v6380_v15  ;;  %3301 = vmatpush.msra.mxu1 %v6461_v57  ;;  %v2444_v15 = vpop.f32.mrf.mxu2 }
0x2895   :  { %3282 = vmatpush.msrb.mxu3 %v6382_v39  ;;  %3302 = vmatpush.msra.mxu1 %v6463_v26  ;;  %v2445_v39 = vadd.f32 %v2444_v15, %v6522_v35 }
0x2897   :  { %3283 = vmatpush.msrb.mxu3 %v6385_v33  ;;  %3303 = vmatpush.msra.mxu1 %v6467_v58 }
0x2899   :  { %3284 = vmatpush.msrb.mxu3 %v6388_v8  ;;  %3304 = vmatpush.msra.mxu1 %v6473_v49 }
0x289b   :  { %3285 = vmatpush.msrb.mxu3 %v6392_v48  ;;  %3305 = vmatpush.msra.mxu1 %v6479_v41 }
0x2909   :  { %v3031_v38 = vpop.f32.mrf.mxu1 }
0x290a   :  { %v3037_v6 = vadd.f32 %v3031_v38, %v2525_v0 }
0x290c   :  { %5060 = vtanh.f32 %v3037_v6  ;;  %v4724_v48 = vmul.f32 -1.442695, %v3037_v6 }
0x290f   :  { %v3011_v33 = vpop.f32.mrf.mxu3 }
0x2910   :  { %v3035_v36 = vadd.f32 %v3011_v33, %v2445_v39 }
0x2912   :  { %v5061_v2 = vpop.eup %5060  ;;  %5062 = vtanh.f32 %v3035_v36  ;;  %v4723_v12 = vmul.f32 -1.442695, %v3035_v36 }
0x2913   :  { %3097 = vrot.lane.b32.xlu2 %v5061_v2, %s5374_s15  ;;  %5064 = vpow2.f32 %v4724_v48 }
0x2918   :  { %v5063_v8 = vpop.eup %5062 }
0x2919   :  { %3060 = vrot.lane.b32.xlu1 %v5063_v8, %s5374_s15  ;;  %v5065_v14 = vpop.eup %5064 }
0x291a   :  { %v3078_v22 = vadd.f32 1.0, %v5065_v14 }
0x291c   :  { %5066 = vrcp.f32 %v3078_v22  ;;  %v3090_v7 = vand.u32 2147483648, %v3078_v22  ;;  %vm3084_vm7 = vweird.f32 %v3078_v22  ;;  %v3088_v47 = vand.u32 2147483647, %v3078_v22 }
0x291d   :  { %5068 = vpow2.f32 %v4723_v12 }
0x291e   :  { %v3091_v32 = vor.u32 1.1754944e-38, %v3090_v7  ;;  %vm3089_vm9 = vcmp.eq.f32.partialorder %v3088_v47, 8.507059e+37 }
0x2922   :  { %v5067_v31 = vpop.eup %5066 }
0x2923   :  { %v3080_v28 = vmul.f32 %v5067_v31, %v3078_v22  ;;  %vm3085_vm6 = vweird.f32 %v5067_v31  ;;  %v5069_v5 = vpop.eup %5068 }
0x2924   :  { %vm3086_vm8 = vmor %vm3084_vm7, %vm3085_vm6  ;;  %v3041_v59 = vadd.f32 1.0, %v5069_v5 }
0x2925   :  { %v3081_v27 = vsub.f32 1.0, %v3080_v28 }
0x2926   :  { %5070 = vrcp.f32 %v3041_v59  ;;  %v3053_v16 = vand.u32 2147483648, %v3041_v59  ;;  %vm3047_vm12 = vweird.f32 %v3041_v59  ;;  %v3051_v17 = vand.u32 2147483647, %v3041_v59 }
0x2927   :  { %v3082_v44 = vmul.f32 %v5067_v31, %v3081_v27 }
0x2928   :  { %v3054_v38 = vor.u32 1.1754944e-38, %v3053_v16  ;;  %vm3052_vm14 = vcmp.eq.f32.partialorder %v3051_v17, 8.507059e+37 }
0x2929   :  { %v3083_v25 = vadd.f32 %v5067_v31, %v3082_v44  ;;  %v3113_v44 = vstv %s6728_s1 }
0x292b   :  { %v3087_v43 = vsel %vm3086_vm8, %v5067_v31, %v3083_v25 }
0x292c   :  { %v3092_v19 = vsel %vm3089_vm9, %v3091_v32, %v3087_v43  ;;  %v5071_v20 = vpop.eup %5070 }
0x292d   :  { %v3043_v37 = vmul.f32 %v5071_v20, %v3041_v59  ;;  %vm3048_vm11 = vweird.f32 %v5071_v20  ;;  %v3095_v33 = vmul.f32 %v3092_v19, %v6663_v50  ;;  %v3117_v50 = vstv %s6726_s29 }
0x292e   :  { %vm3049_vm13 = vmor %vm3047_vm12, %vm3048_vm11 }
0x292f   :  { %v3044_v9 = vsub.f32 1.0, %v3043_v37  ;;  %v2447_v37 = vpop.f32.mrf.mxu2 }
0x2931   :  { %v3045_v13 = vmul.f32 %v5071_v20, %v3044_v9 }
0x2933   :  { %v3046_v52 = vadd.f32 %v5071_v20, %v3045_v13 }
0x2935   :  { %v3050_v0 = vsel %vm3049_vm13, %v5071_v20, %v3046_v52 }
0x2936   :  { %v3055_v15 = vsel %vm3052_vm14, %v3054_v38, %v3050_v0 }
0x2937   :  { %v3058_v48 = vmul.f32 %v3055_v15, %v6667_v60 }
0x296d   :  { %v3098_v34 = vpop.permute.xlu2 %3097 }
0x296e   :  { %v3100_v3 = vmul.f32 %v3098_v34, %v3092_v19  ;;  %v6751_v34 = vld [vmem:[#allocation8 + $0x60] sm:$0xff] }
0x2970   :  { %3102 = vrot.lane.b32.xlu1 %v3100_v3, %s5374_s15  ;;  %v6763_v3 = vld [vmem:[#allocation8 + $0x30] sm:$0xff] }
0x298b   :  { %v3061_v6 = vpop.permute.xlu1 %3060 }
0x298c   :  { %v3063_v39 = vmul.f32 %v3061_v6, %v3055_v15 }
0x298e   :  { %3065 = vrot.lane.b32.xlu0 %v3063_v39, %s5374_s15 }
0x29e2   :  { %v3103_v36 = vpop.permute.xlu1 %3102 }
0x29e3   :  { %v6717_v2 = vadd.f32 %v3103_v36, %v3095_v33 }
0x29e5   :  { %5072 = vtanh.f32 %v6717_v2 }
0x29eb   :  { %v5073_v8 = vpop.eup %5072 }
0x29ec   :  { %3108 = vrot.lane.b32.xlu0 %v5073_v8, %s5374_s15 }
0x2a00   :  { %v3066_v14 = vpop.permute.xlu0 %3065 }
0x2a01   :  { %v6722_v22 = vadd.f32 %v3066_v14, %v3058_v48 }
0x2a03   :  { %5074 = vtanh.f32 %v6722_v22 }
0x2a09   :  { %v5075_v31 = vpop.eup %5074 }
0x2a0a   :  { %3071 = vrot.lane.b32.xlu2 %v5075_v31, %s5374_s15 }
0x2a5e   :  { %v3109_v28 = vpop.permute.xlu0 %3108 }
0x2a5f   :  { %v3111_v12 = vmul.f32 %v3109_v28, %v3092_v19  ;;  %v6759_v19 = vld [vmem:[#allocation8 + $0x40] sm:$0xff] }
0x2a61   :  { %v3118_v60 = vmul.f32 %v3117_v50, %v3111_v12  ;;  %3125 = vrot.lane.b32.xlu2 %v3111_v12, %s5376_s16 }
0x2a63   :  { %v6735_v27 = vadd.f32 %v3118_v60, %v6681_v42  ;;  %v6747_v42 = vld [vmem:[#allocation8 + $0x70] sm:$0xff] }
0x2a64   :  { %v3072_v25 = vpop.permute.xlu2 %3071 }
0x2a65   :  { %v3074_v7 = vmul.f32 %v3072_v25, %v3055_v15 }
0x2a67   :  { %v3114_v5 = vmul.f32 %v3113_v44, %v3074_v7  ;;  %3121 = vrot.lane.b32.xlu1 %v3074_v7, %s5375_s4 }
0x2a69   :  { %v6742_v47 = vadd.f32 %v3114_v5, %v6688_v4  ;;  %v6755_v4 = vld [vmem:[#allocation8 + $0x50] sm:$0xff] }
0x2abb   :  { %v3126_v43 = vpop.permute.xlu2 %3125 }
0x2ad9   :  { %v3122_v59 = vpop.permute.xlu1 %3121 }
0x2ada   :  { %v3128_v32 = vsel %vm567_vm10, %v3122_v59, %v3126_v43 }
0x2adb   :  { %4727 = vmatmul.msk.f32.vlgmr.msra.gmra.mxu3 %vm119_vm0, %v3128_v32  ;;  %4728 = vmatmul.msk.f32.vlgmr.msrb.gmra.mxu1 %vm119_vm0, %v3128_v32 }
0x2adc   :  { %3416 = vmatpush.msra.mxu3 %v6747_v42  ;;  %3436 = vmatpush.msrb.mxu1 %v6447_v53  ;;  %v6767_v53 = vld [vmem:[#allocation8 + $0x20] sm:$0xff] }
0x2ade   :  { %3417 = vmatpush.msra.mxu3 %v6751_v34  ;;  %3437 = vmatpush.msrb.mxu1 %v6453_v56  ;;  %v6771_v56 = vld [vmem:[#allocation8 + $0x10] sm:$0xff] }
0x2ae0   :  { %3418 = vmatpush.msra.mxu3 %v6755_v4  ;;  %3438 = vmatpush.msrb.mxu1 %v6455_v40  ;;  %v6775_v40 = vld [vmem:[#allocation8] sm:$0xff] }
0x2ae2   :  { %3419 = vmatpush.msra.mxu3 %v6759_v19  ;;  %3439 = vmatpush.msrb.mxu1 %v6461_v57  ;;  %v2522_v57 = vadd.f32 %v6542_v61, %v6550_v62 }
0x2ae4   :  { %3420 = vmatpush.msra.mxu3 %v6763_v3  ;;  %3440 = vmatpush.msrb.mxu1 %v6463_v26 }
0x2ae6   :  { %3421 = vmatpush.msra.mxu3 %v6767_v53  ;;  %3441 = vmatpush.msrb.mxu1 %v6467_v58  ;;  %v2448_v58 = vadd.f32 %v2447_v37, %v6522_v35 }
0x2ae8   :  { %3422 = vmatpush.msra.mxu3 %v6771_v56  ;;  %3442 = vmatpush.msrb.mxu1 %v6473_v49 }
0x2aea   :  { %3423 = vmatpush.msra.mxu3 %v6775_v40  ;;  %3443 = vmatpush.msrb.mxu1 %v6479_v41 }
0x2b58   :  { %v3169_v26 = vpop.f32.mrf.mxu1 }
0x2b59   :  { %v3175_v20 = vadd.f32 %v3169_v26, %v2522_v57 }
0x2b5b   :  { %5076 = vtanh.f32 %v3175_v20  ;;  %v4730_v16 = vmul.f32 -1.442695, %v3175_v20 }
0x2b5e   :  { %v3149_v9 = vpop.f32.mrf.mxu3 }
0x2b5f   :  { %v3173_v13 = vadd.f32 %v3149_v9, %v2448_v58 }
0x2b61   :  { %v5077_v52 = vpop.eup %5076  ;;  %5078 = vtanh.f32 %v3173_v13  ;;  %v4729_v41 = vmul.f32 -1.442695, %v3173_v13 }
0x2b62   :  { %3235 = vrot.lane.b32.xlu1 %v5077_v52, %s5374_s15  ;;  %5080 = vpow2.f32 %v4730_v16 }
0x2b63   :  { %5082 = vpow2.f32 %v4729_v41 }
0x2b67   :  { %v5079_v49 = vpop.eup %5078 }
0x2b68   :  { %3198 = vrot.lane.b32.xlu0 %v5079_v49, %s5374_s15  ;;  %v5081_v17 = vpop.eup %5080 }
0x2b69   :  { %v3216_v61 = vadd.f32 1.0, %v5081_v17  ;;  %v5083_v0 = vpop.eup %5082 }
0x2b6a   :  { %v3179_v38 = vadd.f32 1.0, %v5083_v0 }
0x2b6b   :  { %5084 = vrcp.f32 %v3216_v61  ;;  %v3228_v31 = vand.u32 2147483648, %v3216_v61  ;;  %vm3222_vm1 = vweird.f32 %v3216_v61  ;;  %v3226_v28 = vand.u32 2147483647, %v3216_v61 }
0x2b6c   :  { %5086 = vrcp.f32 %v3179_v38  ;;  %v3191_v59 = vand.u32 2147483648, %v3179_v38  ;;  %vm3185_vm5 = vweird.f32 %v3179_v38  ;;  %v3189_v57 = vand.u32 2147483647, %v3179_v38 }
0x2b6d   :  { %v3229_v25 = vor.u32 1.1754944e-38, %v3228_v31  ;;  %vm3227_vm3 = vcmp.eq.f32.partialorder %v3226_v28, 8.507059e+37 }
0x2b6e   :  { %v3192_v20 = vor.u32 1.1754944e-38, %v3191_v59  ;;  %vm3190_vm7 = vcmp.eq.f32.partialorder %v3189_v57, 8.507059e+37  ;;  %v2519_v59 = vadd.f32 %v6540_v21, %v6550_v62 }
0x2b71   :  { %v5085_v6 = vpop.eup %5084 }
0x2b72   :  { %v3218_v15 = vmul.f32 %v5085_v6, %v3216_v61  ;;  %v5087_v39 = vpop.eup %5086  ;;  %vm3223_vm15 = vweird.f32 %v5085_v6 }
0x2b73   :  { %v3181_v36 = vmul.f32 %v5087_v39, %v3179_v38  ;;  %vm3224_vm2 = vmor %vm3222_vm1, %vm3223_vm15  ;;  %vm3186_vm4 = vweird.f32 %v5087_v39 }
0x2b74   :  { %v3219_v33 = vsub.f32 1.0, %v3218_v15  ;;  %vm3187_vm6 = vmor %vm3185_vm5, %vm3186_vm4 }
0x2b75   :  { %v3182_v48 = vsub.f32 1.0, %v3181_v36 }
0x2b76   :  { %v3220_v8 = vmul.f32 %v5085_v6, %v3219_v33 }
0x2b77   :  { %v3183_v12 = vmul.f32 %v5087_v39, %v3182_v48 }
0x2b78   :  { %v3221_v14 = vadd.f32 %v5085_v6, %v3220_v8 }
0x2b79   :  { %v3184_v7 = vadd.f32 %v5087_v39, %v3183_v12  ;;  %v6822_v12 = vld [vmem:[#allocation8 + $0x68] sm:$0xff] }
0x2b7a   :  { %v3225_v60 = vsel %vm3224_vm2, %v5085_v6, %v3221_v14 }
0x2b7b   :  { %v3230_v43 = vsel %vm3227_vm3, %v3229_v25, %v3225_v60  ;;  %v3188_v26 = vsel %vm3187_vm6, %v5087_v39, %v3184_v7  ;;  %v3251_v39 = vstv %s6798_s9  ;;  %v6830_v60 = vld [vmem:[#allocation8 + $0x48] sm:$0xff]  ;;  %v6834_v25 = vld [vmem:[#allocation8 + $0x38] sm:$0xff] }
0x2b7c   :  { %v3193_v58 = vsel %vm3190_vm7, %v3192_v20, %v3188_v26  ;;  %v3233_v41 = vmul.f32 %v3230_v43, %v6717_v2  ;;  %v6838_v7 = vld [vmem:[#allocation8 + $0x28] sm:$0xff]  ;;  %v2450_v26 = vpop.f32.mrf.mxu2 }
0x2b7d   :  { %v3196_v13 = vmul.f32 %v3193_v58, %v6722_v22  ;;  %v3255_v22 = vstv %s6796_s30  ;;  %v2451_v20 = vadd.f32 %v2450_v26, %v6522_v35 }
0x2bd4   :  { %v3236_v5 = vpop.permute.xlu1 %3235 }
0x2bd5   :  { %v3238_v32 = vmul.f32 %v3236_v5, %v3230_v43  ;;  %v6842_v5 = vld [vmem:[#allocation8 + $0x18] sm:$0xff] }
0x2bd7   :  { %3240 = vrot.lane.b32.xlu0 %v3238_v32, %s5374_s15 }
0x2bda   :  { %v3199_v37 = vpop.permute.xlu0 %3198 }
0x2bdb   :  { %v3201_v9 = vmul.f32 %v3199_v37, %v3193_v58 }
0x2bdd   :  { %3203 = vrot.lane.b32.xlu2 %v3201_v9, %s5374_s15 }
0x2c37   :  { %v3204_v52 = vpop.permute.xlu2 %3203 }
0x2c38   :  { %v6787_v49 = vadd.f32 %v3204_v52, %v3196_v13 }
0x2c3a   :  { %5088 = vtanh.f32 %v6787_v49 }
0x2c40   :  { %v5089_v16 = vpop.eup %5088 }
0x2c41   :  { %3209 = vrot.lane.b32.xlu1 %v5089_v16, %s5374_s15 }
0x2c49   :  { %v3241_v17 = vpop.permute.xlu0 %3240 }
0x2c4a   :  { %v6792_v61 = vadd.f32 %v3241_v17, %v3233_v41 }
0x2c4c   :  { %5090 = vtanh.f32 %v6792_v61 }
0x2c52   :  { %v5091_v0 = vpop.eup %5090 }
0x2c53   :  { %3246 = vrot.lane.b32.xlu2 %v5091_v0, %s5374_s15 }
0x2cad   :  { %v3247_v38 = vpop.permute.xlu2 %3246 }
0x2cae   :  { %v3249_v6 = vmul.f32 %v3247_v38, %v3230_v43  ;;  %v6846_v43 = vld [vmem:[#allocation8 + $0x8] sm:$0xff] }
0x2cb0   :  { %v3256_v2 = vmul.f32 %v3255_v22, %v3249_v6  ;;  %3263 = vrot.lane.b32.xlu1 %v3249_v6, %s5376_s16 }
0x2cb2   :  { %v6805_v15 = vadd.f32 %v3256_v2, %v6735_v27  ;;  %v6818_v27 = vld [vmem:[#allocation8 + $0x78] sm:$0xff] }
0x2cb3   :  { %v3210_v33 = vpop.permute.xlu1 %3209 }
0x2cb4   :  { %v3212_v36 = vmul.f32 %v3210_v33, %v3193_v58 }
0x2cb6   :  { %v3252_v8 = vmul.f32 %v3251_v39, %v3212_v36  ;;  %3259 = vrot.lane.b32.xlu0 %v3212_v36, %s5375_s4 }
0x2cb8   :  { %v6812_v48 = vadd.f32 %v3252_v8, %v6742_v47  ;;  %v6826_v47 = vld [vmem:[#allocation8 + $0x58] sm:$0xff] }
0x2d22   :  { %v3264_v14 = vpop.permute.xlu1 %3263 }
0x2d28   :  { %v3260_v31 = vpop.permute.xlu0 %3259 }
0x2d29   :  { %v3266_v28 = vsel %vm567_vm10, %v3260_v31, %v3264_v14 }
0x2d2a   :  { %4733 = vmatmul.msk.f32.vlgmr.msrb.gmra.mxu3 %vm119_vm0, %v3266_v28  ;;  %4734 = vmatmul.msk.f32.vlgmr.msra.gmra.mxu1 %vm119_vm0, %v3266_v28 }
0x2d2b   :  { %3688 = vmatpush.msrb.mxu3 %v6747_v42  ;;  %3708 = vmatpush.msra.mxu1 %v6818_v27 }
0x2d2d   :  { %3689 = vmatpush.msrb.mxu3 %v6751_v34  ;;  %3709 = vmatpush.msra.mxu1 %v6822_v12 }
0x2d2f   :  { %3690 = vmatpush.msrb.mxu3 %v6755_v4  ;;  %3710 = vmatpush.msra.mxu1 %v6826_v47 }
0x2d31   :  { %3691 = vmatpush.msrb.mxu3 %v6759_v19  ;;  %3711 = vmatpush.msra.mxu1 %v6830_v60 }
0x2d33   :  { %3692 = vmatpush.msrb.mxu3 %v6763_v3  ;;  %3712 = vmatpush.msra.mxu1 %v6834_v25 }
0x2d35   :  { %3693 = vmatpush.msrb.mxu3 %v6767_v53  ;;  %3713 = vmatpush.msra.mxu1 %v6838_v7 }
0x2d37   :  { %3694 = vmatpush.msrb.mxu3 %v6771_v56  ;;  %3714 = vmatpush.msra.mxu1 %v6842_v5 }
0x2d39   :  { %3695 = vmatpush.msrb.mxu3 %v6775_v40  ;;  %3715 = vmatpush.msra.mxu1 %v6846_v43 }
0x2da7   :  { %v3307_v32 = vpop.f32.mrf.mxu1 }
0x2da8   :  { %v3313_v57 = vadd.f32 %v3307_v32, %v2519_v59 }
0x2daa   :  { %5092 = vtanh.f32 %v3313_v57  ;;  %v4736_v21 = vmul.f32 -1.442695, %v3313_v57 }
0x2dad   :  { %v3287_v37 = vpop.f32.mrf.mxu3 }
0x2dae   :  { %v3311_v58 = vadd.f32 %v3287_v37, %v2451_v20 }
0x2db0   :  { %v5093_v9 = vpop.eup %5092  ;;  %5094 = vtanh.f32 %v3311_v58  ;;  %v4735_v52 = vmul.f32 -1.442695, %v3311_v58 }
0x2db1   :  { %3373 = vrot.lane.b32.xlu0 %v5093_v9, %s5374_s15 }
0x2db2   :  { %5096 = vpow2.f32 %v4735_v52 }
0x2db6   :  { %v5095_v13 = vpop.eup %5094 }
0x2db7   :  { %3336 = vrot.lane.b32.xlu2 %v5095_v13, %s5374_s15 }
0x2db8   :  { %v5097_v16 = vpop.eup %5096 }
0x2db9   :  { %v3317_v41 = vadd.f32 1.0, %v5097_v16 }
0x2dbb   :  { %5098 = vrcp.f32 %v3317_v41  ;;  %v3329_v8 = vand.u32 2147483648, %v3317_v41  ;;  %vm3323_vm9 = vweird.f32 %v3317_v41  ;;  %v3327_v14 = vand.u32 2147483647, %v3317_v41 }
0x2dbc   :  { %5100 = vpow2.f32 %v4736_v21 }
0x2dbd   :  { %v3330_v59 = vor.u32 1.1754944e-38, %v3329_v8  ;;  %vm3328_vm12 = vcmp.eq.f32.partialorder %v3327_v14, 8.507059e+37 }
0x2dc1   :  { %v5099_v17 = vpop.eup %5098 }
0x2dc2   :  { %v3319_v0 = vmul.f32 %v5099_v17, %v3317_v41  ;;  %v5101_v38 = vpop.eup %5100  ;;  %vm3324_vm8 = vweird.f32 %v5099_v17 }
0x2dc3   :  { %v3354_v2 = vadd.f32 1.0, %v5101_v38  ;;  %vm3325_vm11 = vmor %vm3323_vm9, %vm3324_vm8 }
0x2dc4   :  { %v3320_v6 = vsub.f32 1.0, %v3319_v0 }
0x2dc5   :  { %5102 = vrcp.f32 %v3354_v2  ;;  %v3366_v13 = vand.u32 2147483648, %v3354_v2  ;;  %vm3360_vm14 = vweird.f32 %v3354_v2  ;;  %v3364_v52 = vand.u32 2147483647, %v3354_v2 }
0x2dc6   :  { %v3321_v33 = vmul.f32 %v5099_v17, %v3320_v6 }
0x2dc7   :  { %v3367_v41 = vor.u32 1.1754944e-38, %v3366_v13  ;;  %vm3365_vm1 = vcmp.eq.f32.partialorder %v3364_v52, 8.507059e+37 }
0x2dc8   :  { %v3322_v36 = vadd.f32 %v5099_v17, %v3321_v33 }
0x2dca   :  { %v3326_v28 = vsel %vm3325_vm11, %v5099_v17, %v3322_v36 }
0x2dcb   :  { %v5103_v31 = vpop.eup %5102  ;;  %v3331_v26 = vsel %vm3328_vm12, %v3330_v59, %v3326_v28 }
0x2dcc   :  { %v3356_v32 = vmul.f32 %v5103_v31, %v3354_v2  ;;  %vm3361_vm13 = vweird.f32 %v5103_v31  ;;  %v3334_v36 = vmul.f32 %v3331_v26, %v6787_v49  ;;  %v3393_v49 = vstv %s6866_s17 }
0x2dcd   :  { %vm3362_vm15 = vmor %vm3360_vm14, %vm3361_vm13 }
0x2dce   :  { %v3357_v37 = vsub.f32 1.0, %v3356_v32 }
0x2dd0   :  { %v3358_v58 = vmul.f32 %v5103_v31, %v3357_v37 }
0x2dd2   :  { %v3359_v9 = vadd.f32 %v5103_v31, %v3358_v58 }
0x2dd4   :  { %v3363_v16 = vsel %vm3362_vm15, %v5103_v31, %v3359_v9 }
0x2dd5   :  { %v3368_v17 = vsel %vm3365_vm1, %v3367_v41, %v3363_v16  ;;  %v2453_v41 = vpop.f32.mrf.mxu2 }
0x2dd6   :  { %v3371_v38 = vmul.f32 %v3368_v17, %v6792_v61 }
0x2e11   :  { %v3337_v57 = vpop.permute.xlu2 %3336 }
0x2e12   :  { %v3339_v20 = vmul.f32 %v3337_v57, %v3331_v26  ;;  %v3389_v57 = vstv %s6868_s3 }
0x2e14   :  { %3341 = vrot.lane.b32.xlu1 %v3339_v20, %s5374_s15 }
0x2e23   :  { %v3374_v21 = vpop.permute.xlu0 %3373 }
0x2e24   :  { %v3376_v0 = vmul.f32 %v3374_v21, %v3368_v17  ;;  %v2454_v21 = vadd.f32 %v2453_v41, %v6522_v35 }
0x2e26   :  { %3378 = vrot.lane.b32.xlu2 %v3376_v0, %s5374_s15 }
0x2e80   :  { %v3379_v6 = vpop.permute.xlu2 %3378 }
0x2e81   :  { %v6857_v33 = vadd.f32 %v3379_v6, %v3371_v38 }
0x2e83   :  { %5104 = vtanh.f32 %v6857_v33 }
0x2e86   :  { %v3342_v8 = vpop.permute.xlu1 %3341 }
0x2e87   :  { %v6861_v2 = vadd.f32 %v3342_v8, %v3334_v36 }
0x2e89   :  { %v5105_v14 = vpop.eup %5104  ;;  %5106 = vtanh.f32 %v6861_v2 }
0x2e8a   :  { %3384 = vrot.lane.b32.xlu1 %v5105_v14, %s5374_s15 }
0x2e8f   :  { %v5107_v31 = vpop.eup %5106 }
0x2e90   :  { %3347 = vrot.lane.b32.xlu0 %v5107_v31, %s5374_s15 }
0x2efc   :  { %v3385_v61 = vpop.permute.xlu1 %3384 }
0x2efd   :  { %v3387_v28 = vmul.f32 %v3385_v61, %v3368_v17 }
0x2eff   :  { %v3394_v59 = vmul.f32 %v3393_v49, %v3387_v28  ;;  %3401 = vrot.lane.b32.xlu0 %v3387_v28, %s5376_s16 }
0x2f01   :  { %v6875_v32 = vadd.f32 %v3394_v59, %v6805_v15  ;;  %v2516_v15 = vadd.f32 %v6538_v23, %v6550_v62 }
0x2f02   :  { %v3348_v20 = vpop.permute.xlu0 %3347 }
0x2f03   :  { %v3350_v37 = vmul.f32 %v3348_v20, %v3331_v26 }
0x2f05   :  { %v3390_v58 = vmul.f32 %v3389_v57, %v3350_v37  ;;  %3397 = vrot.lane.b32.xlu2 %v3350_v37, %s5375_s4 }
0x2f07   :  { %v6882_v9 = vadd.f32 %v3390_v58, %v6812_v48 }
0x2f5f   :  { %v3398_v13 = vpop.permute.xlu2 %3397 }
0x2f71   :  { %v3402_v52 = vpop.permute.xlu0 %3401 }
0x2f72   :  { %v3404_v16 = vsel %vm567_vm10, %v3398_v13, %v3402_v52 }
0x2f73   :  { %4739 = vmatmul.msk.f32.vlgmr.msra.gmra.mxu3 %vm119_vm0, %v3404_v16  ;;  %4740 = vmatmul.msk.f32.vlgmr.msrb.gmra.mxu1 %vm119_vm0, %v3404_v16 }
0x2f74   :  { %3956 = vmatpush.msra.mxu3 %v6747_v42  ;;  %3976 = vmatpush.msrb.mxu1 %v6818_v27 }
0x2f76   :  { %3957 = vmatpush.msra.mxu3 %v6751_v34  ;;  %3977 = vmatpush.msrb.mxu1 %v6822_v12 }
0x2f78   :  { %3958 = vmatpush.msra.mxu3 %v6755_v4  ;;  %3978 = vmatpush.msrb.mxu1 %v6826_v47 }
0x2f7a   :  { %3959 = vmatpush.msra.mxu3 %v6759_v19  ;;  %3979 = vmatpush.msrb.mxu1 %v6830_v60 }
0x2f7c   :  { %3960 = vmatpush.msra.mxu3 %v6763_v3  ;;  %3980 = vmatpush.msrb.mxu1 %v6834_v25 }
0x2f7e   :  { %3961 = vmatpush.msra.mxu3 %v6767_v53  ;;  %3981 = vmatpush.msrb.mxu1 %v6838_v7 }
0x2f80   :  { %3962 = vmatpush.msra.mxu3 %v6771_v56  ;;  %3982 = vmatpush.msrb.mxu1 %v6842_v5 }
0x2f82   :  { %3963 = vmatpush.msra.mxu3 %v6775_v40  ;;  %3983 = vmatpush.msrb.mxu1 %v6846_v43 }
0x2ff0   :  { %v3445_v48 = vpop.f32.mrf.mxu1 }
0x2ff1   :  { %v3451_v26 = vadd.f32 %v3445_v48, %v2516_v15 }
0x2ff3   :  { %5108 = vtanh.f32 %v3451_v26  ;;  %v4742_v36 = vmul.f32 -1.442695, %v3451_v26 }
0x2ff6   :  { %v3425_v17 = vpop.f32.mrf.mxu3 }
0x2ff7   :  { %v3449_v0 = vadd.f32 %v3425_v17, %v2454_v21 }
0x2ff9   :  { %v5109_v38 = vpop.eup %5108  ;;  %5110 = vtanh.f32 %v3449_v0  ;;  %v4741_v61 = vmul.f32 -1.442695, %v3449_v0 }
0x2ffa   :  { %3511 = vrot.lane.b32.xlu2 %v5109_v38, %s5374_s15  ;;  %5112 = vpow2.f32 %v4742_v36 }
0x2fff   :  { %v5111_v6 = vpop.eup %5110 }
0x3000   :  { %3474 = vrot.lane.b32.xlu1 %v5111_v6, %s5374_s15  ;;  %v5113_v8 = vpop.eup %5112 }
0x3001   :  { %v3492_v14 = vadd.f32 1.0, %v5113_v8 }
0x3003   :  { %5114 = vrcp.f32 %v3492_v14  ;;  %v3504_v37 = vand.u32 2147483648, %v3492_v14  ;;  %vm3498_vm3 = vweird.f32 %v3492_v14  ;;  %v3502_v13 = vand.u32 2147483647, %v3492_v14 }
0x3004   :  { %5116 = vpow2.f32 %v4741_v61 }
0x3005   :  { %v3505_v15 = vor.u32 1.1754944e-38, %v3504_v37  ;;  %vm3503_vm5 = vcmp.eq.f32.partialorder %v3502_v13, 8.507059e+37 }
0x3009   :  { %v5115_v23 = vpop.eup %5114 }
0x300a   :  { %v3494_v31 = vmul.f32 %v5115_v23, %v3492_v14  ;;  %vm3499_vm2 = vweird.f32 %v5115_v23  ;;  %v5117_v58 = vpop.eup %5116 }
0x300b   :  { %vm3500_vm4 = vmor %vm3498_vm3, %vm3499_vm2  ;;  %v3455_v16 = vadd.f32 1.0, %v5117_v58 }
0x300c   :  { %v3495_v28 = vsub.f32 1.0, %v3494_v31 }
0x300d   :  { %5118 = vrcp.f32 %v3455_v16  ;;  %v3467_v36 = vand.u32 2147483648, %v3455_v16  ;;  %vm3461_vm7 = vweird.f32 %v3455_v16  ;;  %v3465_v8 = vand.u32 2147483647, %v3455_v16 }
0x300e   :  { %v3496_v59 = vmul.f32 %v5115_v23, %v3495_v28 }
0x300f   :  { %vm3466_vm9 = vcmp.eq.f32.partialorder %v3465_v8, 8.507059e+37 }
0x3010   :  { %v3497_v20 = vadd.f32 %v5115_v23, %v3496_v59 }
0x3012   :  { %v3501_v52 = vsel %vm3500_vm4, %v5115_v23, %v3497_v20  ;;  %v3468_v23 = vor.u32 1.1754944e-38, %v3467_v36 }
0x3013   :  { %v3506_v26 = vsel %vm3503_vm5, %v3505_v15, %v3501_v52  ;;  %v5119_v21 = vpop.eup %5118 }
0x3014   :  { %v3457_v17 = vmul.f32 %v5119_v21, %v3455_v16  ;;  %vm3462_vm6 = vweird.f32 %v5119_v21  ;;  %v3509_v59 = vmul.f32 %v3506_v26, %v6857_v33  ;;  %v3531_v33 = vstv %s6920_s18 }
0x3015   :  { %vm3463_vm8 = vmor %vm3461_vm7, %vm3462_vm6 }
0x3016   :  { %v3458_v0 = vsub.f32 1.0, %v3457_v17  ;;  %v3527_v17 = vstv %s6922_s0 }
0x3018   :  { %v3459_v38 = vmul.f32 %v5119_v21, %v3458_v0 }
0x301a   :  { %v3460_v6 = vadd.f32 %v5119_v21, %v3459_v38 }
0x301c   :  { %v3464_v14 = vsel %vm3463_vm8, %v5119_v21, %v3460_v6 }
0x301d   :  { %v3469_v61 = vsel %vm3466_vm9, %v3468_v23, %v3464_v14 }
0x301e   :  { %v3472_v13 = vmul.f32 %v3469_v61, %v6861_v2 }
0x3054   :  { %v3512_v48 = vpop.permute.xlu2 %3511 }
0x3055   :  { %v3514_v41 = vmul.f32 %v3512_v48, %v3506_v26 }
0x3057   :  { %3516 = vrot.lane.b32.xlu1 %v3514_v41, %s5374_s15 }
0x3072   :  { %v3475_v31 = vpop.permute.xlu1 %3474 }
0x3073   :  { %v3477_v28 = vmul.f32 %v3475_v31, %v3469_v61 }
0x3075   :  { %3479 = vrot.lane.b32.xlu0 %v3477_v28, %s5374_s15 }
0x30c9   :  { %v3517_v20 = vpop.permute.xlu1 %3516 }
0x30ca   :  { %v6911_v37 = vadd.f32 %v3517_v20, %v3509_v59  ;;  %v2513_v20 = vadd.f32 %v6536_v55, %v6550_v62 }
0x30cc   :  { %5120 = vtanh.f32 %v6911_v37 }
0x30d2   :  { %v5121_v58 = vpop.eup %5120 }
0x30d3   :  { %3522 = vrot.lane.b32.xlu0 %v5121_v58, %s5374_s15 }
0x30e7   :  { %v3480_v52 = vpop.permute.xlu0 %3479 }
0x30e8   :  { %v6916_v16 = vadd.f32 %v3480_v52, %v3472_v13 }
0x30ea   :  { %5122 = vtanh.f32 %v6916_v16 }
0x30f0   :  { %v5123_v15 = vpop.eup %5122 }
0x30f1   :  { %3485 = vrot.lane.b32.xlu2 %v5123_v15, %s5374_s15 }
0x3145   :  { %v3523_v48 = vpop.permute.xlu0 %3522 }
0x3146   :  { %v3525_v41 = vmul.f32 %v3523_v48, %v3506_v26 }
0x3148   :  { %v3532_v2 = vmul.f32 %v3531_v33, %v3525_v41  ;;  %3539 = vrot.lane.b32.xlu2 %v3525_v41, %s5376_s16 }
0x314a   :  { %v6929_v21 = vadd.f32 %v3532_v2, %v6875_v32  ;;  %v2456_v32 = vpop.f32.mrf.mxu2 }
0x314b   :  { %v3486_v0 = vpop.permute.xlu2 %3485  ;;  %v2457_v52 = vadd.f32 %v2456_v32, %v6522_v35 }
0x314c   :  { %v3488_v38 = vmul.f32 %v3486_v0, %v3469_v61 }
0x314e   :  { %v3528_v6 = vmul.f32 %v3527_v17, %v3488_v38  ;;  %3535 = vrot.lane.b32.xlu1 %v3488_v38, %s5375_s4 }
0x3150   :  { %v6936_v36 = vadd.f32 %v3528_v6, %v6882_v9 }
0x3152   :  { %v6957_v9 = vpop.f32.mrf.mxu2 }
0x315a   :  { %v6959_v23 = vpop.f32.mrf.mxu2 }
0x3162   :  { %v6961_v31 = vpop.f32.mrf.mxu2 }
0x316a   :  { %v6963_v61 = vpop.f32.mrf.mxu2 }
0x3172   :  { %v6965_v28 = vpop.f32.mrf.mxu2 }
0x317a   :  { %v6967_v59 = vpop.f32.mrf.mxu2 }
0x31a2   :  { %v3540_v8 = vpop.permute.xlu2 %3539 }
0x31c0   :  { %v3536_v14 = vpop.permute.xlu1 %3535 }
0x31c1   :  { %v3542_v26 = vsel %vm567_vm10, %v3536_v14, %v3540_v8 }
0x31c2   :  { %4745 = vmatmul.msk.f32.vlgmr.msrb.gmra.mxu2 %vm119_vm0, %v3542_v26  ;;  %4746 = vmatmul.msk.f32.vlgmr.msrb.gmra.mxu0 %vm119_vm0, %v3542_v26 }
0x31c3   :  { %4090 = vmatpush.msrb.mxu2 %v6747_v42  ;;  %4110 = vmatpush.msrb.mxu0 %v6818_v27 }
0x31c5   :  { %4091 = vmatpush.msrb.mxu2 %v6751_v34  ;;  %4111 = vmatpush.msrb.mxu0 %v6822_v12 }
0x31c7   :  { %4092 = vmatpush.msrb.mxu2 %v6755_v4  ;;  %4112 = vmatpush.msrb.mxu0 %v6826_v47 }
0x31c9   :  { %4093 = vmatpush.msrb.mxu2 %v6759_v19  ;;  %4113 = vmatpush.msrb.mxu0 %v6830_v60 }
0x31cb   :  { %4094 = vmatpush.msrb.mxu2 %v6763_v3  ;;  %4114 = vmatpush.msrb.mxu0 %v6834_v25 }
0x31cd   :  { %4095 = vmatpush.msrb.mxu2 %v6767_v53  ;;  %4115 = vmatpush.msrb.mxu0 %v6838_v7 }
0x31cf   :  { %4096 = vmatpush.msrb.mxu2 %v6771_v56  ;;  %4116 = vmatpush.msrb.mxu0 %v6842_v5 }
0x31d1   :  { %4097 = vmatpush.msrb.mxu2 %v6775_v40  ;;  %4117 = vmatpush.msrb.mxu0 %v6846_v43 }
0x323f   :  { %v3583_v58 = vpop.f32.mrf.mxu0 }
0x3240   :  { %v3589_v13 = vadd.f32 %v3583_v58, %v2513_v20 }
0x3242   :  { %5124 = vtanh.f32 %v3589_v13  ;;  %v4748_v0 = vmul.f32 -1.442695, %v3589_v13 }
0x3245   :  { %v3563_v15 = vpop.f32.mrf.mxu2 }
0x3246   :  { %v3587_v48 = vadd.f32 %v3563_v15, %v2457_v52 }
0x3248   :  { %v5125_v41 = vpop.eup %5124  ;;  %5126 = vtanh.f32 %v3587_v48  ;;  %v4747_v38 = vmul.f32 -1.442695, %v3587_v48 }
0x3249   :  { %3649 = vrot.lane.b32.xlu1 %v5125_v41, %s5374_s15  ;;  %5128 = vpow2.f32 %v4748_v0 }
0x324a   :  { %5130 = vpow2.f32 %v4747_v38 }
0x324e   :  { %v5127_v2 = vpop.eup %5126 }
0x324f   :  { %3612 = vrot.lane.b32.xlu0 %v5127_v2, %s5374_s15  ;;  %v5129_v6 = vpop.eup %5128 }
0x3250   :  { %v3630_v55 = vadd.f32 1.0, %v5129_v6  ;;  %v5131_v8 = vpop.eup %5130 }
0x3251   :  { %v3593_v14 = vadd.f32 1.0, %v5131_v8 }
0x3252   :  { %5132 = vrcp.f32 %v3630_v55  ;;  %v3642_v2 = vand.u32 2147483648, %v3630_v55  ;;  %vm3636_vm12 = vweird.f32 %v3630_v55  ;;  %v3640_v13 = vand.u32 2147483647, %v3630_v55 }
0x3253   :  { %5134 = vrcp.f32 %v3593_v14  ;;  %v3605_v24 = vand.u32 2147483648, %v3593_v14  ;;  %vm3599_vm1 = vweird.f32 %v3593_v14 }
0x3254   :  { %v3643_v38 = vor.u32 1.1754944e-38, %v3642_v2  ;;  %vm3641_vm14 = vcmp.eq.f32.partialorder %v3640_v13, 8.507059e+37 }
0x3258   :  { %v5133_v26 = vpop.eup %5132 }
0x3259   :  { %v3632_v32 = vmul.f32 %v5133_v26, %v3630_v55  ;;  %v5135_v20 = vpop.eup %5134  ;;  %vm3637_vm11 = vweird.f32 %v5133_v26 }
0x325a   :  { %v3595_v52 = vmul.f32 %v5135_v20, %v3593_v14  ;;  %vm3638_vm13 = vmor %vm3636_vm12, %vm3637_vm11  ;;  %vm3600_vm15 = vweird.f32 %v5135_v20 }
0x325b   :  { %v3633_v58 = vsub.f32 1.0, %v3632_v32  ;;  %v3603_v32 = vand.u32 2147483647, %v3593_v14  ;;  %vm3601_vm2 = vmor %vm3599_vm1, %vm3600_vm15 }
0x325c   :  { %v3596_v41 = vsub.f32 1.0, %v3595_v52  ;;  %v3606_v52 = vor.u32 1.1754944e-38, %v3605_v24 }
0x325d   :  { %v3634_v15 = vmul.f32 %v5133_v26, %v3633_v58  ;;  %vm3604_vm3 = vcmp.eq.f32.partialorder %v3603_v32, 8.507059e+37 }
0x325e   :  { %v3597_v48 = vmul.f32 %v5135_v20, %v3596_v41 }
0x325f   :  { %v3635_v63 = vadd.f32 %v5133_v26, %v3634_v15 }
0x3260   :  { %v3598_v6 = vadd.f32 %v5135_v20, %v3597_v48 }
0x3261   :  { %v3639_v0 = vsel %vm3638_vm13, %v5133_v26, %v3635_v63 }
0x3262   :  { %v3644_v11 = vsel %vm3641_vm14, %v3643_v38, %v3639_v0  ;;  %v3602_v58 = vsel %vm3601_vm2, %v5135_v20, %v3598_v6 }
0x3263   :  { %v3607_v15 = vsel %vm3604_vm3, %v3606_v52, %v3602_v58  ;;  %v3647_v24 = vmul.f32 %v3644_v11, %v6911_v37 }
0x3264   :  { %v3610_v63 = vmul.f32 %v3607_v15, %v6916_v16 }
0x32bb   :  { %v3650_v8 = vpop.permute.xlu1 %3649 }
0x32bc   :  { %v3652_v29 = vmul.f32 %v3650_v8, %v3644_v11 }
0x32be   :  { %3654 = vrot.lane.b32.xlu0 %v3652_v29, %s5374_s15 }
0x32c1   :  { %v3613_v55 = vpop.permute.xlu0 %3612 }
0x32c2   :  { %v3615_v41 = vmul.f32 %v3613_v55, %v3607_v15 }
0x32c4   :  { %3617 = vrot.lane.b32.xlu2 %v3615_v41, %s5374_s15 }
0x331e   :  { %v3618_v26 = vpop.permute.xlu2 %3617 }
0x331f   :  { %v6977_v2 = vadd.f32 %v3618_v26, %v3610_v63 }
0x3321   :  { %5136 = vtanh.f32 %v6977_v2 }
0x3327   :  { %v5137_v14 = vpop.eup %5136 }
0x3328   :  { %3623 = vrot.lane.b32.xlu1 %v5137_v14, %s5374_s15 }
0x3330   :  { %v3655_v29 = vpop.permute.xlu0 %3654 }
0x3331   :  { %v6982_v20 = vadd.f32 %v3655_v29, %v3647_v24 }
0x3333   :  { %5138 = vtanh.f32 %v6982_v20 }
0x3339   :  { %v5139_v13 = vpop.eup %5138 }
0x333a   :  { %3660 = vrot.lane.b32.xlu2 %v5139_v13, %s5374_s15 }
0x3394   :  { %v3661_v16 = vpop.permute.xlu2 %3660 }
0x3395   :  { %v3663_v48 = vmul.f32 %v3661_v16, %v3644_v11 }
0x3397   :  { %v3666_v0 = vmul.f32 %v3663_v48, %v3527_v17  ;;  %3673 = vrot.lane.b32.xlu1 %v3663_v48, %s5376_s16 }
0x3399   :  { %v6990_v38 = vadd.f32 %v3666_v0, %v6929_v21 }
0x339a   :  { %v3624_v6 = vpop.permute.xlu1 %3623 }
0x339b   :  { %v3626_v8 = vmul.f32 %v3624_v6, %v3607_v15 }
0x339d   :  { %v3664_v37 = vmul.f32 %v3626_v8, %v3531_v33  ;;  %3669 = vrot.lane.b32.xlu0 %v3626_v8, %s5375_s4 }
0x339f   :  { %v6996_v32 = vadd.f32 %v3664_v37, %v6936_v36 }
0x3409   :  { %v3674_v58 = vpop.permute.xlu1 %3673 }
0x340f   :  { %v3670_v52 = vpop.permute.xlu0 %3669 }
0x3410   :  { %v3676_v11 = vsel %vm567_vm10, %v3670_v52, %v3674_v58 }
0x3411   :  { %4749 = vmatmul.msk.f32.vlgmr.msrb.gmra.mxu3 %vm119_vm0, %v3676_v11  ;;  %4750 = vmatmul.msk.f32.vlgmr.msra.gmra.mxu1 %vm119_vm0, %v3676_v11 }
0x3412   :  { %4224 = vmatpush.msrb.mxu3 %v6747_v42  ;;  %4244 = vmatpush.msra.mxu1 %v6818_v27  ;;  %v2510_v42 = vadd.f32 %v6534_v54, %v6550_v62 }
0x3414   :  { %4225 = vmatpush.msrb.mxu3 %v6751_v34  ;;  %4245 = vmatpush.msra.mxu1 %v6822_v12 }
0x3416   :  { %4226 = vmatpush.msrb.mxu3 %v6755_v4  ;;  %4246 = vmatpush.msra.mxu1 %v6826_v47 }
0x3418   :  { %4227 = vmatpush.msrb.mxu3 %v6759_v19  ;;  %4247 = vmatpush.msra.mxu1 %v6830_v60  ;;  %v2460_v19 = vadd.f32 %v6957_v9, %v6522_v35 }
0x341a   :  { %4228 = vmatpush.msrb.mxu3 %v6763_v3  ;;  %4248 = vmatpush.msra.mxu1 %v6834_v25 }
0x341c   :  { %4229 = vmatpush.msrb.mxu3 %v6767_v53  ;;  %4249 = vmatpush.msra.mxu1 %v6838_v7 }
0x341e   :  { %4230 = vmatpush.msrb.mxu3 %v6771_v56  ;;  %4250 = vmatpush.msra.mxu1 %v6842_v5 }
0x3420   :  { %4231 = vmatpush.msrb.mxu3 %v6775_v40  ;;  %4251 = vmatpush.msra.mxu1 %v6846_v43 }
0x348e   :  { %v3717_v34 = vpop.f32.mrf.mxu1 }
0x348f   :  { %v3723_v4 = vadd.f32 %v3717_v34, %v2510_v42 }
0x3491   :  { %5140 = vtanh.f32 %v3723_v4  ;;  %v4752_v54 = vmul.f32 -1.442695, %v3723_v4 }
0x3494   :  { %v3697_v3 = vpop.f32.mrf.mxu3 }
0x3495   :  { %v3721_v53 = vadd.f32 %v3697_v3, %v2460_v19 }
0x3497   :  { %v5141_v33 = vpop.eup %5140  ;;  %5142 = vtanh.f32 %v3721_v53  ;;  %v4751_v40 = vmul.f32 -1.442695, %v3721_v53 }
0x3498   :  { %3783 = vrot.lane.b32.xlu0 %v5141_v33, %s5374_s15 }
0x3499   :  { %5144 = vpow2.f32 %v4751_v40 }
0x349d   :  { %v5143_v56 = vpop.eup %5142 }
0x349e   :  { %3746 = vrot.lane.b32.xlu2 %v5143_v56, %s5374_s15 }
0x349f   :  { %v5145_v21 = vpop.eup %5144 }
0x34a0   :  { %v3727_v17 = vadd.f32 1.0, %v5145_v21 }
0x34a2   :  { %5146 = vrcp.f32 %v3727_v17  ;;  %v3739_v14 = vand.u32 2147483648, %v3727_v17  ;;  %vm3733_vm5 = vweird.f32 %v3727_v17  ;;  %v3737_v24 = vand.u32 2147483647, %v3727_v17 }
0x34a3   :  { %5148 = vpow2.f32 %v4752_v54 }
0x34a4   :  { %v3740_v16 = vor.u32 1.1754944e-38, %v3739_v14  ;;  %vm3738_vm7 = vcmp.eq.f32.partialorder %v3737_v24, 8.507059e+37 }
0x34a8   :  { %v5147_v36 = vpop.eup %5146 }
0x34a9   :  { %v3729_v55 = vmul.f32 %v5147_v36, %v3727_v17  ;;  %v5149_v15 = vpop.eup %5148  ;;  %vm3734_vm4 = vweird.f32 %v5147_v36 }
0x34aa   :  { %v3764_v41 = vadd.f32 1.0, %v5149_v15  ;;  %vm3735_vm6 = vmor %vm3733_vm5, %vm3734_vm4 }
0x34ab   :  { %v3730_v9 = vsub.f32 1.0, %v3729_v55 }
0x34ac   :  { %5150 = vrcp.f32 %v3764_v41  ;;  %v3776_v11 = vand.u32 2147483648, %v3764_v41  ;;  %vm3770_vm9 = vweird.f32 %v3764_v41  ;;  %v3774_v42 = vand.u32 2147483647, %v3764_v41 }
0x34ad   :  { %v3731_v63 = vmul.f32 %v5147_v36, %v3730_v9 }
0x34ae   :  { %v3777_v4 = vor.u32 1.1754944e-38, %v3776_v11  ;;  %vm3775_vm12 = vcmp.eq.f32.partialorder %v3774_v42, 8.507059e+37 }
0x34af   :  { %v3732_v26 = vadd.f32 %v5147_v36, %v3731_v63 }
0x34b1   :  { %v3736_v13 = vsel %vm3735_vm6, %v5147_v36, %v3732_v26 }
0x34b2   :  { %v5151_v29 = vpop.eup %5150  ;;  %v3741_v6 = vsel %vm3738_vm7, %v3740_v16, %v3736_v13  ;;  %v5272_v16 = vld [vmem:[#allocation8 + $0x30] sm:$0xff] }
0x34b3   :  { %v3766_v48 = vmul.f32 %v5151_v29, %v3764_v41  ;;  %vm3771_vm8 = vweird.f32 %v5151_v29  ;;  %v3744_v21 = vmul.f32 %v3741_v6, %v6977_v2 }
0x34b4   :  { %vm3772_vm11 = vmor %vm3770_vm9, %vm3771_vm8 }
0x34b5   :  { %v3767_v37 = vsub.f32 1.0, %v3766_v48  ;;  %v5273_v48 = vld [vmem:[#allocation8 + $0x20] sm:$0xff] }
0x34b7   :  { %v3768_v58 = vmul.f32 %v5151_v29, %v3767_v37 }
0x34b9   :  { %v3769_v52 = vadd.f32 %v5151_v29, %v3768_v58 }
0x34bb   :  { %v3773_v34 = vsel %vm3772_vm11, %v5151_v29, %v3769_v52 }
0x34bc   :  { %v3778_v3 = vsel %vm3775_vm12, %v3777_v4, %v3773_v34 }
0x34bd   :  { %v3781_v33 = vmul.f32 %v3778_v3, %v6982_v20 }
0x34f8   :  { %v3747_v0 = vpop.permute.xlu2 %3746 }
0x34f9   :  { %v3749_v8 = vmul.f32 %v3747_v0, %v3741_v6 }
0x34fb   :  { %3751 = vrot.lane.b32.xlu1 %v3749_v8, %s5374_s15 }
0x350a   :  { %v3784_v19 = vpop.permute.xlu0 %3783 }
0x350b   :  { %v3786_v53 = vmul.f32 %v3784_v19, %v3778_v3 }
0x350d   :  { %3788 = vrot.lane.b32.xlu2 %v3786_v53, %s5374_s15 }
0x3567   :  { %v3789_v56 = vpop.permute.xlu2 %3788 }
0x3568   :  { %v7026_v40 = vadd.f32 %v3789_v56, %v3781_v33 }
0x356a   :  { %5152 = vtanh.f32 %v7026_v40 }
0x356d   :  { %v3752_v17 = vpop.permute.xlu1 %3751 }
0x356e   :  { %v7030_v54 = vadd.f32 %v3752_v17, %v3744_v21 }
0x3570   :  { %v5153_v36 = vpop.eup %5152  ;;  %5154 = vtanh.f32 %v7030_v54 }
0x3571   :  { %3794 = vrot.lane.b32.xlu1 %v5153_v36, %s5374_s15 }
0x3576   :  { %v5155_v55 = vpop.eup %5154 }
0x3577   :  { %3757 = vrot.lane.b32.xlu0 %v5155_v55, %s5374_s15 }
0x35e3   :  { %v3795_v20 = vpop.permute.xlu1 %3794 }
0x35e4   :  { %v3797_v15 = vmul.f32 %v3795_v20, %v3778_v3 }
0x35e6   :  { %v3800_v9 = vmul.f32 %v3797_v15, %v3389_v57  ;;  %3807 = vrot.lane.b32.xlu0 %v3797_v15, %s5376_s16  ;;  %v5268_v57 = vld [vmem:[#allocation8 + $0x70] sm:$0xff] }
0x35e8   :  { %v7039_v41 = vadd.f32 %v3800_v9, %v6990_v38  ;;  %v5269_v38 = vld [vmem:[#allocation8 + $0x60] sm:$0xff] }
0x35e9   :  { %v3758_v2 = vpop.permute.xlu0 %3757 }
0x35ea   :  { %v3760_v63 = vmul.f32 %v3758_v2, %v3741_v6 }
0x35ec   :  { %v3798_v26 = vmul.f32 %v3760_v63, %v3393_v49  ;;  %3803 = vrot.lane.b32.xlu2 %v3760_v63, %s5375_s4  ;;  %v5270_v49 = vld [vmem:[#allocation8 + $0x50] sm:$0xff] }
0x35ee   :  { %v7045_v14 = vadd.f32 %v3798_v26, %v6996_v32  ;;  %v5271_v32 = vld [vmem:[#allocation8 + $0x40] sm:$0xff] }
0x3646   :  { %v3804_v24 = vpop.permute.xlu2 %3803 }
0x3658   :  { %v3808_v29 = vpop.permute.xlu0 %3807 }
0x3659   :  { %v3810_v13 = vsel %vm567_vm10, %v3804_v24, %v3808_v29 }
0x365a   :  { %4753 = vmatmul.msk.f32.vlgmr.msra.gmra.mxu2 %vm119_vm0, %v3810_v13  ;;  %4754 = vmatmul.msk.f32.vlgmr.msra.gmra.mxu0 %vm119_vm0, %v3810_v13 }
0x365b   :  { %4358 = vmatpush.msra.mxu2 %v5268_v57  ;;  %4378 = vmatpush.msra.mxu0 %v6818_v27  ;;  %v5274_v27 = vld [vmem:[#allocation8 + $0x10] sm:$0xff] }
0x365d   :  { %4359 = vmatpush.msra.mxu2 %v5269_v38  ;;  %4379 = vmatpush.msra.mxu0 %v6822_v12  ;;  %v5275_v12 = vld [vmem:[#allocation8] sm:$0xff] }
0x365f   :  { %4360 = vmatpush.msra.mxu2 %v5270_v49  ;;  %4380 = vmatpush.msra.mxu0 %v6826_v47  ;;  %v2507_v47 = vadd.f32 %v6532_v30, %v6550_v62 }
0x3661   :  { %4361 = vmatpush.msra.mxu2 %v5271_v32  ;;  %4381 = vmatpush.msra.mxu0 %v6830_v60 }
0x3663   :  { %4362 = vmatpush.msra.mxu2 %v5272_v16  ;;  %4382 = vmatpush.msra.mxu0 %v6834_v25  ;;  %v2463_v25 = vadd.f32 %v6959_v23, %v6522_v35 }
0x3665   :  { %4363 = vmatpush.msra.mxu2 %v5273_v48  ;;  %4383 = vmatpush.msra.mxu0 %v6838_v7 }
0x3667   :  { %4364 = vmatpush.msra.mxu2 %v5274_v27  ;;  %4384 = vmatpush.msra.mxu0 %v6842_v5 }
0x3669   :  { %4365 = vmatpush.msra.mxu2 %v5275_v12  ;;  %4385 = vmatpush.msra.mxu0 %v6846_v43 }
0x36d7   :  { %v3851_v60 = vpop.f32.mrf.mxu0 }
0x36d8   :  { %v3857_v0 = vadd.f32 %v3851_v60, %v2507_v47 }
0x36da   :  { %5156 = vtanh.f32 %v3857_v0  ;;  %v4756_v37 = vmul.f32 -1.442695, %v3857_v0 }
0x36dd   :  { %v3831_v6 = vpop.f32.mrf.mxu2 }
0x36de   :  { %v3855_v8 = vadd.f32 %v3831_v6, %v2463_v25 }
0x36e0   :  { %v5157_v7 = vpop.eup %5156  ;;  %5158 = vtanh.f32 %v3855_v8  ;;  %v4755_v11 = vmul.f32 -1.442695, %v3855_v8 }
0x36e1   :  { %3917 = vrot.lane.b32.xlu2 %v5157_v7, %s5374_s15  ;;  %5160 = vpow2.f32 %v4756_v37 }
0x36e6   :  { %v5159_v5 = vpop.eup %5158 }
0x36e7   :  { %3880 = vrot.lane.b32.xlu1 %v5159_v5, %s5374_s15  ;;  %v5161_v43 = vpop.eup %5160 }
0x36e8   :  { %v3898_v58 = vadd.f32 1.0, %v5161_v43 }
0x36ea   :  { %5162 = vrcp.f32 %v3898_v58  ;;  %v3910_v4 = vand.u32 2147483648, %v3898_v58  ;;  %vm3904_vm14 = vweird.f32 %v3898_v58  ;;  %v3908_v3 = vand.u32 2147483647, %v3898_v58 }
0x36eb   :  { %5164 = vpow2.f32 %v4755_v11 }
0x36ec   :  { %v3911_v56 = vor.u32 1.1754944e-38, %v3910_v4  ;;  %vm3909_vm1 = vcmp.eq.f32.partialorder %v3908_v3, 8.507059e+37 }
0x36f0   :  { %v5163_v30 = vpop.eup %5162 }
0x36f1   :  { %v3900_v52 = vmul.f32 %v5163_v30, %v3898_v58  ;;  %vm3905_vm13 = vweird.f32 %v5163_v30  ;;  %v5165_v19 = vpop.eup %5164 }
0x36f2   :  { %vm3906_vm15 = vmor %vm3904_vm14, %vm3905_vm13  ;;  %v3861_v33 = vadd.f32 1.0, %v5165_v19 }
0x36f3   :  { %v3901_v42 = vsub.f32 1.0, %v3900_v52 }
0x36f4   :  { %5166 = vrcp.f32 %v3861_v33  ;;  %v3873_v63 = vand.u32 2147483648, %v3861_v33  ;;  %vm3867_vm3 = vweird.f32 %v3861_v33  ;;  %v3871_v26 = vand.u32 2147483647, %v3861_v33 }
0x36f5   :  { %v3902_v23 = vmul.f32 %v5163_v30, %v3901_v42 }
0x36f6   :  { %v3874_v29 = vor.u32 1.1754944e-38, %v3873_v63  ;;  %vm3872_vm5 = vcmp.eq.f32.partialorder %v3871_v26, 8.507059e+37 }
0x36f7   :  { %v3903_v34 = vadd.f32 %v5163_v30, %v3902_v23 }
0x36f9   :  { %v3907_v53 = vsel %vm3906_vm15, %v5163_v30, %v3903_v34 }
0x36fa   :  { %v3912_v17 = vsel %vm3909_vm1, %v3911_v56, %v3907_v53  ;;  %v5167_v55 = vpop.eup %5166 }
0x36fb   :  { %v3863_v20 = vmul.f32 %v5167_v55, %v3861_v33  ;;  %vm3868_vm2 = vweird.f32 %v5167_v55  ;;  %v3915_v49 = vmul.f32 %v3912_v17, %v7026_v40 }
0x36fc   :  { %vm3869_vm4 = vmor %vm3867_vm3, %vm3868_vm2 }
0x36fd   :  { %v3864_v15 = vsub.f32 1.0, %v3863_v20 }
0x36ff   :  { %v3865_v9 = vmul.f32 %v5167_v55, %v3864_v15 }
0x3701   :  { %v3866_v2 = vadd.f32 %v5167_v55, %v3865_v9 }
0x3703   :  { %v3870_v24 = vsel %vm3869_vm4, %v5167_v55, %v3866_v2 }
0x3704   :  { %v3875_v57 = vsel %vm3872_vm5, %v3874_v29, %v3870_v24 }
0x3705   :  { %v3878_v27 = vmul.f32 %v3875_v57, %v7030_v54 }
0x373b   :  { %v3918_v21 = vpop.permute.xlu2 %3917 }
0x373c   :  { %v3920_v36 = vmul.f32 %v3918_v21, %v3912_v17 }
0x373e   :  { %3922 = vrot.lane.b32.xlu1 %v3920_v36, %s5374_s15 }
0x3759   :  { %v3881_v13 = vpop.permute.xlu1 %3880 }
0x375a   :  { %v3883_v38 = vmul.f32 %v3881_v13, %v3875_v57 }
0x375c   :  { %3885 = vrot.lane.b32.xlu0 %v3883_v38, %s5374_s15 }
0x37b0   :  { %v3923_v32 = vpop.permute.xlu1 %3922 }
0x37b1   :  { %v7067_v16 = vadd.f32 %v3923_v32, %v3915_v49 }
0x37b3   :  { %5168 = vtanh.f32 %v7067_v16 }
0x37b9   :  { %v5169_v48 = vpop.eup %5168 }
0x37ba   :  { %3928 = vrot.lane.b32.xlu0 %v5169_v48, %s5374_s15 }
0x37ce   :  { %v3886_v12 = vpop.permute.xlu0 %3885 }
0x37cf   :  { %v7072_v47 = vadd.f32 %v3886_v12, %v3878_v27 }
0x37d1   :  { %5170 = vtanh.f32 %v7072_v47 }
0x37d7   :  { %v5171_v60 = vpop.eup %5170 }
0x37d8   :  { %3891 = vrot.lane.b32.xlu2 %v5171_v60, %s5374_s15 }
0x382c   :  { %v3929_v40 = vpop.permute.xlu0 %3928 }
0x382d   :  { %v3931_v0 = vmul.f32 %v3929_v40, %v3912_v17 }
0x382f   :  { %v3934_v25 = vmul.f32 %v3931_v0, %v3251_v39  ;;  %3941 = vrot.lane.b32.xlu2 %v3931_v0, %s5376_s16  ;;  %v2504_v39 = vadd.f32 %v6530_v51, %v6550_v62 }
0x3831   :  { %v7080_v6 = vadd.f32 %v3934_v25, %v7039_v41 }
0x3832   :  { %v3892_v8 = vpop.permute.xlu2 %3891 }
0x3833   :  { %v3894_v7 = vmul.f32 %v3892_v8, %v3875_v57 }
0x3835   :  { %v3932_v54 = vmul.f32 %v3894_v7, %v3255_v22  ;;  %3937 = vrot.lane.b32.xlu1 %v3894_v7, %s5375_s4  ;;  %v2466_v22 = vadd.f32 %v6961_v31, %v6522_v35 }
0x3837   :  { %v7086_v5 = vadd.f32 %v3932_v54, %v7045_v14 }
0x3889   :  { %v3942_v37 = vpop.permute.xlu2 %3941 }
0x38a7   :  { %v3938_v43 = vpop.permute.xlu1 %3937 }
0x38a8   :  { %v3944_v58 = vsel %vm567_vm10, %v3938_v43, %v3942_v37 }
0x38a9   :  { %4757 = vmatmul.msk.f32.vlgmr.msra.gmra.mxu3 %vm119_vm0, %v3944_v58  ;;  %4758 = vmatmul.msk.f32.vlgmr.msrb.gmra.mxu1 %vm119_vm0, %v3944_v58 }
0x3926   :  { %v3985_v41 = vpop.f32.mrf.mxu1 }
0x3927   :  { %v3991_v30 = vadd.f32 %v3985_v41, %v2504_v39 }
0x3929   :  { %5172 = vtanh.f32 %v3991_v30  ;;  %v4760_v23 = vmul.f32 -1.442695, %v3991_v30 }
0x392c   :  { %v3965_v52 = vpop.f32.mrf.mxu3 }
0x392d   :  { %v3989_v14 = vadd.f32 %v3965_v52, %v2466_v22 }
0x392f   :  { %v5173_v11 = vpop.eup %5172  ;;  %5174 = vtanh.f32 %v3989_v14  ;;  %v4759_v34 = vmul.f32 -1.442695, %v3989_v14 }
0x3930   :  { %4051 = vrot.lane.b32.xlu1 %v5173_v11, %s5374_s15  ;;  %5176 = vpow2.f32 %v4760_v23 }
0x3931   :  { %5178 = vpow2.f32 %v4759_v34 }
0x3935   :  { %v5175_v42 = vpop.eup %5174 }
0x3936   :  { %4014 = vrot.lane.b32.xlu0 %v5175_v42, %s5374_s15  ;;  %v5177_v4 = vpop.eup %5176 }
0x3937   :  { %v4032_v51 = vadd.f32 1.0, %v5177_v4  ;;  %v5179_v19 = vpop.eup %5178 }
0x3938   :  { %v3995_v3 = vadd.f32 1.0, %v5179_v19 }
0x3939   :  { %5180 = vrcp.f32 %v4032_v51  ;;  %v4044_v20 = vand.u32 2147483648, %v4032_v51  ;;  %vm4038_vm7 = vweird.f32 %v4032_v51  ;;  %v4042_v15 = vand.u32 2147483647, %v4032_v51 }
0x393a   :  { %5182 = vrcp.f32 %v3995_v3  ;;  %v4007_v13 = vand.u32 2147483648, %v3995_v3  ;;  %vm4001_vm12 = vweird.f32 %v3995_v3  ;;  %v4005_v38 = vand.u32 2147483647, %v3995_v3 }
0x393b   :  { %v4045_v63 = vor.u32 1.1754944e-38, %v4044_v20  ;;  %vm4043_vm9 = vcmp.eq.f32.partialorder %v4042_v15, 8.507059e+37 }
0x393c   :  { %v4008_v32 = vor.u32 1.1754944e-38, %v4007_v13  ;;  %vm4006_vm14 = vcmp.eq.f32.partialorder %v4005_v38, 8.507059e+37 }
0x393f   :  { %v5181_v53 = vpop.eup %5180 }
0x3940   :  { %v4034_v31 = vmul.f32 %v5181_v53, %v4032_v51  ;;  %v5183_v33 = vpop.eup %5182  ;;  %vm4039_vm6 = vweird.f32 %v5181_v53 }
0x3941   :  { %v3997_v21 = vmul.f32 %v5183_v33, %v3995_v3  ;;  %vm4040_vm8 = vmor %vm4038_vm7, %vm4039_vm6  ;;  %vm4002_vm11 = vweird.f32 %v5183_v33 }
0x3942   :  { %v4035_v56 = vsub.f32 1.0, %v4034_v31  ;;  %vm4003_vm13 = vmor %vm4001_vm12, %vm4002_vm11 }
0x3943   :  { %v3998_v36 = vsub.f32 1.0, %v3997_v21 }
0x3944   :  { %v4036_v17 = vmul.f32 %v5181_v53, %v4035_v56 }
0x3945   :  { %v3999_v9 = vmul.f32 %v5183_v33, %v3998_v36 }
0x3946   :  { %v4037_v55 = vadd.f32 %v5181_v53, %v4036_v17 }
0x3947   :  { %v4000_v26 = vadd.f32 %v5183_v33, %v3999_v9 }
0x3948   :  { %v4041_v2 = vsel %vm4040_vm8, %v5181_v53, %v4037_v55 }
0x3949   :  { %v4046_v29 = vsel %vm4043_vm9, %v4045_v63, %v4041_v2  ;;  %v4004_v49 = vsel %vm4003_vm13, %v5183_v33, %v4000_v26 }
0x394a   :  { %v4009_v27 = vsel %vm4006_vm14, %v4008_v32, %v4004_v49  ;;  %v4049_v8 = vmul.f32 %v4046_v29, %v7067_v16 }
0x394b   :  { %v4012_v60 = vmul.f32 %v4009_v27, %v7072_v47 }
0x39a2   :  { %v4052_v24 = vpop.permute.xlu1 %4051 }
0x39a3   :  { %v4054_v57 = vmul.f32 %v4052_v24, %v4046_v29 }
0x39a5   :  { %4056 = vrot.lane.b32.xlu0 %v4054_v57, %s5374_s15 }
0x39a8   :  { %v4015_v48 = vpop.permute.xlu0 %4014 }
0x39a9   :  { %v4017_v12 = vmul.f32 %v4015_v48, %v4009_v27 }
0x39ab   :  { %4019 = vrot.lane.b32.xlu2 %v4017_v12, %s5374_s15 }
0x3a05   :  { %v4020_v40 = vpop.permute.xlu2 %4019 }
0x3a06   :  { %v7100_v0 = vadd.f32 %v4020_v40, %v4012_v60 }
0x3a08   :  { %5184 = vtanh.f32 %v7100_v0 }
0x3a0e   :  { %v5185_v25 = vpop.eup %5184 }
0x3a0f   :  { %4025 = vrot.lane.b32.xlu1 %v5185_v25, %s5374_s15 }
0x3a17   :  { %v4057_v7 = vpop.permute.xlu0 %4056 }
0x3a18   :  { %v7105_v54 = vadd.f32 %v4057_v7, %v4049_v8 }
0x3a1a   :  { %5186 = vtanh.f32 %v7105_v54 }
0x3a20   :  { %v5187_v37 = vpop.eup %5186 }
0x3a21   :  { %4062 = vrot.lane.b32.xlu2 %v5187_v37, %s5374_s15 }
0x3a7b   :  { %v4063_v47 = vpop.permute.xlu2 %4062 }
0x3a7c   :  { %v4065_v43 = vmul.f32 %v4063_v47, %v4046_v29 }
0x3a7e   :  { %v4068_v58 = vmul.f32 %v4065_v43, %v3113_v44  ;;  %4075 = vrot.lane.b32.xlu1 %v4065_v43, %s5376_s16  ;;  %v2501_v44 = vadd.f32 %v6527_v45, %v6550_v62 }
0x3a80   :  { %v7113_v39 = vadd.f32 %v4068_v58, %v7080_v6 }
0x3a81   :  { %v4026_v41 = vpop.permute.xlu1 %4025 }
0x3a82   :  { %v4028_v30 = vmul.f32 %v4026_v41, %v4009_v27 }
0x3a84   :  { %v4066_v16 = vmul.f32 %v4028_v30, %v3117_v50  ;;  %4071 = vrot.lane.b32.xlu0 %v4028_v30, %s5375_s4  ;;  %v2469_v50 = vadd.f32 %v6963_v61, %v6522_v35 }
0x3a86   :  { %v7119_v22 = vadd.f32 %v4066_v16, %v7086_v5 }
0x3af0   :  { %v4076_v52 = vpop.permute.xlu1 %4075 }
0x3af6   :  { %v4072_v14 = vpop.permute.xlu0 %4071 }
0x3af7   :  { %v4078_v11 = vsel %vm567_vm10, %v4072_v14, %v4076_v52 }
0x3af8   :  { %4761 = vmatmul.msk.f32.vlgmr.msrb.gmra.mxu2 %vm119_vm0, %v4078_v11  ;;  %4762 = vmatmul.msk.f32.vlgmr.msrb.gmra.mxu0 %vm119_vm0, %v4078_v11 }
0x3b75   :  { %v4119_v6 = vpop.f32.mrf.mxu0 }
0x3b76   :  { %v4125_v42 = vadd.f32 %v4119_v6, %v2501_v44 }
0x3b78   :  { %5188 = vtanh.f32 %v4125_v42  ;;  %v4764_v45 = vmul.f32 -1.442695, %v4125_v42 }
0x3b7b   :  { %v4099_v23 = vpop.f32.mrf.mxu2 }
0x3b7c   :  { %v4123_v5 = vadd.f32 %v4099_v23, %v2469_v50 }
0x3b7e   :  { %v5189_v34 = vpop.eup %5188  ;;  %5190 = vtanh.f32 %v4123_v5  ;;  %v4763_v51 = vmul.f32 -1.442695, %v4123_v5 }
0x3b7f   :  { %4185 = vrot.lane.b32.xlu0 %v5189_v34, %s5374_s15 }
0x3b80   :  { %5192 = vpow2.f32 %v4763_v51 }
0x3b84   :  { %v5191_v4 = vpop.eup %5190 }
0x3b85   :  { %4148 = vrot.lane.b32.xlu2 %v5191_v4, %s5374_s15 }
0x3b86   :  { %v5193_v19 = vpop.eup %5192 }
0x3b87   :  { %v4129_v3 = vadd.f32 1.0, %v5193_v19 }
0x3b89   :  { %5194 = vrcp.f32 %v4129_v3  ;;  %v4141_v36 = vand.u32 2147483648, %v4129_v3  ;;  %vm4135_vm1 = vweird.f32 %v4129_v3  ;;  %v4139_v55 = vand.u32 2147483647, %v4129_v3 }
0x3b8a   :  { %5196 = vpow2.f32 %v4764_v45 }
0x3b8b   :  { %v4142_v9 = vor.u32 1.1754944e-38, %v4141_v36  ;;  %vm4140_vm3 = vcmp.eq.f32.partialorder %v4139_v55, 8.507059e+37 }
0x3b8f   :  { %v5195_v53 = vpop.eup %5194 }
0x3b90   :  { %v4131_v31 = vmul.f32 %v5195_v53, %v4129_v3  ;;  %v5197_v33 = vpop.eup %5196  ;;  %vm4136_vm15 = vweird.f32 %v5195_v53 }
0x3b91   :  { %v4166_v56 = vadd.f32 1.0, %v5197_v33  ;;  %vm4137_vm2 = vmor %vm4135_vm1, %vm4136_vm15 }
0x3b92   :  { %v4132_v61 = vsub.f32 1.0, %v4131_v31 }
0x3b93   :  { %5198 = vrcp.f32 %v4166_v56  ;;  %v4178_v38 = vand.u32 2147483648, %v4166_v56  ;;  %vm4172_vm5 = vweird.f32 %v4166_v56  ;;  %v4176_v49 = vand.u32 2147483647, %v4166_v56 }
0x3b94   :  { %v4133_v21 = vmul.f32 %v5195_v53, %v4132_v61 }
0x3b95   :  { %v4179_v48 = vor.u32 1.1754944e-38, %v4178_v38  ;;  %vm4177_vm7 = vcmp.eq.f32.partialorder %v4176_v49, 8.507059e+37 }
0x3b96   :  { %v4134_v17 = vadd.f32 %v5195_v53, %v4133_v21 }
0x3b98   :  { %v4138_v15 = vsel %vm4137_vm2, %v5195_v53, %v4134_v17 }
0x3b99   :  { %v5199_v20 = vpop.eup %5198  ;;  %v4143_v26 = vsel %vm4140_vm3, %v4142_v9, %v4138_v15 }
0x3b9a   :  { %v4168_v2 = vmul.f32 %v5199_v20, %v4166_v56  ;;  %vm4173_vm4 = vweird.f32 %v5199_v20  ;;  %v4146_v7 = vmul.f32 %v4143_v26, %v7100_v0 }
0x3b9b   :  { %vm4174_vm6 = vmor %vm4172_vm5, %vm4173_vm4 }
0x3b9c   :  { %v4169_v29 = vsub.f32 1.0, %v4168_v2 }
0x3b9e   :  { %v4170_v13 = vmul.f32 %v5199_v20, %v4169_v29 }
0x3ba0   :  { %v4171_v57 = vadd.f32 %v5199_v20, %v4170_v13 }
0x3ba2   :  { %v4175_v32 = vsel %vm4174_vm6, %v5199_v20, %v4171_v57 }
0x3ba3   :  { %v4180_v12 = vsel %vm4177_vm7, %v4179_v48, %v4175_v32 }
0x3ba4   :  { %v4183_v40 = vmul.f32 %v4180_v12, %v7105_v54 }
0x3bdf   :  { %v4149_v63 = vpop.permute.xlu2 %4148 }
0x3be0   :  { %v4151_v24 = vmul.f32 %v4149_v63, %v4143_v26 }
0x3be2   :  { %4153 = vrot.lane.b32.xlu1 %v4151_v24, %s5374_s15 }
0x3bf1   :  { %v4186_v27 = vpop.permute.xlu0 %4185 }
0x3bf2   :  { %v4188_v60 = vmul.f32 %v4186_v27, %v4180_v12 }
0x3bf4   :  { %4190 = vrot.lane.b32.xlu2 %v4188_v60, %s5374_s15 }
0x3c4e   :  { %v4191_v25 = vpop.permute.xlu2 %4190 }
0x3c4f   :  { %v7133_v8 = vadd.f32 %v4191_v25, %v4183_v40 }
0x3c51   :  { %5200 = vtanh.f32 %v7133_v8 }
0x3c54   :  { %v4154_v37 = vpop.permute.xlu1 %4153 }
0x3c55   :  { %v7137_v47 = vadd.f32 %v4154_v37, %v4146_v7 }
0x3c57   :  { %v5201_v43 = vpop.eup %5200  ;;  %5202 = vtanh.f32 %v7137_v47 }
0x3c58   :  { %4196 = vrot.lane.b32.xlu1 %v5201_v43, %s5374_s15 }
0x3c5d   :  { %v5203_v58 = vpop.eup %5202 }
0x3c5e   :  { %4159 = vrot.lane.b32.xlu0 %v5203_v58, %s5374_s15 }
0x3cca   :  { %v4197_v54 = vpop.permute.xlu1 %4196 }
0x3ccb   :  { %v4199_v41 = vmul.f32 %v4197_v54, %v4180_v12  ;;  %v7277_v54 = vstv %s6614_s6 }
0x3ccd   :  { %v4202_v30 = vmul.f32 %v4199_v41, %v2975_v1  ;;  %4209 = vrot.lane.b32.xlu0 %v4199_v41, %s5376_s16  ;;  %v2498_v1 = vadd.f32 %v6525_v18, %v6550_v62 }
0x3ccf   :  { %v7146_v16 = vadd.f32 %v4202_v30, %v7113_v39 }
0x3cd0   :  { %v4160_v0 = vpop.permute.xlu0 %4159 }
0x3cd1   :  { %v4162_v52 = vmul.f32 %v4160_v0, %v4143_v26 }
0x3cd3   :  { %v4200_v14 = vmul.f32 %v4162_v52, %v2979_v10  ;;  %4205 = vrot.lane.b32.xlu2 %v4162_v52, %s5375_s4  ;;  %v2472_v10 = vadd.f32 %v6965_v28, %v6522_v35 }
0x3cd5   :  { %v7152_v11 = vadd.f32 %v4200_v14, %v7119_v22 }
0x3d2d   :  { %v4206_v44 = vpop.permute.xlu2 %4205 }
0x3d3f   :  { %v4210_v6 = vpop.permute.xlu0 %4209 }
0x3d40   :  { %v4212_v42 = vsel %vm567_vm10, %v4206_v44, %v4210_v6 }
0x3d41   :  { %4765 = vmatmul.msk.f32.vlgmr.msrb.gmra.mxu3 %vm119_vm0, %v4212_v42  ;;  %4766 = vmatmul.msk.f32.vlgmr.msra.gmra.mxu1 %vm119_vm0, %v4212_v42 }
0x3dbe   :  { %v4253_v39 = vpop.f32.mrf.mxu1 }
0x3dbf   :  { %v4259_v50 = vadd.f32 %v4253_v39, %v2498_v1 }
0x3dc1   :  { %5204 = vtanh.f32 %v4259_v50  ;;  %v4768_v4 = vmul.f32 -1.442695, %v4259_v50 }
0x3dc4   :  { %v4233_v23 = vpop.f32.mrf.mxu3 }
0x3dc5   :  { %v4257_v22 = vadd.f32 %v4233_v23, %v2472_v10  ;;  %v2475_v10 = vadd.f32 %v6967_v59, %v6522_v35 }
0x3dc7   :  { %v5205_v5 = vpop.eup %5204  ;;  %5206 = vtanh.f32 %v4257_v22  ;;  %v4767_v45 = vmul.f32 -1.442695, %v4257_v22 }
0x3dc8   :  { %4319 = vrot.lane.b32.xlu2 %v5205_v5, %s5374_s15  ;;  %5208 = vpow2.f32 %v4768_v4 }
0x3dcd   :  { %v5207_v34 = vpop.eup %5206 }
0x3dce   :  { %4282 = vrot.lane.b32.xlu1 %v5207_v34, %s5374_s15  ;;  %v5209_v51 = vpop.eup %5208 }
0x3dcf   :  { %v4300_v19 = vadd.f32 1.0, %v5209_v51 }
0x3dd1   :  { %5210 = vrcp.f32 %v4300_v19  ;;  %v4312_v33 = vand.u32 2147483648, %v4300_v19  ;;  %vm4306_vm9 = vweird.f32 %v4300_v19  ;;  %v4310_v56 = vand.u32 2147483647, %v4300_v19 }
0x3dd2   :  { %5212 = vpow2.f32 %v4767_v45 }
0x3dd3   :  { %v4313_v36 = vor.u32 1.1754944e-38, %v4312_v33  ;;  %vm4311_vm12 = vcmp.eq.f32.partialorder %v4310_v56, 8.507059e+37 }
0x3dd7   :  { %v5211_v18 = vpop.eup %5210 }
0x3dd8   :  { %v4302_v3 = vmul.f32 %v5211_v18, %v4300_v19  ;;  %vm4307_vm8 = vweird.f32 %v5211_v18  ;;  %v5213_v61 = vpop.eup %5212 }
0x3dd9   :  { %vm4308_vm11 = vmor %vm4306_vm9, %vm4307_vm8  ;;  %v4263_v17 = vadd.f32 1.0, %v5213_v61 }
0x3dda   :  { %v4303_v53 = vsub.f32 1.0, %v4302_v3 }
0x3ddb   :  { %5214 = vrcp.f32 %v4263_v17  ;;  %v4275_v29 = vand.u32 2147483648, %v4263_v17  ;;  %vm4269_vm14 = vweird.f32 %v4263_v17  ;;  %v4273_v13 = vand.u32 2147483647, %v4263_v17 }
0x3ddc   :  { %v4304_v28 = vmul.f32 %v5211_v18, %v4303_v53 }
0x3ddd   :  { %v4276_v38 = vor.u32 1.1754944e-38, %v4275_v29  ;;  %vm4274_vm1 = vcmp.eq.f32.partialorder %v4273_v13, 8.507059e+37 }
0x3dde   :  { %v4305_v31 = vadd.f32 %v5211_v18, %v4304_v28 }
0x3de0   :  { %v4309_v21 = vsel %vm4308_vm11, %v5211_v18, %v4305_v31 }
0x3de1   :  { %v4314_v20 = vsel %vm4311_vm12, %v4313_v36, %v4309_v21  ;;  %v5215_v9 = vpop.eup %5214 }
0x3de2   :  { %v4265_v2 = vmul.f32 %v5215_v9, %v4263_v17  ;;  %vm4270_vm13 = vweird.f32 %v5215_v9  ;;  %v4317_v27 = vmul.f32 %v4314_v20, %v7133_v8 }
0x3de3   :  { %vm4271_vm15 = vmor %vm4269_vm14, %vm4270_vm13 }
0x3de4   :  { %v4266_v63 = vsub.f32 1.0, %v4265_v2 }
0x3de6   :  { %v4267_v26 = vmul.f32 %v5215_v9, %v4266_v63 }
0x3de8   :  { %v4268_v24 = vadd.f32 %v5215_v9, %v4267_v26 }
0x3dea   :  { %v4272_v57 = vsel %vm4271_vm15, %v5215_v9, %v4268_v24 }
0x3deb   :  { %v4277_v32 = vsel %vm4274_vm1, %v4276_v38, %v4272_v57 }
0x3dec   :  { %v4280_v25 = vmul.f32 %v4277_v32, %v7137_v47  ;;  %v7278_v47 = vstv %s6610_s26 }
0x3e22   :  { %v4320_v55 = vpop.permute.xlu2 %4319 }
0x3e23   :  { %v4322_v15 = vmul.f32 %v4320_v55, %v4314_v20 }
0x3e25   :  { %4324 = vrot.lane.b32.xlu1 %v4322_v15, %s5374_s15 }
0x3e40   :  { %v4283_v49 = vpop.permute.xlu1 %4282 }
0x3e41   :  { %v4285_v48 = vmul.f32 %v4283_v49, %v4277_v32 }
0x3e43   :  { %4287 = vrot.lane.b32.xlu0 %v4285_v48, %s5374_s15 }
0x3e97   :  { %v4325_v12 = vpop.permute.xlu1 %4324 }
0x3e98   :  { %v7166_v60 = vadd.f32 %v4325_v12, %v4317_v27 }
0x3e9a   :  { %5216 = vtanh.f32 %v7166_v60 }
0x3ea0   :  { %v5217_v40 = vpop.eup %5216 }
0x3ea1   :  { %4330 = vrot.lane.b32.xlu0 %v5217_v40, %s5374_s15 }
0x3eb5   :  { %v4288_v7 = vpop.permute.xlu0 %4287 }
0x3eb6   :  { %v7171_v37 = vadd.f32 %v4288_v7, %v4280_v25  ;;  %v4488_v25 = vld [vmem:[%s7268_s10 + $0x38] sm:$0xff]  ;;  %v4487_v7 = vld [vmem:[%s7268_s10 + $0x30] sm:$0xff] }
0x3eb7   :  { %4504 = vmatpush.msra.mxu3 %v4488_v25 }
0x3eb8   :  { %5218 = vtanh.f32 %v7171_v37 }
0x3eb9   :  { %4505 = vmatpush.msra.mxu3 %v4487_v7 }
0x3ebe   :  { %v5219_v43 = vpop.eup %5218 }
0x3ebf   :  { %4293 = vrot.lane.b32.xlu2 %v5219_v43, %s5374_s15 }
0x3f13   :  { %v4331_v8 = vpop.permute.xlu0 %4330 }
0x3f14   :  { %v4333_v58 = vmul.f32 %v4331_v8, %v4314_v20 }
0x3f16   :  { %v4336_v41 = vmul.f32 %v4333_v58, %v7277_v54  ;;  %4343 = vrot.lane.b32.xlu2 %v4333_v58, %s5376_s16  ;;  %v7279_v58 = vstv %s6612_s27 }
0x3f18   :  { %v7179_v30 = vadd.f32 %v4336_v41, %v7146_v16  ;;  %v2495_v16 = vadd.f32 %v6517_v46, %v6550_v62 }
0x3f19   :  { %v4294_v0 = vpop.permute.xlu2 %4293 }
0x3f1a   :  { %v4296_v52 = vmul.f32 %v4294_v0, %v4277_v32 }
0x3f1c   :  { %v4334_v14 = vmul.f32 %v4296_v52, %v7278_v47  ;;  %4339 = vrot.lane.b32.xlu1 %v4296_v52, %s5375_s4  ;;  %v7280_v47 = vstv %s6608_s7 }
0x3f1e   :  { %v7185_v44 = vadd.f32 %v4334_v14, %v7152_v11 }
0x3f70   :  { %v4344_v6 = vpop.permute.xlu2 %4343 }
0x3f8e   :  { %v4340_v42 = vpop.permute.xlu1 %4339 }
0x3f8f   :  { %v4346_v1 = vsel %vm567_vm10, %v4340_v42, %v4344_v6  ;;  %v4484_v42 = vld [vmem:[%s7268_s10 + $0x18] sm:$0xff] }
0x3f90   :  { %4769 = vmatmul.msk.f32.vlgmr.msra.gmra.mxu2 %vm119_vm0, %v4346_v1  ;;  %4770 = vmatmul.msk.f32.vlgmr.msra.gmra.mxu0 %vm119_vm0, %v4346_v1  ;;  %v4483_v1 = vld [vmem:[%s7268_s10 + $0x10] sm:$0xff] }
0x400d   :  { %v4387_v39 = vpop.f32.mrf.mxu0 }
0x400e   :  { %v4393_v50 = vadd.f32 %v4387_v39, %v2495_v16  ;;  %v4520_v16 = vld [vmem:[%s7270_s12 + $0x18] sm:$0xff]  ;;  %v4519_v39 = vld [vmem:[%s7270_s12 + $0x10] sm:$0xff] }
0x400f   :  { %4540 = vmatpush.msrb.mxu1 %v4520_v16 }
0x4010   :  { %5220 = vtanh.f32 %v4393_v50  ;;  %v4772_v34 = vmul.f32 -1.442695, %v4393_v50 }
0x4011   :  { %4541 = vmatpush.msrb.mxu1 %v4519_v39 }
0x4013   :  { %v4367_v23 = vpop.f32.mrf.mxu2 }
0x4014   :  { %v4391_v11 = vadd.f32 %v4367_v23, %v2475_v10 }
0x4016   :  { %v5221_v22 = vpop.eup %5220  ;;  %5222 = vtanh.f32 %v4391_v11  ;;  %v4771_v4 = vmul.f32 -1.442695, %v4391_v11  ;;  %v4518_v11 = vld [vmem:[%s7270_s12 + $0x8] sm:$0xff] }
0x4017   :  { %4453 = vrot.lane.b32.xlu1 %v5221_v22, %s5374_s15  ;;  %5224 = vpow2.f32 %v4772_v34  ;;  %4542 = vmatpush.msrb.mxu1 %v4518_v11  ;;  %v4517_v22 = vld [vmem:[%s7270_s12] sm:$0xff]  ;;  %s4557_s12 = sshll.u32 %s7272_s14, 4  ;;  %s4558_s12 = int_to_ptr.hbm [resolvable:$true] %s4557_s12 }
0x4018   :  { %5226 = vpow2.f32 %v4771_v4 }
0x4019   :  { %4543 = vmatpush.msrb.mxu1 %v4517_v22 }
0x401c   :  { %v5223_v5 = vpop.eup %5222 }
0x401d   :  { %4416 = vrot.lane.b32.xlu0 %v5223_v5, %s5374_s15  ;;  %v5225_v51 = vpop.eup %5224  ;;  %v4786_v5 = vld [vmem:[%s7269_s11] ss:$0 sm:$0xff] }
0x401e   :  { %v4434_v46 = vadd.f32 1.0, %v5225_v51  ;;  %v5227_v62 = vpop.eup %5226 }
0x401f   :  { %v4397_v19 = vadd.f32 1.0, %v5227_v62 }
0x4020   :  { %5228 = vrcp.f32 %v4434_v46  ;;  %v4446_v33 = vand.u32 2147483648, %v4434_v46  ;;  %vm4440_vm3 = vweird.f32 %v4434_v46  ;;  %v4444_v61 = vand.u32 2147483647, %v4434_v46 }
0x4021   :  { %5230 = vrcp.f32 %v4397_v19  ;;  %v4409_v15 = vand.u32 2147483648, %v4397_v19  ;;  %vm4403_vm7 = vweird.f32 %v4397_v19  ;;  %v4407_v2 = vand.u32 2147483647, %v4397_v19 }
0x4022   :  { %v4447_v17 = vor.u32 1.1754944e-38, %v4446_v33  ;;  %vm4445_vm5 = vcmp.eq.f32.partialorder %v4444_v61, 8.507059e+37 }
0x4023   :  { %v4410_v26 = vor.u32 1.1754944e-38, %v4409_v15  ;;  %vm4408_vm9 = vcmp.eq.f32.partialorder %v4407_v2, 8.507059e+37 }
0x4026   :  { %v5229_v18 = vpop.eup %5228 }
0x4027   :  { %v4436_v35 = vmul.f32 %v5229_v18, %v4434_v46  ;;  %v5231_v59 = vpop.eup %5230  ;;  %vm4441_vm2 = vweird.f32 %v5229_v18  ;;  %v4787_v46 = vld [vmem:[%s7271_s13] ss:$0 sm:$0xff] }
0x4028   :  { %v4399_v45 = vmul.f32 %v5231_v59, %v4397_v19  ;;  %vm4442_vm4 = vmor %vm4440_vm3, %vm4441_vm2  ;;  %vm4404_vm6 = vweird.f32 %v5231_v59 }
0x4029   :  { %v4437_v3 = vsub.f32 1.0, %v4436_v35  ;;  %vm4405_vm8 = vmor %vm4403_vm7, %vm4404_vm6 }
0x402a   :  { %v4400_v28 = vsub.f32 1.0, %v4399_v45 }
0x402b   :  { %v4438_v53 = vmul.f32 %v5229_v18, %v4437_v3 }
0x402c   :  { %v4401_v56 = vmul.f32 %v5231_v59, %v4400_v28 }
0x402d   :  { %v4439_v31 = vadd.f32 %v5229_v18, %v4438_v53 }
0x402e   :  { %v4402_v36 = vadd.f32 %v5231_v59, %v4401_v56 }
0x402f   :  { %v4443_v21 = vsel %vm4442_vm4, %v5229_v18, %v4439_v31 }
0x4030   :  { %v4448_v20 = vsel %vm4445_vm5, %v4447_v17, %v4443_v21  ;;  %v4406_v63 = vsel %vm4405_vm8, %v5231_v59, %v4402_v36 }
0x4031   :  { %v4411_v29 = vsel %vm4408_vm9, %v4410_v26, %v4406_v63  ;;  %v4451_v48 = vmul.f32 %v4448_v20, %v7166_v60  ;;  %v4486_v60 = vld [vmem:[%s7268_s10 + $0x28] sm:$0xff] }
0x4032   :  { %v4414_v57 = vmul.f32 %v4411_v29, %v7171_v37  ;;  %v4485_v37 = vld [vmem:[%s7268_s10 + $0x20] sm:$0xff]  ;;  %4506 = vmatpush.msra.mxu3 %v4486_v60 }
0x4034   :  { %4507 = vmatpush.msra.mxu3 %v4485_v37 }
0x4036   :  { %4508 = vmatpush.msra.mxu3 %v4484_v42 }
0x4038   :  { %4509 = vmatpush.msra.mxu3 %v4483_v1 }
0x4089   :  { %v4454_v55 = vpop.permute.xlu1 %4453 }
0x408a   :  { %v4456_v9 = vmul.f32 %v4454_v55, %v4448_v20 }
0x408c   :  { %4458 = vrot.lane.b32.xlu0 %v4456_v9, %s5374_s15 }
0x408f   :  { %v4417_v24 = vpop.permute.xlu0 %4416 }
0x4090   :  { %v4419_v13 = vmul.f32 %v4417_v24, %v4411_v29 }
0x4092   :  { %4421 = vrot.lane.b32.xlu2 %v4419_v13, %s5374_s15 }
0x40ec   :  { %v4422_v38 = vpop.permute.xlu2 %4421 }
0x40ed   :  { %v4424_v49 = vadd.f32 %v4422_v38, %v4414_v57 }
0x40ef   :  { %5232 = vtanh.f32 %v4424_v49 }
0x40f5   :  { %v5233_v32 = vpop.eup %5232 }
0x40f6   :  { %4427 = vrot.lane.b32.xlu1 %v5233_v32, %s5374_s15 }
0x40fe   :  { %v4459_v27 = vpop.permute.xlu0 %4458 }
0x40ff   :  { %v4461_v12 = vadd.f32 %v4459_v27, %v4451_v48 }
0x4101   :  { %5234 = vtanh.f32 %v4461_v12 }
0x4107   :  { %v5235_v40 = vpop.eup %5234 }
0x4108   :  { %4464 = vrot.lane.b32.xlu2 %v5235_v40, %s5374_s15 }
0x4162   :  { %v4465_v43 = vpop.permute.xlu2 %4464 }
0x4163   :  { %v4467_v8 = vmul.f32 %v4465_v43, %v4448_v20 }
0x4165   :  { %v4470_v54 = vmul.f32 %v4467_v8, %v7279_v58 }
0x4167   :  { %v4471_v41 = vadd.f32 %v4470_v54, %v7179_v30  ;;  %v4482_v30 = vld [vmem:[%s7268_s10 + $0x8] sm:$0xff] }
0x4168   :  { %v4428_v0 = vpop.permute.xlu1 %4427  ;;  %4510 = vmatpush.msra.mxu3 %v4482_v30 }
0x4169   :  { %v4430_v52 = vmul.f32 %v4428_v0, %v4411_v29  ;;  %4477 = vrot.lane.b32.xlu1 %v4471_v41, %s5376_s16 }
0x416b   :  { %v4468_v14 = vmul.f32 %v4430_v52, %v7280_v47 }
0x416d   :  { %v4469_v6 = vadd.f32 %v4468_v14, %v7185_v44  ;;  %v4481_v44 = vld [vmem:[%s7268_s10] sm:$0xff] }
0x416e   :  { %4511 = vmatpush.msra.mxu3 %v4481_v44 }
0x416f   :  { %4473 = vrot.lane.b32.xlu0 %v4469_v6, %s5375_s4 }
0x41db   :  { %v4478_v50 = vpop.permute.xlu1 %4477 }
0x41e1   :  { %v4474_v10 = vpop.permute.xlu0 %4473 }
0x41e2   :  { %v4480_v23 = vsel %vm567_vm10, %v4474_v10, %v4478_v50 }
0x41e3   :  { %4773 = vmatmul.msk.f32.vlgmr.msra.gmra.mxu3 %vm119_vm0, %v4480_v23  ;;  %vm4548_vm0 = vcmask 64512  }
0x4266   :  { %v4513_v34 = vpop.f32.mrf.mxu3 }
0x4267   :  { %v4514_v4 = vadd.f32 %v4786_v5, %v4513_v34 }
0x4269   :  { %v4516_v51 = vmax.f32 %v4514_v4, 0.0 }
0x426b   :  { %4774 = vmatmul.msk.f32.vlgmr.msrb.gmra.mxu1 %vm567_vm10, %v4516_v51 }
0x42e8   :  { %v4545_v62 = vpop.f32.mrf.mxu1 }
0x42e9   :  { %v4546_v19 = vadd.f32 %v4787_v46, %v4545_v62 }
0x42eb   :  { %4549 = vst.msk [vmem:[#allocation11] sm:$0xff] %vm4548_vm0, %v4546_v19 }
0x42ec   :  { %4560 = dma.vmem_to_hbm [thread:$0]  %s4556_s20, 128, %s4558_s12, [#allocation6]  }
0x42ed   :  { %5366 = dma.done.wait [#allocation6], 128  }
0x42ee   :  { %5367 = vsyncadd [#allocation6], 4294967168 }
0x42ef   :  { %4565 = vsyncpa [#allocation5], 1 }
0x42f0   :  { %4566 = vsyncpa [#allocation9], 1 }
0x42f1   :  { %4567 = vsyncpa [#allocation6], 1 }
0x42f2   :  { %4568 = vsyncpa [#allocation7], 1 }

</bundles_post_ra>
